<compile_context>
chip_gen: v7x
topology: tpu7x:2x2x1
jax: 0.10.0
libtpu: 0.0.40
codegen_flags: <defaults>
</compile_context>

<pallas_src>
import functools
import math

import jax
import jax.numpy as jnp
from jax.experimental import pallas as pl
from jax.experimental.pallas import tpu as pltpu


def _round_up(x, m):
    return ((x + m - 1) // m) * m


# ----------------------------------------------------------------------------
# Pallas kernels
# ----------------------------------------------------------------------------
def _conv_kernel(x_ref, w_ref, scale_ref, bias_ref, y_ref):
    """One batch element: Y = relu((X @ W) * scale + bias)."""
    acc = jnp.dot(x_ref[0], w_ref[...], preferred_element_type=jnp.float32)
    y = acc * scale_ref[...] + bias_ref[...]
    y_ref[0] = jnp.maximum(y, 0.0).astype(y_ref.dtype)


def _conv_pool_kernel(x_ref, w_ref, scale_ref, bias_ref, y_ref, psum_ref, *,
                      rows):
    """Conv matmul + BN + ReLU, plus per-batch spatial-sum accumulator.

    Grid is (N, num_row_blocks); psum_ref is grid-resident across the row
    blocks ("arbitrary" axis) and holds sum over all valid rows (masked iota
    handles the ragged last block), i.e. the un-normalized adaptive_avg_pool.
    """
    j = pl.program_id(1)
    tm = x_ref.shape[1]
    acc = jnp.dot(x_ref[0], w_ref[...], preferred_element_type=jnp.float32)
    y = jnp.maximum(acc * scale_ref[...] + bias_ref[...], 0.0)
    y_ref[0] = y.astype(y_ref.dtype)

    row = jax.lax.broadcasted_iota(jnp.int32, y.shape, 0) + j * tm
    part = jnp.sum(jnp.where(row < rows, y, 0.0), axis=0, keepdims=True)

    @pl.when(j == 0)
    def _():
        psum_ref[...] = jnp.zeros_like(psum_ref)

    psum_ref[0] = psum_ref[0] + part


def _conv3_heads_kernel(x_ref, w_ref, scale_ref, bias_ref, psum1_ref,
                        clsw_ref, clsb_ref, w1_ref, b1_ref, w2_ref, b2_ref,
                        o_ref, *, inv_s1, inv_s3):
    """conv3 (matmul + BN + ReLU) fused with both heads, one batch element.

    x3 is pooled in-register (never written to HBM); conv1's pooled sums come
    in via psum1_ref.  Heads: Linear(32,1)+Sigmoid gate, feature*scores,
    Linear(128,64)+ReLU, Linear(64,2), Softmax(dim=1).
    """
    acc = jnp.dot(x_ref[0], w_ref[...], preferred_element_type=jnp.float32)
    x3 = jnp.maximum(acc * scale_ref[...] + bias_ref[...], 0.0)   # (R, 128) f32

    feat = jnp.sum(x3, axis=0, keepdims=True) * inv_s3            # (1, 128)
    score = psum1_ref[0] * inv_s1                                 # (1, 32)

    logit = (jnp.sum(score * clsw_ref[...], axis=-1, keepdims=True)
             + clsb_ref[...])                                     # (1, 1)
    scores = jax.nn.sigmoid(logit)

    h = feat * scores                                             # (1, 128)
    h1 = jnp.dot(h, w1_ref[...], preferred_element_type=jnp.float32) + b1_ref[...]
    h1 = jnp.maximum(h1, 0.0)
    logits = (jnp.dot(h1, w2_ref[...], preferred_element_type=jnp.float32)
              + b2_ref[...])
    logits = logits - jnp.max(logits, axis=-1, keepdims=True)
    e = jnp.exp(logits)
    o_ref[0] = e * pl.reciprocal(jnp.sum(e, axis=-1, keepdims=True),
                                 approx=False)


# ----------------------------------------------------------------------------
# Channels-last im2col (XLA-side strided slices; no K zero-padding)
# ----------------------------------------------------------------------------
def _im2col3d_cl(x, k, s, p):
    """x: (N, D, H, W, C) -> cols (N, Do*Ho*Wo, k^3*C), plus (Do, Ho, Wo)."""
    N, D, H, W, C = x.shape
    if p:
        x = jnp.pad(x, ((0, 0), (p, p), (p, p), (p, p), (0, 0)))
    Do = (D + 2 * p - k) // s + 1
    Ho = (H + 2 * p - k) // s + 1
    Wo = (W + 2 * p - k) // s + 1
    pats = []
    for kd in range(k):
        for kh in range(k):
            for kw in range(k):
                pats.append(jax.lax.slice(
                    x, (0, kd, kh, kw, 0),
                    (N, kd + (Do - 1) * s + 1, kh + (Ho - 1) * s + 1,
                     kw + (Wo - 1) * s + 1, C),
                    (1, s, s, s, 1)))
    cols = jnp.concatenate(pats, axis=-1)            # (N, Do, Ho, Wo, k^3*C)
    return cols.reshape(N, Do * Ho * Wo, k ** 3 * C), (Do, Ho, Wo)


def _fold_bn(conv_b, bn):
    gamma, beta, mean, var, eps = bn
    rstd = gamma / jnp.sqrt(var + eps)
    scale = rstd.astype(jnp.float32)
    bias = (beta + (conv_b - mean) * rstd).astype(jnp.float32)
    return scale, bias


def _w2d(w, k, cin, cout):
    # (Cout, Cin, kd, kh, kw) -> (kd, kh, kw, Cin, Cout) -> (k^3*Cin, Cout)
    return (jnp.transpose(w, (2, 3, 4, 1, 0))
            .reshape(k ** 3 * cin, cout).astype(jnp.bfloat16))


# ----------------------------------------------------------------------------
# Conv layer wrappers
# ----------------------------------------------------------------------------
def conv_bn_relu(x, w, conv_b, bn, *, k, s, p):
    """Conv3d + folded BN + ReLU.  One full-extent row block per batch."""
    N = x.shape[0]
    Cout, Cin = w.shape[0], w.shape[1]
    scale, bias = _fold_bn(conv_b, bn)
    cols, (Do, Ho, Wo) = _im2col3d_cl(x, k, s, p)
    _, R, K = cols.shape
    y = pl.pallas_call(
        _conv_kernel,
        out_shape=jax.ShapeDtypeStruct((N, R, Cout), jnp.bfloat16),
        grid=(N,),
        in_specs=[
            pl.BlockSpec((1, R, K), lambda n: (n, 0, 0)),
            pl.BlockSpec((K, Cout), lambda n: (0, 0)),
            pl.BlockSpec((1, Cout), lambda n: (0, 0)),
            pl.BlockSpec((1, Cout), lambda n: (0, 0)),
        ],
        out_specs=pl.BlockSpec((1, R, Cout), lambda n: (n, 0, 0)),
        compiler_params=pltpu.CompilerParams(
            dimension_semantics=("parallel",),
            allow_input_fusion=[True, False, False, False]),
    )(cols, _w2d(w, k, Cin, Cout), scale.reshape(1, Cout), bias.reshape(1, Cout))
    return y.reshape(N, Do, Ho, Wo, Cout)


def conv_bn_relu_pool(x, w, conv_b, bn, *, k, s, p, tm=1024):
    """Conv3d + BN + ReLU with the adaptive_avg_pool sum fused as a second,
    grid-resident accumulator output (per batch element)."""
    N = x.shape[0]
    Cout, Cin = w.shape[0], w.shape[1]
    scale, bias = _fold_bn(conv_b, bn)
    cols, (Do, Ho, Wo) = _im2col3d_cl(x, k, s, p)
    _, R, K = cols.shape
    tm = min(tm, _round_up(R, 8))        # stays a multiple of 8
    jb = pl.cdiv(R, tm)
    y, psum = pl.pallas_call(
        functools.partial(_conv_pool_kernel, rows=R),
        out_shape=(jax.ShapeDtypeStruct((N, R, Cout), jnp.bfloat16),
                   jax.ShapeDtypeStruct((N, 1, Cout), jnp.float32)),
        grid=(N, jb),
        in_specs=[
            pl.BlockSpec((1, tm, K), lambda n, j: (n, j, 0)),
            pl.BlockSpec((K, Cout), lambda n, j: (0, 0)),
            pl.BlockSpec((1, Cout), lambda n, j: (0, 0)),
            pl.BlockSpec((1, Cout), lambda n, j: (0, 0)),
        ],
        out_specs=(pl.BlockSpec((1, tm, Cout), lambda n, j: (n, j, 0)),
                   pl.BlockSpec((1, 1, Cout), lambda n, j: (n, 0, 0))),
        compiler_params=pltpu.CompilerParams(
            dimension_semantics=("parallel", "arbitrary"),
            allow_input_fusion=[True, False, False, False]),
    )(cols, _w2d(w, k, Cin, Cout), scale.reshape(1, Cout), bias.reshape(1, Cout))
    return y.reshape(N, Do, Ho, Wo, Cout), psum


def conv3_and_heads(l1, psum1, params, *, inv_s1):
    """conv3 + norm3 + relu3 fused with both pooling / classifier heads."""
    N = l1.shape[0]
    w = params["conv3_w"]
    Cout, Cin, k = w.shape[0], w.shape[1], w.shape[2]
    scale, bias = _fold_bn(params["conv3_b"], params["bn3"])
    cols, _ = _im2col3d_cl(l1, k, 2, 3)
    _, R, K = cols.shape
    C1 = psum1.shape[-1]
    fc1_w, fc1_b = params["fc1_w"], params["fc1_b"]
    fc2_w, fc2_b = params["fc2_w"], params["fc2_b"]
    out = pl.pallas_call(
        functools.partial(_conv3_heads_kernel, inv_s1=inv_s1, inv_s3=1.0 / R),
        out_shape=jax.ShapeDtypeStruct((N, 1, 2), jnp.float32),
        grid=(N,),
        in_specs=[
            pl.BlockSpec((1, R, K), lambda n: (n, 0, 0)),
            pl.BlockSpec((K, Cout), lambda n: (0, 0)),
            pl.BlockSpec((1, Cout), lambda n: (0, 0)),
            pl.BlockSpec((1, Cout), lambda n: (0, 0)),
            pl.BlockSpec((1, 1, C1), lambda n: (n, 0, 0)),
            pl.BlockSpec(params["cls_w"].shape, lambda n: (0, 0)),
            pl.BlockSpec(params["cls_b"].shape, lambda n: (0, 0)),
            pl.BlockSpec(fc1_w.shape, lambda n: (0, 0)),
            pl.BlockSpec(fc1_b.shape, lambda n: (0, 0)),
            pl.BlockSpec(fc2_w.shape, lambda n: (0, 0)),
            pl.BlockSpec(fc2_b.shape, lambda n: (0, 0)),
        ],
        out_specs=pl.BlockSpec((1, 1, 2), lambda n: (n, 0, 0)),
        compiler_params=pltpu.CompilerParams(
            dimension_semantics=("parallel",),
            allow_input_fusion=[True] + [False] * 10),
    )(cols, _w2d(w, k, Cin, Cout), scale.reshape(1, Cout),
      bias.reshape(1, Cout), psum1,
      params["cls_w"], params["cls_b"], fc1_w, fc1_b, fc2_w, fc2_b)
    return out.reshape(N, 2)


# ----------------------------------------------------------------------------
# Parameter init (deterministic, synthetic; matmul-ready layouts)
# ----------------------------------------------------------------------------
FEATURE_DEPTH = [32, 64, 128, 128]


def _bn_params(c):
    return (jnp.ones(c), jnp.zeros(c), jnp.zeros(c), jnp.ones(c), 1e-5)


def init_params(key):
    ks = jax.random.split(key, 16)

    def conv_w(k_, cout, cin, ksz):
        fan_in = cin * ksz ** 3
        return jax.random.normal(k_, (cout, cin, ksz, ksz, ksz),
                                 jnp.float32) / math.sqrt(fan_in)

    def lin_w(k_, din, dout):
        return jax.random.normal(k_, (din, dout), jnp.float32) / math.sqrt(din)

    fd = FEATURE_DEPTH
    p = {}
    p["conv1_w"] = conv_w(ks[0], fd[0], 1, 3)
    p["conv1_b"] = 0.01 * jax.random.normal(ks[1], (fd[0],), jnp.float32)
    p["bn1"] = _bn_params(fd[0])
    p["conv2_w"] = conv_w(ks[2], fd[1], fd[0], 3)
    p["conv2_b"] = 0.01 * jax.random.normal(ks[3], (fd[1],), jnp.float32)
    p["bn2"] = _bn_params(fd[1])
    p["branch1_w"] = conv_w(ks[4], 64, 64, 3)
    p["branch1_b"] = 0.01 * jax.random.normal(ks[5], (64,), jnp.float32)
    p["bn_b1"] = _bn_params(64)
    p["conv3_w"] = conv_w(ks[6], fd[2], fd[1], 3)
    p["conv3_b"] = 0.01 * jax.random.normal(ks[7], (fd[2],), jnp.float32)
    p["bn3"] = _bn_params(fd[2])
    # classify: Linear(32, 1) + Sigmoid   (weight stored as (1, 32))
    p["cls_w"] = jnp.transpose(lin_w(ks[8], 32, 1))            # (1, 32)
    p["cls_b"] = 0.01 * jax.random.normal(ks[9], (1, 1), jnp.float32)
    # classify_scroe: Linear(128,64) -> ReLU -> Linear(64,2) -> Softmax(dim=1)
    p["fc1_w"] = lin_w(ks[10], 128, 64)                        # (128, 64)
    p["fc1_b"] = 0.01 * jax.random.normal(ks[11], (1, 64), jnp.float32)
    p["fc2_w"] = lin_w(ks[12], 64, 2)                          # (64, 2)
    p["fc2_b"] = 0.01 * jax.random.normal(ks[13], (1, 2), jnp.float32)
    return p


# ----------------------------------------------------------------------------
# BaseNet forward
# ----------------------------------------------------------------------------
def basenet_forward(x_nchw, params):
    # One-time NCDHW -> channels-last permute; bf16 operands for the MXU.
    x = jnp.transpose(x_nchw, (0, 2, 3, 4, 1)).astype(jnp.bfloat16)
    # conv1 -> norm1 -> relu1   (+ fused adaptive_avg_pool partial sums)
    x1, psum1 = conv_bn_relu_pool(x, params["conv1_w"], params["conv1_b"],
                                  params["bn1"], k=3, s=1, p=0, tm=1024)
    inv_s1 = 1.0 / (x1.shape[1] * x1.shape[2] * x1.shape[3])
    # conv2 -> norm2 -> relu2
    x2 = conv_bn_relu(x1, params["conv2_w"], params["conv2_b"],
                      params["bn2"], k=3, s=2, p=3)
    # branch1 -> norm -> relu
    l1 = conv_bn_relu(x2, params["branch1_w"], params["branch1_b"],
                      params["bn_b1"], k=3, s=2, p=1)
    # conv3 -> norm3 -> relu3 fused with avg-pool(x3), classify (sigmoid gate)
    # and classify_scroe (softmax).
    return conv3_and_heads(l1, psum1, params, inv_s1=inv_s1)


if __name__ == "__main__":
    key = jax.random.PRNGKey(0)
    k_in, k_par = jax.random.split(key)
    # Input: NCDHW, single-channel 3D volume.
    x = jax.random.normal(k_in, (2, 1, 16, 16, 16), jnp.float32)
    params = init_params(k_par)

    fwd = jax.jit(lambda inp: basenet_forward(inp, params))
    out = jax.block_until_ready(fwd(x))

    assert out.shape == (2, 2), out.shape
    assert bool(jnp.all(jnp.isfinite(out)))
    # softmax rows should sum to ~1
    assert bool(jnp.all(jnp.abs(jnp.sum(out, axis=1) - 1.0) < 1e-4))
    print("KERNEL_OK")
</pallas_src>

<mosaic_0001>
module attributes {stable_mosaic.version = 11 : i64} {
  func.func @_conv_pool_kernel(%arg0: i32, %arg1: i32, %arg2: memref<1x1024x27xbf16, #tpu.memory_space<vmem>>, %arg3: memref<27x32xbf16, #tpu.memory_space<vmem>>, %arg4: memref<1x32xf32, #tpu.memory_space<vmem>>, %arg5: memref<1x32xf32, #tpu.memory_space<vmem>>, %arg6: memref<1x1024x32xbf16, #tpu.memory_space<vmem>>, %arg7: memref<1x1x32xf32, #tpu.memory_space<vmem>>) attributes {dimension_semantics = [#tpu.dimension_semantics<parallel>, #tpu.dimension_semantics<arbitrary>], iteration_bounds = array<i64: 2, 3>, scalar_prefetch = 0 : i64, scratch_operands = 0 : i64, tpu.core_type = #tpu.core_type<tc>, window_params = [{transform_indices = @transform_0, window_bounds = array<i64: 1, 1024, 27>}, {pipeline_mode = #tpu.pipeline_mode<synchronous>, transform_indices = @transform_1, window_bounds = array<i64: 27, 32>}, {pipeline_mode = #tpu.pipeline_mode<synchronous>, transform_indices = @transform_2, window_bounds = array<i64: 1, 32>}, {pipeline_mode = #tpu.pipeline_mode<synchronous>, transform_indices = @transform_3, window_bounds = array<i64: 1, 32>}, {transform_indices = @transform_4, window_bounds = array<i64: 1, 1024, 32>}, {transform_indices = @transform_5, window_bounds = array<i64: 1, 1, 32>}]} {
    %c0 = arith.constant 0 : index
    %c0_0 = arith.constant 0 : index
    %c0_1 = arith.constant 0 : index
    %0 = vector.load %arg2[%c0, %c0_0, %c0_1] : memref<1x1024x27xbf16, #tpu.memory_space<vmem>>, vector<1x1024x27xbf16>
    %1 = vector.shape_cast %0 : vector<1x1024x27xbf16> to vector<1024x27xbf16>
    %c0_2 = arith.constant 0 : index
    %c0_3 = arith.constant 0 : index
    %2 = vector.load %arg3[%c0_2, %c0_3] : memref<27x32xbf16, #tpu.memory_space<vmem>>, vector<27x32xbf16>
    %cst = arith.constant dense<0.000000e+00> : vector<1024x32xf32>
    %3 = tpu.matmul %1, %2, %cst {dimension_numbers = #tpu.dot_dimension_numbers<[1], [0], [0], [1], [0, 0, 1, 1], [], []>} : vector<1024x27xbf16>, vector<27x32xbf16>, vector<1024x32xf32> -> vector<1024x32xf32>
    %c0_4 = arith.constant 0 : index
    %c0_5 = arith.constant 0 : index
    %4 = vector.load %arg4[%c0_4, %c0_5] : memref<1x32xf32, #tpu.memory_space<vmem>>, vector<1x32xf32>
    %5 = vector.broadcast %4 : vector<1x32xf32> to vector<1024x32xf32>
    %6 = arith.mulf %3, %5 : vector<1024x32xf32>
    %c0_6 = arith.constant 0 : index
    %c0_7 = arith.constant 0 : index
    %7 = vector.load %arg5[%c0_6, %c0_7] : memref<1x32xf32, #tpu.memory_space<vmem>>, vector<1x32xf32>
    %8 = vector.broadcast %7 : vector<1x32xf32> to vector<1024x32xf32>
    %9 = arith.addf %6, %8 : vector<1024x32xf32>
    %cst_8 = arith.constant 0.000000e+00 : f32
    %10 = vector.broadcast %cst_8 : f32 to vector<1024x32xf32>
    %11 = arith.maximumf %9, %10 : vector<1024x32xf32>
    %12 = arith.truncf %11 : vector<1024x32xf32> to vector<1024x32xbf16>
    %c0_9 = arith.constant 0 : index
    %c0_10 = arith.constant 0 : index
    %c0_11 = arith.constant 0 : index
    %13 = vector.load %arg6[%c0_9, %c0_10, %c0_11] : memref<1x1024x32xbf16, #tpu.memory_space<vmem>>, vector<1x1024x32xbf16>
    %14 = vector.shape_cast %13 : vector<1x1024x32xbf16> to vector<1024x32xbf16>
    %15 = vector.shape_cast %12 : vector<1024x32xbf16> to vector<1x1024x32xbf16>
    tpu.vector_store %arg6[%c0_9, %c0_10, %c0_11], %15 {strides = array<i32>} : memref<1x1024x32xbf16, #tpu.memory_space<vmem>>, vector<1x1024x32xbf16>,
    %16 = tpu.iota {dimensions = array<i32: 0>} : vector<1024x32xi32>
    %c1024_i32 = arith.constant 1024 : i32
    %17 = arith.muli %arg1, %c1024_i32 : i32
    %18 = vector.broadcast %17 : i32 to vector<1024x32xi32>
    %19 = arith.addi %16, %18 : vector<1024x32xi32>
    %c2744_i32 = arith.constant 2744 : i32
    %20 = vector.broadcast %c2744_i32 : i32 to vector<1024x32xi32>
    %21 = arith.cmpi slt, %19, %20 : vector<1024x32xi32>
    %cst_12 = arith.constant 0.000000e+00 : f32
    %22 = vector.broadcast %cst_12 : f32 to vector<1024x32xf32>
    %23 = arith.select %21, %11, %22 : vector<1024x32xi1>, vector<1024x32xf32>
    %cst_13 = arith.constant dense<0.000000e+00> : vector<32xf32>
    %24 = vector.multi_reduction <add>, %23, %cst_13 [0] : vector<1024x32xf32> to vector<32xf32>
    %25 = vector.shape_cast %24 : vector<32xf32> to vector<1x32xf32>
    %c0_i32 = arith.constant 0 : i32
    %26 = arith.cmpi eq, %arg1, %c0_i32 : i32
    %27 = arith.extui %26 : i1 to i32
    %c0_i32_14 = arith.constant 0 : i32
    %28 = arith.cmpi ne, %27, %c0_i32_14 : i32
    scf.if %28 {
      %cst_21 = arith.constant 0.000000e+00 : f32
      %35 = vector.broadcast %cst_21 : f32 to vector<1x1x32xf32>
      %c0_22 = arith.constant 0 : index
      %c0_23 = arith.constant 0 : index
      %c0_24 = arith.constant 0 : index
      %36 = vector.load %arg7[%c0_22, %c0_23, %c0_24] : memref<1x1x32xf32, #tpu.memory_space<vmem>>, vector<1x1x32xf32>
      tpu.vector_store %arg7[%c0_22, %c0_23, %c0_24], %35 {strides = array<i32>} : memref<1x1x32xf32, #tpu.memory_space<vmem>>, vector<1x1x32xf32>,
    } else {
    }
    %c0_15 = arith.constant 0 : index
    %c0_16 = arith.constant 0 : index
    %c0_17 = arith.constant 0 : index
    %29 = vector.load %arg7[%c0_15, %c0_16, %c0_17] : memref<1x1x32xf32, #tpu.memory_space<vmem>>, vector<1x1x32xf32>
    %30 = vector.shape_cast %29 : vector<1x1x32xf32> to vector<1x32xf32>
    %31 = arith.addf %30, %25 : vector<1x32xf32>
    %c0_18 = arith.constant 0 : index
    %c0_19 = arith.constant 0 : index
    %c0_20 = arith.constant 0 : index
    %32 = vector.load %arg7[%c0_18, %c0_19, %c0_20] : memref<1x1x32xf32, #tpu.memory_space<vmem>>, vector<1x1x32xf32>
    %33 = vector.shape_cast %32 : vector<1x1x32xf32> to vector<1x32xf32>
    %34 = vector.shape_cast %31 : vector<1x32xf32> to vector<1x1x32xf32>
    tpu.vector_store %arg7[%c0_18, %c0_19, %c0_20], %34 {strides = array<i32>} : memref<1x1x32xf32, #tpu.memory_space<vmem>>, vector<1x1x32xf32>,
    return
  }
  func.func @transform_0(%arg0: i32, %arg1: i32) -> (i32, i32, i32) {
    %c0_i32 = arith.constant 0 : i32
    %c0_i32_0 = arith.constant 0 : i32
    return %arg0, %arg1, %c0_i32 : i32, i32, i32
  }
  func.func @transform_1(%arg0: i32, %arg1: i32) -> (i32, i32) {
    %c0_i32 = arith.constant 0 : i32
    %c0_i32_0 = arith.constant 0 : i32
    %c0_i32_1 = arith.constant 0 : i32
    return %c0_i32, %c0_i32_0 : i32, i32
  }
  func.func @transform_2(%arg0: i32, %arg1: i32) -> (i32, i32) {
    %c0_i32 = arith.constant 0 : i32
    %c0_i32_0 = arith.constant 0 : i32
    %c0_i32_1 = arith.constant 0 : i32
    return %c0_i32, %c0_i32_0 : i32, i32
  }
  func.func @transform_3(%arg0: i32, %arg1: i32) -> (i32, i32) {
    %c0_i32 = arith.constant 0 : i32
    %c0_i32_0 = arith.constant 0 : i32
    %c0_i32_1 = arith.constant 0 : i32
    return %c0_i32, %c0_i32_0 : i32, i32
  }
  func.func @transform_4(%arg0: i32, %arg1: i32) -> (i32, i32, i32) {
    %c0_i32 = arith.constant 0 : i32
    %c0_i32_0 = arith.constant 0 : i32
    return %arg0, %arg1, %c0_i32 : i32, i32, i32
  }
  func.func @transform_5(%arg0: i32, %arg1: i32) -> (i32, i32, i32) {
    %c0_i32 = arith.constant 0 : i32
    %c0_i32_0 = arith.constant 0 : i32
    %c0_i32_1 = arith.constant 0 : i32
    return %arg0, %c0_i32, %c0_i32_0 : i32, i32, i32
  }
}

module attributes {stable_mosaic.version = 11 : i64} {
  func.func @_conv_kernel(%arg0: i32, %arg1: memref<1x729x864xbf16, #tpu.memory_space<vmem>>, %arg2: memref<864x64xbf16, #tpu.memory_space<vmem>>, %arg3: memref<1x64xf32, #tpu.memory_space<vmem>>, %arg4: memref<1x64xf32, #tpu.memory_space<vmem>>, %arg5: memref<1x729x64xbf16, #tpu.memory_space<vmem>>) attributes {dimension_semantics = [#tpu.dimension_semantics<parallel>], iteration_bounds = array<i64: 2>, scalar_prefetch = 0 : i64, scratch_operands = 0 : i64, tpu.core_type = #tpu.core_type<tc>, window_params = [{transform_indices = @transform_0, window_bounds = array<i64: 1, 729, 864>}, {pipeline_mode = #tpu.pipeline_mode<synchronous>, transform_indices = @transform_1, window_bounds = array<i64: 864, 64>}, {pipeline_mode = #tpu.pipeline_mode<synchronous>, transform_indices = @transform_2, window_bounds = array<i64: 1, 64>}, {pipeline_mode = #tpu.pipeline_mode<synchronous>, transform_indices = @transform_3, window_bounds = array<i64: 1, 64>}, {transform_indices = @transform_4, window_bounds = array<i64: 1, 729, 64>}]} {
    %c0 = arith.constant 0 : index
    %c0_0 = arith.constant 0 : index
    %c0_1 = arith.constant 0 : index
    %0 = vector.load %arg1[%c0, %c0_0, %c0_1] : memref<1x729x864xbf16, #tpu.memory_space<vmem>>, vector<1x729x864xbf16>
    %1 = vector.shape_cast %0 : vector<1x729x864xbf16> to vector<729x864xbf16>
    %c0_2 = arith.constant 0 : index
    %c0_3 = arith.constant 0 : index
    %2 = vector.load %arg2[%c0_2, %c0_3] : memref<864x64xbf16, #tpu.memory_space<vmem>>, vector<864x64xbf16>
    %cst = arith.constant dense<0.000000e+00> : vector<729x64xf32>
    %3 = tpu.matmul %1, %2, %cst {dimension_numbers = #tpu.dot_dimension_numbers<[1], [0], [0], [1], [0, 0, 1, 1], [], []>} : vector<729x864xbf16>, vector<864x64xbf16>, vector<729x64xf32> -> vector<729x64xf32>
    %c0_4 = arith.constant 0 : index
    %c0_5 = arith.constant 0 : index
    %4 = vector.load %arg3[%c0_4, %c0_5] : memref<1x64xf32, #tpu.memory_space<vmem>>, vector<1x64xf32>
    %5 = vector.broadcast %4 : vector<1x64xf32> to vector<729x64xf32>
    %6 = arith.mulf %3, %5 : vector<729x64xf32>
    %c0_6 = arith.constant 0 : index
    %c0_7 = arith.constant 0 : index
    %7 = vector.load %arg4[%c0_6, %c0_7] : memref<1x64xf32, #tpu.memory_space<vmem>>, vector<1x64xf32>
    %8 = vector.broadcast %7 : vector<1x64xf32> to vector<729x64xf32>
    %9 = arith.addf %6, %8 : vector<729x64xf32>
    %cst_8 = arith.constant 0.000000e+00 : f32
    %10 = vector.broadcast %cst_8 : f32 to vector<729x64xf32>
    %11 = arith.maximumf %9, %10 : vector<729x64xf32>
    %12 = arith.truncf %11 : vector<729x64xf32> to vector<729x64xbf16>
    %c0_9 = arith.constant 0 : index
    %c0_10 = arith.constant 0 : index
    %c0_11 = arith.constant 0 : index
    %13 = vector.load %arg5[%c0_9, %c0_10, %c0_11] : memref<1x729x64xbf16, #tpu.memory_space<vmem>>, vector<1x729x64xbf16>
    %14 = vector.shape_cast %13 : vector<1x729x64xbf16> to vector<729x64xbf16>
    %15 = vector.shape_cast %12 : vector<729x64xbf16> to vector<1x729x64xbf16>
    tpu.vector_store %arg5[%c0_9, %c0_10, %c0_11], %15 {strides = array<i32>} : memref<1x729x64xbf16, #tpu.memory_space<vmem>>, vector<1x729x64xbf16>,
    return
  }
  func.func @transform_0(%arg0: i32) -> (i32, i32, i32) {
    %c0_i32 = arith.constant 0 : i32
    %c0_i32_0 = arith.constant 0 : i32
    %c0_i32_1 = arith.constant 0 : i32
    return %arg0, %c0_i32, %c0_i32_0 : i32, i32, i32
  }
  func.func @transform_1(%arg0: i32) -> (i32, i32) {
    %c0_i32 = arith.constant 0 : i32
    %c0_i32_0 = arith.constant 0 : i32
    %c0_i32_1 = arith.constant 0 : i32
    return %c0_i32, %c0_i32_0 : i32, i32
  }
  func.func @transform_2(%arg0: i32) -> (i32, i32) {
    %c0_i32 = arith.constant 0 : i32
    %c0_i32_0 = arith.constant 0 : i32
    %c0_i32_1 = arith.constant 0 : i32
    return %c0_i32, %c0_i32_0 : i32, i32
  }
  func.func @transform_3(%arg0: i32) -> (i32, i32) {
    %c0_i32 = arith.constant 0 : i32
    %c0_i32_0 = arith.constant 0 : i32
    %c0_i32_1 = arith.constant 0 : i32
    return %c0_i32, %c0_i32_0 : i32, i32
  }
  func.func @transform_4(%arg0: i32) -> (i32, i32, i32) {
    %c0_i32 = arith.constant 0 : i32
    %c0_i32_0 = arith.constant 0 : i32
    %c0_i32_1 = arith.constant 0 : i32
    return %arg0, %c0_i32, %c0_i32_0 : i32, i32, i32
  }
}

module attributes {stable_mosaic.version = 11 : i64} {
  func.func @_conv_kernel(%arg0: i32, %arg1: memref<1x125x1728xbf16, #tpu.memory_space<vmem>>, %arg2: memref<1728x64xbf16, #tpu.memory_space<vmem>>, %arg3: memref<1x64xf32, #tpu.memory_space<vmem>>, %arg4: memref<1x64xf32, #tpu.memory_space<vmem>>, %arg5: memref<1x125x64xbf16, #tpu.memory_space<vmem>>) attributes {dimension_semantics = [#tpu.dimension_semantics<parallel>], iteration_bounds = array<i64: 2>, scalar_prefetch = 0 : i64, scratch_operands = 0 : i64, tpu.core_type = #tpu.core_type<tc>, window_params = [{transform_indices = @transform_0, window_bounds = array<i64: 1, 125, 1728>}, {pipeline_mode = #tpu.pipeline_mode<synchronous>, transform_indices = @transform_1, window_bounds = array<i64: 1728, 64>}, {pipeline_mode = #tpu.pipeline_mode<synchronous>, transform_indices = @transform_2, window_bounds = array<i64: 1, 64>}, {pipeline_mode = #tpu.pipeline_mode<synchronous>, transform_indices = @transform_3, window_bounds = array<i64: 1, 64>}, {transform_indices = @transform_4, window_bounds = array<i64: 1, 125, 64>}]} {
    %c0 = arith.constant 0 : index
    %c0_0 = arith.constant 0 : index
    %c0_1 = arith.constant 0 : index
    %0 = vector.load %arg1[%c0, %c0_0, %c0_1] : memref<1x125x1728xbf16, #tpu.memory_space<vmem>>, vector<1x125x1728xbf16>
    %1 = vector.shape_cast %0 : vector<1x125x1728xbf16> to vector<125x1728xbf16>
    %c0_2 = arith.constant 0 : index
    %c0_3 = arith.constant 0 : index
    %2 = vector.load %arg2[%c0_2, %c0_3] : memref<1728x64xbf16, #tpu.memory_space<vmem>>, vector<1728x64xbf16>
    %cst = arith.constant dense<0.000000e+00> : vector<125x64xf32>
    %3 = tpu.matmul %1, %2, %cst {dimension_numbers = #tpu.dot_dimension_numbers<[1], [0], [0], [1], [0, 0, 1, 1], [], []>} : vector<125x1728xbf16>, vector<1728x64xbf16>, vector<125x64xf32> -> vector<125x64xf32>
    %c0_4 = arith.constant 0 : index
    %c0_5 = arith.constant 0 : index
    %4 = vector.load %arg3[%c0_4, %c0_5] : memref<1x64xf32, #tpu.memory_space<vmem>>, vector<1x64xf32>
    %5 = vector.broadcast %4 : vector<1x64xf32> to vector<125x64xf32>
    %6 = arith.mulf %3, %5 : vector<125x64xf32>
    %c0_6 = arith.constant 0 : index
    %c0_7 = arith.constant 0 : index
    %7 = vector.load %arg4[%c0_6, %c0_7] : memref<1x64xf32, #tpu.memory_space<vmem>>, vector<1x64xf32>
    %8 = vector.broadcast %7 : vector<1x64xf32> to vector<125x64xf32>
    %9 = arith.addf %6, %8 : vector<125x64xf32>
    %cst_8 = arith.constant 0.000000e+00 : f32
    %10 = vector.broadcast %cst_8 : f32 to vector<125x64xf32>
    %11 = arith.maximumf %9, %10 : vector<125x64xf32>
    %12 = arith.truncf %11 : vector<125x64xf32> to vector<125x64xbf16>
    %c0_9 = arith.constant 0 : index
    %c0_10 = arith.constant 0 : index
    %c0_11 = arith.constant 0 : index
    %13 = vector.load %arg5[%c0_9, %c0_10, %c0_11] : memref<1x125x64xbf16, #tpu.memory_space<vmem>>, vector<1x125x64xbf16>
    %14 = vector.shape_cast %13 : vector<1x125x64xbf16> to vector<125x64xbf16>
    %15 = vector.shape_cast %12 : vector<125x64xbf16> to vector<1x125x64xbf16>
    tpu.vector_store %arg5[%c0_9, %c0_10, %c0_11], %15 {strides = array<i32>} : memref<1x125x64xbf16, #tpu.memory_space<vmem>>, vector<1x125x64xbf16>,
    return
  }
  func.func @transform_0(%arg0: i32) -> (i32, i32, i32) {
    %c0_i32 = arith.constant 0 : i32
    %c0_i32_0 = arith.constant 0 : i32
    %c0_i32_1 = arith.constant 0 : i32
    return %arg0, %c0_i32, %c0_i32_0 : i32, i32, i32
  }
  func.func @transform_1(%arg0: i32) -> (i32, i32) {
    %c0_i32 = arith.constant 0 : i32
    %c0_i32_0 = arith.constant 0 : i32
    %c0_i32_1 = arith.constant 0 : i32
    return %c0_i32, %c0_i32_0 : i32, i32
  }
  func.func @transform_2(%arg0: i32) -> (i32, i32) {
    %c0_i32 = arith.constant 0 : i32
    %c0_i32_0 = arith.constant 0 : i32
    %c0_i32_1 = arith.constant 0 : i32
    return %c0_i32, %c0_i32_0 : i32, i32
  }
  func.func @transform_3(%arg0: i32) -> (i32, i32) {
    %c0_i32 = arith.constant 0 : i32
    %c0_i32_0 = arith.constant 0 : i32
    %c0_i32_1 = arith.constant 0 : i32
    return %c0_i32, %c0_i32_0 : i32, i32
  }
  func.func @transform_4(%arg0: i32) -> (i32, i32, i32) {
    %c0_i32 = arith.constant 0 : i32
    %c0_i32_0 = arith.constant 0 : i32
    %c0_i32_1 = arith.constant 0 : i32
    return %arg0, %c0_i32, %c0_i32_0 : i32, i32, i32
  }
}

module attributes {stable_mosaic.version = 11 : i64} {
  func.func @_conv3_heads_kernel(%arg0: i32, %arg1: memref<1x125x1728xbf16, #tpu.memory_space<vmem>>, %arg2: memref<1728x128xbf16, #tpu.memory_space<vmem>>, %arg3: memref<1x128xf32, #tpu.memory_space<vmem>>, %arg4: memref<1x128xf32, #tpu.memory_space<vmem>>, %arg5: memref<1x1x32xf32, #tpu.memory_space<vmem>>, %arg6: memref<1x32xf32, #tpu.memory_space<vmem>>, %arg7: memref<1x1xf32, #tpu.memory_space<vmem>>, %arg8: memref<128x64xf32, #tpu.memory_space<vmem>>, %arg9: memref<1x64xf32, #tpu.memory_space<vmem>>, %arg10: memref<64x2xf32, #tpu.memory_space<vmem>>, %arg11: memref<1x2xf32, #tpu.memory_space<vmem>>, %arg12: memref<1x1x2xf32, #tpu.memory_space<vmem>>) attributes {dimension_semantics = [#tpu.dimension_semantics<parallel>], iteration_bounds = array<i64: 2>, scalar_prefetch = 0 : i64, scratch_operands = 0 : i64, tpu.core_type = #tpu.core_type<tc>, window_params = [{transform_indices = @transform_0, window_bounds = array<i64: 1, 125, 1728>}, {pipeline_mode = #tpu.pipeline_mode<synchronous>, transform_indices = @transform_1, window_bounds = array<i64: 1728, 128>}, {pipeline_mode = #tpu.pipeline_mode<synchronous>, transform_indices = @transform_2, window_bounds = array<i64: 1, 128>}, {pipeline_mode = #tpu.pipeline_mode<synchronous>, transform_indices = @transform_3, window_bounds = array<i64: 1, 128>}, {transform_indices = @transform_4, window_bounds = array<i64: 1, 1, 32>}, {pipeline_mode = #tpu.pipeline_mode<synchronous>, transform_indices = @transform_5, window_bounds = array<i64: 1, 32>}, {pipeline_mode = #tpu.pipeline_mode<synchronous>, transform_indices = @transform_6, window_bounds = array<i64: 1, 1>}, {pipeline_mode = #tpu.pipeline_mode<synchronous>, transform_indices = @transform_7, window_bounds = array<i64: 128, 64>}, {pipeline_mode = #tpu.pipeline_mode<synchronous>, transform_indices = @transform_8, window_bounds = array<i64: 1, 64>}, {pipeline_mode = #tpu.pipeline_mode<synchronous>, transform_indices = @transform_9, window_bounds = array<i64: 64, 2>}, {pipeline_mode = #tpu.pipeline_mode<synchronous>, transform_indices = @transform_10, window_bounds = array<i64: 1, 2>}, {transform_indices = @transform_11, window_bounds = array<i64: 1, 1, 2>}]} {
    %c0 = arith.constant 0 : index
    %c0_0 = arith.constant 0 : index
    %c0_1 = arith.constant 0 : index
    %0 = vector.load %arg1[%c0, %c0_0, %c0_1] : memref<1x125x1728xbf16, #tpu.memory_space<vmem>>, vector<1x125x1728xbf16>
    %1 = vector.shape_cast %0 : vector<1x125x1728xbf16> to vector<125x1728xbf16>
    %c0_2 = arith.constant 0 : index
    %c0_3 = arith.constant 0 : index
    %2 = vector.load %arg2[%c0_2, %c0_3] : memref<1728x128xbf16, #tpu.memory_space<vmem>>, vector<1728x128xbf16>
    %cst = arith.constant dense<0.000000e+00> : vector<125x128xf32>
    %3 = tpu.matmul %1, %2, %cst {dimension_numbers = #tpu.dot_dimension_numbers<[1], [0], [0], [1], [0, 0, 1, 1], [], []>} : vector<125x1728xbf16>, vector<1728x128xbf16>, vector<125x128xf32> -> vector<125x128xf32>
    %c0_4 = arith.constant 0 : index
    %c0_5 = arith.constant 0 : index
    %4 = vector.load %arg3[%c0_4, %c0_5] : memref<1x128xf32, #tpu.memory_space<vmem>>, vector<1x128xf32>
    %5 = vector.broadcast %4 : vector<1x128xf32> to vector<125x128xf32>
    %6 = arith.mulf %3, %5 : vector<125x128xf32>
    %c0_6 = arith.constant 0 : index
    %c0_7 = arith.constant 0 : index
    %7 = vector.load %arg4[%c0_6, %c0_7] : memref<1x128xf32, #tpu.memory_space<vmem>>, vector<1x128xf32>
    %8 = vector.broadcast %7 : vector<1x128xf32> to vector<125x128xf32>
    %9 = arith.addf %6, %8 : vector<125x128xf32>
    %cst_8 = arith.constant 0.000000e+00 : f32
    %10 = vector.broadcast %cst_8 : f32 to vector<125x128xf32>
    %11 = arith.maximumf %9, %10 : vector<125x128xf32>
    %cst_9 = arith.constant dense<0.000000e+00> : vector<128xf32>
    %12 = vector.multi_reduction <add>, %11, %cst_9 [0] : vector<125x128xf32> to vector<128xf32>
    %13 = vector.shape_cast %12 : vector<128xf32> to vector<1x128xf32>
    %cst_10 = arith.constant 8.000000e-03 : f32
    %14 = vector.broadcast %cst_10 : f32 to vector<1x128xf32>
    %15 = arith.mulf %13, %14 : vector<1x128xf32>
    %c0_11 = arith.constant 0 : index
    %c0_12 = arith.constant 0 : index
    %c0_13 = arith.constant 0 : index
    %16 = vector.load %arg5[%c0_11, %c0_12, %c0_13] : memref<1x1x32xf32, #tpu.memory_space<vmem>>, vector<1x1x32xf32>
    %17 = vector.shape_cast %16 : vector<1x1x32xf32> to vector<1x32xf32>
    %cst_14 = arith.constant 3.644315E-4 : f32
    %18 = vector.broadcast %cst_14 : f32 to vector<1x32xf32>
    %19 = arith.mulf %17, %18 : vector<1x32xf32>
    %c0_15 = arith.constant 0 : index
    %c0_16 = arith.constant 0 : index
    %20 = vector.load %arg6[%c0_15, %c0_16] : memref<1x32xf32, #tpu.memory_space<vmem>>, vector<1x32xf32>
    %21 = arith.mulf %19, %20 : vector<1x32xf32>
    %cst_17 = arith.constant dense<0.000000e+00> : vector<1xf32>
    %22 = vector.multi_reduction <add>, %21, %cst_17 [1] : vector<1x32xf32> to vector<1xf32>
    %23 = vector.shape_cast %22 : vector<1xf32> to vector<1x1xf32>
    %c0_18 = arith.constant 0 : index
    %c0_19 = arith.constant 0 : index
    %24 = vector.load %arg7[%c0_18, %c0_19] : memref<1x1xf32, #tpu.memory_space<vmem>>, vector<1x1xf32>
    %25 = arith.addf %23, %24 : vector<1x1xf32>
    %26 = arith.negf %25 : vector<1x1xf32>
    %27 = math.exp %26 : vector<1x1xf32>
    %cst_20 = arith.constant 1.000000e+00 : f32
    %28 = vector.broadcast %cst_20 : f32 to vector<1x1xf32>
    %29 = arith.addf %28, %27 : vector<1x1xf32>
    %30 = arith.divf %28, %29 : vector<1x1xf32>
    %31 = vector.broadcast %30 : vector<1x1xf32> to vector<1x128xf32>
    %32 = arith.mulf %15, %31 : vector<1x128xf32>
    %c0_21 = arith.constant 0 : index
    %c0_22 = arith.constant 0 : index
    %33 = vector.load %arg8[%c0_21, %c0_22] : memref<128x64xf32, #tpu.memory_space<vmem>>, vector<128x64xf32>
    %cst_23 = arith.constant dense<0.000000e+00> : vector<1x64xf32>
    %34 = tpu.matmul %32, %33, %cst_23 {dimension_numbers = #tpu.dot_dimension_numbers<[1], [0], [0], [1], [0, 0, 1, 1], [], []>} : vector<1x128xf32>, vector<128x64xf32>, vector<1x64xf32> -> vector<1x64xf32>
    %c0_24 = arith.constant 0 : index
    %c0_25 = arith.constant 0 : index
    %35 = vector.load %arg9[%c0_24, %c0_25] : memref<1x64xf32, #tpu.memory_space<vmem>>, vector<1x64xf32>
    %36 = arith.addf %34, %35 : vector<1x64xf32>
    %cst_26 = arith.constant 0.000000e+00 : f32
    %37 = vector.broadcast %cst_26 : f32 to vector<1x64xf32>
    %38 = arith.maximumf %36, %37 : vector<1x64xf32>
    %c0_27 = arith.constant 0 : index
    %c0_28 = arith.constant 0 : index
    %39 = vector.load %arg10[%c0_27, %c0_28] : memref<64x2xf32, #tpu.memory_space<vmem>>, vector<64x2xf32>
    %cst_29 = arith.constant dense<0.000000e+00> : vector<1x2xf32>
    %40 = tpu.matmul %38, %39, %cst_29 {dimension_numbers = #tpu.dot_dimension_numbers<[1], [0], [0], [1], [0, 0, 1, 1], [], []>} : vector<1x64xf32>, vector<64x2xf32>, vector<1x2xf32> -> vector<1x2xf32>
    %c0_30 = arith.constant 0 : index
    %c0_31 = arith.constant 0 : index
    %41 = vector.load %arg11[%c0_30, %c0_31] : memref<1x2xf32, #tpu.memory_space<vmem>>, vector<1x2xf32>
    %42 = arith.addf %40, %41 : vector<1x2xf32>
    %cst_32 = arith.constant dense<0xFF800000> : vector<1xf32>
    %43 = vector.multi_reduction <maximumf>, %42, %cst_32 [1] : vector<1x2xf32> to vector<1xf32>
    %44 = vector.shape_cast %43 : vector<1xf32> to vector<1x1xf32>
    %45 = vector.broadcast %44 : vector<1x1xf32> to vector<1x2xf32>
    %46 = arith.subf %42, %45 : vector<1x2xf32>
    %47 = math.exp %46 : vector<1x2xf32>
    %cst_33 = arith.constant dense<0.000000e+00> : vector<1xf32>
    %48 = vector.multi_reduction <add>, %47, %cst_33 [1] : vector<1x2xf32> to vector<1xf32>
    %49 = vector.shape_cast %48 : vector<1xf32> to vector<1x1xf32>
    %50 = tpu.reciprocal %49 : vector<1x1xf32> -> vector<1x1xf32>
    %51 = vector.broadcast %50 : vector<1x1xf32> to vector<1x2xf32>
    %52 = arith.mulf %47, %51 : vector<1x2xf32>
    %c0_34 = arith.constant 0 : index
    %c0_35 = arith.constant 0 : index
    %c0_36 = arith.constant 0 : index
    %53 = vector.load %arg12[%c0_34, %c0_35, %c0_36] : memref<1x1x2xf32, #tpu.memory_space<vmem>>, vector<1x1x2xf32>
    %54 = vector.shape_cast %53 : vector<1x1x2xf32> to vector<1x2xf32>
    %55 = vector.shape_cast %52 : vector<1x2xf32> to vector<1x1x2xf32>
    tpu.vector_store %arg12[%c0_34, %c0_35, %c0_36], %55 {strides = array<i32>} : memref<1x1x2xf32, #tpu.memory_space<vmem>>, vector<1x1x2xf32>,
    return
  }
  func.func @transform_0(%arg0: i32) -> (i32, i32, i32) {
    %c0_i32 = arith.constant 0 : i32
    %c0_i32_0 = arith.constant 0 : i32
    %c0_i32_1 = arith.constant 0 : i32
    return %arg0, %c0_i32, %c0_i32_0 : i32, i32, i32
  }
  func.func @transform_1(%arg0: i32) -> (i32, i32) {
    %c0_i32 = arith.constant 0 : i32
    %c0_i32_0 = arith.constant 0 : i32
    %c0_i32_1 = arith.constant 0 : i32
    return %c0_i32, %c0_i32_0 : i32, i32
  }
  func.func @transform_2(%arg0: i32) -> (i32, i32) {
    %c0_i32 = arith.constant 0 : i32
    %c0_i32_0 = arith.constant 0 : i32
    %c0_i32_1 = arith.constant 0 : i32
    return %c0_i32, %c0_i32_0 : i32, i32
  }
  func.func @transform_3(%arg0: i32) -> (i32, i32) {
    %c0_i32 = arith.constant 0 : i32
    %c0_i32_0 = arith.constant 0 : i32
    %c0_i32_1 = arith.constant 0 : i32
    return %c0_i32, %c0_i32_0 : i32, i32
  }
  func.func @transform_4(%arg0: i32) -> (i32, i32, i32) {
    %c0_i32 = arith.constant 0 : i32
    %c0_i32_0 = arith.constant 0 : i32
    %c0_i32_1 = arith.constant 0 : i32
    return %arg0, %c0_i32, %c0_i32_0 : i32, i32, i32
  }
  func.func @transform_5(%arg0: i32) -> (i32, i32) {
    %c0_i32 = arith.constant 0 : i32
    %c0_i32_0 = arith.constant 0 : i32
    %c0_i32_1 = arith.constant 0 : i32
    return %c0_i32, %c0_i32_0 : i32, i32
  }
  func.func @transform_6(%arg0: i32) -> (i32, i32) {
    %c0_i32 = arith.constant 0 : i32
    %c0_i32_0 = arith.constant 0 : i32
    %c0_i32_1 = arith.constant 0 : i32
    return %c0_i32, %c0_i32_0 : i32, i32
  }
  func.func @transform_7(%arg0: i32) -> (i32, i32) {
    %c0_i32 = arith.constant 0 : i32
    %c0_i32_0 = arith.constant 0 : i32
    %c0_i32_1 = arith.constant 0 : i32
    return %c0_i32, %c0_i32_0 : i32, i32
  }
  func.func @transform_8(%arg0: i32) -> (i32, i32) {
    %c0_i32 = arith.constant 0 : i32
    %c0_i32_0 = arith.constant 0 : i32
    %c0_i32_1 = arith.constant 0 : i32
    return %c0_i32, %c0_i32_0 : i32, i32
  }
  func.func @transform_9(%arg0: i32) -> (i32, i32) {
    %c0_i32 = arith.constant 0 : i32
    %c0_i32_0 = arith.constant 0 : i32
    %c0_i32_1 = arith.constant 0 : i32
    return %c0_i32, %c0_i32_0 : i32, i32
  }
  func.func @transform_10(%arg0: i32) -> (i32, i32) {
    %c0_i32 = arith.constant 0 : i32
    %c0_i32_0 = arith.constant 0 : i32
    %c0_i32_1 = arith.constant 0 : i32
    return %c0_i32, %c0_i32_0 : i32, i32
  }
  func.func @transform_11(%arg0: i32) -> (i32, i32, i32) {
    %c0_i32 = arith.constant 0 : i32
    %c0_i32_0 = arith.constant 0 : i32
    %c0_i32_1 = arith.constant 0 : i32
    return %arg0, %c0_i32, %c0_i32_0 : i32, i32, i32
  }
}

</mosaic_0001>

<bundles_post_ra>
// kernel: _lambda_.4
= control target key start
LH: loop header
LB: loop body
LE: loop exit
PB: predicated region body
PF: predicated region fallthrough
CT: control target
= control target key end

     0   :  { %s4796_s18 = smov 0   ;;  %s4798_s19 = smov 0   ;;  %s6770_s0 = inlined_call_operand.vmem [shape: bf16[2,2744,27], index: 0, kind: input, shape index: {}]   ;;  %s6771_s1 = inlined_call_operand.vmem [shape: bf16[27,32], index: 1, kind: input, shape index: {}]   ;;  %s6772_s2 = inlined_call_operand.vmem [shape: f32[1,32], index: 2, kind: input, shape index: {}]   ;;  %s6773_s3 = inlined_call_operand.vmem [shape: f32[1,32], index: 3, kind: input, shape index: {}]   ;;  %s6774_s4 = inlined_call_operand.vmem [shape: bf16[2,2744,32], index: 4, kind: output, shape index: {0}]   ;;  %s6775_s5 = inlined_call_operand.vmem [shape: f32[2,1,32], index: 5, kind: output, shape index: {1}]  }
   0x1   :  { %s4800_s20 = smov 0   ;;  %s4802_s21 = smov 0  }
   0x2   :  { %s4804_s22 = smov 0   ;;  %s4806_s23 = smov 0  }
   0x3   :  { %s4808_s24 = smov 0  }
   0x4 LB: > { %s25_s25 = sadd.s32 1, %s4722_s22  ;;  %s28_s26 = sadd.s32 1, %s4726_s23  ;;  %s4730_s24 = sphi %s4808_s24, %s16_s24   ;;  %s4726_s23 = sphi %s4806_s23, %s6878_s23   ;;  %s4722_s22 = sphi %s4804_s22, %s6877_s22   ;;  %s4718_s21 = sphi %s4802_s21, %s6876_s21   ;;  %s4714_s20 = sphi %s4800_s20, %s6875_s20   ;;  %s4710_s19 = sphi %s4798_s19, %s6874_s19   ;;  %s4706_s18 = sphi %s4796_s18, %s6873_s18  }
   0x5   : > { %p26_p0 = scmp.ge.s32.totalorder %s25_s25, 3  ;;  %s3831_s27 = sadd.s32 4294967295, %s4730_s24  }
   0x6   : > { %p138_p1 = scmp.ne.s32.totalorder %s4710_s19, %s4706_s18  ;;  %p139_p2 = scmp.eq.s32.totalorder %s3831_s27, 5 }
   0x7   : > { %s6880_s25 = smov (%p26_p0, %s25_s25), 0  ;;  %s6882_s26 = smov (!%p26_p0, %s28_s26), %s4726_s23 }
   0x8   : > { %s124_s28 = ssub.s32 %s4722_s22, %s6880_s25  ;;  %p30_p3 = scmp.ge.s32.totalorder %s6882_s26, 2 }
   0x9   : > { %p3835_p4 = scmp.ge.s32.totalorder %s4730_s24, 1  ;;  %p4842_p5 = por %p139_p2, %p138_p1 }
   0xa   : > { %p219_p6 = scmp.lt.s32.totalorder %s4730_s24, 7  ;;  %s6884_s26 = smov (%p30_p3, %s6882_s26), 0 }
   0xb   : > { %s123_s30 = ssub.s32 %s4726_s23, %s6884_s26  ;;  %s128_s7 = sadd.s32 1, %s4710_s19 }
   0xc   : > { %p220_p7 = pnand %p3835_p4, %p219_p6  ;;  %s125_s6 = sor.u32 %s124_s28, %s123_s30 }
   0xd   : > { %p126_p8 = scmp.eq.s32.totalorder %s125_s6, 0 }
   0xe   : > { %223 = sbr.rel (%p220_p7) target bundleno = 648 (0x288), region = 36 }
   0xf   : > { %s4853_s8 = scalar_select %p126_p8, %s4710_s19, %s128_s7  }
  0x15   : > { %v4574_v0 = vld [vmem:[%s6771_s1] sm:$0xff]   ;;  %vm940_vm0 = vcmask 1044480   ;;  %v4575_v1 = vld [vmem:[%s6771_s1 + $0x8] sm:$0x3f]   ;;  %vm941_vm1 = vcmask 1045504   ;;  %s4862_s13 = sshll.u32 %s4714_s20, 7 }
  0x16   : > { %4314 = vmatprep.subr.bf16.mxu0 %v4574_v0  ;;  %p262_p9 = scmp.lt.s32.totalorder %s4718_s21, 1  ;;  %4446 = vmatprep.subr.bf16.mxu1 %v4574_v0  ;;  %v4764_v2 = vmov 65535   ;;  %p264_p10 = scmp.lt.s32.totalorder %s4862_s13, 342  ;;  %vm747_vm2 = vcmask 220160   ;;  %vm2402_vm4 = vcmask 257024   ;;  %vm3046_vm7 = vcmask 261120  }
  0x17   : > { %4315 = vmatpush3.bf16.msra.mxu0 %v4574_v0  ;;  %v942_v3 = vsel %vm940_vm0, 4294967295, %v4764_v2  ;;  %4448 = vmatpush3.bf16.msra.mxu1 %v4574_v0  ;;  %s4099_s11 = sshll.u32 %s4714_s20, 10  ;;  %p4100_p11 = scmp.ne.s32.totalorder %s4714_s20, 0 }
  0x18   : > { %v943_v4 = vsel %vm941_vm1, %v942_v3, 0  ;;  %s263_s14 = scalar_select %p262_p9, %s4718_s21, 1 }
  0x19   : > { %v945_v5 = vand.u32 %v4575_v1, %v943_v4  ;;  %s265_s15 = scalar_select %p264_p10, %s4862_s13, 342 }
  0x1a   : > { %s4450_s16 = smul.u32 343, %s263_s14  ;;  %s4871_s28 = scalar_lea.vmem %s6775_s5, %s263_s14 }
  0x1b   : > { %4316 = vmatprep.subr.bf16.mxu0 %v945_v5  ;;  %4447 = vmatprep.subr.bf16.mxu1 %v945_v5 }
  0x1c   : > { %4317 = vmatpush3.bf16.msra.mxu0 %v945_v5  ;;  %s267_s30 = sadd.s32 %s4450_s16, %s265_s15  ;;  %4449 = vmatpush3.bf16.msra.mxu1 %v945_v5  ;;  %s249_s15 = sand.u32 1, %s4706_s18  }
  0x1d   : > { %s3838_s6 = sshll.u32 %s267_s30, 2  ;;  %s5257_s18 = sshll.u32 %s249_s15, 9 }
  0x1e   : > { %s4876_s10 = scalar_lea.vmem %s6770_s0, %s3838_s6  ;;  %s5299_s27 = scalar_lea.vmem [#allocation2], %s5257_s18  }
  0x1f   : > { %v4576_v6 = vld [vmem:[%s4876_s10] sm:$0xff]   ;;  %v4577_v7 = vld [vmem:[%s4876_s10 + $0x8] sm:$0xff]   ;;  %v4578_v8 = vld [vmem:[%s4876_s10 + $0x10] sm:$0xff]  }
  0x20   : > { %4318 = vmatprep.mubr.msk.bf16.mxu0 %vm747_vm2, %v4576_v6  ;;  %v4579_v9 = vld [vmem:[%s4876_s10 + $0x18] sm:$0xff]   ;;  %v4580_v10 = vld [vmem:[%s4876_s10 + $0x20] sm:$0xff]   ;;  %v4581_v11 = vld [vmem:[%s4876_s10 + $0x28] sm:$0xff]   ;;  %v2531_v6 = vlaneseq }
  0x21   : > { %4319 = vmatmul.mubr.msk.bf16.vlgmr.msra.gmra.mrb[0].mxu0 %vm747_vm2, %v4577_v7  ;;  %v4582_v12 = vld [vmem:[%s4876_s10 + $0x30] sm:$0xff]   ;;  %v4583_v13 = vld [vmem:[%s4876_s10 + $0x38] sm:$0xff]   ;;  %v4584_v14 = vld [vmem:[%s4876_s10 + $0x40] sm:$0xff]  }
  0x22   : > { %4322 = vmatprep.mubr.msk.bf16.mxu0 %vm747_vm2, %v4578_v8  ;;  %v4585_v15 = vld [vmem:[%s4876_s10 + $0x48] sm:$0xff]   ;;  %v4586_v16 = vld [vmem:[%s4876_s10 + $0x50] sm:$0xff]   ;;  %v4608_v17 = vld [vmem:[%s4876_s10 + $0x100] sm:$0xff]   ;;  %v5006_v7 = vshrl.u32 %v2531_v6, 7 }
  0x23   : > { %v4609_v18 = vld [vmem:[%s4876_s10 + $0x108] sm:$0xff]   ;;  %4382 = vmatprep.mubr.msk.bf16.mxu1 %vm747_vm2, %v4608_v17  ;;  %v4610_v19 = vld [vmem:[%s4876_s10 + $0x110] sm:$0xff]   ;;  %v4587_v20 = vld [vmem:[%s4876_s10 + $0x58] sm:$0xff]  }
  0x24   : > { %4383 = vmatmul.mubr.msk.bf16.vlgmr.msra.gmra.mrb[0].mxu1 %vm747_vm2, %v4609_v18  ;;  %v4588_v21 = vld [vmem:[%s4876_s10 + $0x60] sm:$0xff]   ;;  %v4611_v22 = vld [vmem:[%s4876_s10 + $0x118] sm:$0xff]   ;;  %v4589_v24 = vld [vmem:[%s4876_s10 + $0x68] sm:$0xff]   ;;  %v2534_v8 = vadd.s32 16, %v5006_v7  ;;  %v2568_v6 = vadd.s32 288, %v5006_v7 }
  0x25   : > { %4386 = vmatprep.mubr.msk.bf16.mxu1 %vm747_vm2, %v4610_v19  ;;  %v4612_v23 = vld [vmem:[%s4876_s10 + $0x120] sm:$0xff]   ;;  %v4590_v25 = vld [vmem:[%s4876_s10 + $0x70] sm:$0xff]   ;;  %v4613_v26 = vld [vmem:[%s4876_s10 + $0x128] sm:$0xff]  }
  0x26   : > { %v4614_v27 = vld [vmem:[%s4876_s10 + $0x130] sm:$0xff]   ;;  %v4591_v28 = vld [vmem:[%s4876_s10 + $0x78] sm:$0xff]   ;;  %v4592_v30 = vld [vmem:[%s4876_s10 + $0x80] sm:$0xff]  }
  0x27   : > { %v4615_v29 = vld [vmem:[%s4876_s10 + $0x138] sm:$0xff]   ;;  %v4616_v31 = vld [vmem:[%s4876_s10 + $0x140] sm:$0xff]   ;;  %v4593_v32 = vld [vmem:[%s4876_s10 + $0x88] sm:$0xff]  }
  0x28   : > { %v4617_v33 = vld [vmem:[%s4876_s10 + $0x148] sm:$0xff]   ;;  %v4594_v34 = vld [vmem:[%s4876_s10 + $0x90] sm:$0xff]   ;;  %v4595_v36 = vld [vmem:[%s4876_s10 + $0x98] sm:$0xff]  }
  0x29   : > { %4323 = vmatmul.mubr.msk.bf16.gmra.mrb[4].mxu0 %vm747_vm2, %v4579_v9  ;;  %v4618_v35 = vld [vmem:[%s4876_s10 + $0x150] sm:$0xff]   ;;  %v4619_v37 = vld [vmem:[%s4876_s10 + $0x158] sm:$0xff]   ;;  %v4596_v38 = vld [vmem:[%s4876_s10 + $0xa0] sm:$0xff]   ;;  %v2535_v9 = vadd.s32 24, %v5006_v7 }
  0x2a   : > { %4326 = vmatprep.mubr.msk.bf16.mxu0 %vm747_vm2, %v4580_v10  ;;  %v4620_v39 = vld [vmem:[%s4876_s10 + $0x160] sm:$0xff]   ;;  %v4597_v40 = vld [vmem:[%s4876_s10 + $0xa8] sm:$0xff]   ;;  %v4598_v42 = vld [vmem:[%s4876_s10 + $0xb0] sm:$0xff]   ;;  %v5011_v10 = vstv %s4099_s11 }
  0x2b   : > { %v4621_v41 = vld [vmem:[%s4876_s10 + $0x168] sm:$0xff]   ;;  %v4622_v43 = vld [vmem:[%s4876_s10 + $0x170] sm:$0xff]   ;;  %v4599_v44 = vld [vmem:[%s4876_s10 + $0xb8] sm:$0xff]   ;;  %v5023_v17 = vadd.s32 %v5011_v10, %v5006_v7  ;;  %v5026_v18 = vadd.s32 %v5011_v10, %v2535_v9 }
  0x2c   : > { %4387 = vmatmul.mubr.msk.bf16.gmra.mrb[4].mxu1 %vm747_vm2, %v4611_v22  ;;  %v4623_v45 = vld [vmem:[%s4876_s10 + $0x178] sm:$0xff]   ;;  %v4600_v46 = vld [vmem:[%s4876_s10 + $0xc0] sm:$0xff]   ;;  %v4601_v48 = vld [vmem:[%s4876_s10 + $0xc8] sm:$0xff]   ;;  %v2542_v22 = vadd.s32 80, %v5006_v7 }
  0x2d   : > { %4390 = vmatprep.mubr.msk.bf16.mxu1 %vm747_vm2, %v4612_v23  ;;  %v4624_v47 = vld [vmem:[%s4876_s10 + $0x180] sm:$0xff]   ;;  %v4625_v49 = vld [vmem:[%s4876_s10 + $0x188] sm:$0xff]   ;;  %v4602_v50 = vld [vmem:[%s4876_s10 + $0xd0] sm:$0xff]   ;;  %vm2790_vm3 = vcmp.lt.s32.totalorder %v5023_v17, 2744  ;;  %vm2793_vm8 = vcmp.lt.s32.totalorder %v5026_v18, 2744 }
  0x2e   : > { %v4626_v51 = vld [vmem:[%s4876_s10 + $0x190] sm:$0xff]   ;;  %v4603_v52 = vld [vmem:[%s4876_s10 + $0xd8] sm:$0xff]   ;;  %v4604_v54 = vld [vmem:[%s4876_s10 + $0xe0] sm:$0xff]  }
  0x2f   : > { %v4627_v53 = vld [vmem:[%s4876_s10 + $0x198] sm:$0xff]   ;;  %v4628_v55 = vld [vmem:[%s4876_s10 + $0x1a0] sm:$0xff]   ;;  %v4605_v56 = vld [vmem:[%s4876_s10 + $0xe8] sm:$0xff]  }
  0x30   : > { %v4629_v57 = vld [vmem:[%s4876_s10 + $0x1a8] sm:$0xff]   ;;  %v4606_v58 = vld [vmem:[%s4876_s10 + $0xf0] sm:$0xff]   ;;  %v4607_v60 = vld [vmem:[%s4876_s10 + $0xf8] sm:$0xff]  }
  0x31   : > { %4327 = vmatmul.mubr.msk.bf16.gmra.mrb[8].mxu0 %vm747_vm2, %v4581_v11  ;;  %v4630_v59 = vld [vmem:[%s4876_s10 + $0x1b0] sm:$0xff]   ;;  %v4631_v61 = vld [vmem:[%s4876_s10 + $0x1b8] sm:$0xff]   ;;  %v4632_v62 = vld [vmem:[%s4876_s10 + $0x1c0] sm:$0xff]   ;;  %v2533_v11 = vadd.s32 8, %v5006_v7 }
  0x32   : > { %4330 = vmatprep.mubr.msk.bf16.mxu0 %vm747_vm2, %v4582_v12  ;;  %v4633_v63 = vld [vmem:[%s4876_s10 + $0x1c8] sm:$0xff]   ;;  %v4634_v0 = vld [vmem:[%s4876_s10 + $0x1d0] sm:$0xff]   ;;  %v4635_v1 = vld [vmem:[%s4876_s10 + $0x1d8] sm:$0xff]   ;;  %v2538_v12 = vadd.s32 48, %v5006_v7 }
  0x33   : > { %v4636_v2 = vld [vmem:[%s4876_s10 + $0x1e0] sm:$0xff]   ;;  %v4637_v3 = vld [vmem:[%s4876_s10 + $0x1e8] sm:$0xff]   ;;  %v4638_v4 = vld [vmem:[%s4876_s10 + $0x1f0] sm:$0xff]   ;;  %v5029_v19 = vadd.s32 %v5011_v10, %v2533_v11 }
  0x34   : > { %4391 = vmatmul.mubr.msk.bf16.gmra.mrb[8].mxu1 %vm747_vm2, %v4613_v26  ;;  %v4639_v5 = vld [vmem:[%s4876_s10 + $0x1f8] sm:$0xff]   ;;  %v2541_v26 = vadd.s32 72, %v5006_v7 }
  0x35   : > { %4394 = vmatprep.mubr.msk.bf16.mxu1 %vm747_vm2, %v4614_v27  ;;  %vm2791_vm6 = vcmp.lt.s32.totalorder %v5029_v19, 2744 }
  0x39   : > { %4331 = vmatmul.mubr.msk.bf16.gmra.mrb[12].mxu0 %vm747_vm2, %v4583_v13  ;;  %v2536_v13 = vadd.s32 32, %v5006_v7 }
  0x3a   : > { %4334 = vmatprep.mubr.msk.bf16.mxu0 %vm747_vm2, %v4584_v14  ;;  %v2539_v14 = vadd.s32 56, %v5006_v7 }
  0x3c   : > { %4395 = vmatmul.mubr.msk.bf16.gmra.mrb[12].mxu1 %vm747_vm2, %v4615_v29  ;;  %v5039_v23 = vadd.s32 %v5011_v10, %v2539_v14  ;;  %v2544_v29 = vadd.s32 96, %v5006_v7 }
  0x3d   : > { %4398 = vmatprep.mubr.msk.bf16.mxu1 %vm747_vm2, %v4616_v31  ;;  %v2545_v31 = vadd.s32 104, %v5006_v7 }
  0x3e   : > { %vm2797_vm11 = vcmp.lt.s32.totalorder %v5039_v23, 2744 }
  0x41   : > { %4335 = vmatmul.mubr.msk.bf16.gmra.mrb[16].mxu0 %vm747_vm2, %v4585_v15  ;;  %v2537_v15 = vadd.s32 40, %v5006_v7 }
  0x42   : > { %4338 = vmatprep.mubr.msk.bf16.mxu0 %vm747_vm2, %v4586_v16  ;;  %v5019_v16 = vadd.s32 %v5011_v10, %v2534_v8 }
  0x43   : > { %v5045_v27 = vadd.s32 %v5011_v10, %v2537_v15 }
  0x44   : > { %4399 = vmatmul.mubr.msk.bf16.gmra.mrb[16].mxu1 %vm747_vm2, %v4617_v33  ;;  %v2548_v33 = vadd.s32 128, %v5006_v7  ;;  %vm2792_vm5 = vcmp.lt.s32.totalorder %v5019_v16, 2744 }
  0x45   : > { %4402 = vmatprep.mubr.msk.bf16.mxu1 %vm747_vm2, %v4618_v35  ;;  %v5055_v35 = vadd.s32 %v5011_v10, %v2542_v22  ;;  %v2569_v22 = vadd.s32 296, %v5006_v7  ;;  %vm2795_vm12 = vcmp.lt.s32.totalorder %v5045_v27, 2744 }
  0x47   : > { %vm2800_vm14 = vcmp.lt.s32.totalorder %v5055_v35, 2744 }
  0x49   : > { %4339 = vmatmul.mubr.msk.bf16.gmra.mrb[20].mxu0 %vm747_vm2, %v4587_v20  ;;  %v5032_v20 = vadd.s32 %v5011_v10, %v2538_v12  ;;  %v2571_v12 = vadd.s32 312, %v5006_v7 }
  0x4a   : > { %4342 = vmatprep.mubr.msk.bf16.mxu0 %vm747_vm2, %v4588_v21  ;;  %v5035_v21 = vadd.s32 %v5011_v10, %v2536_v13 }
  0x4b   : > { %vm2796_vm10 = vcmp.lt.s32.totalorder %v5032_v20, 2744 }
  0x4c   : > { %4403 = vmatmul.mubr.msk.bf16.gmra.mrb[20].mxu1 %vm747_vm2, %v4619_v37  ;;  %v2554_v37 = vadd.s32 176, %v5006_v7  ;;  %vm2794_vm9 = vcmp.lt.s32.totalorder %v5035_v21, 2744 }
  0x4d   : > { %4406 = vmatprep.mubr.msk.bf16.mxu1 %vm747_vm2, %v4620_v39 }
  0x51   : > { %4343 = vmatmul.mubr.msk.bf16.gmra.mrb[24].mxu0 %vm747_vm2, %v4589_v24  ;;  %v2540_v24 = vadd.s32 64, %v5006_v7 }
  0x52   : > { %4346 = vmatprep.mubr.msk.bf16.mxu0 %vm747_vm2, %v4590_v25  ;;  %v2543_v25 = vadd.s32 88, %v5006_v7 }
  0x53   : > { %v5061_v39 = vadd.s32 %v5011_v10, %v2540_v24 }
  0x54   : > { %4407 = vmatmul.mubr.msk.bf16.gmra.mrb[24].mxu1 %vm747_vm2, %v4621_v41  ;;  %v5067_v41 = vadd.s32 %v5011_v10, %v2541_v26 }
  0x55   : > { %4410 = vmatprep.mubr.msk.bf16.mxu1 %vm747_vm2, %v4622_v43  ;;  %vm2798_vm13 = vcmp.lt.s32.totalorder %v5061_v39, 2744 }
  0x56   : > { %vm2799_vm0 = vcmp.lt.s32.totalorder %v5067_v41, 2744 }
  0x59   : > { %4347 = vmatmul.mubr.msk.bf16.gmra.mrb[28].mxu0 %vm747_vm2, %v4591_v28  ;;  %v2546_v28 = vadd.s32 112, %v5006_v7 }
  0x5a   : > { %4350 = vmatprep.mubr.msk.bf16.mxu0 %vm747_vm2, %v4592_v30  ;;  %v2547_v30 = vadd.s32 120, %v5006_v7 }
  0x5b   : > { %v5071_v43 = vadd.s32 %v5011_v10, %v2546_v28 }
  0x5c   : > { %4411 = vmatmul.mubr.msk.bf16.gmra.mrb[28].mxu1 %vm747_vm2, %v4623_v45  ;;  %v5077_v45 = vadd.s32 %v5011_v10, %v2547_v30 }
  0x5d   : > { %4414 = vmatprep.mubr.msk.bf16.mxu1 %vm747_vm2, %v4624_v47  ;;  %v5081_v47 = vadd.s32 %v5011_v10, %v2545_v31  ;;  %v5163_v31 = vadd.s32 %v5011_v10, %v2568_v6  ;;  %v5202_v6 = vld [vmem:[%s6772_s2] ss:$0 sm:$0xff]  ;;  %vm2804_vm1 = vcmp.lt.s32.totalorder %v5071_v43, 2744 }
  0x61   : > { %4351 = vmatmul.mubr.msk.bf16.gmra.mrb[32].mxu0 %vm747_vm2, %v4593_v32  ;;  %v2550_v32 = vadd.s32 144, %v5006_v7 }
  0x62   : > { %4354 = vmatprep.mubr.msk.bf16.mxu0 %vm747_vm2, %v4594_v34  ;;  %v2551_v34 = vadd.s32 152, %v5006_v7 }
  0x64   : > { %4415 = vmatmul.mubr.msk.bf16.gmra.mrb[32].mxu1 %vm747_vm2, %v4625_v49  ;;  %v5087_v49 = vadd.s32 %v5011_v10, %v2548_v33  ;;  %v5167_v33 = vadd.s32 %v5011_v10, %v2571_v12 }
  0x65   : > { %4418 = vmatprep.mubr.msk.bf16.mxu1 %vm747_vm2, %v4626_v51 }
  0x69   : > { %4355 = vmatmul.mubr.msk.bf16.gmra.mrb[36].mxu0 %vm747_vm2, %v4595_v36  ;;  %v2549_v36 = vadd.s32 136, %v5006_v7 }
  0x6a   : > { %4358 = vmatprep.mubr.msk.bf16.mxu0 %vm747_vm2, %v4596_v38  ;;  %v2552_v38 = vadd.s32 160, %v5006_v7 }
  0x6b   : > { %v5093_v51 = vadd.s32 %v5011_v10, %v2549_v36  ;;  %v2575_v36 = vadd.s32 344, %v5006_v7 }
  0x6c   : > { %4419 = vmatmul.mubr.msk.bf16.gmra.mrb[36].mxu1 %vm747_vm2, %v4627_v53  ;;  %v5099_v53 = vadd.s32 %v5011_v10, %v2552_v38  ;;  %v5173_v38 = vadd.s32 %v5011_v10, %v2569_v22 }
  0x6d   : > { %4422 = vmatprep.mubr.msk.bf16.mxu1 %vm747_vm2, %v4628_v55 }
  0x71   : > { %4359 = vmatmul.mubr.msk.bf16.gmra.mrb[40].mxu0 %vm747_vm2, %v4597_v40  ;;  %v5064_v40 = vadd.s32 %v5011_v10, %v2543_v25 }
  0x72   : > { %4362 = vmatprep.mubr.msk.bf16.mxu0 %vm747_vm2, %v4598_v42  ;;  %v2555_v42 = vadd.s32 184, %v5006_v7 }
  0x73   : > { %vm2801_vm15 = vcmp.lt.s32.totalorder %v5064_v40, 2744 }
  0x74   : > { %4423 = vmatmul.mubr.msk.bf16.gmra.mrb[40].mxu1 %vm747_vm2, %v4629_v57  ;;  %v5103_v55 = vadd.s32 %v5011_v10, %v2555_v42  ;;  %v2559_v57 = vadd.s32 216, %v5006_v7  ;;  %v2578_v42 = vadd.s32 368, %v5006_v7 }
  0x75   : > { %4426 = vmatprep.mubr.msk.bf16.mxu1 %vm747_vm2, %v4630_v59 }
  0x76   : > { %v5128_v9 = vadd.s32 %v5011_v10, %v2559_v57  ;;  %v2582_v57 = vadd.s32 400, %v5006_v7  ;;  %v5205_v12 = vadd.s32 %v5011_v10, %v2578_v42 }
  0x78   : > { %6802 = vst [vmem:[#allocation7_spill] sm:$0xff] %v5205_v12  ;;  %v2595_v12 = vadd.s32 504, %v5006_v7 }
  0x79   : > { %4363 = vmatmul.mubr.msk.bf16.gmra.mrb[44].mxu0 %vm747_vm2, %v4599_v44  ;;  %v5074_v44 = vadd.s32 %v5011_v10, %v2544_v29 }
  0x7a   : > { %4366 = vmatprep.mubr.msk.bf16.mxu0 %vm747_vm2, %v4600_v46  ;;  %v2553_v46 = vadd.s32 168, %v5006_v7 }
  0x7c   : > { %4427 = vmatmul.mubr.msk.bf16.gmra.mrb[44].mxu1 %vm747_vm2, %v4631_v61  ;;  %v5109_v59 = vadd.s32 %v5011_v10, %v2553_v46  ;;  %v2560_v61 = vadd.s32 224, %v5006_v7  ;;  %v2576_v46 = vadd.s32 352, %v5006_v7 }
  0x7d   : > { %4430 = vmatprep.mubr.msk.bf16.mxu1 %vm747_vm2, %v4632_v62  ;;  %v2563_v62 = vadd.s32 248, %v5006_v7 }
  0x7e   : > { %v5138_v14 = vadd.s32 %v5011_v10, %v2560_v61  ;;  %v5208_v22 = vadd.s32 %v5011_v10, %v2576_v46 }
  0x7f   : > { %v5141_v15 = vadd.s32 %v5011_v10, %v2563_v62  ;;  %v2581_v62 = vadd.s32 392, %v5006_v7 }
  0x80   : > { %6803 = vst [vmem:[#allocation8_spill] sm:$0xff] %v5208_v22  ;;  %v2592_v22 = vadd.s32 480, %v5006_v7 }
  0x81   : > { %4367 = vmatmul.mubr.msk.bf16.gmra.mrb[48].mxu0 %vm747_vm2, %v4601_v48  ;;  %v5084_v48 = vadd.s32 %v5011_v10, %v2550_v32  ;;  %v2574_v32 = vadd.s32 336, %v5006_v7 }
  0x82   : > { %4370 = vmatprep.mubr.msk.bf16.mxu0 %vm747_vm2, %v4602_v50  ;;  %v5090_v50 = vadd.s32 %v5011_v10, %v2551_v34  ;;  %v2572_v34 = vadd.s32 320, %v5006_v7 }
  0x83   : > { %v5183_v61 = vadd.s32 %v5011_v10, %v2574_v32 }
  0x84   : > { %4431 = vmatmul.mubr.msk.bf16.gmra.mrb[48].mxu1 %vm747_vm2, %v4633_v63  ;;  %v2561_v63 = vadd.s32 232, %v5006_v7 }
  0x85   : > { %4434 = vmatprep.mubr.msk.bf16.mxu1 %vm747_vm2, %v4634_v0  ;;  %v2566_v0 = vadd.s32 272, %v5006_v7  ;;  %6798 = vst [vmem:[#allocation3_spill] sm:$0xff] %v5183_v61 }
  0x86   : > { %v5145_v24 = vadd.s32 %v5011_v10, %v2561_v63  ;;  %v2586_v63 = vadd.s32 432, %v5006_v7 }
  0x87   : > { %v5148_v25 = vadd.s32 %v5011_v10, %v2566_v0  ;;  %v2584_v0 = vadd.s32 416, %v5006_v7 }
  0x89   : > { %4371 = vmatmul.mubr.msk.bf16.gmra.mrb[52].mxu0 %vm747_vm2, %v4603_v52  ;;  %v5096_v52 = vadd.s32 %v5011_v10, %v2554_v37  ;;  %v2573_v37 = vadd.s32 328, %v5006_v7 }
  0x8a   : > { %4374 = vmatprep.mubr.msk.bf16.mxu0 %vm747_vm2, %v4604_v54  ;;  %v2558_v54 = vadd.s32 208, %v5006_v7 }
  0x8c   : > { %4435 = vmatmul.mubr.msk.bf16.gmra.mrb[52].mxu1 %vm747_vm2, %v4635_v1  ;;  %v2564_v1 = vadd.s32 256, %v5006_v7 }
  0x8d   : > { %4438 = vmatprep.mubr.msk.bf16.mxu1 %vm747_vm2, %v4636_v2  ;;  %v2567_v2 = vadd.s32 280, %v5006_v7 }
  0x8e   : > { %v5151_v26 = vadd.s32 %v5011_v10, %v2564_v1  ;;  %v5190_v1 = vadd.s32 %v5011_v10, %v2572_v34  ;;  %v2585_v34 = vadd.s32 424, %v5006_v7 }
  0x8f   : > { %v5154_v28 = vadd.s32 %v5011_v10, %v2567_v2  ;;  %v5193_v2 = vadd.s32 %v5011_v10, %v2575_v36 }
  0x90   : > { %6799 = vst [vmem:[#allocation4_spill] sm:$0xff] %v5190_v1 }
  0x91   : > { %4375 = vmatmul.mubr.msk.bf16.gmra.mrb[56].mxu0 %vm747_vm2, %v4605_v56  ;;  %v2556_v56 = vadd.s32 192, %v5006_v7  ;;  %6800 = vst [vmem:[#allocation5_spill] sm:$0xff] %v5193_v2 }
  0x92   : > { %4378 = vmatprep.mubr.msk.bf16.mxu0 %vm747_vm2, %v4606_v58  ;;  %v2557_v58 = vadd.s32 200, %v5006_v7 }
  0x93   : > { %v5125_v8 = vadd.s32 %v5011_v10, %v2556_v56  ;;  %v2577_v56 = vadd.s32 360, %v5006_v7 }
  0x94   : > { %4439 = vmatmul.mubr.msk.bf16.gmra.mrb[56].mxu1 %vm747_vm2, %v4637_v3  ;;  %v5119_v3 = vadd.s32 %v5011_v10, %v2558_v54  ;;  %v5131_v11 = vadd.s32 %v5011_v10, %v2557_v58  ;;  %v2579_v54 = vadd.s32 376, %v5006_v7  ;;  %v2580_v58 = vadd.s32 384, %v5006_v7 }
  0x95   : > { %4442 = vmatprep.mubr.msk.bf16.mxu1 %vm747_vm2, %v4638_v4  ;;  %v2565_v4 = vadd.s32 264, %v5006_v7  ;;  %v5217_v36 = vadd.s32 %v5011_v10, %v2577_v56  ;;  %v5235_v56 = vadd.s32 %v5011_v10, %v2581_v62  ;;  %v2591_v62 = vadd.s32 472, %v5006_v7 }
  0x96   : > { %v5211_v32 = vadd.s32 %v5011_v10, %v2579_v54  ;;  %v5223_v42 = vadd.s32 %v5011_v10, %v2580_v58  ;;  %v5241_v58 = vadd.s32 %v5011_v10, %v2584_v0  ;;  %v5253_v0 = vadd.s32 %v5011_v10, %v2585_v34 }
  0x97   : > { %v5157_v29 = vadd.s32 %v5011_v10, %v2565_v4  ;;  %v5196_v4 = vadd.s32 %v5011_v10, %v2573_v37  ;;  %6805 = vst [vmem:[#allocation10_spill] sm:$0xff] %v5217_v36  ;;  %v5220_v37 = vadd.s32 %v5011_v10, %v2582_v57  ;;  %6809 = vst [vmem:[#allocation14_spill] sm:$0xff] %v5235_v56  ;;  %v2588_v36 = vadd.s32 448, %v5006_v7 }
  0x98   : > { %6804 = vst [vmem:[#allocation9_spill] sm:$0xff] %v5211_v32  ;;  %6807 = vst [vmem:[#allocation12_spill] sm:$0xff] %v5223_v42  ;;  %v5232_v32 = vld [vmem:[%s6773_s3] ss:$0 sm:$0xff]  ;;  %v5238_v57 = vadd.s32 %v5011_v10, %v2586_v63 }
  0x99   : > { %4379 = vmatmul.mubr.msk.bf16.gmra.mrb[60].mxu0 %vm747_vm2, %v4607_v60  ;;  %v2562_v60 = vadd.s32 240, %v5006_v7  ;;  %6801 = vst [vmem:[#allocation6_spill] sm:$0xff] %v5196_v4  ;;  %6806 = vst [vmem:[#allocation11_spill] sm:$0xff] %v5220_v37  ;;  %v2593_v4 = vadd.s32 488, %v5006_v7 }
  0x9a   : > { %6810 = vst [vmem:[#allocation15_spill] sm:$0xff] %v5238_v57  ;;  %6811 = vst [vmem:[#allocation16_spill] sm:$0xff] %v5241_v58  ;;  %v2589_v58 = vadd.s32 456, %v5006_v7 }
  0x9b   : > { %v5135_v13 = vadd.s32 %v5011_v10, %v2562_v60  ;;  %v2583_v60 = vadd.s32 408, %v5006_v7  ;;  %6813 = vst [vmem:[#allocation18_spill] sm:$0xff] %v5253_v0 }
  0x9c   : > { %4443 = vmatmul.mubr.msk.bf16.gmra.mrb[60].mxu1 %vm747_vm2, %v4639_v5  ;;  %v2570_v5 = vadd.s32 304, %v5006_v7  ;;  %vm2802_vm2 = vcmp.lt.s32.totalorder %v5074_v44, 2744 }
  0x9d   : > { %v5226_v46 = vadd.s32 %v5011_v10, %v2583_v60  ;;  %v2590_v60 = vadd.s32 464, %v5006_v7 }
  0x9e   : > { %v5160_v30 = vadd.s32 %v5011_v10, %v2570_v5  ;;  %v2587_v5 = vadd.s32 440, %v5006_v7 }
  0x9f   : > { %6808 = vst [vmem:[#allocation13_spill] sm:$0xff] %v5226_v46  ;;  %v5266_v0 = vadd.s32 %v5011_v10, %v2590_v60  ;;  %v5279_v60 = vadd.s32 %v5011_v10, %v2589_v58 }
  0xa0   : > { %v5247_v37 = vadd.s32 %v5011_v10, %v2587_v5 }
  0xa2   : > { %6812 = vst [vmem:[#allocation17_spill] sm:$0xff] %v5247_v37 }
  0xf4   : > { %v4320_v54 = vpop.f32.mrb[0].mxu0 }
  0xf5   : > { %v1501_v46 = vmul.f32 %v4320_v54, %v5202_v6  ;;  %v981_v42 = vpop.f32.mrb[1].mxu0  ;;  %v2594_v54 = vadd.s32 496, %v5006_v7 }
  0xf6   : > { %v1499_v63 = vmul.f32 %v5202_v6, %v981_v42  ;;  %v4321_v57 = vpop.f32.mrb[2].mxu0 }
  0xf7   : > { %v1636_v56 = vadd.f32 %v5232_v32, %v1501_v46  ;;  %v1502_v5 = vmul.f32 %v4321_v57, %v5202_v6  ;;  %v984_v37 = vpop.f32.mrb[3].mxu0  ;;  %v5272_v46 = vadd.s32 %v5011_v10, %v2588_v36  ;;  %v5275_v57 = vadd.s32 %v5011_v10, %v2591_v62 }
  0xf8   : > { %v1634_v42 = vadd.f32 %v5232_v32, %v1499_v63  ;;  %v1500_v34 = vmul.f32 %v5202_v6, %v984_v37  ;;  %v5282_v63 = vadd.s32 %v5011_v10, %v2594_v54  ;;  %v5286_v36 = vadd.s32 %v5011_v10, %v2592_v22 }
  0xf9   : > { %v1764_v2 = vmax.f32 %v1636_v56, 0.0  ;;  %v1637_v1 = vadd.f32 %v5232_v32, %v1502_v5  ;;  %6814 = vst [vmem:[#allocation19_spill] sm:$0xff] %v5275_v57  ;;  %v5289_v62 = vadd.s32 %v5011_v10, %v2595_v12  ;;  %v2598_v22 = vadd.s32 528, %v5006_v7 }
  0xfa   : > { %v1762_v61 = vmax.f32 %v1634_v42, 0.0  ;;  %v1635_v37 = vadd.f32 %v5232_v32, %v1500_v34  ;;  %6815 = vst [vmem:[#allocation20_spill] sm:$0xff] %v5282_v63  ;;  %6816 = vst [vmem:[#allocation21_spill] sm:$0xff] %v5286_v36  ;;  %v2596_v54 = vadd.s32 512, %v5006_v7 }
  0xfb   : > { %v4120_v56 = vpack.c.bf16 %v1764_v2, %v1764_v2  ;;  %v1765_v5 = vmax.f32 %v1637_v1, 0.0  ;;  %6817 = vst [vmem:[#allocation22_spill] sm:$0xff] %v5289_v62  ;;  %v5296_v1 = vadd.s32 %v5011_v10, %v2593_v4  ;;  %v2920_v4 = vsel %vm2792_vm5, %v1764_v2, 0.0 }
  0xfc   : > { %v4118_v42 = vpack.c.bf16 %v1762_v61, %v1762_v61  ;;  %v2918_v34 = vsel %vm2790_vm3, %v1762_v61, 0.0  ;;  %v1763_v57 = vmax.f32 %v1635_v37, 0.0  ;;  %v4324_v58 = vpop.f32.mrb[4].mxu0  ;;  %vm2805_vm3 = vcmp.lt.s32.totalorder %v5077_v45, 2744 }
  0xfd   : > { %6818 = vst [vmem:[#allocation23_spill] sm:$0xff] %v5296_v1  ;;  %2405 = vst.msk [vmem:[%s5299_s27 + $0x8] sm:$0xf] %vm2402_vm4, %v4120_v56  ;;  %v4121_v12 = vpack.c.bf16 %v1765_v5, %v1765_v5  ;;  %v1505_v17 = vmul.f32 %v4324_v58, %v5202_v6  ;;  %v997_v61 = vpop.f32.mrb[5].mxu0  ;;  %v3047_v58 = vsel %vm3046_vm7, %v2918_v34, 0.0  ;;  %v3050_v34 = vsel %vm3046_vm7, %v2920_v4, 0.0 }
  0xfe   : > { %2403 = vst.msk [vmem:[%s5299_s27] sm:$0xf] %vm2402_vm4, %v4118_v42  ;;  %v4119_v37 = vpack.c.bf16 %v1763_v57, %v1763_v57  ;;  %v2919_v1 = vsel %vm2791_vm6, %v1763_v57, 0.0  ;;  %v1503_v56 = vmul.f32 %v5202_v6, %v997_v61  ;;  %v4325_v62 = vpop.f32.mrb[6].mxu0  ;;  %v2921_v42 = vsel %vm2793_vm8, %v1765_v5, 0.0 }
  0xff   : > { %2406 = vst.msk [vmem:[%s5299_s27 + $0xc] sm:$0xf] %vm2402_vm4, %v4121_v12  ;;  %v3048_v36 = vsel %vm3046_vm7, %v2919_v1, 0.0  ;;  %v1640_v63 = vadd.f32 %v5232_v32, %v1505_v17  ;;  %v1506_v16 = vmul.f32 %v4325_v62, %v5202_v6  ;;  %v1000_v2 = vpop.f32.mrb[7].mxu0  ;;  %v2599_v62 = vadd.s32 536, %v5006_v7 }
 0x100   : > { %2404 = vst.msk [vmem:[%s5299_s27 + $0x4] sm:$0xf] %vm2402_vm4, %v4119_v37  ;;  %v3049_v19 = vadd.f32 %v3048_v36, %v3047_v58  ;;  %v1638_v57 = vadd.f32 %v5232_v32, %v1503_v56  ;;  %v1504_v61 = vmul.f32 %v5202_v6, %v1000_v2  ;;  %v2597_v36 = vadd.s32 520, %v5006_v7 }
 0x101   : > { %v1768_v12 = vmax.f32 %v1640_v63, 0.0  ;;  %v1641_v1 = vadd.f32 %v5232_v32, %v1506_v16  ;;  %v3052_v37 = vsel %vm3046_vm7, %v2921_v42, 0.0  ;;  %v5334_v63 = vadd.s32 %v5011_v10, %v2598_v22 }
 0x102   : > { %v3051_v17 = vadd.f32 %v3050_v34, %v3049_v19  ;;  %v1766_v18 = vmax.f32 %v1638_v57, 0.0  ;;  %v1639_v5 = vadd.f32 %v5232_v32, %v1504_v61  ;;  %v5340_v57 = vadd.s32 %v5011_v10, %v2596_v54 }
 0x103   : > { %v4124_v56 = vpack.c.bf16 %v1768_v12, %v1768_v12  ;;  %v1769_v58 = vmax.f32 %v1641_v1, 0.0  ;;  %v5347_v1 = vadd.s32 %v5011_v10, %v2599_v62  ;;  %v2924_v21 = vsel %vm2796_vm10, %v1768_v12, 0.0 }
 0x104   : > { %v3053_v4 = vadd.f32 %v3052_v37, %v3051_v17  ;;  %v4122_v16 = vpack.c.bf16 %v1766_v18, %v1766_v18  ;;  %v2922_v2 = vsel %vm2794_vm9, %v1766_v18, 0.0  ;;  %v4328_v19 = vpop.f32.mrb[8].mxu0  ;;  %v1767_v34 = vmax.f32 %v1639_v5, 0.0 }
 0x105   : > { %2409 = vst.msk [vmem:[%s5299_s27 + $0x18] sm:$0xf] %vm2402_vm4, %v4124_v56  ;;  %v3054_v42 = vsel %vm3046_vm7, %v2922_v2, 0.0  ;;  %v4125_v61 = vpack.c.bf16 %v1769_v58, %v1769_v58  ;;  %v1013_v22 = vpop.f32.mrb[9].mxu0  ;;  %v1509_v17 = vmul.f32 %v4328_v19, %v5202_v6  ;;  %v2925_v5 = vsel %vm2797_vm11, %v1769_v58, 0.0 }
 0x106   : > { %2407 = vst.msk [vmem:[%s5299_s27 + $0x10] sm:$0xf] %vm2402_vm4, %v4122_v16  ;;  %v3055_v54 = vadd.f32 %v3054_v42, %v3053_v4  ;;  %v1507_v18 = vmul.f32 %v5202_v6, %v1013_v22  ;;  %v4329_v37 = vpop.f32.mrb[10].mxu0  ;;  %v4123_v56 = vpack.c.bf16 %v1767_v34, %v1767_v34  ;;  %v2923_v62 = vsel %vm2795_vm12, %v1767_v34, 0.0 }
 0x107   : > { %2410 = vst.msk [vmem:[%s5299_s27 + $0x1c] sm:$0xf] %vm2402_vm4, %v4125_v61  ;;  %v1510_v20 = vmul.f32 %v4329_v37, %v5202_v6  ;;  %v1016_v12 = vpop.f32.mrb[11].mxu0  ;;  %v3056_v16 = vsel %vm3046_vm7, %v2923_v62, 0.0  ;;  %v1644_v4 = vadd.f32 %v5232_v32, %v1509_v17  ;;  %v5371_v27 = vadd.s32 %v5011_v10, %v2597_v36 }
 0x108   : > { %v1642_v2 = vadd.f32 %v5232_v32, %v1507_v18  ;;  %v1508_v19 = vmul.f32 %v5202_v6, %v1016_v12  ;;  %2408 = vst.msk [vmem:[%s5299_s27 + $0x14] sm:$0xf] %vm2402_vm4, %v4123_v56  ;;  %v3057_v42 = vadd.f32 %v3056_v16, %v3055_v54  ;;  %v2602_v58 = vadd.s32 560, %v5006_v7 }
 0x109   : > { %v1645_v23 = vadd.f32 %v5232_v32, %v1510_v20  ;;  %v3058_v61 = vsel %vm3046_vm7, %v2924_v21, 0.0  ;;  %v1772_v34 = vmax.f32 %v1644_v4, 0.0  ;;  %v3060_v18 = vsel %vm3046_vm7, %v2925_v5, 0.0 }
 0x10a   : > { %v1770_v22 = vmax.f32 %v1642_v2, 0.0  ;;  %v1643_v17 = vadd.f32 %v5232_v32, %v1508_v19  ;;  %v3059_v54 = vadd.f32 %v3058_v61, %v3057_v42  ;;  %v2600_v36 = vadd.s32 544, %v5006_v7 }
 0x10b   : > { %v1773_v37 = vmax.f32 %v1645_v23, 0.0  ;;  %v4128_v56 = vpack.c.bf16 %v1772_v34, %v1772_v34  ;;  %v2603_v12 = vadd.s32 568, %v5006_v7  ;;  %vm2803_vm5 = vcmp.lt.s32.totalorder %v5081_v47, 2744 }
 0x10c   : > { %v4126_v62 = vpack.c.bf16 %v1770_v22, %v1770_v22  ;;  %v2926_v21 = vsel %vm2798_vm13, %v1770_v22, 0.0  ;;  %v4332_v20 = vpop.f32.mrb[12].mxu0  ;;  %v3061_v16 = vadd.f32 %v3060_v18, %v3059_v54  ;;  %v5386_v19 = vadd.s32 %v5011_v10, %v2602_v58 }
 0x10d   : > { %v3062_v5 = vsel %vm3046_vm7, %v2926_v21, 0.0  ;;  %v4129_v4 = vpack.c.bf16 %v1773_v37, %v1773_v37  ;;  %v1029_v2 = vpop.f32.mrb[13].mxu0  ;;  %2413 = vst.msk [vmem:[%s5299_s27 + $0x28] sm:$0xf] %vm2402_vm4, %v4128_v56  ;;  %v2928_v39 = vsel %vm2800_vm14, %v1772_v34, 0.0  ;;  %v1771_v42 = vmax.f32 %v1643_v17, 0.0 }
 0x10e   : > { %2411 = vst.msk [vmem:[%s5299_s27 + $0x20] sm:$0xf] %vm2402_vm4, %v4126_v62  ;;  %v1513_v23 = vmul.f32 %v4332_v20, %v5202_v6  ;;  %v1511_v61 = vmul.f32 %v5202_v6, %v1029_v2  ;;  %v4333_v22 = vpop.f32.mrb[14].mxu0  ;;  %v3063_v18 = vadd.f32 %v3062_v5, %v3061_v16  ;;  %v2929_v58 = vsel %vm2801_vm15, %v1773_v37, 0.0 }
 0x10f   : > { %2414 = vst.msk [vmem:[%s5299_s27 + $0x2c] sm:$0xf] %vm2402_vm4, %v4129_v4  ;;  %v1514_v54 = vmul.f32 %v4333_v22, %v5202_v6  ;;  %v1032_v56 = vpop.f32.mrb[15].mxu0  ;;  %v5402_v35 = vadd.s32 %v5011_v10, %v2600_v36  ;;  %v4127_v34 = vpack.c.bf16 %v1771_v42, %v1771_v42  ;;  %v2927_v17 = vsel %vm2799_vm0, %v1771_v42, 0.0 }
 0x110   : > { %v1648_v62 = vadd.f32 %v5232_v32, %v1513_v23  ;;  %v1646_v21 = vadd.f32 %v5232_v32, %v1511_v61  ;;  %v3066_v20 = vsel %vm3046_vm7, %v2928_v39, 0.0  ;;  %v3064_v16 = vsel %vm3046_vm7, %v2927_v17, 0.0 }
 0x111   : > { %v1649_v40 = vadd.f32 %v5232_v32, %v1514_v54  ;;  %v1512_v37 = vmul.f32 %v5202_v6, %v1032_v56  ;;  %v3068_v5 = vsel %vm3046_vm7, %v2929_v58, 0.0  ;;  %2412 = vst.msk [vmem:[%s5299_s27 + $0x24] sm:$0xf] %vm2402_vm4, %v4127_v34  ;;  %v3065_v36 = vadd.f32 %v3064_v16, %v3063_v18  ;;  %v4384_v56 = vpop.f32.mrb[0].mxu1 }
 0x112   : > { %v1776_v4 = vmax.f32 %v1648_v62, 0.0  ;;  %v1774_v41 = vmax.f32 %v1646_v21, 0.0  ;;  %vm2808_vm6 = vcmp.lt.s32.totalorder %v5084_v48, 2744  ;;  %vm2806_vm8 = vcmp.lt.s32.totalorder %v5087_v49, 2744  ;;  %v1237_v21 = vpop.f32.mrb[1].mxu1 }
 0x113   : > { %v1777_v2 = vmax.f32 %v1649_v40, 0.0  ;;  %v1647_v39 = vadd.f32 %v5232_v32, %v1512_v37  ;;  %v5419_v42 = vadd.s32 %v5011_v10, %v2603_v12  ;;  %v5422_v23 = vadd.s32 552, %v5006_v7 }
 0x114   : > { %v3067_v61 = vadd.f32 %v3066_v20, %v3065_v36  ;;  %v4132_v22 = vpack.c.bf16 %v1776_v4, %v1776_v4  ;;  %v2932_v18 = vsel %vm2804_vm1, %v1776_v4, 0.0  ;;  %v4130_v58 = vpack.c.bf16 %v1774_v41, %v1774_v41  ;;  %v4336_v54 = vpop.f32.mrb[16].mxu0  ;;  %v4385_v36 = vpop.f32.mrb[2].mxu1 }
 0x115   : > { %vm2807_vm9 = vcmp.lt.s32.totalorder %v5093_v51, 2744  ;;  %v3074_v34 = vsel %vm3046_vm7, %v2932_v18, 0.0  ;;  %v2930_v12 = vsel %vm2802_vm2, %v1774_v41, 0.0  ;;  %v4133_v17 = vpack.c.bf16 %v1777_v2, %v1777_v2  ;;  %v1045_v62 = vpop.f32.mrb[17].mxu0  ;;  %v5448_v18 = vpop.f32.mrb[3].mxu1 }
 0x116   : > { %vm2809_vm10 = vcmp.lt.s32.totalorder %v5090_v50, 2744  ;;  %v5432_v20 = vadd.s32 592, %v5006_v7  ;;  %v3069_v43 = vadd.f32 %v3068_v5, %v3067_v61  ;;  %2417 = vst.msk [vmem:[%s5299_s27 + $0x38] sm:$0xf] %vm2402_vm4, %v4132_v22  ;;  %2415 = vst.msk [vmem:[%s5299_s27 + $0x30] sm:$0xf] %vm2402_vm4, %v4130_v58  ;;  %v1517_v4 = vmul.f32 %v4336_v54, %v5202_v6 }
 0x117   : > { %v3070_v16 = vsel %vm3046_vm7, %v2930_v12, 0.0  ;;  %v2933_v40 = vsel %vm2805_vm3, %v1777_v2, 0.0  ;;  %v1775_v44 = vmax.f32 %v1647_v39, 0.0  ;;  %v4337_v37 = vpop.f32.mrb[18].mxu0  ;;  %2418 = vst.msk [vmem:[%s5299_s27 + $0x3c] sm:$0xf] %vm2402_vm4, %v4133_v17  ;;  %v1515_v41 = vmul.f32 %v5202_v6, %v1045_v62 }
 0x118   : > { %v1518_v5 = vmul.f32 %v4337_v37, %v5202_v6  ;;  %v1048_v61 = vpop.f32.mrb[19].mxu0  ;;  %v1565_v22 = vmul.f32 %v4384_v56, %v5202_v6  ;;  %vm2856_vm11 = vcmp.lt.s32.totalorder %v5334_v63, 2744  ;;  %v3071_v45 = vadd.f32 %v3070_v16, %v3069_v43 }
 0x119   : > { %v4131_v2 = vpack.c.bf16 %v1775_v44, %v1775_v44  ;;  %v2931_v39 = vsel %vm2803_vm5, %v1775_v44, 0.0  ;;  %v1516_v58 = vmul.f32 %v5202_v6, %v1048_v61  ;;  %v1652_v12 = vadd.f32 %v5232_v32, %v1517_v4 }
 0x11a   : > { %v3072_v54 = vsel %vm3046_vm7, %v2931_v39, 0.0  ;;  %v1650_v17 = vadd.f32 %v5232_v32, %v1515_v41  ;;  %v1653_v62 = vadd.f32 %v5232_v32, %v1518_v5  ;;  %vm2812_vm12 = vcmp.lt.s32.totalorder %v5096_v52, 2744 }
 0x11b   : > { %2416 = vst.msk [vmem:[%s5299_s27 + $0x34] sm:$0xf] %vm2402_vm4, %v4131_v2  ;;  %v3073_v56 = vadd.f32 %v3072_v54, %v3071_v45  ;;  %v1651_v37 = vadd.f32 %v5232_v32, %v1516_v58  ;;  %v1700_v47 = vadd.f32 %v5232_v32, %v1565_v22  ;;  %v1563_v43 = vmul.f32 %v5202_v6, %v1237_v21  ;;  %v5470_v21 = vpop.f32.mrb[4].mxu1 }
 0x11c   : > { %v3076_v16 = vsel %vm3046_vm7, %v2933_v40, 0.0  ;;  %v1780_v44 = vmax.f32 %v1652_v12, 0.0  ;;  %v1778_v61 = vmax.f32 %v1650_v17, 0.0  ;;  %v1781_v4 = vmax.f32 %v1653_v62, 0.0  ;;  %v4340_v45 = vpop.f32.mrb[20].mxu0  ;;  %v5477_v12 = vpop.f32.mrb[5].mxu1 }
 0x11d   : > { %vm2810_vm13 = vcmp.lt.s32.totalorder %v5099_v53, 2744  ;;  %vm2854_vm14 = vcmp.lt.s32.totalorder %v5340_v57, 2744  ;;  %v3075_v41 = vadd.f32 %v3074_v34, %v3073_v56  ;;  %v1779_v5 = vmax.f32 %v1651_v37, 0.0  ;;  %v1061_v54 = vpop.f32.mrb[21].mxu0  ;;  %v5481_v48 = vpop.f32.mrb[6].mxu1 }
 0x11e   : > { %vm2813_vm15 = vcmp.lt.s32.totalorder %v5103_v55, 2744  ;;  %v1828_v2 = vmax.f32 %v1700_v47, 0.0  ;;  %v5468_v22 = vmul.f32 %v4385_v36, %v5202_v6  ;;  %v4136_v40 = vpack.c.bf16 %v1780_v44, %v1780_v44  ;;  %v4341_v56 = vpop.f32.mrb[22].mxu0 }
 0x11f   : > { %v2936_v39 = vsel %vm2808_vm6, %v1780_v44, 0.0  ;;  %v4134_v58 = vpack.c.bf16 %v1778_v61, %v1778_v61  ;;  %v2934_v34 = vsel %vm2806_vm8, %v1778_v61, 0.0  ;;  %vm2811_vm0 = vcmp.lt.s32.totalorder %v5109_v59, 2744  ;;  %v1064_v61 = vpop.f32.mrb[23].mxu0 }
 0x120   : > { %v3077_v17 = vadd.f32 %v3076_v16, %v3075_v41  ;;  %v3078_v36 = vsel %vm3046_vm7, %v2934_v34, 0.0  ;;  %v4137_v62 = vpack.c.bf16 %v1781_v4, %v1781_v4  ;;  %v1698_v37 = vadd.f32 %v5232_v32, %v1563_v43  ;;  %2421 = vst.msk [vmem:[%s5299_s27 + $0x48] sm:$0xf] %vm2402_vm4, %v4136_v40  ;;  %v5491_v41 = vpop.f32.mrb[7].mxu1 }
 0x121   : > { %v3082_v49 = vsel %vm3046_vm7, %v2936_v39, 0.0  ;;  %2419 = vst.msk [vmem:[%s5299_s27 + $0x40] sm:$0xf] %vm2402_vm4, %v4134_v58  ;;  %v4135_v47 = vpack.c.bf16 %v1779_v5, %v1779_v5  ;;  %v2935_v44 = vsel %vm2807_vm9, %v1779_v5, 0.0  ;;  %v1521_v16 = vmul.f32 %v4340_v45, %v5202_v6 }
 0x122   : > { %v3079_v34 = vadd.f32 %v3078_v36, %v3077_v17  ;;  %2422 = vst.msk [vmem:[%s5299_s27 + $0x4c] sm:$0xf] %vm2402_vm4, %v4137_v62  ;;  %v2937_v43 = vsel %vm2809_vm10, %v1781_v4, 0.0  ;;  %v3080_v40 = vsel %vm3046_vm7, %v2935_v44, 0.0  ;;  %v1519_v39 = vmul.f32 %v5202_v6, %v1061_v54 }
 0x123   : > { %2420 = vst.msk [vmem:[%s5299_s27 + $0x44] sm:$0xf] %vm2402_vm4, %v4135_v47  ;;  %v1656_v51 = vadd.f32 %v5232_v32, %v1521_v16  ;;  %v1522_v5 = vmul.f32 %v4341_v56, %v5202_v6  ;;  %v1520_v45 = vmul.f32 %v5202_v6, %v1064_v61  ;;  %v4184_v58 = vpack.c.bf16 %v1828_v2, %v1828_v2 }
 0x124   : > { %v3081_v17 = vadd.f32 %v3080_v40, %v3079_v34  ;;  %v1654_v36 = vadd.f32 %v5232_v32, %v1519_v39  ;;  %v2984_v50 = vsel %vm2856_vm11, %v1828_v2, 0.0  ;;  %v1826_v4 = vmax.f32 %v1698_v37, 0.0  ;;  %v4344_v61 = vpop.f32.mrb[24].mxu0  ;;  %v5517_v37 = vpop.f32.mrb[8].mxu1 }
 0x125   : > { %v3084_v62 = vsel %vm3046_vm7, %v2937_v43, 0.0  ;;  %v1784_v44 = vmax.f32 %v1656_v51, 0.0  ;;  %v1657_v54 = vadd.f32 %v5232_v32, %v1522_v5  ;;  %v1655_v47 = vadd.f32 %v5232_v32, %v1520_v45  ;;  %2469 = vst.msk [vmem:[%s5299_s27 + $0x108] sm:$0xf] %vm2402_vm4, %v4184_v58  ;;  %v1077_v51 = vpop.f32.mrb[25].mxu0 }
 0x126   : > { %vm2816_vm1 = vcmp.lt.s32.totalorder %v5119_v3, 2744  ;;  %v3083_v56 = vadd.f32 %v3082_v49, %v3081_v17  ;;  %v1782_v16 = vmax.f32 %v1654_v36, 0.0  ;;  %vm2814_vm2 = vcmp.lt.s32.totalorder %v5125_v8, 2744  ;;  %v5523_v49 = vpop.f32.mrb[9].mxu1  ;;  %v4345_v17 = vpop.f32.mrb[26].mxu0 }
 0x127   : > { %v5515_v63 = vsel %vm3046_vm7, %v2984_v50, 0.0  ;;  %v4182_v2 = vpack.c.bf16 %v1826_v4, %v1826_v4  ;;  %v4140_v34 = vpack.c.bf16 %v1784_v44, %v1784_v44  ;;  %v2940_v43 = vsel %vm2812_vm12, %v1784_v44, 0.0  ;;  %v5531_v36 = vpop.f32.mrb[10].mxu1 }
 0x128   : > { %v1785_v40 = vmax.f32 %v1657_v54, 0.0  ;;  %v1783_v39 = vmax.f32 %v1655_v47, 0.0  ;;  %vm2817_vm3 = vcmp.lt.s32.totalorder %v5128_v9, 2744  ;;  %vm2815_vm5 = vcmp.lt.s32.totalorder %v5131_v11, 2744  ;;  %v1080_v54 = vpop.f32.mrb[27].mxu0  ;;  %v5538_v47 = vpop.f32.mrb[11].mxu1 }
 0x129   : > { %v3085_v5 = vadd.f32 %v3084_v62, %v3083_v56  ;;  %v4138_v45 = vpack.c.bf16 %v1782_v16, %v1782_v16  ;;  %v2938_v58 = vsel %vm2810_vm13, %v1782_v16, 0.0  ;;  %2467 = vst.msk [vmem:[%s5299_s27 + $0x100] sm:$0xf] %vm2402_vm4, %v4182_v2  ;;  %v2982_v52 = vsel %vm2854_vm14, %v1826_v4, 0.0  ;;  %2425 = vst.msk [vmem:[%s5299_s27 + $0x58] sm:$0xf] %vm2402_vm4, %v4140_v34 }
 0x12a   : > { %v3086_v50 = vsel %vm3046_vm7, %v2938_v58, 0.0  ;;  %v4141_v44 = vpack.c.bf16 %v1785_v40, %v1785_v40  ;;  %v2941_v62 = vsel %vm2813_vm15, %v1785_v40, 0.0  ;;  %v4139_v53 = vpack.c.bf16 %v1783_v39, %v1783_v39 }
 0x12b   : > { %v3090_v56 = vsel %vm3046_vm7, %v2940_v43, 0.0  ;;  %2423 = vst.msk [vmem:[%s5299_s27 + $0x50] sm:$0xf] %vm2402_vm4, %v4138_v45  ;;  %v3087_v57 = vadd.f32 %v3086_v50, %v3085_v5  ;;  %v2939_v4 = vsel %vm2811_vm0, %v1783_v39, 0.0  ;;  %v1525_v16 = vmul.f32 %v4344_v61, %v5202_v6 }
 0x12c   : > { %vm2857_vm6 = vcmp.lt.s32.totalorder %v5347_v1, 2744  ;;  %2426 = vst.msk [vmem:[%s5299_s27 + $0x5c] sm:$0xf] %vm2402_vm4, %v4141_v44  ;;  %2424 = vst.msk [vmem:[%s5299_s27 + $0x54] sm:$0xf] %vm2402_vm4, %v4139_v53  ;;  %v3088_v55 = vsel %vm3046_vm7, %v2939_v4, 0.0  ;;  %v1523_v2 = vmul.f32 %v5202_v6, %v1077_v51  ;;  %v1526_v34 = vmul.f32 %v4345_v17, %v5202_v6 }
 0x12d   : > { %v1524_v43 = vmul.f32 %v5202_v6, %v1080_v54  ;;  %v3092_v40 = vsel %vm3046_vm7, %v2941_v62, 0.0  ;;  %v3089_v59 = vadd.f32 %v3088_v55, %v3087_v57  ;;  %v1660_v39 = vadd.f32 %v5232_v32, %v1525_v16  ;;  %v4348_v44 = vpop.f32.mrb[28].mxu0  ;;  %v5569_v53 = vpop.f32.mrb[12].mxu1 }
 0x12e   : > { %v1701_v61 = vadd.f32 %v5232_v32, %v5468_v22  ;;  %v1658_v5 = vadd.f32 %v5232_v32, %v1523_v2  ;;  %v1661_v45 = vadd.f32 %v5232_v32, %v1526_v34  ;;  %vm2820_vm8 = vcmp.lt.s32.totalorder %v5135_v13, 2744  ;;  %v1093_v55 = vpop.f32.mrb[29].mxu0 }
 0x12f   : > { %v1659_v58 = vadd.f32 %v5232_v32, %v1524_v43  ;;  %vm2818_vm9 = vcmp.lt.s32.totalorder %v5138_v14, 2744  ;;  %v5565_v51 = vsel %vm3046_vm7, %v2982_v52, 0.0  ;;  %v3091_v17 = vadd.f32 %v3090_v56, %v3089_v59  ;;  %v5573_v52 = vpop.f32.mrb[13].mxu1  ;;  %v4349_v43 = vpop.f32.mrb[30].mxu0 }
 0x130   : > { %v1788_v50 = vmax.f32 %v1660_v39, 0.0  ;;  %v1829_v62 = vmax.f32 %v1701_v61, 0.0  ;;  %v1564_v22 = vmul.f32 %v5202_v6, %v5448_v18  ;;  %v1786_v54 = vmax.f32 %v1658_v5, 0.0  ;;  %v5579_v59 = vpop.f32.mrb[14].mxu1 }
 0x131   : > { %v1789_v57 = vmax.f32 %v1661_v45, 0.0  ;;  %v1787_v4 = vmax.f32 %v1659_v58, 0.0  ;;  %v1529_v16 = vmul.f32 %v4348_v44, %v5202_v6  ;;  %vm2821_vm10 = vcmp.lt.s32.totalorder %v5141_v15, 2744  ;;  %v5587_v45 = vpop.f32.mrb[15].mxu1 }
 0x132   : > { %v3093_v56 = vadd.f32 %v3092_v40, %v3091_v17  ;;  %v4144_v2 = vpack.c.bf16 %v1788_v50, %v1788_v50  ;;  %v2944_v34 = vsel %vm2816_vm1, %v1788_v50, 0.0  ;;  %v1527_v18 = vmul.f32 %v5202_v6, %v1093_v55  ;;  %v1096_v40 = vpop.f32.mrb[31].mxu0 }
 0x133   : > { %vm2819_vm11 = vcmp.lt.s32.totalorder %v5145_v24, 2744  ;;  %v4142_v39 = vpack.c.bf16 %v1786_v54, %v1786_v54  ;;  %v2942_v61 = vsel %vm2814_vm2, %v1786_v54, 0.0  ;;  %v4145_v5 = vpack.c.bf16 %v1789_v57, %v1789_v57 }
 0x134   : > { %v5585_v3 = vmul.f32 %v5470_v21, %v5202_v6  ;;  %2429 = vst.msk [vmem:[%s5299_s27 + $0x68] sm:$0xf] %vm2402_vm4, %v4144_v2  ;;  %v3094_v58 = vsel %vm3046_vm7, %v2942_v61, 0.0  ;;  %v2945_v17 = vsel %vm2817_vm3, %v1789_v57, 0.0  ;;  %v4143_v50 = vpack.c.bf16 %v1787_v4, %v1787_v4 }
 0x135   : > { %v2943_v8 = vsel %vm2815_vm5, %v1787_v4, 0.0  ;;  %v3098_v44 = vsel %vm3046_vm7, %v2944_v34, 0.0  ;;  %2427 = vst.msk [vmem:[%s5299_s27 + $0x60] sm:$0xf] %vm2402_vm4, %v4142_v39  ;;  %v3095_v54 = vadd.f32 %v3094_v58, %v3093_v56  ;;  %2430 = vst.msk [vmem:[%s5299_s27 + $0x6c] sm:$0xf] %vm2402_vm4, %v4145_v5  ;;  %v1664_v55 = vadd.f32 %v5232_v32, %v1529_v16 }
 0x136   : > { %v3096_v21 = vsel %vm3046_vm7, %v2943_v8, 0.0  ;;  %vm2824_vm12 = vcmp.lt.s32.totalorder %v5148_v25, 2744  ;;  %2428 = vst.msk [vmem:[%s5299_s27 + $0x64] sm:$0xf] %vm2402_vm4, %v4143_v50  ;;  %v1662_v9 = vadd.f32 %v5232_v32, %v1527_v18  ;;  %v1530_v11 = vmul.f32 %v4349_v43, %v5202_v6  ;;  %v4352_v18 = vpop.f32.mrb[32].mxu0 }
 0x137   : > { %v1528_v57 = vmul.f32 %v5202_v6, %v1096_v40  ;;  %v4185_v4 = vpack.c.bf16 %v1829_v62, %v1829_v62  ;;  %v3100_v56 = vsel %vm3046_vm7, %v2945_v17, 0.0  ;;  %v3097_v2 = vadd.f32 %v3096_v21, %v3095_v54  ;;  %v5619_v40 = vpop.f32.mrb[16].mxu1 }
 0x138   : > { %v1792_v34 = vmax.f32 %v1664_v55, 0.0  ;;  %vm2822_vm13 = vcmp.lt.s32.totalorder %v5151_v26, 2744  ;;  %v2985_v16 = vsel %vm2857_vm6, %v1829_v62, 0.0  ;;  %v1790_v39 = vmax.f32 %v1662_v9, 0.0  ;;  %v1109_v62 = vpop.f32.mrb[33].mxu0  ;;  %v5625_v8 = vpop.f32.mrb[17].mxu1 }
 0x139   : > { %v1665_v61 = vadd.f32 %v5232_v32, %v1530_v11  ;;  %v1663_v5 = vadd.f32 %v5232_v32, %v1528_v57  ;;  %vm2825_vm14 = vcmp.lt.s32.totalorder %v5154_v28, 2744  ;;  %2470 = vst.msk [vmem:[%s5299_s27 + $0x10c] sm:$0xf] %vm2402_vm4, %v4185_v4  ;;  %v1699_v43 = vadd.f32 %v5232_v32, %v1564_v22  ;;  %v4353_v9 = vpop.f32.mrb[34].mxu0 }
 0x13a   : > { %v3099_v58 = vadd.f32 %v3098_v44, %v3097_v2  ;;  %v4148_v17 = vpack.c.bf16 %v1792_v34, %v1792_v34  ;;  %v1533_v1 = vmul.f32 %v4352_v18, %v5202_v6  ;;  %v5623_v50 = vsel %vm3046_vm7, %v2985_v16, 0.0  ;;  %v5632_v44 = vpop.f32.mrb[18].mxu1  ;;  %v1112_v2 = vpop.f32.mrb[35].mxu0 }
 0x13b   : > { %v2948_v54 = vsel %vm2820_vm8, %v1792_v34, 0.0  ;;  %v4146_v21 = vpack.c.bf16 %v1790_v39, %v1790_v39  ;;  %v2946_v22 = vsel %vm2818_vm9, %v1790_v39, 0.0  ;;  %v1793_v55 = vmax.f32 %v1665_v61, 0.0  ;;  %v5638_v34 = vpop.f32.mrb[19].mxu1 }
 0x13c   : > { %vm2823_vm15 = vcmp.lt.s32.totalorder %v5157_v29, 2744  ;;  %v3101_v11 = vadd.f32 %v3100_v56, %v3099_v58  ;;  %2433 = vst.msk [vmem:[%s5299_s27 + $0x78] sm:$0xf] %vm2402_vm4, %v4148_v17  ;;  %v3102_v57 = vsel %vm3046_vm7, %v2946_v22, 0.0  ;;  %v1791_v4 = vmax.f32 %v1663_v5, 0.0  ;;  %v6821_v29 = vld [vmem:[#allocation5_spill] sm:$0xff] }
 0x13d   : > { %v1668_v13 = vadd.f32 %v5232_v32, %v1533_v1  ;;  %2431 = vst.msk [vmem:[%s5299_s27 + $0x70] sm:$0xf] %vm2402_vm4, %v4146_v21  ;;  %v4149_v14 = vpack.c.bf16 %v1793_v55, %v1793_v55  ;;  %v2949_v16 = vsel %vm2821_vm10, %v1793_v55, 0.0  ;;  %v1531_v56 = vmul.f32 %v5202_v6, %v1109_v62 }
 0x13e   : > { %v1534_v39 = vmul.f32 %v4353_v9, %v5202_v6  ;;  %vm2855_vm0 = vcmp.lt.s32.totalorder %v5371_v27, 2744  ;;  %v3106_v61 = vsel %vm3046_vm7, %v2948_v54, 0.0  ;;  %v3103_v5 = vadd.f32 %v3102_v57, %v3101_v11 }
 0x13f   : > { %v4147_v18 = vpack.c.bf16 %v1791_v4, %v1791_v4  ;;  %v2947_v58 = vsel %vm2819_vm11, %v1791_v4, 0.0  ;;  %vm2828_vm1 = vcmp.lt.s32.totalorder %v5160_v30, 2744  ;;  %2434 = vst.msk [vmem:[%s5299_s27 + $0x7c] sm:$0xf] %vm2402_vm4, %v4149_v14  ;;  %v1796_v17 = vmax.f32 %v1668_v13, 0.0  ;;  %v4356_v4 = vpop.f32.mrb[36].mxu0 }
 0x140   : > { %v3104_v15 = vsel %vm3046_vm7, %v2947_v58, 0.0  ;;  %v1666_v1 = vadd.f32 %v5232_v32, %v1531_v56  ;;  %v1669_v62 = vadd.f32 %v5232_v32, %v1534_v39  ;;  %v3108_v21 = vsel %vm3046_vm7, %v2949_v16, 0.0  ;;  %v5664_v13 = vpop.f32.mrb[20].mxu1  ;;  %v1125_v56 = vpop.f32.mrb[37].mxu0 }
 0x141   : > { %2432 = vst.msk [vmem:[%s5299_s27 + $0x74] sm:$0xf] %vm2402_vm4, %v4147_v18  ;;  %v3105_v54 = vadd.f32 %v3104_v15, %v3103_v5  ;;  %v1532_v22 = vmul.f32 %v5202_v6, %v1112_v2  ;;  %vm2826_vm2 = vcmp.lt.s32.totalorder %v5163_v31, 2744  ;;  %vm2829_vm3 = vcmp.lt.s32.totalorder %v5167_v33, 2744  ;;  %v5671_v25 = vpop.f32.mrb[21].mxu1  ;;  %v4357_v58 = vpop.f32.mrb[38].mxu0 }
 0x142   : > { %v1827_v24 = vmax.f32 %v1699_v43, 0.0  ;;  %v4152_v55 = vpack.c.bf16 %v1796_v17, %v1796_v17  ;;  %v2952_v9 = vsel %vm2824_vm12, %v1796_v17, 0.0  ;;  %v1794_v11 = vmax.f32 %v1666_v1, 0.0  ;;  %v5678_v15 = vpop.f32.mrb[22].mxu1 }
 0x143   : > { %v1797_v57 = vmax.f32 %v1669_v62, 0.0  ;;  %v3107_v14 = vadd.f32 %v3106_v61, %v3105_v54  ;;  %v1667_v16 = vadd.f32 %v5232_v32, %v1532_v22  ;;  %v1537_v2 = vmul.f32 %v4356_v4, %v5202_v6  ;;  %v1128_v54 = vpop.f32.mrb[39].mxu0  ;;  %v5683_v22 = vpop.f32.mrb[23].mxu1  ;;  %v6819_v4 = vld [vmem:[#allocation3_spill] sm:$0xff] }
 0x144   : > { %vm2827_vm5 = vcmp.lt.s32.totalorder %v5173_v38, 2744  ;;  %v1704_v43 = vadd.f32 %v5232_v32, %v5585_v3  ;;  %2437 = vst.msk [vmem:[%s5299_s27 + $0x88] sm:$0xf] %vm2402_vm4, %v4152_v55  ;;  %v3114_v39 = vsel %vm3046_vm7, %v2952_v9, 0.0  ;;  %v4150_v5 = vpack.c.bf16 %v1794_v11, %v1794_v11 }
 0x145   : > { %v2950_v61 = vsel %vm2822_vm13, %v1794_v11, 0.0  ;;  %v4153_v18 = vpack.c.bf16 %v1797_v57, %v1797_v57  ;;  %v3109_v17 = vadd.f32 %v3108_v21, %v3107_v14  ;;  %v2953_v3 = vsel %vm2825_vm14, %v1797_v57, 0.0 }
 0x146   : > { %v3110_v1 = vsel %vm3046_vm7, %v2950_v61, 0.0  ;;  %v1795_v62 = vmax.f32 %v1667_v16, 0.0  ;;  %2435 = vst.msk [vmem:[%s5299_s27 + $0x80] sm:$0xf] %vm2402_vm4, %v4150_v5  ;;  %v1672_v26 = vadd.f32 %v5232_v32, %v1537_v2  ;;  %v1535_v55 = vmul.f32 %v5202_v6, %v1125_v56 }
 0x147   : > { %2438 = vst.msk [vmem:[%s5299_s27 + $0x8c] sm:$0xf] %vm2402_vm4, %v4153_v18  ;;  %v1538_v21 = vmul.f32 %v4357_v58, %v5202_v6  ;;  %v1536_v9 = vmul.f32 %v5202_v6, %v1128_v54  ;;  %vm2860_vm6 = vcmp.lt.s32.totalorder %v5386_v19, 2744  ;;  %v3111_v28 = vadd.f32 %v3110_v1, %v3109_v17  ;;  %v6820_v17 = vld [vmem:[#allocation4_spill] sm:$0xff] }
 0x148   : > { %v4151_v11 = vpack.c.bf16 %v1795_v62, %v1795_v62  ;;  %v2951_v57 = vsel %vm2823_vm15, %v1795_v62, 0.0  ;;  %vm2832_vm8 = vcmp.lt.s32.totalorder %v6819_v4, 2744  ;;  %v4183_v14 = vpack.c.bf16 %v1827_v24, %v1827_v24 }
 0x149   : > { %v3112_v16 = vsel %vm3046_vm7, %v2951_v57, 0.0  ;;  %v1800_v2 = vmax.f32 %v1672_v26, 0.0  ;;  %v1670_v56 = vadd.f32 %v5232_v32, %v1535_v55  ;;  %v1673_v5 = vadd.f32 %v5232_v32, %v1538_v21  ;;  %v4360_v55 = vpop.f32.mrb[40].mxu0  ;;  %v5712_v21 = vpop.f32.mrb[24].mxu1 }
 0x14a   : > { %v3116_v61 = vsel %vm3046_vm7, %v2953_v3, 0.0  ;;  %2436 = vst.msk [vmem:[%s5299_s27 + $0x84] sm:$0xf] %vm2402_vm4, %v4151_v11  ;;  %v3113_v18 = vadd.f32 %v3112_v16, %v3111_v28  ;;  %v1671_v58 = vadd.f32 %v5232_v32, %v1536_v9  ;;  %vm2830_vm9 = vcmp.lt.s32.totalorder %v6820_v17, 2744  ;;  %2468 = vst.msk [vmem:[%s5299_s27 + $0x104] sm:$0xf] %vm2402_vm4, %v4183_v14 }
 0x14b   : > { %vm2833_vm10 = vcmp.lt.s32.totalorder %v6821_v29, 2744  ;;  %v2983_v1 = vsel %vm2855_vm0, %v1827_v24, 0.0  ;;  %v4156_v62 = vpack.c.bf16 %v1800_v2, %v1800_v2  ;;  %v2956_v54 = vsel %vm2828_vm1, %v1800_v2, 0.0  ;;  %v1141_v57 = vpop.f32.mrb[41].mxu0  ;;  %v6822_v16 = vld [vmem:[#allocation6_spill] sm:$0xff]  ;;  %v5716_v27 = vpop.f32.mrb[25].mxu1 }
 0x14c   : > { %v1798_v3 = vmax.f32 %v1670_v56, 0.0  ;;  %v1801_v26 = vmax.f32 %v1673_v5, 0.0  ;;  %v3115_v9 = vadd.f32 %v3114_v39, %v3113_v18  ;;  %v1799_v28 = vmax.f32 %v1671_v58, 0.0  ;;  %6823 = vst [vmem:[#allocation3_spill] sm:$0xff] %v5716_v27  ;;  %v4361_v56 = vpop.f32.mrb[42].mxu0  ;;  %v6830_v27 = vld [vmem:[#allocation10_spill] sm:$0xff] }
 0x14d   : > { %v1541_v11 = vmul.f32 %v4360_v55, %v5202_v6  ;;  %vm2831_vm11 = vcmp.lt.s32.totalorder %v6822_v16, 2744  ;;  %v1832_v14 = vmax.f32 %v1704_v43, 0.0  ;;  %2441 = vst.msk [vmem:[%s5299_s27 + $0x98] sm:$0xf] %vm2402_vm4, %v4156_v62  ;;  %v5724_v6 = vpop.f32.mrb[26].mxu1  ;;  %v3122_v43 = vsel %vm3046_vm7, %v2956_v54, 0.0 }
 0x14e   : > { %v4154_v30 = vpack.c.bf16 %v1798_v3, %v1798_v3  ;;  %v2954_v24 = vsel %vm2826_vm2, %v1798_v3, 0.0  ;;  %v4157_v2 = vpack.c.bf16 %v1801_v26, %v1801_v26  ;;  %v2957_v39 = vsel %vm2829_vm3, %v1801_v26, 0.0  ;;  %6824 = vst [vmem:[#allocation4_spill] sm:$0xff] %v5724_v6  ;;  %v1144_v55 = vpop.f32.mrb[43].mxu0  ;;  %v5728_v62 = vpop.f32.mrb[27].mxu1 }
 0x14f   : > { %v3117_v5 = vadd.f32 %v3116_v61, %v3115_v9  ;;  %v3118_v18 = vsel %vm3046_vm7, %v2954_v24, 0.0  ;;  %v4155_v58 = vpack.c.bf16 %v1799_v28, %v1799_v28  ;;  %6825 = vst [vmem:[#allocation5_spill] sm:$0xff] %v5728_v62  ;;  %v2955_v31 = vsel %vm2827_vm5, %v1799_v28, 0.0  ;;  %v5740_v61 = vld [vmem:[%s6772_s2] ss:$0 sm:$0xff] }
 0x150   : > { %2439 = vst.msk [vmem:[%s5299_s27 + $0x90] sm:$0xf] %vm2402_vm4, %v4154_v30  ;;  %2442 = vst.msk [vmem:[%s5299_s27 + $0x9c] sm:$0xf] %vm2402_vm4, %v4157_v2  ;;  %v1676_v33 = vadd.f32 %v5232_v32, %v1541_v11  ;;  %v1539_v54 = vmul.f32 %v5740_v61, %v1141_v57  ;;  %v1542_v3 = vmul.f32 %v5740_v61, %v4361_v56  ;;  %v3124_v9 = vsel %vm3046_vm7, %v2957_v39, 0.0  ;;  %v6826_v28 = vld [vmem:[#allocation7_spill] sm:$0xff] }
 0x151   : > { %v3119_v26 = vadd.f32 %v3118_v18, %v3117_v5  ;;  %2440 = vst.msk [vmem:[%s5299_s27 + $0x94] sm:$0xf] %vm2402_vm4, %v4155_v58  ;;  %v3120_v30 = vsel %vm3046_vm7, %v2955_v31, 0.0  ;;  %v1540_v38 = vmul.f32 %v5740_v61, %v1144_v55  ;;  %vm2836_vm12 = vcmp.lt.s32.totalorder %v6826_v28, 2744  ;;  %v5754_v57 = vld [vmem:[%s6773_s3] ss:$0 sm:$0xff] }
 0x152   : > { %v1804_v11 = vmax.f32 %v1676_v33, 0.0  ;;  %v1674_v24 = vadd.f32 %v5232_v32, %v1539_v54  ;;  %v1677_v2 = vadd.f32 %v5754_v57, %v1542_v3  ;;  %v4188_v39 = vpack.c.bf16 %v1832_v14, %v1832_v14  ;;  %v6827_v18 = vld [vmem:[#allocation8_spill] sm:$0xff]  ;;  %v6828_v58 = vld [vmem:[#allocation9_spill] sm:$0xff] }
 0x153   : > { %v3121_v56 = vadd.f32 %v3120_v30, %v3119_v26  ;;  %v1675_v5 = vadd.f32 %v5754_v57, %v1540_v38  ;;  %vm2834_vm13 = vcmp.lt.s32.totalorder %v6827_v18, 2744  ;;  %vm2837_vm14 = vcmp.lt.s32.totalorder %v6828_v58, 2744  ;;  %v4364_v26 = vpop.f32.mrb[44].mxu0  ;;  %v5769_v30 = vpop.f32.mrb[28].mxu1 }
 0x154   : > { %v5761_v55 = vsel %vm3046_vm7, %v2983_v1, 0.0  ;;  %v2988_v32 = vsel %vm2860_vm6, %v1832_v14, 0.0  ;;  %v4160_v31 = vpack.c.bf16 %v1804_v11, %v1804_v11  ;;  %v2960_v33 = vsel %vm2832_vm8, %v1804_v11, 0.0  ;;  %2473 = vst.msk [vmem:[%s5299_s27 + $0x118] sm:$0xf] %vm2402_vm4, %v4188_v39  ;;  %6829 = vst [vmem:[#allocation6_spill] sm:$0xff] %v5769_v30 }
 0x155   : > { %v1802_v54 = vmax.f32 %v1674_v24, 0.0  ;;  %v1805_v3 = vmax.f32 %v1677_v2, 0.0  ;;  %v3123_v38 = vadd.f32 %v3122_v43, %v3121_v56  ;;  %v1803_v62 = vmax.f32 %v1675_v5, 0.0  ;;  %v1157_v6 = vpop.f32.mrb[45].mxu0  ;;  %v5775_v4 = vpop.f32.mrb[29].mxu1  ;;  %v6845_v30 = vld [vmem:[#allocation18_spill] sm:$0xff] }
 0x156   : > { %v1545_v1 = vmul.f32 %v5740_v61, %v4364_v26  ;;  %vm2835_vm15 = vcmp.lt.s32.totalorder %v6830_v27, 2744  ;;  %v1567_v19 = vmul.f32 %v5740_v61, %v5477_v12  ;;  %6831 = vst [vmem:[#allocation7_spill] sm:$0xff] %v5775_v4  ;;  %2445 = vst.msk [vmem:[%s5299_s27 + $0xa8] sm:$0xf] %vm2402_vm4, %v4160_v31  ;;  %v4365_v2 = vpop.f32.mrb[46].mxu0  ;;  %v5783_v39 = vpop.f32.mrb[30].mxu1 }
 0x157   : > { %v4158_v14 = vpack.c.bf16 %v1802_v54, %v1802_v54  ;;  %v2958_v11 = vsel %vm2830_vm9, %v1802_v54, 0.0  ;;  %v4161_v43 = vpack.c.bf16 %v1805_v3, %v1805_v3  ;;  %v2961_v24 = vsel %vm2833_vm10, %v1805_v3, 0.0  ;;  %6832 = vst [vmem:[#allocation8_spill] sm:$0xff] %v5783_v39  ;;  %v1160_v4 = vpop.f32.mrb[47].mxu0  ;;  %v5787_v31 = vpop.f32.mrb[31].mxu1 }
 0x158   : > { %v3125_v56 = vadd.f32 %v3124_v9, %v3123_v38  ;;  %v3130_v12 = vsel %vm3046_vm7, %v2960_v33, 0.0  ;;  %v3126_v5 = vsel %vm3046_vm7, %v2958_v11, 0.0  ;;  %v4159_v26 = vpack.c.bf16 %v1803_v62, %v1803_v62  ;;  %6833 = vst [vmem:[#allocation9_spill] sm:$0xff] %v5787_v31  ;;  %v6834_v11 = vld [vmem:[#allocation11_spill] sm:$0xff] }
 0x159   : > { %2443 = vst.msk [vmem:[%s5299_s27 + $0xa0] sm:$0xf] %vm2402_vm4, %v4158_v14  ;;  %2446 = vst.msk [vmem:[%s5299_s27 + $0xac] sm:$0xf] %vm2402_vm4, %v4161_v43  ;;  %v2959_v17 = vsel %vm2831_vm11, %v1803_v62, 0.0  ;;  %v1680_v29 = vadd.f32 %v5754_v57, %v1545_v1  ;;  %v1543_v54 = vmul.f32 %v5740_v61, %v1157_v6  ;;  %v1546_v9 = vmul.f32 %v5740_v61, %v4365_v2 }
 0x15a   : > { %vm2858_vm0 = vcmp.lt.s32.totalorder %v5402_v35, 2744  ;;  %v3127_v33 = vadd.f32 %v3126_v5, %v3125_v56  ;;  %v3132_v3 = vsel %vm3046_vm7, %v2961_v24, 0.0  ;;  %2444 = vst.msk [vmem:[%s5299_s27 + $0xa4] sm:$0xf] %vm2402_vm4, %v4159_v26  ;;  %v3128_v38 = vsel %vm3046_vm7, %v2959_v17, 0.0  ;;  %v6835_v24 = vld [vmem:[#allocation12_spill] sm:$0xff] }
 0x15b   : > { %v1544_v14 = vmul.f32 %v5740_v61, %v1160_v4  ;;  %vm2840_vm1 = vcmp.lt.s32.totalorder %v6834_v11, 2744  ;;  %v1808_v16 = vmax.f32 %v1680_v29, 0.0  ;;  %v1678_v62 = vadd.f32 %v5754_v57, %v1543_v54  ;;  %v6836_v56 = vld [vmem:[#allocation13_spill] sm:$0xff]  ;;  %v4368_v54 = vpop.f32.mrb[48].mxu0 }
 0x15c   : > { %v1681_v6 = vadd.f32 %v5754_v57, %v1546_v9  ;;  %v5808_v1 = vsel %vm3046_vm7, %v2988_v32, 0.0  ;;  %v3129_v43 = vadd.f32 %v3128_v38, %v3127_v33  ;;  %vm2838_vm2 = vcmp.lt.s32.totalorder %v6835_v24, 2744  ;;  %v5818_v9 = vpop.f32.mrb[32].mxu1  ;;  %v1173_v39 = vpop.f32.mrb[49].mxu0 }
 0x15d   : > { %v1679_v2 = vadd.f32 %v5754_v57, %v1544_v14  ;;  %vm2841_vm3 = vcmp.lt.s32.totalorder %v6836_v56, 2744  ;;  %v1702_v4 = vadd.f32 %v5754_v57, %v1567_v19  ;;  %v1570_v5 = vmul.f32 %v5740_v61, %v5481_v48  ;;  %6837 = vst [vmem:[#allocation10_spill] sm:$0xff] %v5818_v9  ;;  %v6838_v19 = vld [vmem:[#allocation14_spill] sm:$0xff]  ;;  %v5823_v48 = vpop.f32.mrb[33].mxu1 }
 0x15e   : > { %v4164_v26 = vpack.c.bf16 %v1808_v16, %v1808_v16  ;;  %v2964_v17 = vsel %vm2836_vm12, %v1808_v16, 0.0  ;;  %v1806_v29 = vmax.f32 %v1678_v62, 0.0  ;;  %v1809_v32 = vmax.f32 %v1681_v6, 0.0  ;;  %6839 = vst [vmem:[#allocation11_spill] sm:$0xff] %v5823_v48  ;;  %v4369_v6 = vpop.f32.mrb[50].mxu0 }
 0x15f   : > { %v3131_v33 = vadd.f32 %v3130_v12, %v3129_v43  ;;  %v3138_v38 = vsel %vm3046_vm7, %v2964_v17, 0.0  ;;  %v1807_v14 = vmax.f32 %v1679_v2, 0.0  ;;  %v1549_v31 = vmul.f32 %v5740_v61, %v4368_v54  ;;  %v5831_v43 = vpop.f32.mrb[34].mxu1  ;;  %v1176_v9 = vpop.f32.mrb[51].mxu0 }
 0x160   : > { %vm2839_vm5 = vcmp.lt.s32.totalorder %v6838_v19, 2744  ;;  %2449 = vst.msk [vmem:[%s5299_s27 + $0xb8] sm:$0xf] %vm2402_vm4, %v4164_v26  ;;  %v4162_v28 = vpack.c.bf16 %v1806_v29, %v1806_v29  ;;  %v2962_v16 = vsel %vm2834_vm13, %v1806_v29, 0.0  ;;  %v4165_v62 = vpack.c.bf16 %v1809_v32, %v1809_v32  ;;  %6840 = vst [vmem:[#allocation12_spill] sm:$0xff] %v5831_v43  ;;  %v5835_v26 = vpop.f32.mrb[35].mxu1 }
 0x161   : > { %v2965_v12 = vsel %vm2837_vm14, %v1809_v32, 0.0  ;;  %v3133_v2 = vadd.f32 %v3132_v3, %v3131_v33  ;;  %v3134_v17 = vsel %vm3046_vm7, %v2962_v16, 0.0  ;;  %v4163_v48 = vpack.c.bf16 %v1807_v14, %v1807_v14  ;;  %6841 = vst [vmem:[#allocation13_spill] sm:$0xff] %v5835_v26 }
 0x162   : > { %v3140_v54 = vsel %vm3046_vm7, %v2965_v12, 0.0  ;;  %2447 = vst.msk [vmem:[%s5299_s27 + $0xb0] sm:$0xf] %vm2402_vm4, %v4162_v28  ;;  %2450 = vst.msk [vmem:[%s5299_s27 + $0xbc] sm:$0xf] %vm2402_vm4, %v4165_v62  ;;  %v2963_v18 = vsel %vm2835_vm15, %v1807_v14, 0.0  ;;  %v1684_v58 = vadd.f32 %v5754_v57, %v1549_v31  ;;  %v1547_v29 = vmul.f32 %v5740_v61, %v1173_v39 }
 0x163   : > { %v1550_v3 = vmul.f32 %v5740_v61, %v4369_v6  ;;  %v3135_v32 = vadd.f32 %v3134_v17, %v3133_v2  ;;  %2448 = vst.msk [vmem:[%s5299_s27 + $0xb4] sm:$0xf] %vm2402_vm4, %v4163_v48  ;;  %v3136_v33 = vsel %vm3046_vm7, %v2963_v18, 0.0  ;;  %v1548_v16 = vmul.f32 %v5740_v61, %v1176_v9  ;;  %v6842_v12 = vld [vmem:[#allocation15_spill] sm:$0xff]  ;;  %v6843_v2 = vld [vmem:[#allocation16_spill] sm:$0xff]  ;;  %v6844_v48 = vld [vmem:[#allocation17_spill] sm:$0xff] }
 0x164   : > { %vm2844_vm6 = vcmp.lt.s32.totalorder %v6842_v12, 2744  ;;  %v1830_v28 = vmax.f32 %v1702_v4, 0.0  ;;  %v1812_v62 = vmax.f32 %v1684_v58, 0.0  ;;  %v1682_v27 = vadd.f32 %v5754_v57, %v1547_v29 }
 0x165   : > { %v1685_v14 = vadd.f32 %v5754_v57, %v1550_v3  ;;  %v1705_v31 = vadd.f32 %v5754_v57, %v1570_v5  ;;  %v3137_v39 = vadd.f32 %v3136_v33, %v3135_v32  ;;  %v1683_v6 = vadd.f32 %v5754_v57, %v1548_v16  ;;  %v4372_v5 = vpop.f32.mrb[52].mxu0  ;;  %v5861_v3 = vpop.f32.mrb[36].mxu1 }
 0x166   : > { %vm2842_vm8 = vcmp.lt.s32.totalorder %v6843_v2, 2744  ;;  %vm2845_vm9 = vcmp.lt.s32.totalorder %v6844_v48, 2744  ;;  %v4186_v17 = vpack.c.bf16 %v1830_v28, %v1830_v28  ;;  %v2986_v4 = vsel %vm2858_vm0, %v1830_v28, 0.0  ;;  %v1189_v43 = vpop.f32.mrb[53].mxu0  ;;  %v5868_v35 = vpop.f32.mrb[37].mxu1 }
 0x167   : > { %v4168_v9 = vpack.c.bf16 %v1812_v62, %v1812_v62  ;;  %v2968_v18 = vsel %vm2840_vm1, %v1812_v62, 0.0  ;;  %v1810_v58 = vmax.f32 %v1682_v27, 0.0  ;;  %v1813_v29 = vmax.f32 %v1685_v14, 0.0  ;;  %v4373_v27 = vpop.f32.mrb[54].mxu0  ;;  %v5876_v14 = vpop.f32.mrb[38].mxu1 }
 0x168   : > { %v3139_v32 = vadd.f32 %v3138_v38, %v3137_v39  ;;  %v3146_v33 = vsel %vm3046_vm7, %v2968_v18, 0.0  ;;  %v1811_v16 = vmax.f32 %v1683_v6, 0.0  ;;  %v1553_v26 = vmul.f32 %v5740_v61, %v4372_v5  ;;  %2471 = vst.msk [vmem:[%s5299_s27 + $0x110] sm:$0xf] %vm2402_vm4, %v4186_v17  ;;  %v1192_v5 = vpop.f32.mrb[55].mxu0 }
 0x169   : > { %vm2843_vm10 = vcmp.lt.s32.totalorder %v6845_v30, 2744  ;;  %2453 = vst.msk [vmem:[%s5299_s27 + $0xc8] sm:$0xf] %vm2402_vm4, %v4168_v9  ;;  %v4166_v11 = vpack.c.bf16 %v1810_v58, %v1810_v58  ;;  %v2966_v38 = vsel %vm2838_vm2, %v1810_v58, 0.0  ;;  %v4169_v28 = vpack.c.bf16 %v1813_v29, %v1813_v29  ;;  %v5881_v9 = vpop.f32.mrb[39].mxu1 }
 0x16a   : > { %v2969_v62 = vsel %vm2841_vm3, %v1813_v29, 0.0  ;;  %v3141_v39 = vadd.f32 %v3140_v54, %v3139_v32  ;;  %v3142_v6 = vsel %vm3046_vm7, %v2966_v38, 0.0  ;;  %v4167_v18 = vpack.c.bf16 %v1811_v16, %v1811_v16 }
 0x16b   : > { %v3148_v17 = vsel %vm3046_vm7, %v2969_v62, 0.0  ;;  %vm2861_vm11 = vcmp.lt.s32.totalorder %v5419_v42, 2744  ;;  %2451 = vst.msk [vmem:[%s5299_s27 + $0xc0] sm:$0xf] %vm2402_vm4, %v4166_v11  ;;  %2454 = vst.msk [vmem:[%s5299_s27 + $0xcc] sm:$0xf] %vm2402_vm4, %v4169_v28  ;;  %v1688_v56 = vadd.f32 %v5754_v57, %v1553_v26  ;;  %v1551_v54 = vmul.f32 %v5740_v61, %v1189_v43 }
 0x16c   : > { %v2967_v24 = vsel %vm2839_vm5, %v1811_v16, 0.0  ;;  %v1554_v58 = vmul.f32 %v5740_v61, %v4373_v27  ;;  %v3143_v29 = vadd.f32 %v3142_v6, %v3141_v39  ;;  %2452 = vst.msk [vmem:[%s5299_s27 + $0xc4] sm:$0xf] %vm2402_vm4, %v4167_v18  ;;  %v1552_v38 = vmul.f32 %v5740_v61, %v1192_v5  ;;  %v6846_v27 = vld [vmem:[#allocation19_spill] sm:$0xff] }
 0x16d   : > { %v3144_v32 = vsel %vm3046_vm7, %v2967_v24, 0.0  ;;  %vm2848_vm12 = vcmp.lt.s32.totalorder %v5266_v0, 2744  ;;  %v5898_v11 = vsel %vm3046_vm7, %v2986_v4, 0.0  ;;  %v1816_v19 = vmax.f32 %v1688_v56, 0.0  ;;  %v4376_v24 = vpop.f32.mrb[56].mxu0  ;;  %v5913_v56 = vpop.f32.mrb[40].mxu1 }
 0x16e   : > { %v1686_v16 = vadd.f32 %v5754_v57, %v1551_v54  ;;  %v1689_v26 = vadd.f32 %v5754_v57, %v1554_v58  ;;  %v1833_v43 = vmax.f32 %v1705_v31, 0.0  ;;  %v3145_v28 = vadd.f32 %v3144_v32, %v3143_v29 }
 0x16f   : > { %v1687_v62 = vadd.f32 %v5754_v57, %v1552_v38  ;;  %vm2846_vm13 = vcmp.lt.s32.totalorder %v5272_v46, 2744  ;;  %vm2849_vm14 = vcmp.lt.s32.totalorder %v6846_v27, 2744  ;;  %v1568_v39 = vmul.f32 %v5740_v61, %v5491_v41  ;;  %v1205_v41 = vpop.f32.mrb[57].mxu0 }
 0x170   : > { %v5909_v4 = vadd.s32 %v5011_v10, %v5422_v23  ;;  %v4172_v6 = vpack.c.bf16 %v1816_v19, %v1816_v19  ;;  %v2972_v18 = vsel %vm2844_vm6, %v1816_v19, 0.0  ;;  %v1814_v31 = vmax.f32 %v1686_v16, 0.0  ;;  %v5918_v23 = vpop.f32.mrb[41].mxu1  ;;  %v4377_v16 = vpop.f32.mrb[58].mxu0 }
 0x171   : > { %v1817_v5 = vmax.f32 %v1689_v26, 0.0  ;;  %v3147_v54 = vadd.f32 %v3146_v33, %v3145_v28  ;;  %v3154_v58 = vsel %vm3046_vm7, %v2972_v18, 0.0  ;;  %v1815_v29 = vmax.f32 %v1687_v62, 0.0  ;;  %6847 = vst [vmem:[#allocation14_spill] sm:$0xff] %v5918_v23  ;;  %v5926_v26 = vpop.f32.mrb[42].mxu1  ;;  %v1208_v23 = vpop.f32.mrb[59].mxu0 }
 0x172   : > { %v1557_v32 = vmul.f32 %v5740_v61, %v4376_v24  ;;  %vm2847_vm15 = vcmp.lt.s32.totalorder %v5279_v60, 2744  ;;  %2457 = vst.msk [vmem:[%s5299_s27 + $0xd8] sm:$0xf] %vm2402_vm4, %v4172_v6  ;;  %v4170_v12 = vpack.c.bf16 %v1814_v31, %v1814_v31  ;;  %v2970_v38 = vsel %vm2842_vm8, %v1814_v31, 0.0  ;;  %v5930_v6 = vpop.f32.mrb[43].mxu1 }
 0x173   : > { %v4173_v19 = vpack.c.bf16 %v1817_v5, %v1817_v5  ;;  %v2973_v33 = vsel %vm2845_vm9, %v1817_v5, 0.0  ;;  %v3149_v28 = vadd.f32 %v3148_v17, %v3147_v54  ;;  %v3150_v62 = vsel %vm3046_vm7, %v2970_v38, 0.0  ;;  %6848 = vst [vmem:[#allocation15_spill] sm:$0xff] %v5930_v6 }
 0x174   : > { %v3156_v18 = vsel %vm3046_vm7, %v2973_v33, 0.0  ;;  %v4171_v24 = vpack.c.bf16 %v1815_v29, %v1815_v29  ;;  %2455 = vst.msk [vmem:[%s5299_s27 + $0xd0] sm:$0xf] %vm2402_vm4, %v4170_v12  ;;  %v2971_v2 = vsel %vm2843_vm10, %v1815_v29, 0.0  ;;  %v1692_v48 = vadd.f32 %v5754_v57, %v1557_v32  ;;  %v6849_v12 = vld [vmem:[#allocation20_spill] sm:$0xff] }
 0x175   : > { %2458 = vst.msk [vmem:[%s5299_s27 + $0xdc] sm:$0xf] %vm2402_vm4, %v4173_v19  ;;  %v1555_v31 = vmul.f32 %v5740_v61, %v1205_v41  ;;  %v1558_v17 = vmul.f32 %v5740_v61, %v4377_v16  ;;  %v3151_v5 = vadd.f32 %v3150_v62, %v3149_v28  ;;  %v3152_v54 = vsel %vm3046_vm7, %v2971_v2, 0.0  ;;  %v6850_v28 = vld [vmem:[#allocation21_spill] sm:$0xff]  ;;  %v6851_v62 = vld [vmem:[#allocation22_spill] sm:$0xff] }
 0x176   : > { %2456 = vst.msk [vmem:[%s5299_s27 + $0xd4] sm:$0xf] %vm2402_vm4, %v4171_v24  ;;  %v1556_v38 = vmul.f32 %v5740_v61, %v1208_v23  ;;  %vm2852_vm0 = vcmp.lt.s32.totalorder %v6849_v12, 2744  ;;  %v4189_v19 = vpack.c.bf16 %v1833_v43, %v1833_v43  ;;  %v1820_v33 = vmax.f32 %v1692_v48, 0.0 }
 0x177   : > { %v1690_v30 = vadd.f32 %v5754_v57, %v1555_v31  ;;  %v1693_v29 = vadd.f32 %v5754_v57, %v1558_v17  ;;  %v2989_v32 = vsel %vm2861_vm11, %v1833_v43, 0.0  ;;  %v3153_v41 = vadd.f32 %v3152_v54, %v3151_v5  ;;  %v4380_v31 = vpop.f32.mrb[60].mxu0  ;;  %v5961_v17 = vpop.f32.mrb[44].mxu1 }
 0x178   : > { %v1691_v16 = vadd.f32 %v5754_v57, %v1556_v38  ;;  %vm2850_vm1 = vcmp.lt.s32.totalorder %v6850_v28, 2744  ;;  %vm2853_vm2 = vcmp.lt.s32.totalorder %v6851_v62, 2744  ;;  %2474 = vst.msk [vmem:[%s5299_s27 + $0x11c] sm:$0xf] %vm2402_vm4, %v4189_v19  ;;  %v5956_v23 = vsel %vm3046_vm7, %v2989_v32, 0.0  ;;  %6852 = vst [vmem:[#allocation16_spill] sm:$0xff] %v5961_v17 }
 0x179   : > { %v1703_v24 = vadd.f32 %v5754_v57, %v1568_v39  ;;  %v4176_v2 = vpack.c.bf16 %v1820_v33, %v1820_v33  ;;  %v2976_v42 = vsel %vm2848_vm12, %v1820_v33, 0.0  ;;  %v1818_v43 = vmax.f32 %v1690_v30, 0.0  ;;  %v1221_v6 = vpop.f32.mrb[61].mxu0  ;;  %v6853_v32 = vld [vmem:[#allocation23_spill] sm:$0xff]  ;;  %v5966_v39 = vpop.f32.mrb[45].mxu1 }
 0x17a   : > { %v1821_v48 = vmax.f32 %v1693_v29, 0.0  ;;  %v3155_v5 = vadd.f32 %v3154_v58, %v3153_v41  ;;  %v3162_v54 = vsel %vm3046_vm7, %v2976_v42, 0.0  ;;  %v1819_v38 = vmax.f32 %v1691_v16, 0.0  ;;  %6854 = vst [vmem:[#allocation17_spill] sm:$0xff] %v5966_v39  ;;  %v4381_v29 = vpop.f32.mrb[62].mxu0  ;;  %v5974_v41 = vpop.f32.mrb[46].mxu1 }
 0x17b   : > { %v1561_v19 = vmul.f32 %v5740_v61, %v4380_v31  ;;  %vm2851_vm3 = vcmp.lt.s32.totalorder %v6853_v32, 2744  ;;  %2461 = vst.msk [vmem:[%s5299_s27 + $0xe8] sm:$0xf] %vm2402_vm4, %v4176_v2  ;;  %v4174_v0 = vpack.c.bf16 %v1818_v43, %v1818_v43  ;;  %v2974_v33 = vsel %vm2846_vm13, %v1818_v43, 0.0  ;;  %v1224_v17 = vpop.f32.mrb[63].mxu0  ;;  %v5978_v2 = vpop.f32.mrb[47].mxu1 }
 0x17c   : > { %v4177_v30 = vpack.c.bf16 %v1821_v48, %v1821_v48  ;;  %v2977_v58 = vsel %vm2849_vm14, %v1821_v48, 0.0  ;;  %v3157_v16 = vadd.f32 %v3156_v18, %v3155_v5  ;;  %v3158_v42 = vsel %vm3046_vm7, %v2974_v33, 0.0 }
 0x17d   : > { %v3164_v31 = vsel %vm3046_vm7, %v2977_v58, 0.0  ;;  %v4175_v39 = vpack.c.bf16 %v1819_v38, %v1819_v38  ;;  %2459 = vst.msk [vmem:[%s5299_s27 + $0xe0] sm:$0xf] %vm2402_vm4, %v4174_v0  ;;  %v2975_v46 = vsel %vm2847_vm15, %v1819_v38, 0.0  ;;  %v1696_v27 = vadd.f32 %v5754_v57, %v1561_v19 }
 0x17e   : > { %2462 = vst.msk [vmem:[%s5299_s27 + $0xec] sm:$0xf] %vm2402_vm4, %v4177_v30  ;;  %v1559_v43 = vmul.f32 %v5740_v61, %v1221_v6  ;;  %v1562_v18 = vmul.f32 %v5740_v61, %v4381_v29  ;;  %v3159_v48 = vadd.f32 %v3158_v42, %v3157_v16  ;;  %v3160_v5 = vsel %vm3046_vm7, %v2975_v46, 0.0  ;;  %v5999_v42 = vpop.f32.mrb[48].mxu1 }
 0x17f   : > { %2460 = vst.msk [vmem:[%s5299_s27 + $0xe4] sm:$0xf] %vm2402_vm4, %v4175_v39  ;;  %v1560_v33 = vmul.f32 %v5740_v61, %v1224_v17  ;;  %v1831_v58 = vmax.f32 %v1703_v24, 0.0  ;;  %v1824_v0 = vmax.f32 %v1696_v27, 0.0  ;;  %vm2859_vm5 = vcmp.lt.s32.totalorder %v5909_v4, 2744 }
 0x180   : > { %v1694_v30 = vadd.f32 %v5754_v57, %v1559_v43  ;;  %v1697_v60 = vadd.f32 %v5754_v57, %v1562_v18  ;;  %v3161_v6 = vadd.f32 %v3160_v5, %v3159_v48  ;;  %v6007_v18 = vpop.f32.mrb[49].mxu1  ;;  %v1573_v62 = vmul.f32 %v5740_v61, %v5517_v37 }
 0x181   : > { %v1695_v38 = vadd.f32 %v5754_v57, %v1560_v33  ;;  %v4187_v19 = vpack.c.bf16 %v1831_v58, %v1831_v58  ;;  %v2987_v29 = vsel %vm2859_vm5, %v1831_v58, 0.0  ;;  %v4180_v39 = vpack.c.bf16 %v1824_v0, %v1824_v0  ;;  %v6015_v33 = vpop.f32.mrb[50].mxu1 }
 0x182   : > { %v2980_v16 = vsel %vm2852_vm0, %v1824_v0, 0.0  ;;  %v1822_v17 = vmax.f32 %v1694_v30, 0.0  ;;  %v1825_v24 = vmax.f32 %v1697_v60, 0.0  ;;  %v3163_v46 = vadd.f32 %v3162_v54, %v3161_v6  ;;  %v6019_v6 = vpop.f32.mrb[51].mxu1 }
 0x183   : > { %v3170_v27 = vsel %vm3046_vm7, %v2980_v16, 0.0  ;;  %v1823_v43 = vmax.f32 %v1695_v38, 0.0  ;;  %2472 = vst.msk [vmem:[%s5299_s27 + $0x114] sm:$0xf] %vm2402_vm4, %v4187_v19  ;;  %v6005_v4 = vsel %vm3046_vm7, %v2987_v29, 0.0  ;;  %v1571_v38 = vmul.f32 %v5740_v61, %v5523_v49 }
 0x184   : > { %2465 = vst.msk [vmem:[%s5299_s27 + $0xf8] sm:$0xf] %vm2402_vm4, %v4180_v39  ;;  %v4178_v12 = vpack.c.bf16 %v1822_v17, %v1822_v17  ;;  %v2978_v48 = vsel %vm2850_vm1, %v1822_v17, 0.0  ;;  %v4181_v54 = vpack.c.bf16 %v1825_v24, %v1825_v24  ;;  %v2981_v5 = vsel %vm2853_vm2, %v1825_v24, 0.0 }
 0x185   : > { %v3165_v58 = vadd.f32 %v3164_v31, %v3163_v46  ;;  %v3166_v0 = vsel %vm3046_vm7, %v2978_v48, 0.0  ;;  %v3172_v30 = vsel %vm3046_vm7, %v2981_v5, 0.0  ;;  %v4179_v60 = vpack.c.bf16 %v1823_v43, %v1823_v43 }
 0x186   : > { %2463 = vst.msk [vmem:[%s5299_s27 + $0xf0] sm:$0xf] %vm2402_vm4, %v4178_v12  ;;  %2466 = vst.msk [vmem:[%s5299_s27 + $0xfc] sm:$0xf] %vm2402_vm4, %v4181_v54  ;;  %v2979_v28 = vsel %vm2851_vm3, %v1823_v43, 0.0  ;;  %v2736_v31 = vadd.s32 %v5011_v10, %v5432_v20  ;;  %v2604_v39 = vadd.s32 576, %v5006_v7  ;;  %v1574_v32 = vmul.f32 %v5740_v61, %v5531_v36 }
 0x187   : > { %v3167_v19 = vadd.f32 %v3166_v0, %v3165_v58  ;;  %2464 = vst.msk [vmem:[%s5299_s27 + $0xf4] sm:$0xf] %vm2402_vm4, %v4179_v60  ;;  %v3168_v29 = vsel %vm3046_vm7, %v2979_v28, 0.0  ;;  %v1708_v16 = vadd.f32 %v5754_v57, %v1573_v62  ;;  %v1706_v37 = vadd.f32 %v5754_v57, %v1571_v38  ;;  %v6048_v54 = vpop.f32.mrb[52].mxu1 }
 0x188   : > { %vm2864_vm6 = vcmp.lt.s32.totalorder %v2736_v31, 2744  ;;  %v2607_v20 = vadd.s32 600, %v5006_v7  ;;  %v2734_v49 = vadd.s32 %v5011_v10, %v2604_v39  ;;  %v1709_v24 = vadd.f32 %v5754_v57, %v1574_v32  ;;  %v6051_v60 = vpop.f32.mrb[53].mxu1 }
 0x189   : > { %v3169_v17 = vadd.f32 %v3168_v29, %v3167_v19  ;;  %v1572_v46 = vmul.f32 %v5740_v61, %v5538_v47  ;;  %v1836_v43 = vmax.f32 %v1708_v16, 0.0  ;;  %v1834_v12 = vmax.f32 %v1706_v37, 0.0  ;;  %v6054_v19 = vpop.f32.mrb[54].mxu1 }
 0x18a   : > { %v2737_v48 = vadd.s32 %v5011_v10, %v2607_v20  ;;  %v2605_v36 = vadd.s32 584, %v5006_v7  ;;  %vm2862_vm8 = vcmp.lt.s32.totalorder %v2734_v49, 2744  ;;  %v1837_v58 = vmax.f32 %v1709_v24, 0.0  ;;  %v6062_v16 = vpop.f32.mrb[55].mxu1 }
 0x18b   : > { %v3171_v5 = vadd.f32 %v3170_v27, %v3169_v17  ;;  %v1707_v0 = vadd.f32 %v5754_v57, %v1572_v46  ;;  %v4192_v28 = vpack.c.bf16 %v1836_v43, %v1836_v43  ;;  %v2992_v47 = vsel %vm2864_vm6, %v1836_v43, 0.0 }
 0x18c   : > { %v4190_v62 = vpack.c.bf16 %v1834_v12, %v1834_v12  ;;  %v2990_v38 = vsel %vm2862_vm8, %v1834_v12, 0.0  ;;  %v6057_v39 = vsel %vm3046_vm7, %v2992_v47, 0.0  ;;  %v4193_v32 = vpack.c.bf16 %v1837_v58, %v1837_v58 }
 0x18d   : > { %v3173_v29 = vadd.f32 %v3172_v30, %v3171_v5  ;;  %v6060_v27 = vsel %vm3046_vm7, %v2990_v38, 0.0  ;;  %2477 = vst.msk [vmem:[%s5299_s27 + $0x128] sm:$0xf] %vm2402_vm4, %v4192_v28  ;;  %vm2865_vm9 = vcmp.lt.s32.totalorder %v2737_v48, 2744  ;;  %v1835_v31 = vmax.f32 %v1707_v0, 0.0  ;;  %v6092_v28 = vpop.f32.mrb[56].mxu1 }
 0x18e   : > { %2475 = vst.msk [vmem:[%s5299_s27 + $0x120] sm:$0xf] %vm2402_vm4, %v4190_v62  ;;  %v2735_v37 = vadd.s32 %v5011_v10, %v2605_v36  ;;  %v1577_v30 = vmul.f32 %v5740_v61, %v5569_v53  ;;  %2478 = vst.msk [vmem:[%s5299_s27 + $0x12c] sm:$0xf] %vm2402_vm4, %v4193_v32  ;;  %v2993_v17 = vsel %vm2865_vm9, %v1837_v58, 0.0  ;;  %v2610_v49 = vadd.s32 624, %v5006_v7 }
 0x18f   : > { %v3175_v20 = vadd.f32 %v5565_v51, %v3173_v29  ;;  %v1575_v24 = vmul.f32 %v5740_v61, %v5573_v52  ;;  %v6078_v46 = vsel %vm3046_vm7, %v2993_v17, 0.0  ;;  %v4191_v43 = vpack.c.bf16 %v1835_v31, %v1835_v31  ;;  %v6096_v38 = vpop.f32.mrb[57].mxu1 }
 0x190   : > { %vm2863_vm10 = vcmp.lt.s32.totalorder %v2735_v37, 2744  ;;  %v1712_v12 = vadd.f32 %v5754_v57, %v1577_v30  ;;  %v2740_v51 = vadd.s32 %v5011_v10, %v2610_v49  ;;  %v2608_v58 = vadd.s32 608, %v5006_v7  ;;  %v6100_v30 = vpop.f32.mrb[58].mxu1 }
 0x191   : > { %v3177_v48 = vadd.f32 %v5761_v55, %v3175_v20  ;;  %v2991_v53 = vsel %vm2863_vm10, %v1835_v31, 0.0  ;;  %v1710_v36 = vadd.f32 %v5754_v57, %v1575_v24  ;;  %2476 = vst.msk [vmem:[%s5299_s27 + $0x124] sm:$0xf] %vm2402_vm4, %v4191_v43  ;;  %v1578_v0 = vmul.f32 %v5740_v61, %v5579_v59  ;;  %v6107_v49 = vpop.f32.mrb[59].mxu1 }
 0x192   : > { %v6087_v5 = vsel %vm3046_vm7, %v2991_v53, 0.0  ;;  %v1840_v52 = vmax.f32 %v1712_v12, 0.0  ;;  %vm2868_vm11 = vcmp.lt.s32.totalorder %v2740_v51, 2744  ;;  %v2611_v62 = vadd.s32 632, %v5006_v7 }
 0x193   : > { %v3179_v55 = vadd.f32 %v5515_v63, %v3177_v48  ;;  %v1838_v47 = vmax.f32 %v1710_v36, 0.0  ;;  %v2738_v31 = vadd.s32 %v5011_v10, %v2608_v58  ;;  %v1713_v37 = vadd.f32 %v5754_v57, %v1578_v0 }
 0x194   : > { %v4196_v29 = vpack.c.bf16 %v1840_v52, %v1840_v52  ;;  %v2996_v32 = vsel %vm2868_vm11, %v1840_v52, 0.0  ;;  %v2741_v17 = vadd.s32 %v5011_v10, %v2611_v62  ;;  %v1576_v43 = vmul.f32 %v5740_v61, %v5587_v45 }
 0x195   : > { %v3181_v59 = vadd.f32 %v5623_v50, %v3179_v55  ;;  %v6104_v20 = vsel %vm3046_vm7, %v2996_v32, 0.0  ;;  %v4194_v63 = vpack.c.bf16 %v1838_v47, %v1838_v47  ;;  %vm2866_vm12 = vcmp.lt.s32.totalorder %v2738_v31, 2744  ;;  %v6135_v32 = vpop.f32.mrb[60].mxu1 }
 0x196   : > { %2481 = vst.msk [vmem:[%s5299_s27 + $0x138] sm:$0xf] %vm2402_vm4, %v4196_v29  ;;  %v1841_v24 = vmax.f32 %v1713_v37, 0.0  ;;  %v2609_v12 = vadd.s32 616, %v5006_v7  ;;  %v2994_v48 = vsel %vm2866_vm12, %v1838_v47, 0.0  ;;  %vm2869_vm13 = vcmp.lt.s32.totalorder %v2741_v17, 2744 }
 0x197   : > { %v3183_v50 = vadd.f32 %v5898_v11, %v3181_v59  ;;  %2479 = vst.msk [vmem:[%s5299_s27 + $0x130] sm:$0xf] %vm2402_vm4, %v4194_v63  ;;  %v1581_v53 = vmul.f32 %v5740_v61, %v5619_v40  ;;  %v6120_v51 = vsel %vm3046_vm7, %v2994_v48, 0.0  ;;  %v1711_v58 = vadd.f32 %v5754_v57, %v1576_v43  ;;  %v6140_v59 = vpop.f32.mrb[61].mxu1 }
 0x198   : > { %v4197_v36 = vpack.c.bf16 %v1841_v24, %v1841_v24  ;;  %v2997_v52 = vsel %vm2869_vm13, %v1841_v24, 0.0  ;;  %v2739_v11 = vadd.s32 %v5011_v10, %v2609_v12  ;;  %v2614_v40 = vadd.s32 656, %v5006_v7  ;;  %v6144_v43 = vpop.f32.mrb[62].mxu1 }
 0x199   : > { %v3185_v45 = vadd.f32 %v6005_v4, %v3183_v50  ;;  %v6125_v0 = vsel %vm3046_vm7, %v2997_v52, 0.0  ;;  %v1716_v55 = vadd.f32 %v5754_v57, %v1581_v53  ;;  %v1839_v47 = vmax.f32 %v1711_v58, 0.0  ;;  %v6149_v53 = vpop.f32.mrb[63].mxu1 }
 0x19a   : > { %2482 = vst.msk [vmem:[%s5299_s27 + $0x13c] sm:$0xf] %vm2402_vm4, %v4197_v36  ;;  %v1579_v62 = vmul.f32 %v5740_v61, %v5625_v8  ;;  %v2612_v29 = vadd.s32 640, %v5006_v7  ;;  %vm2867_vm14 = vcmp.lt.s32.totalorder %v2739_v11, 2744  ;;  %v1582_v37 = vmul.f32 %v5740_v61, %v5632_v44 }
 0x19b   : > { %v3187_v4 = vadd.f32 %v5808_v1, %v3185_v45  ;;  %v1844_v31 = vmax.f32 %v1716_v55, 0.0  ;;  %v4195_v63 = vpack.c.bf16 %v1839_v47, %v1839_v47  ;;  %v2995_v17 = vsel %vm2867_vm14, %v1839_v47, 0.0 }
 0x19c   : > { %v2744_v24 = vadd.s32 %v5011_v10, %v2614_v40  ;;  %v1714_v8 = vadd.f32 %v5754_v57, %v1579_v62  ;;  %v3200_v1 = vsel %vm3046_vm7, %v2995_v17, 0.0  ;;  %v2742_v48 = vadd.s32 %v5011_v10, %v2612_v29 }
 0x19d   : > { %v3189_v12 = vadd.f32 %v5956_v23, %v3187_v4  ;;  %v4200_v50 = vpack.c.bf16 %v1844_v31, %v1844_v31  ;;  %2480 = vst.msk [vmem:[%s5299_s27 + $0x134] sm:$0xf] %vm2402_vm4, %v4195_v63  ;;  %v1717_v36 = vadd.f32 %v5754_v57, %v1582_v37  ;;  %v2615_v52 = vadd.s32 664, %v5006_v7 }
 0x19e   : > { %vm2872_vm15 = vcmp.lt.s32.totalorder %v2744_v24, 2744  ;;  %v1842_v44 = vmax.f32 %v1714_v8, 0.0  ;;  %vm2870_vm0 = vcmp.lt.s32.totalorder %v2742_v48, 2744  ;;  %v1580_v45 = vmul.f32 %v5740_v61, %v5638_v34 }
 0x19f   : > { %v3191_v58 = vadd.f32 %v6060_v27, %v3189_v12  ;;  %2485 = vst.msk [vmem:[%s5299_s27 + $0x148] sm:$0xf] %vm2402_vm4, %v4200_v50  ;;  %v3000_v23 = vsel %vm2872_vm15, %v1844_v31, 0.0  ;;  %v1845_v40 = vmax.f32 %v1717_v36, 0.0  ;;  %v2745_v27 = vadd.s32 %v5011_v10, %v2615_v52 }
 0x1a0   : > { %v6161_v11 = vsel %vm3046_vm7, %v3000_v23, 0.0  ;;  %v4198_v55 = vpack.c.bf16 %v1842_v44, %v1842_v44  ;;  %v2998_v47 = vsel %vm2870_vm0, %v1842_v44, 0.0  ;;  %v1715_v4 = vadd.f32 %v5754_v57, %v1580_v45 }
 0x1a1   : > { %v3193_v62 = vadd.f32 %v6087_v5, %v3191_v58  ;;  %v3206_v29 = vsel %vm3046_vm7, %v2998_v47, 0.0  ;;  %v4201_v31 = vpack.c.bf16 %v1845_v40, %v1845_v40  ;;  %v2613_v34 = vadd.s32 648, %v5006_v7 }
 0x1a2   : > { %2483 = vst.msk [vmem:[%s5299_s27 + $0x140] sm:$0xf] %vm2402_vm4, %v4198_v55  ;;  %v1585_v37 = vmul.f32 %v5740_v61, %v5664_v13  ;;  %v2618_v63 = vadd.s32 688, %v5006_v7  ;;  %vm2873_vm1 = vcmp.lt.s32.totalorder %v2745_v27, 2744  ;;  %v1843_v5 = vmax.f32 %v1715_v4, 0.0 }
 0x1a3   : > { %v3195_v17 = vadd.f32 %v6057_v39, %v3193_v62  ;;  %v1583_v24 = vmul.f32 %v5740_v61, %v5671_v25  ;;  %2486 = vst.msk [vmem:[%s5299_s27 + $0x14c] sm:$0xf] %vm2402_vm4, %v4201_v31  ;;  %v3001_v8 = vsel %vm2873_vm1, %v1845_v40, 0.0  ;;  %v2743_v12 = vadd.s32 %v5011_v10, %v2613_v34 }
 0x1a4   : > { %v1720_v50 = vadd.f32 %v5754_v57, %v1585_v37  ;;  %v2748_v48 = vadd.s32 %v5011_v10, %v2618_v63  ;;  %v6183_v44 = vsel %vm3046_vm7, %v3001_v8, 0.0  ;;  %v4199_v39 = vpack.c.bf16 %v1843_v5, %v1843_v5 }
 0x1a5   : > { %v3197_v13 = vadd.f32 %v6078_v46, %v3195_v17  ;;  %v1718_v36 = vadd.f32 %v5754_v57, %v1583_v24  ;;  %vm2871_vm2 = vcmp.lt.s32.totalorder %v2743_v12, 2744  ;;  %v2616_v25 = vadd.s32 672, %v5006_v7 }
 0x1a6   : > { %v1848_v52 = vmax.f32 %v1720_v50, 0.0  ;;  %vm2876_vm3 = vcmp.lt.s32.totalorder %v2748_v48, 2744  ;;  %2484 = vst.msk [vmem:[%s5299_s27 + $0x144] sm:$0xf] %vm2402_vm4, %v4199_v39  ;;  %v2999_v23 = vsel %vm2871_vm2, %v1843_v5, 0.0  ;;  %v1586_v46 = vmul.f32 %v5740_v61, %v5678_v15 }
 0x1a7   : > { %v3199_v58 = vadd.f32 %v6120_v51, %v3197_v13  ;;  %v1846_v45 = vmax.f32 %v1718_v36, 0.0  ;;  %v3208_v55 = vsel %vm3046_vm7, %v2999_v23, 0.0  ;;  %v2746_v62 = vadd.s32 %v5011_v10, %v2616_v25 }
 0x1a8   : > { %v4204_v47 = vpack.c.bf16 %v1848_v52, %v1848_v52  ;;  %v3004_v40 = vsel %vm2876_vm3, %v1848_v52, 0.0  ;;  %v1721_v51 = vadd.f32 %v5754_v57, %v1586_v46  ;;  %v2619_v34 = vadd.s32 696, %v5006_v7 }
 0x1a9   : > { %v3201_v27 = vadd.f32 %v3200_v1, %v3199_v58  ;;  %v6195_v4 = vsel %vm3046_vm7, %v3004_v40, 0.0  ;;  %v4202_v31 = vpack.c.bf16 %v1846_v45, %v1846_v45  ;;  %vm2874_vm5 = vcmp.lt.s32.totalorder %v2746_v62, 2744 }
 0x1aa   : > { %2489 = vst.msk [vmem:[%s5299_s27 + $0x158] sm:$0xf] %vm2402_vm4, %v4204_v47  ;;  %v1584_v15 = vmul.f32 %v5740_v61, %v5683_v22  ;;  %v2617_v37 = vadd.s32 680, %v5006_v7  ;;  %v3002_v1 = vsel %vm2874_vm5, %v1846_v45, 0.0  ;;  %v1849_v17 = vmax.f32 %v1721_v51, 0.0 }
 0x1ab   : > { %v3203_v63 = vadd.f32 %v6104_v20, %v3201_v27  ;;  %2487 = vst.msk [vmem:[%s5299_s27 + $0x150] sm:$0xf] %vm2402_vm4, %v4202_v31  ;;  %v1589_v5 = vmul.f32 %v5740_v61, %v5712_v21  ;;  %v3214_v24 = vsel %vm3046_vm7, %v3002_v1, 0.0  ;;  %v2749_v8 = vadd.s32 %v5011_v10, %v2619_v34  ;;  %v6855_v21 = vld [vmem:[#allocation3_spill] sm:$0xff]  ;;  %v6856_v34 = vld [vmem:[#allocation4_spill] sm:$0xff]  ;;  %v6857_v1 = vld [vmem:[#allocation5_spill] sm:$0xff] }
 0x1ac   : > { %v1719_v12 = vadd.f32 %v5754_v57, %v1584_v15  ;;  %v2747_v22 = vadd.s32 %v5011_v10, %v2617_v37  ;;  %v4205_v48 = vpack.c.bf16 %v1849_v17, %v1849_v17  ;;  %v2622_v13 = vadd.s32 720, %v5006_v7 }
 0x1ad   : > { %v3205_v50 = vadd.f32 %v6125_v0, %v3203_v63  ;;  %v1724_v20 = vadd.f32 %v5754_v57, %v1589_v5  ;;  %vm2877_vm6 = vcmp.lt.s32.totalorder %v2749_v8, 2744  ;;  %v1587_v36 = vmul.f32 %v5740_v61, %v6855_v21 }
 0x1ae   : > { %v1847_v39 = vmax.f32 %v1719_v12, 0.0  ;;  %vm2875_vm8 = vcmp.lt.s32.totalorder %v2747_v22, 2744  ;;  %2490 = vst.msk [vmem:[%s5299_s27 + $0x15c] sm:$0xf] %vm2402_vm4, %v4205_v48  ;;  %v3005_v25 = vsel %vm2877_vm6, %v1849_v17, 0.0  ;;  %v2752_v0 = vadd.s32 %v5011_v10, %v2622_v13 }
 0x1af   : > { %v3207_v52 = vadd.f32 %v3206_v29, %v3205_v50  ;;  %v1852_v58 = vmax.f32 %v1724_v20, 0.0  ;;  %v3220_v23 = vsel %vm3046_vm7, %v3005_v25, 0.0  ;;  %v1722_v47 = vadd.f32 %v5754_v57, %v1587_v36  ;;  %v6858_v20 = vld [vmem:[#allocation6_spill] sm:$0xff] }
 0x1b0   : > { %v4203_v45 = vpack.c.bf16 %v1847_v39, %v1847_v39  ;;  %v3003_v46 = vsel %vm2875_vm8, %v1847_v39, 0.0  ;;  %vm2880_vm9 = vcmp.lt.s32.totalorder %v2752_v0, 2744  ;;  %v2620_v51 = vadd.s32 704, %v5006_v7 }
 0x1b1   : > { %v3209_v40 = vadd.f32 %v3208_v55, %v3207_v52  ;;  %v3216_v62 = vsel %vm3046_vm7, %v3003_v46, 0.0  ;;  %v4208_v27 = vpack.c.bf16 %v1852_v58, %v1852_v58  ;;  %v3008_v29 = vsel %vm2880_vm9, %v1852_v58, 0.0 }
 0x1b2   : > { %2488 = vst.msk [vmem:[%s5299_s27 + $0x154] sm:$0xf] %vm2402_vm4, %v4203_v45  ;;  %v1850_v31 = vmax.f32 %v1722_v47, 0.0  ;;  %v1590_v15 = vmul.f32 %v5740_v61, %v6856_v34  ;;  %v6233_v55 = vsel %vm3046_vm7, %v3008_v29, 0.0  ;;  %v2623_v63 = vadd.s32 728, %v5006_v7 }
 0x1b3   : > { %v3211_v37 = vadd.f32 %v6161_v11, %v3209_v40  ;;  %2493 = vst.msk [vmem:[%s5299_s27 + $0x168] sm:$0xf] %vm2402_vm4, %v4208_v27  ;;  %v1588_v17 = vmul.f32 %v5740_v61, %v6857_v1  ;;  %v2750_v8 = vadd.s32 %v5011_v10, %v2620_v51  ;;  %v2621_v22 = vadd.s32 712, %v5006_v7 }
 0x1b4   : > { %v4206_v5 = vpack.c.bf16 %v1850_v31, %v1850_v31  ;;  %v1725_v12 = vadd.f32 %v5754_v57, %v1590_v15  ;;  %v2753_v11 = vadd.s32 %v5011_v10, %v2623_v63  ;;  %v1593_v13 = vmul.f32 %v5740_v61, %v6858_v20 }
 0x1b5   : > { %v3213_v50 = vadd.f32 %v6183_v44, %v3211_v37  ;;  %v1723_v48 = vadd.f32 %v5754_v57, %v1588_v17  ;;  %vm2878_vm10 = vcmp.lt.s32.totalorder %v2750_v8, 2744  ;;  %v2751_v21 = vadd.s32 %v5011_v10, %v2621_v22  ;;  %v6860_v37 = vld [vmem:[#allocation8_spill] sm:$0xff]  ;;  %v6861_v8 = vld [vmem:[#allocation9_spill] sm:$0xff] }
 0x1b6   : > { %2491 = vst.msk [vmem:[%s5299_s27 + $0x160] sm:$0xf] %vm2402_vm4, %v4206_v5  ;;  %v1853_v39 = vmax.f32 %v1725_v12, 0.0  ;;  %v2626_v36 = vadd.s32 752, %v5006_v7  ;;  %v3006_v25 = vsel %vm2878_vm10, %v1850_v31, 0.0  ;;  %vm2881_vm11 = vcmp.lt.s32.totalorder %v2753_v11, 2744 }
 0x1b7   : > { %v3215_v52 = vadd.f32 %v3214_v24, %v3213_v50  ;;  %v1851_v44 = vmax.f32 %v1723_v48, 0.0  ;;  %v3222_v58 = vsel %vm3046_vm7, %v3006_v25, 0.0  ;;  %vm2879_vm12 = vcmp.lt.s32.totalorder %v2751_v21, 2744  ;;  %v6258_v24 = vld [vmem:[%s6773_s3] ss:$0 sm:$0xff] }
 0x1b8   : > { %v4209_v57 = vpack.c.bf16 %v1853_v39, %v1853_v39  ;;  %v3009_v0 = vsel %vm2881_vm11, %v1853_v39, 0.0  ;;  %v1728_v27 = vadd.f32 %v6258_v24, %v1593_v13  ;;  %v2756_v29 = vadd.s32 %v5011_v10, %v2626_v36  ;;  %v6859_v31 = vld [vmem:[#allocation7_spill] sm:$0xff] }
 0x1b9   : > { %v3217_v61 = vadd.f32 %v3216_v62, %v3215_v52  ;;  %v3228_v45 = vsel %vm3046_vm7, %v3009_v0, 0.0  ;;  %v4207_v46 = vpack.c.bf16 %v1851_v44, %v1851_v44  ;;  %v3007_v47 = vsel %vm2879_vm12, %v1851_v44, 0.0  ;;  %v6265_v62 = vld [vmem:[%s6772_s2] ss:$0 sm:$0xff] }
 0x1ba   : > { %2494 = vst.msk [vmem:[%s5299_s27 + $0x16c] sm:$0xf] %vm2402_vm4, %v4209_v57  ;;  %v3224_v40 = vsel %vm3046_vm7, %v3007_v47, 0.0  ;;  %v1591_v51 = vmul.f32 %v6265_v62, %v6859_v31  ;;  %v2624_v15 = vadd.s32 736, %v5006_v7  ;;  %v1594_v63 = vmul.f32 %v6265_v62, %v6860_v37 }
 0x1bb   : > { %v3219_v34 = vadd.f32 %v6195_v4, %v3217_v61  ;;  %2492 = vst.msk [vmem:[%s5299_s27 + $0x164] sm:$0xf] %vm2402_vm4, %v4207_v46  ;;  %v2627_v1 = vadd.s32 760, %v5006_v7  ;;  %v1856_v17 = vmax.f32 %v1728_v27, 0.0  ;;  %vm2884_vm13 = vcmp.lt.s32.totalorder %v2756_v29, 2744  ;;  %v6862_v29 = vld [vmem:[#allocation10_spill] sm:$0xff] }
 0x1bc   : > { %v1726_v5 = vadd.f32 %v6258_v24, %v1591_v51  ;;  %v1592_v12 = vmul.f32 %v6265_v62, %v6861_v8  ;;  %v2754_v4 = vadd.s32 %v5011_v10, %v2624_v15  ;;  %v1729_v50 = vadd.f32 %v6258_v24, %v1594_v63 }
 0x1bd   : > { %v3221_v22 = vadd.f32 %v3220_v23, %v3219_v34  ;;  %v2757_v11 = vadd.s32 %v5011_v10, %v2627_v1  ;;  %v4212_v48 = vpack.c.bf16 %v1856_v17, %v1856_v17  ;;  %v3012_v20 = vsel %vm2884_vm13, %v1856_v17, 0.0  ;;  %v6863_v34 = vld [vmem:[#allocation11_spill] sm:$0xff]  ;;  %v6864_v17 = vld [vmem:[#allocation12_spill] sm:$0xff] }
 0x1be   : > { %v1854_v13 = vmax.f32 %v1726_v5, 0.0  ;;  %v1727_v39 = vadd.f32 %v6258_v24, %v1592_v12  ;;  %v3234_v36 = vsel %vm3046_vm7, %v3012_v20, 0.0  ;;  %vm2882_vm14 = vcmp.lt.s32.totalorder %v2754_v4, 2744 }
 0x1bf   : > { %v3223_v21 = vadd.f32 %v3222_v58, %v3221_v22  ;;  %v1857_v52 = vmax.f32 %v1729_v50, 0.0  ;;  %2497 = vst.msk [vmem:[%s5299_s27 + $0x178] sm:$0xf] %vm2402_vm4, %v4212_v48  ;;  %vm2885_vm15 = vcmp.lt.s32.totalorder %v2757_v11, 2744  ;;  %v2625_v27 = vadd.s32 744, %v5006_v7 }
 0x1c0   : > { %v4210_v23 = vpack.c.bf16 %v1854_v13, %v1854_v13  ;;  %v3010_v25 = vsel %vm2882_vm14, %v1854_v13, 0.0  ;;  %v1855_v44 = vmax.f32 %v1727_v39, 0.0  ;;  %v1597_v31 = vmul.f32 %v6265_v62, %v6862_v29 }
 0x1c1   : > { %v3225_v57 = vadd.f32 %v3224_v40, %v3223_v21  ;;  %v3230_v0 = vsel %vm3046_vm7, %v3010_v25, 0.0  ;;  %v4213_v61 = vpack.c.bf16 %v1857_v52, %v1857_v52  ;;  %v3013_v46 = vsel %vm2885_vm15, %v1857_v52, 0.0 }
 0x1c2   : > { %2495 = vst.msk [vmem:[%s5299_s27 + $0x170] sm:$0xf] %vm2402_vm4, %v4210_v23  ;;  %v3236_v58 = vsel %vm3046_vm7, %v3013_v46, 0.0  ;;  %v4211_v47 = vpack.c.bf16 %v1855_v44, %v1855_v44  ;;  %v2630_v40 = vadd.s32 784, %v5006_v7  ;;  %v1595_v15 = vmul.f32 %v6265_v62, %v6863_v34 }
 0x1c3   : > { %v3227_v51 = vadd.f32 %v6233_v55, %v3225_v57  ;;  %2498 = vst.msk [vmem:[%s5299_s27 + $0x17c] sm:$0xf] %vm2402_vm4, %v4213_v61  ;;  %v2628_v37 = vadd.s32 768, %v5006_v7  ;;  %v2755_v63 = vadd.s32 %v5011_v10, %v2625_v27  ;;  %v1732_v1 = vadd.f32 %v6258_v24, %v1597_v31 }
 0x1c4   : > { %2496 = vst.msk [vmem:[%s5299_s27 + $0x174] sm:$0xf] %vm2402_vm4, %v4211_v47  ;;  %v1598_v5 = vmul.f32 %v6265_v62, %v6864_v17  ;;  %v2631_v55 = vadd.s32 792, %v5006_v7  ;;  %v2760_v12 = vadd.s32 %v5011_v10, %v2630_v40  ;;  %v1730_v22 = vadd.f32 %v6258_v24, %v1595_v15 }
 0x1c5   : > { %v3229_v8 = vadd.f32 %v3228_v45, %v3227_v51  ;;  %v2758_v4 = vadd.s32 %v5011_v10, %v2628_v37  ;;  %vm2883_vm0 = vcmp.lt.s32.totalorder %v2755_v63, 2744  ;;  %v1860_v50 = vmax.f32 %v1732_v1, 0.0 }
 0x1c6   : > { %v1733_v11 = vadd.f32 %v6258_v24, %v1598_v5  ;;  %v2761_v48 = vadd.s32 %v5011_v10, %v2631_v55  ;;  %v3011_v13 = vsel %vm2883_vm0, %v1855_v44, 0.0  ;;  %vm2888_vm1 = vcmp.lt.s32.totalorder %v2760_v12, 2744  ;;  %v6865_v44 = vld [vmem:[#allocation13_spill] sm:$0xff] }
 0x1c7   : > { %v3231_v20 = vadd.f32 %v3230_v0, %v3229_v8  ;;  %v1858_v39 = vmax.f32 %v1730_v22, 0.0  ;;  %v3232_v45 = vsel %vm3046_vm7, %v3011_v13, 0.0  ;;  %v4216_v21 = vpack.c.bf16 %v1860_v50, %v1860_v50 }
 0x1c8   : > { %v3016_v52 = vsel %vm2888_vm1, %v1860_v50, 0.0  ;;  %vm2886_vm2 = vcmp.lt.s32.totalorder %v2758_v4, 2744  ;;  %v1861_v47 = vmax.f32 %v1733_v11, 0.0  ;;  %vm2889_vm3 = vcmp.lt.s32.totalorder %v2761_v48, 2744 }
 0x1c9   : > { %v3233_v23 = vadd.f32 %v3232_v45, %v3231_v20  ;;  %v3242_v25 = vsel %vm3046_vm7, %v3016_v52, 0.0  ;;  %v4214_v57 = vpack.c.bf16 %v1858_v39, %v1858_v39  ;;  %v3014_v61 = vsel %vm2886_vm2, %v1858_v39, 0.0  ;;  %2501 = vst.msk [vmem:[%s5299_s27 + $0x188] sm:$0xf] %vm2402_vm4, %v4216_v21 }
 0x1ca   : > { %v3238_v46 = vsel %vm3046_vm7, %v3014_v61, 0.0  ;;  %v1596_v0 = vmul.f32 %v6265_v62, %v6865_v44  ;;  %v2629_v29 = vadd.s32 776, %v5006_v7  ;;  %v1601_v31 = vmul.f32 %v6265_v62, %v5861_v3 }
 0x1cb   : > { %v3235_v27 = vadd.f32 %v3234_v36, %v3233_v23  ;;  %2499 = vst.msk [vmem:[%s5299_s27 + $0x180] sm:$0xf] %vm2402_vm4, %v4214_v57  ;;  %v2634_v51 = vadd.s32 816, %v5006_v7  ;;  %v4217_v40 = vpack.c.bf16 %v1861_v47, %v1861_v47  ;;  %v3017_v34 = vsel %vm2889_vm3, %v1861_v47, 0.0 }
 0x1cc   : > { %v1731_v15 = vadd.f32 %v6258_v24, %v1596_v0  ;;  %v1599_v37 = vmul.f32 %v6265_v62, %v5868_v35  ;;  %v3244_v1 = vsel %vm3046_vm7, %v3017_v34, 0.0  ;;  %v2759_v36 = vadd.s32 %v5011_v10, %v2629_v29 }
 0x1cd   : > { %v3237_v63 = vadd.f32 %v3236_v58, %v3235_v27  ;;  %v1736_v17 = vadd.f32 %v6258_v24, %v1601_v31  ;;  %2502 = vst.msk [vmem:[%s5299_s27 + $0x18c] sm:$0xf] %vm2402_vm4, %v4217_v40  ;;  %v2764_v3 = vadd.s32 %v5011_v10, %v2634_v51  ;;  %v2632_v8 = vadd.s32 800, %v5006_v7 }
 0x1ce   : > { %v1859_v5 = vmax.f32 %v1731_v15, 0.0  ;;  %v1734_v55 = vadd.f32 %v6258_v24, %v1599_v37  ;;  %vm2887_vm5 = vcmp.lt.s32.totalorder %v2759_v36, 2744  ;;  %v1602_v58 = vmul.f32 %v6265_v62, %v5876_v14  ;;  %v6866_v15 = vld [vmem:[#allocation14_spill] sm:$0xff] }
 0x1cf   : > { %v3239_v12 = vadd.f32 %v3238_v46, %v3237_v63  ;;  %v1864_v35 = vmax.f32 %v1736_v17, 0.0  ;;  %vm2892_vm6 = vcmp.lt.s32.totalorder %v2764_v3, 2744  ;;  %v2762_v13 = vadd.s32 %v5011_v10, %v2632_v8 }
 0x1d0   : > { %v4215_v22 = vpack.c.bf16 %v1859_v5, %v1859_v5  ;;  %v3015_v4 = vsel %vm2887_vm5, %v1859_v5, 0.0  ;;  %v1862_v50 = vmax.f32 %v1734_v55, 0.0  ;;  %v1737_v52 = vadd.f32 %v6258_v24, %v1602_v58 }
 0x1d1   : > { %v3240_v11 = vsel %vm3046_vm7, %v3015_v4, 0.0  ;;  %v4220_v48 = vpack.c.bf16 %v1864_v35, %v1864_v35  ;;  %v3020_v20 = vsel %vm2892_vm6, %v1864_v35, 0.0  ;;  %vm2890_vm8 = vcmp.lt.s32.totalorder %v2762_v13, 2744  ;;  %v6867_v13 = vld [vmem:[#allocation15_spill] sm:$0xff] }
 0x1d2   : > { %2500 = vst.msk [vmem:[%s5299_s27 + $0x184] sm:$0xf] %vm2402_vm4, %v4215_v22  ;;  %v3241_v39 = vadd.f32 %v3240_v11, %v3239_v12  ;;  %v3250_v45 = vsel %vm3046_vm7, %v3020_v20, 0.0  ;;  %v4218_v21 = vpack.c.bf16 %v1862_v50, %v1862_v50  ;;  %v2635_v14 = vadd.s32 824, %v5006_v7 }
 0x1d3   : > { %2505 = vst.msk [vmem:[%s5299_s27 + $0x198] sm:$0xf] %vm2402_vm4, %v4220_v48  ;;  %v1600_v23 = vmul.f32 %v6265_v62, %v5881_v9  ;;  %v2633_v57 = vadd.s32 808, %v5006_v7  ;;  %v3018_v46 = vsel %vm2890_vm8, %v1862_v50, 0.0  ;;  %v1865_v47 = vmax.f32 %v1737_v52, 0.0 }
 0x1d4   : > { %v3243_v61 = vadd.f32 %v3242_v25, %v3241_v39  ;;  %2503 = vst.msk [vmem:[%s5299_s27 + $0x190] sm:$0xf] %vm2402_vm4, %v4218_v21  ;;  %v1605_v44 = vmul.f32 %v6265_v62, %v5913_v56  ;;  %v3246_v0 = vsel %vm3046_vm7, %v3018_v46, 0.0  ;;  %v2765_v27 = vadd.s32 %v5011_v10, %v2635_v14 }
 0x1d5   : > { %v1735_v29 = vadd.f32 %v6258_v24, %v1600_v23  ;;  %v2763_v31 = vadd.s32 %v5011_v10, %v2633_v57  ;;  %v4221_v51 = vpack.c.bf16 %v1865_v47, %v1865_v47  ;;  %v2638_v40 = vadd.s32 848, %v5006_v7 }
 0x1d6   : > { %v3245_v9 = vadd.f32 %v3244_v1, %v3243_v61  ;;  %v1740_v25 = vadd.f32 %v6258_v24, %v1605_v44  ;;  %vm2893_vm9 = vcmp.lt.s32.totalorder %v2765_v27, 2744  ;;  %v1603_v56 = vmul.f32 %v6265_v62, %v6866_v15  ;;  %v6868_v61 = vld [vmem:[#allocation16_spill] sm:$0xff] }
 0x1d7   : > { %v1863_v34 = vmax.f32 %v1735_v29, 0.0  ;;  %vm2891_vm10 = vcmp.lt.s32.totalorder %v2763_v31, 2744  ;;  %2506 = vst.msk [vmem:[%s5299_s27 + $0x19c] sm:$0xf] %vm2402_vm4, %v4221_v51  ;;  %v3021_v63 = vsel %vm2893_vm9, %v1865_v47, 0.0  ;;  %v2768_v1 = vadd.s32 %v5011_v10, %v2638_v40 }
 0x1d8   : > { %v3247_v37 = vadd.f32 %v3246_v0, %v3245_v9  ;;  %v1868_v36 = vmax.f32 %v1740_v25, 0.0  ;;  %v3252_v17 = vsel %vm3046_vm7, %v3021_v63, 0.0  ;;  %v1738_v55 = vadd.f32 %v6258_v24, %v1603_v56 }
 0x1d9   : > { %v4219_v5 = vpack.c.bf16 %v1863_v34, %v1863_v34  ;;  %v3019_v3 = vsel %vm2891_vm10, %v1863_v34, 0.0  ;;  %vm2896_vm11 = vcmp.lt.s32.totalorder %v2768_v1, 2744  ;;  %v2636_v35 = vadd.s32 832, %v5006_v7 }
 0x1da   : > { %v3248_v8 = vsel %vm3046_vm7, %v3019_v3, 0.0  ;;  %v4224_v12 = vpack.c.bf16 %v1868_v36, %v1868_v36  ;;  %v3024_v22 = vsel %vm2896_vm11, %v1868_v36, 0.0  ;;  %v1866_v4 = vmax.f32 %v1738_v55, 0.0  ;;  %v6869_v36 = vld [vmem:[#allocation17_spill] sm:$0xff] }
 0x1db   : > { %2504 = vst.msk [vmem:[%s5299_s27 + $0x194] sm:$0xf] %vm2402_vm4, %v4219_v5  ;;  %v3249_v58 = vadd.f32 %v3248_v8, %v3247_v37  ;;  %v1606_v50 = vmul.f32 %v6265_v62, %v5926_v26  ;;  %v3258_v11 = vsel %vm3046_vm7, %v3024_v22, 0.0  ;;  %v2766_v48 = vadd.s32 %v5011_v10, %v2636_v35 }
 0x1dc   : > { %2509 = vst.msk [vmem:[%s5299_s27 + $0x1a8] sm:$0xf] %vm2402_vm4, %v4224_v12  ;;  %v2639_v20 = vadd.s32 856, %v5006_v7  ;;  %v1604_v39 = vmul.f32 %v6265_v62, %v6867_v13  ;;  %v4222_v52 = vpack.c.bf16 %v1866_v4, %v1866_v4  ;;  %v2637_v23 = vadd.s32 840, %v5006_v7 }
 0x1dd   : > { %v3251_v21 = vadd.f32 %v3250_v45, %v3249_v58  ;;  %v1741_v14 = vadd.f32 %v6258_v24, %v1606_v50  ;;  %vm2894_vm12 = vcmp.lt.s32.totalorder %v2766_v48, 2744  ;;  %v1609_v46 = vmul.f32 %v6265_v62, %v6868_v61 }
 0x1de   : > { %v2769_v26 = vadd.s32 %v5011_v10, %v2639_v20  ;;  %v1739_v57 = vadd.f32 %v6258_v24, %v1604_v39  ;;  %2507 = vst.msk [vmem:[%s5299_s27 + $0x1a0] sm:$0xf] %vm2402_vm4, %v4222_v52  ;;  %v3022_v47 = vsel %vm2894_vm12, %v1866_v4, 0.0  ;;  %v2767_v45 = vadd.s32 %v5011_v10, %v2637_v23 }
 0x1df   : > { %v3253_v44 = vadd.f32 %v3252_v17, %v3251_v21  ;;  %v1869_v0 = vmax.f32 %v1741_v14, 0.0  ;;  %v3254_v27 = vsel %vm3046_vm7, %v3022_v47, 0.0  ;;  %v1744_v31 = vadd.f32 %v6258_v24, %v1609_v46 }
 0x1e0   : > { %vm2897_vm13 = vcmp.lt.s32.totalorder %v2769_v26, 2744  ;;  %v1867_v29 = vmax.f32 %v1739_v57, 0.0  ;;  %vm2895_vm14 = vcmp.lt.s32.totalorder %v2767_v45, 2744  ;;  %v2642_v63 = vadd.s32 880, %v5006_v7 }
 0x1e1   : > { %v3255_v9 = vadd.f32 %v3254_v27, %v3253_v44  ;;  %v4225_v51 = vpack.c.bf16 %v1869_v0, %v1869_v0  ;;  %v3025_v25 = vsel %vm2897_vm13, %v1869_v0, 0.0  ;;  %v1872_v56 = vmax.f32 %v1744_v31, 0.0 }
 0x1e2   : > { %v3260_v40 = vsel %vm3046_vm7, %v3025_v25, 0.0  ;;  %v4223_v34 = vpack.c.bf16 %v1867_v29, %v1867_v29  ;;  %v3023_v15 = vsel %vm2895_vm14, %v1867_v29, 0.0  ;;  %v1607_v1 = vmul.f32 %v6265_v62, %v6869_v36 }
 0x1e3   : > { %2510 = vst.msk [vmem:[%s5299_s27 + $0x1ac] sm:$0xf] %vm2402_vm4, %v4225_v51  ;;  %v3256_v37 = vsel %vm3046_vm7, %v3023_v15, 0.0  ;;  %v2640_v17 = vadd.s32 864, %v5006_v7  ;;  %v4228_v3 = vpack.c.bf16 %v1872_v56, %v1872_v56  ;;  %v1610_v55 = vmul.f32 %v6265_v62, %v5974_v41 }
 0x1e4   : > { %2508 = vst.msk [vmem:[%s5299_s27 + $0x1a4] sm:$0xf] %vm2402_vm4, %v4223_v34  ;;  %v3257_v5 = vadd.f32 %v3256_v37, %v3255_v9  ;;  %v2643_v8 = vadd.s32 888, %v5006_v7  ;;  %v2772_v12 = vadd.s32 %v5011_v10, %v2642_v63  ;;  %v1742_v35 = vadd.f32 %v6258_v24, %v1607_v1 }
 0x1e5   : > { %v2770_v58 = vadd.s32 %v5011_v10, %v2640_v17  ;;  %v1608_v22 = vmul.f32 %v6265_v62, %v5978_v2  ;;  %2513 = vst.msk [vmem:[%s5299_s27 + $0x1b8] sm:$0xf] %vm2402_vm4, %v4228_v3  ;;  %v1745_v50 = vadd.f32 %v6258_v24, %v1610_v55  ;;  %v2641_v41 = vadd.s32 872, %v5006_v7 }
 0x1e6   : > { %v3259_v4 = vadd.f32 %v3258_v11, %v3257_v5  ;;  %v2773_v48 = vadd.s32 %v5011_v10, %v2643_v8  ;;  %vm2900_vm15 = vcmp.lt.s32.totalorder %v2772_v12, 2744  ;;  %v1870_v20 = vmax.f32 %v1742_v35, 0.0 }
 0x1e7   : > { %vm2898_vm0 = vcmp.lt.s32.totalorder %v2770_v58, 2744  ;;  %v1743_v13 = vadd.f32 %v6258_v24, %v1608_v22  ;;  %v3028_v39 = vsel %vm2900_vm15, %v1872_v56, 0.0  ;;  %v1873_v52 = vmax.f32 %v1745_v50, 0.0 }
 0x1e8   : > { %v3261_v21 = vadd.f32 %v3260_v40, %v3259_v4  ;;  %vm2901_vm1 = vcmp.lt.s32.totalorder %v2773_v48, 2744  ;;  %v4226_v2 = vpack.c.bf16 %v1870_v20, %v1870_v20  ;;  %v3026_v11 = vsel %vm2898_vm0, %v1870_v20, 0.0 }
 0x1e9   : > { %v1871_v14 = vmax.f32 %v1743_v13, 0.0  ;;  %v3266_v23 = vsel %vm3046_vm7, %v3028_v39, 0.0  ;;  %v3262_v26 = vsel %vm3046_vm7, %v3026_v11, 0.0  ;;  %v4229_v57 = vpack.c.bf16 %v1873_v52, %v1873_v52 }
 0x1ea   : > { %v2771_v61 = vadd.s32 %v5011_v10, %v2641_v41  ;;  %2511 = vst.msk [vmem:[%s5299_s27 + $0x1b0] sm:$0xf] %vm2402_vm4, %v4226_v2  ;;  %v3263_v46 = vadd.f32 %v3262_v26, %v3261_v21  ;;  %v3029_v47 = vsel %vm2901_vm1, %v1873_v52, 0.0  ;;  %v1613_v0 = vmul.f32 %v6265_v62, %v5999_v42 }
 0x1eb   : > { %v4227_v44 = vpack.c.bf16 %v1871_v14, %v1871_v14  ;;  %2514 = vst.msk [vmem:[%s5299_s27 + $0x1bc] sm:$0xf] %vm2402_vm4, %v4229_v57  ;;  %v2646_v45 = vadd.s32 912, %v5006_v7  ;;  %v1611_v27 = vmul.f32 %v6265_v62, %v6007_v18  ;;  %v2644_v29 = vadd.s32 896, %v5006_v7 }
 0x1ec   : > { %vm2899_vm2 = vcmp.lt.s32.totalorder %v2771_v61, 2744  ;;  %v1748_v9 = vadd.f32 %v6258_v24, %v1613_v0  ;;  %v1614_v51 = vmul.f32 %v6265_v62, %v6015_v33  ;;  %v2647_v42 = vadd.s32 920, %v5006_v7 }
 0x1ed   : > { %2512 = vst.msk [vmem:[%s5299_s27 + $0x1b4] sm:$0xf] %vm2402_vm4, %v4227_v44  ;;  %v3027_v31 = vsel %vm2899_vm2, %v1871_v14, 0.0  ;;  %v2776_v40 = vadd.s32 %v5011_v10, %v2646_v45  ;;  %v1746_v34 = vadd.f32 %v6258_v24, %v1611_v27  ;;  %v2774_v18 = vadd.s32 %v5011_v10, %v2644_v29 }
 0x1ee   : > { %v3264_v25 = vsel %vm3046_vm7, %v3027_v31, 0.0  ;;  %v1876_v56 = vmax.f32 %v1748_v9, 0.0  ;;  %v1749_v37 = vadd.f32 %v6258_v24, %v1614_v51  ;;  %v2777_v63 = vadd.s32 %v5011_v10, %v2647_v42 }
 0x1ef   : > { %v3265_v15 = vadd.f32 %v3264_v25, %v3263_v46  ;;  %vm2904_vm3 = vcmp.lt.s32.totalorder %v2776_v40, 2744  ;;  %v1874_v33 = vmax.f32 %v1746_v34, 0.0  ;;  %vm2902_vm5 = vcmp.lt.s32.totalorder %v2774_v18, 2744 }
 0x1f0   : > { %v1612_v36 = vmul.f32 %v6265_v62, %v6019_v6  ;;  %v4232_v17 = vpack.c.bf16 %v1876_v56, %v1876_v56  ;;  %v1877_v5 = vmax.f32 %v1749_v37, 0.0  ;;  %v3268_v3 = vsel %vm3046_vm7, %v3029_v47, 0.0 }
 0x1f1   : > { %v3267_v1 = vadd.f32 %v3266_v23, %v3265_v15  ;;  %v4230_v55 = vpack.c.bf16 %v1874_v33, %v1874_v33  ;;  %v3030_v8 = vsel %vm2902_vm5, %v1874_v33, 0.0  ;;  %vm2905_vm6 = vcmp.lt.s32.totalorder %v2777_v63, 2744 }
 0x1f2   : > { %2517 = vst.msk [vmem:[%s5299_s27 + $0x1c8] sm:$0xf] %vm2402_vm4, %v4232_v17  ;;  %v3032_v12 = vsel %vm2904_vm3, %v1876_v56, 0.0  ;;  %v3270_v58 = vsel %vm3046_vm7, %v3030_v8, 0.0  ;;  %v4233_v22 = vpack.c.bf16 %v1877_v5, %v1877_v5  ;;  %v3033_v4 = vsel %vm2905_vm6, %v1877_v5, 0.0 }
 0x1f3   : > { %v3269_v35 = vadd.f32 %v3268_v3, %v3267_v1  ;;  %2515 = vst.msk [vmem:[%s5299_s27 + $0x1c0] sm:$0xf] %vm2402_vm4, %v4230_v55  ;;  %v1747_v6 = vadd.f32 %v6258_v24, %v1612_v36  ;;  %v2645_v50 = vadd.s32 904, %v5006_v7  ;;  %v1617_v48 = vmul.f32 %v6265_v62, %v6048_v54 }
 0x1f4   : > { %2518 = vst.msk [vmem:[%s5299_s27 + $0x1cc] sm:$0xf] %vm2402_vm4, %v4233_v22  ;;  %v2650_v20 = vadd.s32 944, %v5006_v7  ;;  %v1615_v13 = vmul.f32 %v6265_v62, %v6051_v60  ;;  %v2648_v39 = vadd.s32 928, %v5006_v7  ;;  %v1618_v11 = vmul.f32 %v6265_v62, %v6054_v19 }
 0x1f5   : > { %v3271_v41 = vadd.f32 %v3270_v58, %v3269_v35  ;;  %v1875_v21 = vmax.f32 %v1747_v6, 0.0  ;;  %v2775_v52 = vadd.s32 %v5011_v10, %v2645_v50  ;;  %v1752_v2 = vadd.f32 %v6258_v24, %v1617_v48 }
 0x1f6   : > { %v2780_v54 = vadd.s32 %v5011_v10, %v2650_v20  ;;  %v1750_v14 = vadd.f32 %v6258_v24, %v1615_v13  ;;  %v2778_v23 = vadd.s32 %v5011_v10, %v2648_v39  ;;  %v2651_v26 = vadd.s32 952, %v5006_v7 }
 0x1f7   : > { %v4231_v60 = vpack.c.bf16 %v1875_v21, %v1875_v21  ;;  %vm2903_vm8 = vcmp.lt.s32.totalorder %v2775_v52, 2744  ;;  %v1880_v57 = vmax.f32 %v1752_v2, 0.0  ;;  %v1753_v61 = vadd.f32 %v6258_v24, %v1618_v11 }
 0x1f8   : > { %v3274_v46 = vsel %vm3046_vm7, %v3032_v12, 0.0  ;;  %v3031_v47 = vsel %vm2903_vm8, %v1875_v21, 0.0  ;;  %v1878_v44 = vmax.f32 %v1750_v14, 0.0  ;;  %vm2906_vm9 = vcmp.lt.s32.totalorder %v2778_v23, 2744 }
 0x1f9   : > { %v3276_v19 = vsel %vm3046_vm7, %v3033_v4, 0.0  ;;  %2516 = vst.msk [vmem:[%s5299_s27 + $0x1c4] sm:$0xf] %vm2402_vm4, %v4231_v60  ;;  %v3272_v0 = vsel %vm3046_vm7, %v3031_v47, 0.0  ;;  %v4236_v45 = vpack.c.bf16 %v1880_v57, %v1880_v57  ;;  %v1881_v27 = vmax.f32 %v1753_v61, 0.0 }
 0x1fa   : > { %v3273_v29 = vadd.f32 %v3272_v0, %v3271_v41  ;;  %vm2908_vm10 = vcmp.lt.s32.totalorder %v2780_v54, 2744  ;;  %v4234_v31 = vpack.c.bf16 %v1878_v44, %v1878_v44  ;;  %v3034_v9 = vsel %vm2906_vm9, %v1878_v44, 0.0 }
 0x1fb   : > { %2521 = vst.msk [vmem:[%s5299_s27 + $0x1d8] sm:$0xf] %vm2402_vm4, %v4236_v45  ;;  %v3278_v51 = vsel %vm3046_vm7, %v3034_v9, 0.0  ;;  %v4237_v42 = vpack.c.bf16 %v1881_v27, %v1881_v27  ;;  %v2781_v25 = vadd.s32 %v5011_v10, %v2651_v26  ;;  %v1616_v40 = vmul.f32 %v6265_v62, %v6062_v16 }
 0x1fc   : > { %v3275_v34 = vadd.f32 %v3274_v46, %v3273_v29  ;;  %2519 = vst.msk [vmem:[%s5299_s27 + $0x1d0] sm:$0xf] %vm2402_vm4, %v4234_v31  ;;  %v2649_v18 = vadd.s32 936, %v5006_v7  ;;  %v1621_v15 = vmul.f32 %v6265_v62, %v6092_v28  ;;  %v2654_v56 = vadd.s32 976, %v5006_v7 }
 0x1fd   : > { %2522 = vst.msk [vmem:[%s5299_s27 + $0x1dc] sm:$0xf] %vm2402_vm4, %v4237_v42  ;;  %vm2909_vm11 = vcmp.lt.s32.totalorder %v2781_v25, 2744  ;;  %v1751_v37 = vadd.f32 %v6258_v24, %v1616_v40  ;;  %v1619_v63 = vmul.f32 %v6265_v62, %v6096_v38  ;;  %v2652_v16 = vadd.s32 960, %v5006_v7 }
 0x1fe   : > { %v3036_v33 = vsel %vm2908_vm10, %v1880_v57, 0.0  ;;  %v3277_v36 = vadd.f32 %v3276_v19, %v3275_v34  ;;  %v2779_v1 = vadd.s32 %v5011_v10, %v2649_v18  ;;  %v1756_v17 = vadd.f32 %v6258_v24, %v1621_v15 }
 0x1ff   : > { %v3037_v28 = vsel %vm2909_vm11, %v1881_v27, 0.0  ;;  %v1879_v5 = vmax.f32 %v1751_v37, 0.0  ;;  %v2784_v3 = vadd.s32 %v5011_v10, %v2654_v56  ;;  %v1754_v55 = vadd.f32 %v6258_v24, %v1619_v63 }
 0x200   : > { %v3279_v8 = vadd.f32 %v3278_v51, %v3277_v36  ;;  %vm2907_vm12 = vcmp.lt.s32.totalorder %v2779_v1, 2744  ;;  %v1884_v38 = vmax.f32 %v1756_v17, 0.0  ;;  %v2782_v12 = vadd.s32 %v5011_v10, %v2652_v16 }
 0x201   : > { %v4235_v35 = vpack.c.bf16 %v1879_v5, %v1879_v5  ;;  %v3035_v58 = vsel %vm2907_vm12, %v1879_v5, 0.0  ;;  %vm2912_vm13 = vcmp.lt.s32.totalorder %v2784_v3, 2744  ;;  %v1882_v22 = vmax.f32 %v1754_v55, 0.0 }
 0x202   : > { %v3282_v4 = vsel %vm3046_vm7, %v3036_v33, 0.0  ;;  %v3280_v6 = vsel %vm3046_vm7, %v3035_v58, 0.0  ;;  %v4240_v50 = vpack.c.bf16 %v1884_v38, %v1884_v38  ;;  %vm2910_vm14 = vcmp.lt.s32.totalorder %v2782_v12, 2744 }
 0x203   : > { %v3284_v48 = vsel %vm3046_vm7, %v3037_v28, 0.0  ;;  %2520 = vst.msk [vmem:[%s5299_s27 + $0x1d4] sm:$0xf] %vm2402_vm4, %v4235_v35  ;;  %v3281_v41 = vadd.f32 %v3280_v6, %v3279_v8  ;;  %v4238_v20 = vpack.c.bf16 %v1882_v22, %v1882_v22  ;;  %v3038_v13 = vsel %vm2910_vm14, %v1882_v22, 0.0 }
 0x204   : > { %2525 = vst.msk [vmem:[%s5299_s27 + $0x1e8] sm:$0xf] %vm2402_vm4, %v4240_v50  ;;  %v3040_v39 = vsel %vm2912_vm13, %v1884_v38, 0.0  ;;  %v1622_v21 = vmul.f32 %v6265_v62, %v6100_v30  ;;  %v2655_v52 = vadd.s32 984, %v5006_v7  ;;  %v1620_v2 = vmul.f32 %v6265_v62, %v6107_v49 }
 0x205   : > { %v3283_v11 = vadd.f32 %v3282_v4, %v3281_v41  ;;  %2523 = vst.msk [vmem:[%s5299_s27 + $0x1e0] sm:$0xf] %vm2402_vm4, %v4238_v20  ;;  %v3286_v54 = vsel %vm3046_vm7, %v3038_v13, 0.0  ;;  %v2653_v14 = vadd.s32 968, %v5006_v7  ;;  %v1625_v23 = vmul.f32 %v6265_v62, %v6135_v32 }
 0x206   : > { %v1757_v26 = vadd.f32 %v6258_v24, %v1622_v21  ;;  %v2785_v60 = vadd.s32 %v5011_v10, %v2655_v52  ;;  %v1755_v30 = vadd.f32 %v6258_v24, %v1620_v2  ;;  %v1623_v57 = vmul.f32 %v6265_v62, %v6140_v59 }
 0x207   : > { %v3285_v49 = vadd.f32 %v3284_v48, %v3283_v11  ;;  %v2783_v61 = vadd.s32 %v5011_v10, %v2653_v14  ;;  %v1760_v46 = vadd.f32 %v6258_v24, %v1625_v23  ;;  %v2658_v47 = vadd.s32 1008, %v5006_v7 }
 0x208   : > { %v1885_v44 = vmax.f32 %v1757_v26, 0.0  ;;  %vm2913_vm15 = vcmp.lt.s32.totalorder %v2785_v60, 2744  ;;  %v1883_v32 = vmax.f32 %v1755_v30, 0.0  ;;  %v1758_v19 = vadd.f32 %v6258_v24, %v1623_v57 }
 0x209   : > { %v3287_v0 = vadd.f32 %v3286_v54, %v3285_v49  ;;  %vm2911_vm0 = vcmp.lt.s32.totalorder %v2783_v61, 2744  ;;  %v1888_v45 = vmax.f32 %v1760_v46, 0.0  ;;  %v3290_v31 = vsel %vm3046_vm7, %v3040_v39, 0.0 }
 0x20a   : > { %v4241_v27 = vpack.c.bf16 %v1885_v44, %v1885_v44  ;;  %v4239_v59 = vpack.c.bf16 %v1883_v32, %v1883_v32  ;;  %v3039_v29 = vsel %vm2911_vm0, %v1883_v32, 0.0  ;;  %v3041_v9 = vsel %vm2913_vm15, %v1885_v44, 0.0 }
 0x20b   : > { %v3288_v51 = vsel %vm3046_vm7, %v3039_v29, 0.0  ;;  %v4244_v42 = vpack.c.bf16 %v1888_v45, %v1888_v45  ;;  %v2788_v40 = vadd.s32 %v5011_v10, %v2658_v47  ;;  %v1886_v34 = vmax.f32 %v1758_v19, 0.0 }
 0x20c   : > { %2526 = vst.msk [vmem:[%s5299_s27 + $0x1ec] sm:$0xf] %vm2402_vm4, %v4241_v27  ;;  %2524 = vst.msk [vmem:[%s5299_s27 + $0x1e4] sm:$0xf] %vm2402_vm4, %v4239_v59  ;;  %v3289_v25 = vadd.f32 %v3288_v51, %v3287_v0  ;;  %v2656_v18 = vadd.s32 992, %v5006_v7  ;;  %v1626_v15 = vmul.f32 %v6265_v62, %v6144_v43  ;;  %v2659_v56 = vadd.s32 1016, %v5006_v7 }
 0x20d   : > { %2529 = vst.msk [vmem:[%s5299_s27 + $0x1f8] sm:$0xf] %vm2402_vm4, %v4244_v42  ;;  %v1624_v37 = vmul.f32 %v6265_v62, %v6149_v53  ;;  %v2657_v63 = vadd.s32 1000, %v5006_v7  ;;  %v3292_v16 = vsel %vm3046_vm7, %v3041_v9, 0.0  ;;  %v4242_v36 = vpack.c.bf16 %v1886_v34, %v1886_v34 }
 0x20e   : > { %v3291_v33 = vadd.f32 %v3290_v31, %v3289_v25  ;;  %v2786_v1 = vadd.s32 %v5011_v10, %v2656_v18  ;;  %v1761_v17 = vadd.f32 %v6258_v24, %v1626_v15  ;;  %v2789_v28 = vadd.s32 %v5011_v10, %v2659_v56 }
 0x20f   : > { %v1759_v5 = vadd.f32 %v6258_v24, %v1624_v37  ;;  %v2787_v43 = vadd.s32 %v5011_v10, %v2657_v63  ;;  %2527 = vst.msk [vmem:[%s5299_s27 + $0x1f0] sm:$0xf] %vm2402_vm4, %v4242_v36  ;;  %vm2916_vm2 = vcmp.lt.s32.totalorder %v2788_v40, 2744  ;;  %v4765_v2 = vmov (!%p4100_p11), 0.0  }
 0x210   : > { %vm2914_vm1 = vcmp.lt.s32.totalorder %v2786_v1, 2744  ;;  %v3293_v7 = vadd.f32 %v3292_v16, %v3291_v33  ;;  %v1889_v62 = vmax.f32 %v1761_v17, 0.0  ;;  %vm2917_vm5 = vcmp.lt.s32.totalorder %v2789_v28, 2744 }
 0x211   : > { %v3042_v53 = vsel %vm2914_vm1, %v1886_v34, 0.0  ;;  %v1887_v3 = vmax.f32 %v1759_v5, 0.0  ;;  %vm2915_vm3 = vcmp.lt.s32.totalorder %v2787_v43, 2744  ;;  %v3044_v24 = vsel %vm2916_vm2, %v1888_v45, 0.0 }
 0x212   : > { %v3294_v55 = vsel %vm3046_vm7, %v3042_v53, 0.0  ;;  %v4245_v38 = vpack.c.bf16 %v1889_v62, %v1889_v62  ;;  %v3045_v58 = vsel %vm2917_vm5, %v1889_v62, 0.0  ;;  %v3298_v4 = vsel %vm3046_vm7, %v3044_v24, 0.0 }
 0x213   : > { %v3295_v8 = vadd.f32 %v3294_v55, %v3293_v7  ;;  %v4243_v12 = vpack.c.bf16 %v1887_v3, %v1887_v3  ;;  %v3043_v35 = vsel %vm2915_vm3, %v1887_v3, 0.0  ;;  %v3300_v50 = vsel %vm3046_vm7, %v3045_v58, 0.0 }
 0x214   : > { %2530 = vst.msk [vmem:[%s5299_s27 + $0x1fc] sm:$0xf] %vm2402_vm4, %v4245_v38  ;;  %v3296_v10 = vsel %vm3046_vm7, %v3043_v35, 0.0 }
 0x215   : > { %2528 = vst.msk [vmem:[%s5299_s27 + $0x1f4] sm:$0xf] %vm2402_vm4, %v4243_v12  ;;  %v3297_v22 = vadd.f32 %v3296_v10, %v3295_v8  ;;  %vm3312_vm4 = vcmask (!%p4100_p11), 253952  }
 0x216   : > { %3313 = vst.msk [vmem:[%s4871_s28] sm:$0x1] (!%p4100_p11), %vm3312_vm4, %v4765_v2 }
 0x217   : > { %v3299_v6 = vadd.f32 %v3298_v4, %v3297_v22 }
 0x219   : > { %v3301_v48 = vadd.f32 %v3300_v50, %v3299_v6 }
 0x21b   : > { %v3302_v41 = vrot.slane %v3301_v48, 4 }
 0x21d   : > { %v3303_v20 = vadd.f32 %v3302_v41, %v3301_v48 }
 0x21f   : > { %v3304_v13 = vrot.slane %v3303_v20, 2  ;;  %3311 = sbr.rel (%p4100_p11) target bundleno = 550 (0x226), region = 40 }
 0x221   : > { %v3305_v39 = vadd.f32 %v3304_v13, %v3303_v20 }
 0x223   : > { %v3306_v21 = vrot.slane %v3305_v39, 1 }
 0x225   : > { %v3307_v52 = vadd.f32 %v3306_v21, %v3305_v39 }
 0x226 PF: > { %v3314_v11 = vld [vmem:[%s4871_s28] sm:$0x1]  ;;  %vm3316_vm6 = vcmask 253952   ;;  %3327 = sbr.rel (!%p4842_p5) target bundleno = 648 (0x288), region = 44  ;;  %s3329_s15 = ssub.s32 (%p4842_p5), 343, %s4862_s13 }
 0x227   : > { %v3315_v54 = vadd.f32 %v3314_v11, %v3307_v52  ;;  %s4451_s20 = smul.u32 (%p4842_p5), 343, %s4718_s21  ;;  %p3330_p12 = scmp.lt.s32.totalorder (%p4842_p5), %s3329_s15, 128 }
 0x229   : > { %3317 = vst.msk [vmem:[%s4871_s28] sm:$0x1] %vm3316_vm6, %v3315_v54  ;;  %s3335_s16 = sadd.s32 (%p4842_p5), %s4451_s20, %s4862_s13 }
 0x22a   : > { %s4105_s17 = sshll.u32 (%p4842_p5), %s3335_s16, 2 }
 0x22b   : > { %s6570_s7 = scalar_lea.vmem (%p4842_p5), %s6774_s4, %s4105_s17  }
 0x22d   : > { %s6886_s15 = smov (!%p3330_p12, %s3329_s15), 128 }
 0x22e   : > { %s4103_s18 = sshll.u32 %s6886_s15, 6 }
 0x22f   : > { %p4106_p13 = scmp.eq.s32.totalorder %s4103_s18, 0 }
 0x230   : > { %s6573_s29 = sshrl.u32 (!%p4106_p13), %s6886_s15, 6 }
 0x231   : > { %3340 = sbr.rel (%p4106_p13) target bundleno = 648 (0x288), region = 48  ;;  %p4107_p0 = scmp.le.s32.totalorder (!%p4106_p13), %s6573_s29, 0 }
 0x238   : > { %3767 = sbr.rel (%p4107_p0) target bundleno = 627 (0x273), region = 132  ;;  %s6870_s21 = smov (!%p4107_p0), %s6570_s7 }
 0x239   : > { %s6871_s13 = smov (!%p4107_p0), %s5299_s27  ;;  %s6582_s28 = smov (!%p4107_p0), 0  }
 0x23a   : > { %s6584_s9 = smov (!%p4107_p0), 0  }
 0x23f LB: >> { %v3356_v14 = vld [vmem:[%s4738_s13] sm:$0xf]  ;;  %v3358_v23 = vld [vmem:[%s4738_s13 + $0x4] sm:$0xf]  ;;  %v3360_v26 = vld [vmem:[%s4738_s13 + $0x8] sm:$0xf]  ;;  %s4746_s9 = sphi %s6584_s9, %s3350_s9   ;;  %s4742_s28 = sphi %s6582_s28, %s6872_s28   ;;  %s4738_s13 = sphi %s6871_s13, %s3489_s13   ;;  %s4734_s21 = sphi %s6870_s21, %s3490_s21  }
 0x240   : >> { %3357 = vst [vmem:[%s4734_s21] sm:$0xf] %v3356_v14  ;;  %3359 = vst [vmem:[%s4734_s21 + $0x4] sm:$0xf] %v3358_v23  ;;  %v3362_v60 = vld [vmem:[%s4738_s13 + $0xc] sm:$0xf]  ;;  %s3484_s10 = sadd.s32 1, %s4742_s28 }
 0x241   : >> { %3361 = vst [vmem:[%s4734_s21 + $0x8] sm:$0xf] %v3360_v26  ;;  %v3364_v30 = vld [vmem:[%s4738_s13 + $0x10] sm:$0xf]  ;;  %v3366_v57 = vld [vmem:[%s4738_s13 + $0x14] sm:$0xf]  ;;  %p3485_p1 = scmp.ge.s32.totalorder %s3484_s10, %s6573_s29 }
 0x242   : >> { %3363 = vst [vmem:[%s4734_s21 + $0xc] sm:$0xf] %v3362_v60  ;;  %3365 = vst [vmem:[%s4734_s21 + $0x10] sm:$0xf] %v3364_v30  ;;  %v3368_v49 = vld [vmem:[%s4738_s13 + $0x18] sm:$0xf] }
 0x243   : >> { %3367 = vst [vmem:[%s4734_s21 + $0x14] sm:$0xf] %v3366_v57  ;;  %v3370_v61 = vld [vmem:[%s4738_s13 + $0x1c] sm:$0xf]  ;;  %v3372_v46 = vld [vmem:[%s4738_s13 + $0x20] sm:$0xf] }
 0x244   : >> { %3369 = vst [vmem:[%s4734_s21 + $0x18] sm:$0xf] %v3368_v49  ;;  %3371 = vst [vmem:[%s4734_s21 + $0x1c] sm:$0xf] %v3370_v61  ;;  %v3374_v47 = vld [vmem:[%s4738_s13 + $0x24] sm:$0xf] }
 0x245   : >> { %3373 = vst [vmem:[%s4734_s21 + $0x20] sm:$0xf] %v3372_v46  ;;  %v3376_v44 = vld [vmem:[%s4738_s13 + $0x28] sm:$0xf]  ;;  %v3378_v32 = vld [vmem:[%s4738_s13 + $0x2c] sm:$0xf] }
 0x246   : >> { %3375 = vst [vmem:[%s4734_s21 + $0x24] sm:$0xf] %v3374_v47  ;;  %3377 = vst [vmem:[%s4734_s21 + $0x28] sm:$0xf] %v3376_v44  ;;  %v3380_v19 = vld [vmem:[%s4738_s13 + $0x30] sm:$0xf] }
 0x247   : >> { %3379 = vst [vmem:[%s4734_s21 + $0x2c] sm:$0xf] %v3378_v32  ;;  %v3382_v0 = vld [vmem:[%s4738_s13 + $0x34] sm:$0xf]  ;;  %v3384_v45 = vld [vmem:[%s4738_s13 + $0x38] sm:$0xf] }
 0x248   : >> { %3381 = vst [vmem:[%s4734_s21 + $0x30] sm:$0xf] %v3380_v19  ;;  %3383 = vst [vmem:[%s4734_s21 + $0x34] sm:$0xf] %v3382_v0  ;;  %v3386_v27 = vld [vmem:[%s4738_s13 + $0x3c] sm:$0xf] }
 0x249   : >> { %3385 = vst [vmem:[%s4734_s21 + $0x38] sm:$0xf] %v3384_v45  ;;  %v3388_v59 = vld [vmem:[%s4738_s13 + $0x40] sm:$0xf]  ;;  %v3390_v29 = vld [vmem:[%s4738_s13 + $0x44] sm:$0xf] }
 0x24a   : >> { %3387 = vst [vmem:[%s4734_s21 + $0x3c] sm:$0xf] %v3386_v27  ;;  %3389 = vst [vmem:[%s4734_s21 + $0x40] sm:$0xf] %v3388_v59  ;;  %v3392_v31 = vld [vmem:[%s4738_s13 + $0x48] sm:$0xf] }
 0x24b   : >> { %3391 = vst [vmem:[%s4734_s21 + $0x44] sm:$0xf] %v3390_v29  ;;  %v3394_v9 = vld [vmem:[%s4738_s13 + $0x4c] sm:$0xf]  ;;  %v3396_v51 = vld [vmem:[%s4738_s13 + $0x50] sm:$0xf] }
 0x24c   : >> { %3393 = vst [vmem:[%s4734_s21 + $0x48] sm:$0xf] %v3392_v31  ;;  %3395 = vst [vmem:[%s4734_s21 + $0x4c] sm:$0xf] %v3394_v9  ;;  %v3398_v42 = vld [vmem:[%s4738_s13 + $0x54] sm:$0xf] }
 0x24d   : >> { %3397 = vst [vmem:[%s4734_s21 + $0x50] sm:$0xf] %v3396_v51  ;;  %v3400_v25 = vld [vmem:[%s4738_s13 + $0x58] sm:$0xf]  ;;  %v3402_v40 = vld [vmem:[%s4738_s13 + $0x5c] sm:$0xf] }
 0x24e   : >> { %3399 = vst [vmem:[%s4734_s21 + $0x54] sm:$0xf] %v3398_v42  ;;  %3401 = vst [vmem:[%s4734_s21 + $0x58] sm:$0xf] %v3400_v25  ;;  %v3404_v34 = vld [vmem:[%s4738_s13 + $0x60] sm:$0xf] }
 0x24f   : >> { %3403 = vst [vmem:[%s4734_s21 + $0x5c] sm:$0xf] %v3402_v40  ;;  %v3406_v18 = vld [vmem:[%s4738_s13 + $0x64] sm:$0xf]  ;;  %v3408_v15 = vld [vmem:[%s4738_s13 + $0x68] sm:$0xf] }
 0x250   : >> { %3405 = vst [vmem:[%s4734_s21 + $0x60] sm:$0xf] %v3404_v34  ;;  %3407 = vst [vmem:[%s4734_s21 + $0x64] sm:$0xf] %v3406_v18  ;;  %v3410_v56 = vld [vmem:[%s4738_s13 + $0x6c] sm:$0xf] }
 0x251   : >> { %3409 = vst [vmem:[%s4734_s21 + $0x68] sm:$0xf] %v3408_v15  ;;  %v3412_v37 = vld [vmem:[%s4738_s13 + $0x70] sm:$0xf]  ;;  %v3414_v63 = vld [vmem:[%s4738_s13 + $0x74] sm:$0xf] }
 0x252   : >> { %3411 = vst [vmem:[%s4734_s21 + $0x6c] sm:$0xf] %v3410_v56  ;;  %3413 = vst [vmem:[%s4734_s21 + $0x70] sm:$0xf] %v3412_v37  ;;  %v3416_v16 = vld [vmem:[%s4738_s13 + $0x78] sm:$0xf] }
 0x253   : >> { %3415 = vst [vmem:[%s4734_s21 + $0x74] sm:$0xf] %v3414_v63  ;;  %v3418_v33 = vld [vmem:[%s4738_s13 + $0x7c] sm:$0xf]  ;;  %v3420_v36 = vld [vmem:[%s4738_s13 + $0x80] sm:$0xf] }
 0x254   : >> { %3417 = vst [vmem:[%s4734_s21 + $0x78] sm:$0xf] %v3416_v16  ;;  %3419 = vst [vmem:[%s4734_s21 + $0x7c] sm:$0xf] %v3418_v33  ;;  %v3422_v1 = vld [vmem:[%s4738_s13 + $0x84] sm:$0xf] }
 0x255   : >> { %3421 = vst [vmem:[%s4734_s21 + $0x80] sm:$0xf] %v3420_v36  ;;  %v3424_v17 = vld [vmem:[%s4738_s13 + $0x88] sm:$0xf]  ;;  %v3426_v28 = vld [vmem:[%s4738_s13 + $0x8c] sm:$0xf] }
 0x256   : >> { %3423 = vst [vmem:[%s4734_s21 + $0x84] sm:$0xf] %v3422_v1  ;;  %3425 = vst [vmem:[%s4734_s21 + $0x88] sm:$0xf] %v3424_v17  ;;  %v3428_v5 = vld [vmem:[%s4738_s13 + $0x90] sm:$0xf] }
 0x257   : >> { %3427 = vst [vmem:[%s4734_s21 + $0x8c] sm:$0xf] %v3426_v28  ;;  %v3430_v43 = vld [vmem:[%s4738_s13 + $0x94] sm:$0xf]  ;;  %v3432_v7 = vld [vmem:[%s4738_s13 + $0x98] sm:$0xf] }
 0x258   : >> { %3429 = vst [vmem:[%s4734_s21 + $0x90] sm:$0xf] %v3428_v5  ;;  %3431 = vst [vmem:[%s4734_s21 + $0x94] sm:$0xf] %v3430_v43  ;;  %v3434_v53 = vld [vmem:[%s4738_s13 + $0x9c] sm:$0xf] }
 0x259   : >> { %3433 = vst [vmem:[%s4734_s21 + $0x98] sm:$0xf] %v3432_v7  ;;  %v3436_v62 = vld [vmem:[%s4738_s13 + $0xa0] sm:$0xf]  ;;  %v3438_v3 = vld [vmem:[%s4738_s13 + $0xa4] sm:$0xf] }
 0x25a   : >> { %3435 = vst [vmem:[%s4734_s21 + $0x9c] sm:$0xf] %v3434_v53  ;;  %3437 = vst [vmem:[%s4734_s21 + $0xa0] sm:$0xf] %v3436_v62  ;;  %v3440_v55 = vld [vmem:[%s4738_s13 + $0xa8] sm:$0xf] }
 0x25b   : >> { %3439 = vst [vmem:[%s4734_s21 + $0xa4] sm:$0xf] %v3438_v3  ;;  %v3442_v8 = vld [vmem:[%s4738_s13 + $0xac] sm:$0xf]  ;;  %v3444_v38 = vld [vmem:[%s4738_s13 + $0xb0] sm:$0xf] }
 0x25c   : >> { %3441 = vst [vmem:[%s4734_s21 + $0xa8] sm:$0xf] %v3440_v55  ;;  %3443 = vst [vmem:[%s4734_s21 + $0xac] sm:$0xf] %v3442_v8  ;;  %v3446_v12 = vld [vmem:[%s4738_s13 + $0xb4] sm:$0xf] }
 0x25d   : >> { %3445 = vst [vmem:[%s4734_s21 + $0xb0] sm:$0xf] %v3444_v38  ;;  %v3448_v24 = vld [vmem:[%s4738_s13 + $0xb8] sm:$0xf]  ;;  %v3450_v35 = vld [vmem:[%s4738_s13 + $0xbc] sm:$0xf] }
 0x25e   : >> { %3447 = vst [vmem:[%s4734_s21 + $0xb4] sm:$0xf] %v3446_v12  ;;  %3449 = vst [vmem:[%s4734_s21 + $0xb8] sm:$0xf] %v3448_v24  ;;  %v3452_v10 = vld [vmem:[%s4738_s13 + $0xc0] sm:$0xf] }
 0x25f   : >> { %3451 = vst [vmem:[%s4734_s21 + $0xbc] sm:$0xf] %v3450_v35  ;;  %v3454_v58 = vld [vmem:[%s4738_s13 + $0xc4] sm:$0xf]  ;;  %v3456_v22 = vld [vmem:[%s4738_s13 + $0xc8] sm:$0xf] }
 0x260   : >> { %3453 = vst [vmem:[%s4734_s21 + $0xc0] sm:$0xf] %v3452_v10  ;;  %3455 = vst [vmem:[%s4734_s21 + $0xc4] sm:$0xf] %v3454_v58  ;;  %v3458_v4 = vld [vmem:[%s4738_s13 + $0xcc] sm:$0xf] }
 0x261   : >> { %3457 = vst [vmem:[%s4734_s21 + $0xc8] sm:$0xf] %v3456_v22  ;;  %v3460_v6 = vld [vmem:[%s4738_s13 + $0xd0] sm:$0xf]  ;;  %v3462_v50 = vld [vmem:[%s4738_s13 + $0xd4] sm:$0xf] }
 0x262   : >> { %3459 = vst [vmem:[%s4734_s21 + $0xcc] sm:$0xf] %v3458_v4  ;;  %3461 = vst [vmem:[%s4734_s21 + $0xd0] sm:$0xf] %v3460_v6  ;;  %v3464_v48 = vld [vmem:[%s4738_s13 + $0xd8] sm:$0xf] }
 0x263   : >> { %3463 = vst [vmem:[%s4734_s21 + $0xd4] sm:$0xf] %v3462_v50  ;;  %v3466_v41 = vld [vmem:[%s4738_s13 + $0xdc] sm:$0xf]  ;;  %v3468_v20 = vld [vmem:[%s4738_s13 + $0xe0] sm:$0xf] }
 0x264   : >> { %3465 = vst [vmem:[%s4734_s21 + $0xd8] sm:$0xf] %v3464_v48  ;;  %3467 = vst [vmem:[%s4734_s21 + $0xdc] sm:$0xf] %v3466_v41  ;;  %v3470_v13 = vld [vmem:[%s4738_s13 + $0xe4] sm:$0xf] }
 0x265   : >> { %3469 = vst [vmem:[%s4734_s21 + $0xe0] sm:$0xf] %v3468_v20  ;;  %v3472_v39 = vld [vmem:[%s4738_s13 + $0xe8] sm:$0xf]  ;;  %v3474_v21 = vld [vmem:[%s4738_s13 + $0xec] sm:$0xf] }
 0x266   : >> { %3471 = vst [vmem:[%s4734_s21 + $0xe4] sm:$0xf] %v3470_v13  ;;  %3473 = vst [vmem:[%s4734_s21 + $0xe8] sm:$0xf] %v3472_v39  ;;  %v3476_v52 = vld [vmem:[%s4738_s13 + $0xf0] sm:$0xf] }
 0x267   : >> { %3475 = vst [vmem:[%s4734_s21 + $0xec] sm:$0xf] %v3474_v21  ;;  %v3478_v2 = vld [vmem:[%s4738_s13 + $0xf4] sm:$0xf]  ;;  %v3480_v11 = vld [vmem:[%s4738_s13 + $0xf8] sm:$0xf] }
 0x268   : >> { %3477 = vst [vmem:[%s4734_s21 + $0xf0] sm:$0xf] %v3476_v52  ;;  %3479 = vst [vmem:[%s4734_s21 + $0xf4] sm:$0xf] %v3478_v2  ;;  %v3482_v54 = vld [vmem:[%s4738_s13 + $0xfc] sm:$0xf] }
 0x269   : >> { %3481 = vst [vmem:[%s4734_s21 + $0xf8] sm:$0xf] %v3480_v11  ;;  %3483 = vst [vmem:[%s4734_s21 + $0xfc] sm:$0xf] %v3482_v54  ;;  %s6888_s10 = smov (%p3485_p1, %s3484_s10), 0  ;;  %s3350_s9 = sadd.s32 1, %s4746_s9  }
 0x26a   : >> { %s4108_s11 = sshll.u32 %s6888_s10, 8  ;;  %p3349_p2 = scmp.ge.s32.totalorder %s3350_s9, %s6573_s29 }
 0x26b   : >> { %s3489_s13 = scalar_lea.vmem %s5299_s27, %s4108_s11 [#allocation2]   ;;  %s3490_s21 = scalar_lea.vmem %s6570_s7, %s4108_s11  }
 0x26c   : >> { %s6872_s28 = smov %s6888_s10  ;;  %3352 = sbr.rel (!%p3349_p2) target bundleno = 575 (0x23f), region = 138 }
 0x273 PF: > { %s6741_s12 = sand.u32 63, %s6886_s15   ;;  %s4246_s14 = sshll.u32 %s6573_s29, 8 }
 0x274   : > { %s3495_s20 = scalar_lea.vmem %s5299_s27, %s4246_s14 [#allocation2]   ;;  %s3497_s16 = scalar_lea.vmem %s6570_s7, %s4246_s14  }
 0x275   : > { %p4113_p3 = scmp.le.s32.totalorder %s6741_s12, 0 }
 0x276   : > { %s4748_s17 = smov (!%p4113_p3), %s3497_s16   ;;  %s4752_s18 = smov (!%p4113_p3), %s3495_s20  }
 0x277   : > { %3781 = sbr.rel (%p4113_p3) target bundleno = 648 (0x288), region = 143  ;;  %s4756_s30 = smov (!%p4113_p3), 0  }
 0x278   : > { %s4760_s6 = smov (!%p4113_p3), 0  }
 0x27e LB: >> { %v3507_v14 = vld [vmem:[%s4754_s18] sm:$0xf]  ;;  %s3509_s15 = sadd.s32 1, %s4758_s30  ;;  %s3501_s6 = sadd.s32 1, %s4762_s6   ;;  %s4762_s6 = sphi %s4760_s6, %s3501_s6   ;;  %s4758_s30 = sphi %s4756_s30, %s4757_s30   ;;  %s4754_s18 = sphi %s4752_s18, %s3514_s18   ;;  %s4750_s17 = sphi %s4748_s17, %s3515_s17  }
 0x27f   : >> { %3508 = vst [vmem:[%s4750_s17] sm:$0xf] %v3507_v14  ;;  %p3510_p4 = scmp.ge.s32.totalorder %s3509_s15, %s6741_s12  ;;  %p3500_p5 = scmp.ge.s32.totalorder %s3501_s6, %s6741_s12 }
 0x281   : >> { %s6890_s15 = smov (%p3510_p4, %s3509_s15), 0  ;;  %3503 = sbr.rel (!%p3500_p5) target bundleno = 638 (0x27e), region = 149 }
 0x282   : >> { %s4114_s27 = sshll.u32 %s6890_s15, 2  ;;  %s4757_s30 = smov %s6890_s15  }
 0x283   : >> { %s3514_s18 = scalar_lea.vmem %s3495_s20, %s4114_s27 [#allocation2]   ;;  %s3515_s17 = scalar_lea.vmem %s3497_s16, %s4114_s27  }
 0x288 PF: > { %s16_s24 = sadd.s32 1, %s4730_s24   ;;  %s6873_s18 = smov %s4710_s19 }
 0x289   : > { %p13_p6 = scmp.ge.s32.totalorder %s16_s24, 8   ;;  %s6874_s19 = smov %s4853_s8 }
 0x28a   : > { %s6875_s20 = smov %s4722_s22  ;;  %s6876_s21 = smov %s4726_s23 }
 0x28b   : > { %s6877_s22 = smov %s6880_s25  ;;  %s6878_s23 = smov %s6884_s26 }
 0x28c   :  { %15 = sbr.rel (!%p13_p6) target bundleno = 4 (0x4), region = 160 }

// kernel: _lambda_.5
= control target key start
LH: loop header
LB: loop body
LE: loop exit
PB: predicated region body
PF: predicated region fallthrough
CT: control target
= control target key end

     0   :  { %s6805_s15 = smov 0   ;;  %s8406_s0 = inlined_call_operand.vmem [shape: bf16[2,729,864], index: 0, kind: input, shape index: {}]   ;;  %s8407_s1 = inlined_call_operand.vmem [shape: bf16[864,64], index: 1, kind: input, shape index: {}]   ;;  %s8408_s2 = inlined_call_operand.vmem [shape: f32[1,64], index: 2, kind: input, shape index: {}]   ;;  %s8409_s3 = inlined_call_operand.vmem [shape: f32[1,64], index: 3, kind: input, shape index: {}]   ;;  %s8410_s4 = inlined_call_operand.vmem [shape: bf16[2,729,64], index: 4, kind: output, shape index: {}]  }
   0x1 LB: > { %s5163_s16 = sadd.s32 4294967295, %s6777_s15   ;;  %p5167_p0 = scmp.ge.s32.totalorder %s6777_s15, 1  ;;  %s6777_s15 = sphi %s6805_s15, %s14_s15  }
   0x2   : > { %p162_p1 = scmp.lt.s32.totalorder %s6777_s15, 3 }
   0x4   : > { %p163_p2 = pnand %p5167_p0, %p162_p1 }
   0x6   : > { %166 = sbr.rel (%p163_p2) target bundleno = 946 (0x3b2), region = 36 }
   0xd   : > { %v6255_v0 = vld [vmem:[%s8407_s1] sm:$0xff]   ;;  %v6779_v1 = vmov 0   ;;  %v6257_v3 = vld [vmem:[%s8407_s1 + $0x8] sm:$0xff]   ;;  %v6259_v5 = vld [vmem:[%s8407_s1 + $0x10] sm:$0xff]   ;;  %p188_p3 = scmp.lt.s32.totalorder %s5163_s16, 1  ;;  %vm2609_vm0 = vcmask 785408  }
   0xe   : > { %2748 = vmatprep.subr.bf16.mxu1 %v6779_v1  ;;  %3149 = vmatprep.subr.bf16.mxu0 %v6779_v1  ;;  %v6821_v2 = vld [vmem:[%s8407_s1 + $0x80] sm:$0xff]   ;;  %v6831_v4 = vld [vmem:[%s8407_s1 + $0x88] sm:$0xff]   ;;  %v6842_v6 = vld [vmem:[%s8407_s1 + $0x90] sm:$0xff]   ;;  %vm5010_vm1 = vcmask 519168   ;;  %vm5102_vm2 = vcmask 516096  }
   0xf   : > { %2749 = vmatpush1.bf16.msra.mxu1 %v6255_v0  ;;  %3150 = vmatpush1.bf16.msra.mxu0 %v6821_v2  ;;  %v6261_v7 = vld [vmem:[%s8407_s1 + $0x18] sm:$0xff]   ;;  %v6263_v9 = vld [vmem:[%s8407_s1 + $0x20] sm:$0xff]   ;;  %v6265_v11 = vld [vmem:[%s8407_s1 + $0x28] sm:$0xff]   ;;  %s8498_s16 = smov (!%p188_p3, %s5163_s16), 1  ;;  %vm5103_vm3 = vsmask.f32 256 }
  0x10   : > { %2750 = vmatprep.subr.bf16.mxu1 %v6779_v1  ;;  %3151 = vmatprep.subr.bf16.mxu0 %v6779_v1  ;;  %v6853_v8 = vld [vmem:[%s8407_s1 + $0x98] sm:$0xff]   ;;  %v6864_v10 = vld [vmem:[%s8407_s1 + $0xa0] sm:$0xff]   ;;  %v6877_v12 = vld [vmem:[%s8407_s1 + $0xa8] sm:$0xff]   ;;  %s6244_s23 = smul.u32 2576, %s8498_s16 }
  0x11   : > { %v6267_v13 = vld [vmem:[%s8407_s1 + $0x30] sm:$0xff]   ;;  %v6269_v15 = vld [vmem:[%s8407_s1 + $0x38] sm:$0xff]   ;;  %v6271_v17 = vld [vmem:[%s8407_s1 + $0x40] sm:$0xff]   ;;  %s6245_s13 = smul.u32 368, %s8498_s16 }
  0x12   : > { %v6892_v14 = vld [vmem:[%s8407_s1 + $0xb0] sm:$0xff]   ;;  %v6904_v16 = vld [vmem:[%s8407_s1 + $0xb8] sm:$0xff]   ;;  %s6913_s30 = scalar_lea.vmem %s8406_s0, %s6244_s23  ;;  %v6920_v18 = vld [vmem:[%s8407_s1 + $0xc0] sm:$0xff]  }
  0x13   : > { %2751 = vmatpush1.bf16.msra.mxu1 %v6257_v3  ;;  %3152 = vmatpush1.bf16.msra.mxu0 %v6831_v4  ;;  %v6289_v19 = vld [vmem:[%s6913_s30 + $0x4] ss:$28 sps:$4 sm:$0xff]   ;;  %v6273_v20 = vld [vmem:[%s8407_s1 + $0x48] sm:$0xff]   ;;  %v6275_v23 = vld [vmem:[%s8407_s1 + $0x50] sm:$0xff]   ;;  %s7834_s17 = scalar_lea.vmem %s8410_s4, %s6245_s13 }
  0x14   : > { %2752 = vmatprep.subr.bf16.mxu1 %v6779_v1  ;;  %3153 = vmatprep.subr.bf16.mxu0 %v6779_v1  ;;  %v6292_v21 = vld [vmem:[%s6913_s30 + $0xc] ss:$28 sps:$4 sm:$0xff]   ;;  %v6944_v24 = vld [vmem:[%s8407_s1 + $0xd0] sm:$0xff]   ;;  %v6277_v25 = vld [vmem:[%s8407_s1 + $0x58] sm:$0xff]  }
  0x15   : > { %v6933_v22 = vld [vmem:[%s8407_s1 + $0xc8] sm:$0xff]   ;;  %2780 = vmatprep.mubr.bf16.mxu1 %v6289_v19  ;;  %3181 = vmatprep.mubr.bf16.mxu0 %v6292_v21  ;;  %v6955_v26 = vld [vmem:[%s8407_s1 + $0xd8] sm:$0xff]   ;;  %v6279_v27 = vld [vmem:[%s8407_s1 + $0x60] sm:$0xff]  }
  0x16   : > { %v6966_v28 = vld [vmem:[%s8407_s1 + $0xe0] sm:$0xff]   ;;  %v6281_v29 = vld [vmem:[%s8407_s1 + $0x68] sm:$0xff]   ;;  %v6283_v31 = vld [vmem:[%s8407_s1 + $0x70] sm:$0xff]  }
  0x17   : > { %2753 = vmatpush1.bf16.msra.mxu1 %v6259_v5  ;;  %3154 = vmatpush1.bf16.msra.mxu0 %v6842_v6  ;;  %v6977_v30 = vld [vmem:[%s8407_s1 + $0xe8] sm:$0xff]   ;;  %v6988_v32 = vld [vmem:[%s8407_s1 + $0xf0] sm:$0xff]   ;;  %v6285_v33 = vld [vmem:[%s8407_s1 + $0x78] sm:$0xff]  }
  0x18   : > { %2754 = vmatprep.subr.bf16.mxu1 %v6779_v1  ;;  %3155 = vmatprep.subr.bf16.mxu0 %v6779_v1  ;;  %v6999_v34 = vld [vmem:[%s8407_s1 + $0xf8] sm:$0xff]   ;;  %v6290_v36 = vld [vmem:[%s6913_s30 + $0x8] ss:$28 sps:$4 sm:$0xff]   ;;  %v6300_v43 = vld [vmem:[%s6913_s30 + $0x74] ss:$28 sps:$4 sm:$0xff]  }
  0x19   : > { %v6287_v35 = vld [vmem:[%s6913_s30] ss:$28 sps:$4 sm:$0xff]   ;;  %v6306_v40 = vld [vmem:[%s8407_s1 + $0x108] sm:$0xff]   ;;  %v6298_v41 = vld [vmem:[%s6913_s30 + $0x38] ss:$28 sps:$4 sm:$0xff]  }
  0x1a   : > { %v6294_v37 = vld [vmem:[%s6913_s30 + $0x3c] ss:$28 sps:$4 sm:$0xff]   ;;  %v6293_v38 = vld [vmem:[%s8407_s1 + $0x100] sm:$0xff]   ;;  %v6319_v45 = vld [vmem:[%s8407_s1 + $0x110] sm:$0xff]  }
  0x1b   : > { %2755 = vmatpush1.bf16.msra.mxu1 %v6261_v7  ;;  %3156 = vmatpush1.bf16.msra.mxu0 %v6853_v8  ;;  %v6296_v39 = vld [vmem:[%s6913_s30 + $0x44] ss:$28 sps:$4 sm:$0xff]   ;;  %v6302_v44 = vld [vmem:[%s6913_s30 + $0x7c] ss:$28 sps:$4 sm:$0xff]   ;;  %v6304_v47 = vld [vmem:[%s6913_s30 + $0x70] ss:$28 sps:$4 sm:$0xff]  }
  0x1c   : > { %2756 = vmatprep.subr.bf16.mxu1 %v6779_v1  ;;  %3157 = vmatprep.subr.bf16.mxu0 %v6779_v1  ;;  %v6299_v42 = vld [vmem:[%s6913_s30 + $0x40] ss:$28 sps:$4 sm:$0xff]   ;;  %v6305_v48 = vld [vmem:[%s6913_s30 + $0x78] ss:$28 sps:$4 sm:$0xff]   ;;  %v6307_v49 = vld [vmem:[%s6913_s30 + $0xac] ss:$28 sps:$4 sm:$0xff]  }
  0x1d   : > { %v6332_v46 = vld [vmem:[%s8407_s1 + $0x118] sm:$0xff]   ;;  %v6309_v50 = vld [vmem:[%s6913_s30 + $0xb4] ss:$28 sps:$4 sm:$0xff]   ;;  %v6349_v51 = vld [vmem:[%s8407_s1 + $0x120] sm:$0xff]  }
  0x1e   : > { %v6364_v52 = vld [vmem:[%s8407_s1 + $0x128] sm:$0xff]   ;;  %v6313_v55 = vld [vmem:[%s6913_s30 + $0xe4] ss:$28 sps:$4 sm:$0xff]   ;;  %v6377_v57 = vld [vmem:[%s8407_s1 + $0x130] sm:$0xff]  }
  0x1f   : > { %2757 = vmatpush1.bf16.msra.mxu1 %v6263_v9  ;;  %3158 = vmatpush1.bf16.msra.mxu0 %v6864_v10  ;;  %v6311_v53 = vld [vmem:[%s6913_s30 + $0xa8] ss:$28 sps:$4 sm:$0xff]   ;;  %v6312_v54 = vld [vmem:[%s6913_s30 + $0xb0] ss:$28 sps:$4 sm:$0xff]   ;;  %v6390_v58 = vld [vmem:[%s8407_s1 + $0x138] sm:$0xff]  }
  0x20   : > { %2758 = vmatprep.subr.bf16.mxu1 %v6779_v1  ;;  %3159 = vmatprep.subr.bf16.mxu0 %v6779_v1  ;;  %v6315_v56 = vld [vmem:[%s6913_s30 + $0xec] ss:$28 sps:$4 sm:$0xff]   ;;  %v6317_v59 = vld [vmem:[%s6913_s30 + $0xe0] ss:$28 sps:$4 sm:$0xff]   ;;  %v6324_v0 = vld [vmem:[%s6913_s30 + $0x118] ss:$28 sps:$4 sm:$0xff]  }
  0x21   : > { %v6318_v60 = vld [vmem:[%s6913_s30 + $0xe8] ss:$28 sps:$4 sm:$0xff]   ;;  %v6320_v61 = vld [vmem:[%s6913_s30 + $0x11c] ss:$28 sps:$4 sm:$0xff]   ;;  %v6335_v9 = vld [vmem:[%s6913_s30 + $0x194] ss:$28 sps:$4 sm:$0xff]  }
  0x22   : > { %v6322_v62 = vld [vmem:[%s6913_s30 + $0x124] ss:$28 sps:$4 sm:$0xff]   ;;  %v6328_v5 = vld [vmem:[%s6913_s30 + $0x15c] ss:$28 sps:$4 sm:$0xff]   ;;  %vm5104_vm4 = vmand %vm5102_vm2, %vm5103_vm3 }
  0x23   : > { %2759 = vmatpush1.bf16.msra.mxu1 %v6265_v11  ;;  %3160 = vmatpush1.bf16.msra.mxu0 %v6877_v12  ;;  %v6403_v63 = vld [vmem:[%s8407_s1 + $0x140] sm:$0xff]   ;;  %v6331_v7 = vld [vmem:[%s6913_s30 + $0x158] ss:$28 sps:$4 sm:$0xff]  }
  0x24   : > { %2760 = vmatprep.subr.bf16.mxu1 %v6779_v1  ;;  %3161 = vmatprep.subr.bf16.mxu0 %v6779_v1  ;;  %v6325_v3 = vld [vmem:[%s6913_s30 + $0x120] ss:$28 sps:$4 sm:$0xff]   ;;  %v6337_v11 = vld [vmem:[%s6913_s30 + $0x188] ss:$28 sps:$4 sm:$0xff]  }
  0x25   : > { %v6448_v19 = vld [vmem:[%s8407_s1 + $0x158] sm:$0xff]  }
  0x26   : > { %v6351_v21 = vld [vmem:[%s6913_s30 + $0x200] ss:$28 sps:$4 sm:$0xff]  }
  0x27   : > { %2761 = vmatpush1.bf16.msra.mxu1 %v6267_v13  ;;  %3162 = vmatpush1.bf16.msra.mxu0 %v6892_v14  ;;  %v6339_v13 = vld [vmem:[%s6913_s30 + $0x1c4] ss:$28 sps:$4 sm:$0xff]  }
  0x28   : > { %2762 = vmatprep.subr.bf16.mxu1 %v6779_v1  ;;  %3163 = vmatprep.subr.bf16.mxu0 %v6779_v1 }
  0x2b   : > { %2763 = vmatpush1.bf16.msra.mxu1 %v6269_v15  ;;  %3164 = vmatpush1.bf16.msra.mxu0 %v6904_v16  ;;  %v6343_v15 = vld [vmem:[%s6913_s30 + $0x1c0] ss:$28 sps:$4 sm:$0xff]  }
  0x2c   : > { %2764 = vmatprep.subr.bf16.mxu1 %v6779_v1  ;;  %3165 = vmatprep.subr.bf16.mxu0 %v6779_v1 }
  0x2f   : > { %2765 = vmatpush1.bf16.msra.mxu1 %v6271_v17  ;;  %3166 = vmatpush1.bf16.msra.mxu0 %v6920_v18  ;;  %v6345_v17 = vld [vmem:[%s6913_s30 + $0x1fc] ss:$28 sps:$4 sm:$0xff]  }
  0x30   : > { %2766 = vmatprep.subr.bf16.mxu1 %v6779_v1  ;;  %3167 = vmatprep.subr.bf16.mxu0 %v6779_v1 }
  0x33   : > { %2767 = vmatpush1.bf16.msra.mxu1 %v6273_v20  ;;  %3168 = vmatpush1.bf16.msra.mxu0 %v6933_v22  ;;  %v6350_v20 = vld [vmem:[%s6913_s30 + $0x1f8] ss:$28 sps:$4 sm:$0xff]  }
  0x34   : > { %2768 = vmatprep.subr.bf16.mxu1 %v6779_v1  ;;  %3169 = vmatprep.subr.bf16.mxu0 %v6779_v1 }
  0x37   : > { %2769 = vmatpush1.bf16.msra.mxu1 %v6275_v23  ;;  %3170 = vmatpush1.bf16.msra.mxu0 %v6944_v24  ;;  %v6354_v23 = vld [vmem:[%s6913_s30 + $0x23c] ss:$28 sps:$4 sm:$0xff]  }
  0x38   : > { %2770 = vmatprep.subr.bf16.mxu1 %v6779_v1  ;;  %3171 = vmatprep.subr.bf16.mxu0 %v6779_v1 }
  0x3b   : > { %2771 = vmatpush1.bf16.msra.mxu1 %v6277_v25  ;;  %3172 = vmatpush1.bf16.msra.mxu0 %v6955_v26  ;;  %v6357_v25 = vld [vmem:[%s6913_s30 + $0x238] ss:$28 sps:$4 sm:$0xff]  }
  0x3c   : > { %2772 = vmatprep.subr.bf16.mxu1 %v6779_v1  ;;  %3173 = vmatprep.subr.bf16.mxu0 %v6779_v1 }
  0x3f   : > { %2773 = vmatpush1.bf16.msra.mxu1 %v6279_v27  ;;  %3174 = vmatpush1.bf16.msra.mxu0 %v6966_v28  ;;  %v6360_v27 = vld [vmem:[%s6913_s30 + $0x274] ss:$28 sps:$4 sm:$0xff]  }
  0x40   : > { %2774 = vmatprep.subr.bf16.mxu1 %v6779_v1  ;;  %3175 = vmatprep.subr.bf16.mxu0 %v6779_v1 }
  0x43   : > { %2775 = vmatpush1.bf16.msra.mxu1 %v6281_v29  ;;  %3176 = vmatpush1.bf16.msra.mxu0 %v6977_v30  ;;  %v6362_v29 = vld [vmem:[%s6913_s30 + $0x268] ss:$28 sps:$4 sm:$0xff]  }
  0x44   : > { %2776 = vmatprep.subr.bf16.mxu1 %v6779_v1  ;;  %3177 = vmatprep.subr.bf16.mxu0 %v6779_v1 }
  0x47   : > { %2777 = vmatpush1.bf16.msra.mxu1 %v6283_v31  ;;  %3178 = vmatpush1.bf16.msra.mxu0 %v6988_v32  ;;  %v6365_v31 = vld [vmem:[%s6913_s30 + $0x2a4] ss:$28 sps:$4 sm:$0xff]  }
  0x48   : > { %2778 = vmatprep.subr.bf16.mxu1 %v6779_v1  ;;  %3179 = vmatprep.subr.bf16.mxu0 %v6779_v1 }
  0x4b   : > { %2779 = vmatpush1.bf16.msra.mxu1 %v6285_v33  ;;  %3180 = vmatpush1.bf16.msra.mxu0 %v6999_v34  ;;  %v6369_v33 = vld [vmem:[%s6913_s30 + $0x2a0] ss:$28 sps:$4 sm:$0xff]  }
  0x4c   : > { %5936 = vmatprep.subr.bf16.mxu1 %v6779_v1  ;;  %3550 = vmatprep.subr.bf16.mxu0 %v6779_v1 }
  0x4e   : > { %2781 = vmatmul.mubr.bf16.vlgmr.msra.gmra.mrb[0].mxu1 %v6287_v35  ;;  %3182 = vmatmul.mubr.bf16.vlgmr.msra.gmra.mrb[0].mxu0 %v6290_v36  ;;  %v6371_v35 = vld [vmem:[%s6913_s30 + $0x2dc] ss:$28 sps:$4 sm:$0xff]   ;;  %v6373_v36 = vld [vmem:[%s6913_s30 + $0x2e4] ss:$28 sps:$4 sm:$0xff]  }
  0x4f   : > { %2788 = vmatprep.mubr.bf16.mxu1 %v6294_v37  ;;  %3551 = vmatpush1.bf16.msra.mxu0 %v6293_v38  ;;  %v6474_v37 = vld [vmem:[%s8407_s1 + $0x168] sm:$0xff]   ;;  %v6375_v38 = vld [vmem:[%s6913_s30 + $0x2d8] ss:$28 sps:$4 sm:$0xff]  }
  0x50   : > { %3189 = vmatprep.mubr.bf16.mxu0 %v6296_v39  ;;  %5952 = vmatpush1.bf16.msra.mxu1 %v6821_v2  ;;  %v6420_v2 = vld [vmem:[%s8407_s1 + $0x148] sm:$0xff]   ;;  %v6376_v39 = vld [vmem:[%s6913_s30 + $0x2e0] ss:$28 sps:$4 sm:$0xff]  }
  0x51   : > { %3552 = vmatprep.subr.bf16.mxu0 %v6779_v1  ;;  %5937 = vmatprep.subr.bf16.mxu1 %v6779_v1 }
  0x53   : > { %3553 = vmatpush1.bf16.msra.mxu0 %v6306_v40  ;;  %v6378_v40 = vld [vmem:[%s6913_s30 + $0x314] ss:$28 sps:$4 sm:$0xff]  }
  0x54   : > { %5953 = vmatpush1.bf16.msra.mxu1 %v6831_v4  ;;  %3554 = vmatprep.subr.bf16.mxu0 %v6779_v1  ;;  %v6326_v4 = vld [vmem:[%s6913_s30 + $0x154] ss:$28 sps:$4 sm:$0xff]  }
  0x55   : > { %5938 = vmatprep.subr.bf16.mxu1 %v6779_v1 }
  0x56   : > { %2789 = vmatmul.mubr.bf16.gmra.mrb[4].mxu1 %v6298_v41  ;;  %3190 = vmatmul.mubr.bf16.gmra.mrb[4].mxu0 %v6299_v42  ;;  %v6380_v41 = vld [vmem:[%s6913_s30 + $0x31c] ss:$28 sps:$4 sm:$0xff]   ;;  %v6382_v42 = vld [vmem:[%s6913_s30 + $0x310] ss:$28 sps:$4 sm:$0xff]  }
  0x57   : > { %2796 = vmatprep.mubr.bf16.mxu1 %v6300_v43  ;;  %3197 = vmatprep.mubr.bf16.mxu0 %v6302_v44  ;;  %v6383_v43 = vld [vmem:[%s6913_s30 + $0x318] ss:$28 sps:$4 sm:$0xff]   ;;  %v6384_v44 = vld [vmem:[%s6913_s30 + $0x34c] ss:$28 sps:$4 sm:$0xff]  }
  0x58   : > { %3555 = vmatpush1.bf16.msra.mxu0 %v6319_v45  ;;  %5954 = vmatpush1.bf16.msra.mxu1 %v6842_v6  ;;  %v6330_v6 = vld [vmem:[%s6913_s30 + $0x150] ss:$28 sps:$4 sm:$0xff]  }
  0x59   : > { %3556 = vmatprep.subr.bf16.mxu0 %v6779_v1  ;;  %5939 = vmatprep.subr.bf16.mxu1 %v6779_v1  ;;  %v6386_v45 = vld [vmem:[%s6913_s30 + $0x354] ss:$28 sps:$4 sm:$0xff]  }
  0x5c   : > { %3557 = vmatpush1.bf16.msra.mxu0 %v6332_v46  ;;  %5955 = vmatpush1.bf16.msra.mxu1 %v6853_v8  ;;  %v6333_v8 = vld [vmem:[%s6913_s30 + $0x18c] ss:$28 sps:$4 sm:$0xff]   ;;  %v6487_v46 = vld [vmem:[%s8407_s1 + $0x170] sm:$0xff]  }
  0x5d   : > { %3558 = vmatprep.subr.bf16.mxu0 %v6779_v1  ;;  %5940 = vmatprep.subr.bf16.mxu1 %v6779_v1 }
  0x5e   : > { %2797 = vmatmul.mubr.bf16.gmra.mrb[8].mxu1 %v6304_v47  ;;  %3198 = vmatmul.mubr.bf16.gmra.mrb[8].mxu0 %v6305_v48  ;;  %v6388_v47 = vld [vmem:[%s6913_s30 + $0x348] ss:$28 sps:$4 sm:$0xff]   ;;  %v6389_v48 = vld [vmem:[%s6913_s30 + $0x350] ss:$28 sps:$4 sm:$0xff]  }
  0x5f   : > { %2804 = vmatprep.mubr.bf16.mxu1 %v6307_v49  ;;  %3205 = vmatprep.mubr.bf16.mxu0 %v6309_v50  ;;  %v6391_v49 = vld [vmem:[%s6913_s30 + $0x384] ss:$28 sps:$4 sm:$0xff]   ;;  %v6393_v50 = vld [vmem:[%s6913_s30 + $0x38c] ss:$28 sps:$4 sm:$0xff]  }
  0x60   : > { %3559 = vmatpush1.bf16.msra.mxu0 %v6349_v51  ;;  %5956 = vmatpush1.bf16.msra.mxu1 %v6864_v10  ;;  %v6435_v10 = vld [vmem:[%s8407_s1 + $0x150] sm:$0xff]   ;;  %v6395_v51 = vld [vmem:[%s6913_s30 + $0x380] ss:$28 sps:$4 sm:$0xff]  }
  0x61   : > { %3560 = vmatprep.subr.bf16.mxu0 %v6779_v1  ;;  %5941 = vmatprep.subr.bf16.mxu1 %v6779_v1 }
  0x64   : > { %3561 = vmatpush1.bf16.msra.mxu0 %v6364_v52  ;;  %5957 = vmatpush1.bf16.msra.mxu1 %v6877_v12  ;;  %v6338_v12 = vld [vmem:[%s6913_s30 + $0x190] ss:$28 sps:$4 sm:$0xff]   ;;  %v6396_v52 = vld [vmem:[%s6913_s30 + $0x388] ss:$28 sps:$4 sm:$0xff]  }
  0x65   : > { %3562 = vmatprep.subr.bf16.mxu0 %v6779_v1  ;;  %5942 = vmatprep.subr.bf16.mxu1 %v6779_v1 }
  0x66   : > { %2805 = vmatmul.mubr.bf16.gmra.mrb[12].mxu1 %v6311_v53  ;;  %3206 = vmatmul.mubr.bf16.gmra.mrb[12].mxu0 %v6312_v54  ;;  %v6397_v53 = vld [vmem:[%s6913_s30 + $0x3bc] ss:$28 sps:$4 sm:$0xff]   ;;  %v6399_v54 = vld [vmem:[%s6913_s30 + $0x3c4] ss:$28 sps:$4 sm:$0xff]  }
  0x67   : > { %2812 = vmatprep.mubr.bf16.mxu1 %v6313_v55  ;;  %3213 = vmatprep.mubr.bf16.mxu0 %v6315_v56  ;;  %v6401_v55 = vld [vmem:[%s6913_s30 + $0x3b8] ss:$28 sps:$4 sm:$0xff]   ;;  %v6402_v56 = vld [vmem:[%s6913_s30 + $0x3c0] ss:$28 sps:$4 sm:$0xff]  }
  0x68   : > { %3563 = vmatpush1.bf16.msra.mxu0 %v6377_v57  ;;  %5958 = vmatpush1.bf16.msra.mxu1 %v6892_v14  ;;  %v6341_v14 = vld [vmem:[%s6913_s30 + $0x1cc] ss:$28 sps:$4 sm:$0xff]   ;;  %v6406_v57 = vld [vmem:[%s6913_s30 + $0x3fc] ss:$28 sps:$4 sm:$0xff]  }
  0x69   : > { %3564 = vmatprep.subr.bf16.mxu0 %v6779_v1  ;;  %5943 = vmatprep.subr.bf16.mxu1 %v6779_v1 }
  0x6c   : > { %3565 = vmatpush1.bf16.msra.mxu0 %v6390_v58  ;;  %5959 = vmatpush1.bf16.msra.mxu1 %v6904_v16  ;;  %v6344_v16 = vld [vmem:[%s6913_s30 + $0x1c8] ss:$28 sps:$4 sm:$0xff]   ;;  %v6506_v58 = vld [vmem:[%s8407_s1 + $0x178] sm:$0xff]  }
  0x6d   : > { %3566 = vmatprep.subr.bf16.mxu0 %v6779_v1  ;;  %5944 = vmatprep.subr.bf16.mxu1 %v6779_v1 }
  0x6e   : > { %2813 = vmatmul.mubr.bf16.gmra.mrb[16].mxu1 %v6317_v59  ;;  %3214 = vmatmul.mubr.bf16.gmra.mrb[16].mxu0 %v6318_v60  ;;  %v6408_v59 = vld [vmem:[%s6913_s30 + $0x3f0] ss:$28 sps:$4 sm:$0xff]   ;;  %v6409_v60 = vld [vmem:[%s6913_s30 + $0x3f8] ss:$28 sps:$4 sm:$0xff]  }
  0x6f   : > { %2820 = vmatprep.mubr.bf16.mxu1 %v6320_v61  ;;  %3221 = vmatprep.mubr.bf16.mxu0 %v6322_v62  ;;  %v6410_v61 = vld [vmem:[%s6913_s30 + $0x42c] ss:$28 sps:$4 sm:$0xff]   ;;  %v6412_v62 = vld [vmem:[%s6913_s30 + $0x434] ss:$28 sps:$4 sm:$0xff]  }
  0x70   : > { %3567 = vmatpush1.bf16.msra.mxu0 %v6403_v63  ;;  %5960 = vmatpush1.bf16.msra.mxu1 %v6920_v18  ;;  %v6347_v18 = vld [vmem:[%s6913_s30 + $0x204] ss:$28 sps:$4 sm:$0xff]  }
  0x71   : > { %3568 = vmatprep.subr.bf16.mxu0 %v6779_v1  ;;  %5945 = vmatprep.subr.bf16.mxu1 %v6779_v1  ;;  %v6414_v63 = vld [vmem:[%s6913_s30 + $0x428] ss:$28 sps:$4 sm:$0xff]  }
  0x74   : > { %3569 = vmatpush1.bf16.msra.mxu0 %v6420_v2  ;;  %5961 = vmatpush1.bf16.msra.mxu1 %v6933_v22  ;;  %v6352_v22 = vld [vmem:[%s6913_s30 + $0x234] ss:$28 sps:$4 sm:$0xff]   ;;  %v6416_v2 = vld [vmem:[%s6913_s30 + $0x464] ss:$28 sps:$4 sm:$0xff]  }
  0x75   : > { %3570 = vmatprep.subr.bf16.mxu0 %v6779_v1  ;;  %5946 = vmatprep.subr.bf16.mxu1 %v6779_v1 }
  0x76   : > { %2821 = vmatmul.mubr.bf16.gmra.mrb[20].mxu1 %v6324_v0  ;;  %3222 = vmatmul.mubr.bf16.gmra.mrb[20].mxu0 %v6325_v3  ;;  %v6415_v0 = vld [vmem:[%s6913_s30 + $0x430] ss:$28 sps:$4 sm:$0xff]  }
  0x77   : > { %2828 = vmatprep.mubr.bf16.mxu1 %v6326_v4  ;;  %3229 = vmatprep.mubr.bf16.mxu0 %v6328_v5  ;;  %v6418_v3 = vld [vmem:[%s6913_s30 + $0x46c] ss:$28 sps:$4 sm:$0xff]   ;;  %v6421_v4 = vld [vmem:[%s6913_s30 + $0x460] ss:$28 sps:$4 sm:$0xff]  }
  0x78   : > { %5962 = vmatpush1.bf16.msra.mxu1 %v6944_v24  ;;  %3571 = vmatpush1.bf16.msra.mxu0 %v6435_v10  ;;  %v6356_v24 = vld [vmem:[%s6913_s30 + $0x230] ss:$28 sps:$4 sm:$0xff]   ;;  %v6422_v5 = vld [vmem:[%s6913_s30 + $0x468] ss:$28 sps:$4 sm:$0xff]  }
  0x79   : > { %5947 = vmatprep.subr.bf16.mxu1 %v6779_v1  ;;  %3572 = vmatprep.subr.bf16.mxu0 %v6779_v1  ;;  %v6429_v10 = vld [vmem:[%s6913_s30 + $0x4d4] ss:$28 sps:$4 sm:$0xff]  }
  0x7c   : > { %5963 = vmatpush1.bf16.msra.mxu1 %v6955_v26  ;;  %3573 = vmatpush1.bf16.msra.mxu0 %v6448_v19  ;;  %v6358_v26 = vld [vmem:[%s6913_s30 + $0x26c] ss:$28 sps:$4 sm:$0xff]  }
  0x7d   : > { %5948 = vmatprep.subr.bf16.mxu1 %v6779_v1  ;;  %3574 = vmatprep.subr.bf16.mxu0 %v6779_v1  ;;  %v6444_v19 = vld [vmem:[%s6913_s30 + $0x54c] ss:$28 sps:$4 sm:$0xff]  }
  0x7e   : > { %2829 = vmatmul.mubr.bf16.gmra.mrb[24].mxu1 %v6330_v6  ;;  %3230 = vmatmul.mubr.bf16.gmra.mrb[24].mxu0 %v6331_v7  ;;  %v6423_v6 = vld [vmem:[%s6913_s30 + $0x49c] ss:$28 sps:$4 sm:$0xff]   ;;  %v6425_v7 = vld [vmem:[%s6913_s30 + $0x4a4] ss:$28 sps:$4 sm:$0xff]  }
  0x7f   : > { %2836 = vmatprep.mubr.bf16.mxu1 %v6333_v8  ;;  %3237 = vmatprep.mubr.bf16.mxu0 %v6335_v9  ;;  %v6427_v8 = vld [vmem:[%s6913_s30 + $0x498] ss:$28 sps:$4 sm:$0xff]   ;;  %v6428_v9 = vld [vmem:[%s6913_s30 + $0x4a0] ss:$28 sps:$4 sm:$0xff]  }
  0x80   : > { %5964 = vmatpush1.bf16.msra.mxu1 %v6966_v28  ;;  %v6461_v28 = vld [vmem:[%s8407_s1 + $0x160] sm:$0xff]  }
  0x81   : > { %5949 = vmatprep.subr.bf16.mxu1 %v6779_v1  ;;  %3575 = vmatpush1.bf16.msra.mxu0 %v6461_v28  ;;  %v6459_v28 = vld [vmem:[%s6913_s30 + $0x5b0] ss:$28 sps:$4 sm:$0xff]  }
  0x82   : > { %3576 = vmatprep.subr.bf16.mxu0 %v6779_v1 }
  0x84   : > { %5965 = vmatpush1.bf16.msra.mxu1 %v6977_v30  ;;  %v6363_v30 = vld [vmem:[%s6913_s30 + $0x270] ss:$28 sps:$4 sm:$0xff]  }
  0x85   : > { %5950 = vmatprep.subr.bf16.mxu1 %v6779_v1  ;;  %3577 = vmatpush1.bf16.msra.mxu0 %v6474_v37  ;;  %v6468_v37 = vld [vmem:[%s6913_s30 + $0x624] ss:$28 sps:$4 sm:$0xff]  }
  0x86   : > { %2837 = vmatmul.mubr.bf16.gmra.mrb[28].mxu1 %v6337_v11  ;;  %3238 = vmatmul.mubr.bf16.gmra.mrb[28].mxu0 %v6338_v12  ;;  %v6431_v11 = vld [vmem:[%s6913_s30 + $0x4dc] ss:$28 sps:$4 sm:$0xff]   ;;  %v6433_v12 = vld [vmem:[%s6913_s30 + $0x4d0] ss:$28 sps:$4 sm:$0xff]  }
  0x87   : > { %2844 = vmatprep.mubr.bf16.mxu1 %v6339_v13  ;;  %3245 = vmatprep.mubr.bf16.mxu0 %v6341_v14  ;;  %v6434_v13 = vld [vmem:[%s6913_s30 + $0x4d8] ss:$28 sps:$4 sm:$0xff]   ;;  %v6436_v14 = vld [vmem:[%s6913_s30 + $0x50c] ss:$28 sps:$4 sm:$0xff]  }
  0x88   : > { %5966 = vmatpush1.bf16.msra.mxu1 %v6988_v32  ;;  %v6367_v32 = vld [vmem:[%s6913_s30 + $0x2ac] ss:$28 sps:$4 sm:$0xff]   ;;  %3578 = vmatprep.subr.bf16.mxu0 %v6779_v1 }
  0x89   : > { %5951 = vmatprep.subr.bf16.mxu1 %v6779_v1  ;;  %3579 = vmatpush1.bf16.msra.mxu0 %v6487_v46 }
  0x8a   : > { %3580 = vmatprep.subr.bf16.mxu0 %v6779_v1  ;;  %v6404_v1 = vld [vmem:[%s6913_s30 + $0x3f4] ss:$28 sps:$4 sm:$0xff]  }
  0x8c   : > { %5967 = vmatpush1.bf16.msra.mxu1 %v6999_v34  ;;  %v6370_v34 = vld [vmem:[%s6913_s30 + $0x2a8] ss:$28 sps:$4 sm:$0xff]  }
  0x8d   : > { %3581 = vmatpush1.bf16.msra.mxu0 %v6506_v58  ;;  %v6486_v58 = vld [vmem:[%s6913_s30 + $0x698] ss:$28 sps:$4 sm:$0xff]  }
  0x8e   : > { %2845 = vmatmul.mubr.bf16.gmra.mrb[32].mxu1 %v6343_v15  ;;  %3246 = vmatmul.mubr.bf16.gmra.mrb[32].mxu0 %v6344_v16  ;;  %v6438_v15 = vld [vmem:[%s6913_s30 + $0x514] ss:$28 sps:$4 sm:$0xff]   ;;  %v6440_v16 = vld [vmem:[%s6913_s30 + $0x508] ss:$28 sps:$4 sm:$0xff]  }
  0x8f   : > { %2852 = vmatprep.mubr.bf16.mxu1 %v6345_v17  ;;  %3253 = vmatprep.mubr.bf16.mxu0 %v6347_v18  ;;  %v6441_v17 = vld [vmem:[%s6913_s30 + $0x510] ss:$28 sps:$4 sm:$0xff]   ;;  %v6442_v18 = vld [vmem:[%s6913_s30 + $0x544] ss:$28 sps:$4 sm:$0xff]  }
  0x96   : > { %2853 = vmatmul.mubr.bf16.gmra.mrb[36].mxu1 %v6350_v20  ;;  %3254 = vmatmul.mubr.bf16.gmra.mrb[36].mxu0 %v6351_v21  ;;  %v6446_v20 = vld [vmem:[%s6913_s30 + $0x540] ss:$28 sps:$4 sm:$0xff]   ;;  %v6447_v21 = vld [vmem:[%s6913_s30 + $0x548] ss:$28 sps:$4 sm:$0xff]  }
  0x97   : > { %2860 = vmatprep.mubr.bf16.mxu1 %v6352_v22  ;;  %3261 = vmatprep.mubr.bf16.mxu0 %v6354_v23  ;;  %v6449_v22 = vld [vmem:[%s6913_s30 + $0x57c] ss:$28 sps:$4 sm:$0xff]   ;;  %v6451_v23 = vld [vmem:[%s6913_s30 + $0x584] ss:$28 sps:$4 sm:$0xff]  }
  0x9e   : > { %2861 = vmatmul.mubr.bf16.gmra.mrb[40].mxu1 %v6356_v24  ;;  %3262 = vmatmul.mubr.bf16.gmra.mrb[40].mxu0 %v6357_v25  ;;  %v6453_v24 = vld [vmem:[%s6913_s30 + $0x578] ss:$28 sps:$4 sm:$0xff]   ;;  %v6454_v25 = vld [vmem:[%s6913_s30 + $0x580] ss:$28 sps:$4 sm:$0xff]  }
  0x9f   : > { %2868 = vmatprep.mubr.bf16.mxu1 %v6358_v26  ;;  %3269 = vmatprep.mubr.bf16.mxu0 %v6360_v27  ;;  %v6455_v26 = vld [vmem:[%s6913_s30 + $0x5b4] ss:$28 sps:$4 sm:$0xff]   ;;  %v6457_v27 = vld [vmem:[%s6913_s30 + $0x5bc] ss:$28 sps:$4 sm:$0xff]  }
  0xa6   : > { %2869 = vmatmul.mubr.bf16.gmra.mrb[44].mxu1 %v6362_v29  ;;  %3270 = vmatmul.mubr.bf16.gmra.mrb[44].mxu0 %v6363_v30  ;;  %v6460_v29 = vld [vmem:[%s6913_s30 + $0x5b8] ss:$28 sps:$4 sm:$0xff]   ;;  %v6462_v30 = vld [vmem:[%s6913_s30 + $0x5ec] ss:$28 sps:$4 sm:$0xff]  }
  0xa7   : > { %2876 = vmatprep.mubr.bf16.mxu1 %v6365_v31  ;;  %3277 = vmatprep.mubr.bf16.mxu0 %v6367_v32  ;;  %v6464_v31 = vld [vmem:[%s6913_s30 + $0x5f4] ss:$28 sps:$4 sm:$0xff]  }
  0xae   : > { %2877 = vmatmul.mubr.bf16.gmra.mrb[48].mxu1 %v6369_v33  ;;  %3278 = vmatmul.mubr.bf16.gmra.mrb[48].mxu0 %v6370_v34  ;;  %v6466_v33 = vld [vmem:[%s6913_s30 + $0x5e8] ss:$28 sps:$4 sm:$0xff]  }
  0xaf   : > { %2884 = vmatprep.mubr.bf16.mxu1 %v6371_v35  ;;  %3285 = vmatprep.mubr.bf16.mxu0 %v6373_v36  ;;  %v6467_v35 = vld [vmem:[%s6913_s30 + $0x5f0] ss:$28 sps:$4 sm:$0xff]  }
  0xb6   : > { %2885 = vmatmul.mubr.bf16.gmra.mrb[52].mxu1 %v6375_v38  ;;  %3286 = vmatmul.mubr.bf16.gmra.mrb[52].mxu0 %v6376_v39  ;;  %v6470_v39 = vld [vmem:[%s6913_s30 + $0x62c] ss:$28 sps:$4 sm:$0xff]  }
  0xb7   : > { %2892 = vmatprep.mubr.bf16.mxu1 %v6378_v40  ;;  %3293 = vmatprep.mubr.bf16.mxu0 %v6380_v41  ;;  %v6472_v41 = vld [vmem:[%s6913_s30 + $0x620] ss:$28 sps:$4 sm:$0xff]  }
  0xbe   : > { %2893 = vmatmul.mubr.bf16.gmra.mrb[56].mxu1 %v6382_v42  ;;  %3294 = vmatmul.mubr.bf16.gmra.mrb[56].mxu0 %v6383_v43  ;;  %v6473_v43 = vld [vmem:[%s6913_s30 + $0x628] ss:$28 sps:$4 sm:$0xff]  }
  0xbf   : > { %2900 = vmatprep.mubr.bf16.mxu1 %v6384_v44  ;;  %3301 = vmatprep.mubr.bf16.mxu0 %v6386_v45  ;;  %v6475_v45 = vld [vmem:[%s6913_s30 + $0x65c] ss:$28 sps:$4 sm:$0xff]  }
  0xc6   : > { %2901 = vmatmul.mubr.bf16.gmra.mrb[60].mxu1 %v6388_v47  ;;  %3302 = vmatmul.mubr.bf16.gmra.mrb[60].mxu0 %v6389_v48  ;;  %v6477_v47 = vld [vmem:[%s6913_s30 + $0x664] ss:$28 sps:$4 sm:$0xff]  }
  0xc7   : > { %2908 = vmatprep.mubr.bf16.mxu1 %v6391_v49  ;;  %3309 = vmatprep.mubr.bf16.mxu0 %v6393_v50  ;;  %v6479_v49 = vld [vmem:[%s6913_s30 + $0x658] ss:$28 sps:$4 sm:$0xff]  }
  0xce   : > { %2909 = vmatmul.mubr.bf16.gmra.mrb[64].mxu1 %v6395_v51  ;;  %3310 = vmatmul.mubr.bf16.gmra.mrb[64].mxu0 %v6396_v52  ;;  %v6480_v51 = vld [vmem:[%s6913_s30 + $0x660] ss:$28 sps:$4 sm:$0xff]  }
  0xcf   : > { %2916 = vmatprep.mubr.bf16.mxu1 %v6397_v53  ;;  %3317 = vmatprep.mubr.bf16.mxu0 %v6399_v54  ;;  %v6481_v53 = vld [vmem:[%s6913_s30 + $0x694] ss:$28 sps:$4 sm:$0xff]  }
  0xd6   : > { %2917 = vmatmul.mubr.bf16.gmra.mrb[68].mxu1 %v6401_v55  ;;  %3318 = vmatmul.mubr.bf16.gmra.mrb[68].mxu0 %v6402_v56  ;;  %v6483_v55 = vld [vmem:[%s6913_s30 + $0x69c] ss:$28 sps:$4 sm:$0xff]  }
  0xd7   : > { %2924 = vmatprep.mubr.bf16.mxu1 %v6404_v1  ;;  %3325 = vmatprep.mubr.bf16.mxu0 %v6406_v57  ;;  %v6485_v1 = vld [vmem:[%s6913_s30 + $0x690] ss:$28 sps:$4 sm:$0xff]  }
  0xde   : > { %2925 = vmatmul.mubr.bf16.gmra.mrb[72].mxu1 %v6408_v59  ;;  %3326 = vmatmul.mubr.bf16.gmra.mrb[72].mxu0 %v6409_v60  ;;  %v6488_v60 = vld [vmem:[%s6913_s30 + $0x6cc] ss:$28 sps:$4 sm:$0xff]  }
  0xdf   : > { %2932 = vmatprep.mubr.bf16.mxu1 %v6410_v61  ;;  %3333 = vmatprep.mubr.bf16.mxu0 %v6412_v62  ;;  %v6490_v62 = vld [vmem:[%s6913_s30 + $0x6d4] ss:$28 sps:$4 sm:$0xff]  }
  0xe6   : > { %2933 = vmatmul.mubr.bf16.gmra.mrb[76].mxu1 %v6414_v63  ;;  %3334 = vmatmul.mubr.bf16.gmra.mrb[76].mxu0 %v6415_v0  ;;  %v6492_v0 = vld [vmem:[%s6913_s30 + $0x6c8] ss:$28 sps:$4 sm:$0xff]  }
  0xe7   : > { %2940 = vmatprep.mubr.bf16.mxu1 %v6416_v2  ;;  %3341 = vmatprep.mubr.bf16.mxu0 %v6418_v3  ;;  %v6493_v3 = vld [vmem:[%s6913_s30 + $0x6d0] ss:$28 sps:$4 sm:$0xff]  }
  0xee   : > { %2941 = vmatmul.mubr.bf16.gmra.mrb[80].mxu1 %v6421_v4  ;;  %3342 = vmatmul.mubr.bf16.gmra.mrb[80].mxu0 %v6422_v5  ;;  %v6494_v5 = vld [vmem:[%s6913_s30 + $0x704] ss:$28 sps:$4 sm:$0xff]  }
  0xef   : > { %2948 = vmatprep.mubr.bf16.mxu1 %v6423_v6  ;;  %3349 = vmatprep.mubr.bf16.mxu0 %v6425_v7  ;;  %v6496_v7 = vld [vmem:[%s6913_s30 + $0x70c] ss:$28 sps:$4 sm:$0xff]  }
  0xf6   : > { %2949 = vmatmul.mubr.bf16.gmra.mrb[84].mxu1 %v6427_v8  ;;  %3350 = vmatmul.mubr.bf16.gmra.mrb[84].mxu0 %v6428_v9  ;;  %v7250_v8 = vld [vmem:[%s8407_s1 + $0x180] sm:$0xff]  }
  0xf7   : > { %2956 = vmatprep.mubr.bf16.mxu1 %v6429_v10  ;;  %3357 = vmatprep.mubr.bf16.mxu0 %v6431_v11  ;;  %v6498_v10 = vld [vmem:[%s6913_s30 + $0x700] ss:$28 sps:$4 sm:$0xff]  }
  0xf8   : > { %5832 = vmatprep.subr.bf16.mxu1 %v7250_v8 }
  0xfe   : > { %2957 = vmatmul.mubr.bf16.gmra.mrb[88].mxu1 %v6433_v12  ;;  %3358 = vmatmul.mubr.bf16.gmra.mrb[88].mxu0 %v6434_v13  ;;  %v6499_v12 = vld [vmem:[%s6913_s30 + $0x708] ss:$28 sps:$4 sm:$0xff]  }
  0xff   : > { %2964 = vmatprep.mubr.bf16.mxu1 %v6436_v14  ;;  %3365 = vmatprep.mubr.bf16.mxu0 %v6438_v15  ;;  %v6500_v14 = vld [vmem:[%s6913_s30 + $0x73c] ss:$28 sps:$4 sm:$0xff]  }
 0x106   : > { %2965 = vmatmul.mubr.bf16.gmra.mrb[92].mxu1 %v6440_v16  ;;  %3366 = vmatmul.mubr.bf16.gmra.mrb[92].mxu0 %v6441_v17  ;;  %v6502_v16 = vld [vmem:[%s6913_s30 + $0x744] ss:$28 sps:$4 sm:$0xff]  }
 0x107   : > { %2972 = vmatprep.mubr.bf16.mxu1 %v6442_v18  ;;  %3373 = vmatprep.mubr.bf16.mxu0 %v6444_v19  ;;  %v6504_v18 = vld [vmem:[%s6913_s30 + $0x738] ss:$28 sps:$4 sm:$0xff]  }
 0x10e   : > { %2973 = vmatmul.mubr.bf16.gmra.mrb[96].mxu1 %v6446_v20  ;;  %3374 = vmatmul.mubr.bf16.gmra.mrb[96].mxu0 %v6447_v21  ;;  %v6505_v20 = vld [vmem:[%s6913_s30 + $0x740] ss:$28 sps:$4 sm:$0xff]  }
 0x10f   : > { %2980 = vmatprep.mubr.bf16.mxu1 %v6449_v22  ;;  %3381 = vmatprep.mubr.bf16.mxu0 %v6451_v23  ;;  %v6507_v22 = vld [vmem:[%s6913_s30 + $0x774] ss:$28 sps:$4 sm:$0xff]  }
 0x116   : > { %2981 = vmatmul.mubr.bf16.gmra.mrb[100].mxu1 %v6453_v24  ;;  %3382 = vmatmul.mubr.bf16.gmra.mrb[100].mxu0 %v6454_v25  ;;  %v6509_v24 = vld [vmem:[%s6913_s30 + $0x77c] ss:$28 sps:$4 sm:$0xff]  }
 0x117   : > { %2988 = vmatprep.mubr.bf16.mxu1 %v6455_v26  ;;  %3389 = vmatprep.mubr.bf16.mxu0 %v6457_v27  ;;  %v6511_v26 = vld [vmem:[%s6913_s30 + $0x770] ss:$28 sps:$4 sm:$0xff]  }
 0x11e   : > { %2989 = vmatmul.mubr.bf16.gmra.mrb[104].mxu1 %v6459_v28  ;;  %3390 = vmatmul.mubr.bf16.gmra.mrb[104].mxu0 %v6460_v29  ;;  %v6512_v28 = vld [vmem:[%s6913_s30 + $0x778] ss:$28 sps:$4 sm:$0xff]  }
 0x11f   : > { %2996 = vmatprep.mubr.bf16.mxu1 %v6462_v30  ;;  %3397 = vmatprep.mubr.bf16.mxu0 %v6464_v31  ;;  %v6513_v30 = vld [vmem:[%s6913_s30 + $0x7ac] ss:$28 sps:$4 sm:$0xff]  }
 0x121   : > { %v7207_v32 = vpop.f32.mrb[0].mxu1 }
 0x122   : > { %v2784_v34 = vpop.f32.mrb[1].mxu1 }
 0x123   : > { %v7211_v36 = vpop.f32.mrb[2].mxu1 }
 0x124   : > { %v2787_v38 = vpop.f32.mrb[3].mxu1 }
 0x125   : > { %v6515_v38 = vld [vmem:[%s6913_s30 + $0x10] ss:$28 sps:$4 sm:$0xff]  }
 0x126   : > { %2997 = vmatmul.mubr.bf16.gmra.mrb[108].mxu1 %v6466_v33  ;;  %3398 = vmatmul.mubr.bf16.gmra.mrb[108].mxu0 %v6467_v35  ;;  %v6517_v33 = vld [vmem:[%s6913_s30 + $0x14] ss:$28 sps:$4 sm:$0xff]   ;;  %v6518_v35 = vld [vmem:[%s6913_s30 + $0x7a8] ss:$28 sps:$4 sm:$0xff]  }
 0x127   : > { %3004 = vmatprep.mubr.bf16.mxu1 %v6468_v37  ;;  %3405 = vmatprep.mubr.bf16.mxu0 %v6470_v39 }
 0x129   : > { %v7215_v40 = vpop.f32.mrb[4].mxu1 }
 0x12a   : > { %v2792_v42 = vpop.f32.mrb[5].mxu1 }
 0x12b   : > { %v7219_v44 = vpop.f32.mrb[6].mxu1 }
 0x12c   : > { %v2795_v46 = vpop.f32.mrb[7].mxu1 }
 0x12d   : > { %v6523_v46 = vld [vmem:[%s6913_s30 + $0x7e0] ss:$28 sps:$4 sm:$0xff]  }
 0x12e   : > { %3005 = vmatmul.mubr.bf16.gmra.mrb[112].mxu1 %v6472_v41  ;;  %3406 = vmatmul.mubr.bf16.gmra.mrb[112].mxu0 %v6473_v43  ;;  %v6519_v41 = vld [vmem:[%s6913_s30 + $0x7e4] ss:$28 sps:$4 sm:$0xff]   ;;  %v6521_v43 = vld [vmem:[%s6913_s30 + $0x4c] ss:$28 sps:$4 sm:$0xff]  }
 0x12f   : > { %3012 = vmatprep.mubr.bf16.mxu1 %v6475_v45  ;;  %3413 = vmatprep.mubr.bf16.mxu0 %v6477_v47 }
 0x131   : > { %v7223_v48 = vpop.f32.mrb[8].mxu1 }
 0x132   : > { %v2800_v50 = vpop.f32.mrb[9].mxu1 }
 0x133   : > { %v7227_v52 = vpop.f32.mrb[10].mxu1 }
 0x134   : > { %v2803_v54 = vpop.f32.mrb[11].mxu1 }
 0x135   : > { %v6527_v54 = vld [vmem:[%s6913_s30 + $0x84] ss:$28 sps:$4 sm:$0xff]  }
 0x136   : > { %3013 = vmatmul.mubr.bf16.gmra.mrb[116].mxu1 %v6479_v49  ;;  %3414 = vmatmul.mubr.bf16.gmra.mrb[116].mxu0 %v6480_v51  ;;  %v6524_v49 = vld [vmem:[%s6913_s30 + $0x48] ss:$28 sps:$4 sm:$0xff]   ;;  %v6525_v51 = vld [vmem:[%s6913_s30 + $0x81c] ss:$28 sps:$4 sm:$0xff]  }
 0x137   : > { %3020 = vmatprep.mubr.bf16.mxu1 %v6481_v53  ;;  %3421 = vmatprep.mubr.bf16.mxu0 %v6483_v55 }
 0x139   : > { %v7231_v56 = vpop.f32.mrb[12].mxu1 }
 0x13a   : > { %v2808_v57 = vpop.f32.mrb[13].mxu1 }
 0x13b   : > { %v7235_v59 = vpop.f32.mrb[14].mxu1 }
 0x13c   : > { %v2811_v61 = vpop.f32.mrb[15].mxu1 }
 0x13d   : > { %v6531_v61 = vld [vmem:[%s6913_s30 + $0x854] ss:$28 sps:$4 sm:$0xff]  }
 0x13e   : > { %3021 = vmatmul.mubr.bf16.gmra.mrb[120].mxu1 %v6485_v1  ;;  %3422 = vmatmul.mubr.bf16.gmra.mrb[120].mxu0 %v6486_v58  ;;  %v6529_v1 = vld [vmem:[%s6913_s30 + $0x818] ss:$28 sps:$4 sm:$0xff]   ;;  %v6530_v58 = vld [vmem:[%s6913_s30 + $0x80] ss:$28 sps:$4 sm:$0xff]  }
 0x13f   : > { %3028 = vmatprep.mubr.bf16.mxu1 %v6488_v60  ;;  %3429 = vmatprep.mubr.bf16.mxu0 %v6490_v62 }
 0x141   : > { %v7239_v63 = vpop.f32.mrb[16].mxu1 }
 0x142   : > { %v2816_v2 = vpop.f32.mrb[17].mxu1 }
 0x143   : > { %v7243_v4 = vpop.f32.mrb[18].mxu1 }
 0x144   : > { %v2819_v6 = vpop.f32.mrb[19].mxu1 }
 0x145   : > { %v6536_v6 = vld [vmem:[%s6913_s30 + $0xb8] ss:$28 sps:$4 sm:$0xff]  }
 0x146   : > { %3029 = vmatmul.mubr.bf16.gmra.mrb[124].mxu1 %v6492_v0  ;;  %3430 = vmatmul.mubr.bf16.gmra.mrb[124].mxu0 %v6493_v3  ;;  %v6533_v0 = vld [vmem:[%s6913_s30 + $0xbc] ss:$28 sps:$4 sm:$0xff]   ;;  %v6535_v3 = vld [vmem:[%s6913_s30 + $0x850] ss:$28 sps:$4 sm:$0xff]  }
 0x147   : > { %3036 = vmatprep.mubr.bf16.mxu1 %v6494_v5  ;;  %3437 = vmatprep.mubr.bf16.mxu0 %v6496_v7 }
 0x149   : > { %v7252_v9 = vpop.f32.mrb[20].mxu1 }
 0x14a   : > { %v2824_v11 = vpop.f32.mrb[21].mxu1 }
 0x14b   : > { %v7257_v13 = vpop.f32.mrb[22].mxu1 }
 0x14c   : > { %v2827_v15 = vpop.f32.mrb[23].mxu1 }
 0x14d   : > { %v6541_v15 = vld [vmem:[%s6913_s30 + $0x888] ss:$28 sps:$4 sm:$0xff]  }
 0x14e   : > { %3037 = vmatmul.mubr.bf16.gmra.mrb[128].mxu1 %v6498_v10  ;;  %3438 = vmatmul.mubr.bf16.gmra.mrb[128].mxu0 %v6499_v12  ;;  %v6537_v10 = vld [vmem:[%s6913_s30 + $0x88c] ss:$28 sps:$4 sm:$0xff]   ;;  %v6539_v12 = vld [vmem:[%s6913_s30 + $0xf4] ss:$28 sps:$4 sm:$0xff]  }
 0x14f   : > { %3044 = vmatprep.mubr.bf16.mxu1 %v6500_v14  ;;  %3445 = vmatprep.mubr.bf16.mxu0 %v6502_v16 }
 0x151   : > { %v7261_v17 = vpop.f32.mrb[24].mxu1 }
 0x152   : > { %v2832_v19 = vpop.f32.mrb[25].mxu1 }
 0x153   : > { %v7265_v21 = vpop.f32.mrb[26].mxu1 }
 0x154   : > { %v2835_v23 = vpop.f32.mrb[27].mxu1 }
 0x155   : > { %v6545_v23 = vld [vmem:[%s6913_s30 + $0x12c] ss:$28 sps:$4 sm:$0xff]  }
 0x156   : > { %3045 = vmatmul.mubr.bf16.gmra.mrb[132].mxu1 %v6504_v18  ;;  %3446 = vmatmul.mubr.bf16.gmra.mrb[132].mxu0 %v6505_v20  ;;  %v6542_v18 = vld [vmem:[%s6913_s30 + $0xf0] ss:$28 sps:$4 sm:$0xff]   ;;  %v6543_v20 = vld [vmem:[%s6913_s30 + $0x8c4] ss:$28 sps:$4 sm:$0xff]  }
 0x157   : > { %3052 = vmatprep.mubr.bf16.mxu1 %v6507_v22  ;;  %3453 = vmatprep.mubr.bf16.mxu0 %v6509_v24 }
 0x159   : > { %v7269_v25 = vpop.f32.mrb[28].mxu1 }
 0x15a   : > { %v2840_v27 = vpop.f32.mrb[29].mxu1 }
 0x15b   : > { %v7273_v29 = vpop.f32.mrb[30].mxu1 }
 0x15c   : > { %v2843_v31 = vpop.f32.mrb[31].mxu1 }
 0x15d   : > { %v6549_v31 = vld [vmem:[%s6913_s30 + $0x8fc] ss:$28 sps:$4 sm:$0xff]  }
 0x15e   : > { %3053 = vmatmul.mubr.bf16.gmra.mrb[136].mxu1 %v6511_v26  ;;  %3454 = vmatmul.mubr.bf16.gmra.mrb[136].mxu0 %v6512_v28  ;;  %v6547_v26 = vld [vmem:[%s6913_s30 + $0x8c0] ss:$28 sps:$4 sm:$0xff]   ;;  %v6548_v28 = vld [vmem:[%s6913_s30 + $0x128] ss:$28 sps:$4 sm:$0xff]  }
 0x15f   : > { %3060 = vmatprep.mubr.bf16.mxu1 %v6513_v30  ;;  %3582 = vmatprep.mubr.bf16.mxu0 %v6517_v33 }
 0x161   : > { %v7277_v34 = vpop.f32.mrb[32].mxu1 }
 0x162   : > { %v2848_v37 = vpop.f32.mrb[33].mxu1 }
 0x163   : > { %v7281_v39 = vpop.f32.mrb[34].mxu1 }
 0x164   : > { %v2851_v42 = vpop.f32.mrb[35].mxu1 }
 0x165   : > { %v6554_v42 = vld [vmem:[%s6913_s30 + $0x160] ss:$28 sps:$4 sm:$0xff]  }
 0x166   : > { %3061 = vmatmul.mubr.bf16.gmra.mrb[140].mxu1 %v6518_v35  ;;  %3583 = vmatmul.mubr.bf16.vlgmr.msra.gmra.mrb[0].mxu0 %v6515_v38  ;;  %v6551_v35 = vld [vmem:[%s6913_s30 + $0x164] ss:$28 sps:$4 sm:$0xff]   ;;  %v6553_v38 = vld [vmem:[%s6913_s30 + $0x8f8] ss:$28 sps:$4 sm:$0xff]  }
 0x167   : > { %3068 = vmatprep.mubr.bf16.mxu1 %v6519_v41  ;;  %3590 = vmatprep.mubr.bf16.mxu0 %v6521_v43 }
 0x169   : > { %v7285_v45 = vpop.f32.mrb[36].mxu1 }
 0x16a   : > { %v2856_v47 = vpop.f32.mrb[37].mxu1 }
 0x16b   : > { %v7289_v50 = vpop.f32.mrb[38].mxu1 }
 0x16c   : > { %v2859_v53 = vpop.f32.mrb[39].mxu1 }
 0x16d   : > { %v6559_v53 = vld [vmem:[%s6913_s30 + $0x930] ss:$28 sps:$4 sm:$0xff]  }
 0x16e   : > { %3069 = vmatmul.mubr.bf16.gmra.mrb[144].mxu1 %v6523_v46  ;;  %3591 = vmatmul.mubr.bf16.gmra.mrb[4].mxu0 %v6524_v49  ;;  %v6555_v46 = vld [vmem:[%s6913_s30 + $0x934] ss:$28 sps:$4 sm:$0xff]   ;;  %v6557_v49 = vld [vmem:[%s6913_s30 + $0x19c] ss:$28 sps:$4 sm:$0xff]  }
 0x16f   : > { %3076 = vmatprep.mubr.bf16.mxu1 %v6525_v51  ;;  %3598 = vmatprep.mubr.bf16.mxu0 %v6527_v54 }
 0x171   : > { %v7293_v55 = vpop.f32.mrb[40].mxu1 }
 0x172   : > { %v2864_v57 = vpop.f32.mrb[41].mxu1 }
 0x173   : > { %v7297_v60 = vpop.f32.mrb[42].mxu1 }
 0x174   : > { %v2867_v62 = vpop.f32.mrb[43].mxu1 }
 0x175   : > { %v6563_v62 = vld [vmem:[%s6913_s30 + $0x1d4] ss:$28 sps:$4 sm:$0xff]  }
 0x176   : > { %3077 = vmatmul.mubr.bf16.gmra.mrb[148].mxu1 %v6529_v1  ;;  %3599 = vmatmul.mubr.bf16.gmra.mrb[8].mxu0 %v6530_v58  ;;  %v6560_v1 = vld [vmem:[%s6913_s30 + $0x198] ss:$28 sps:$4 sm:$0xff]   ;;  %v6561_v58 = vld [vmem:[%s6913_s30 + $0x96c] ss:$28 sps:$4 sm:$0xff]  }
 0x177   : > { %3084 = vmatprep.mubr.bf16.mxu1 %v6531_v61  ;;  %3606 = vmatprep.mubr.bf16.mxu0 %v6533_v0 }
 0x179   : > { %v7301_v2 = vpop.f32.mrb[44].mxu1 }
 0x17a   : > { %v2872_v5 = vpop.f32.mrb[45].mxu1 }
 0x17b   : > { %v7305_v7 = vpop.f32.mrb[46].mxu1 }
 0x17c   : > { %v2875_v11 = vpop.f32.mrb[47].mxu1 }
 0x17d   : > { %v6567_v11 = vld [vmem:[%s6913_s30 + $0x9a4] ss:$28 sps:$4 sm:$0xff]  }
 0x17e   : > { %3085 = vmatmul.mubr.bf16.gmra.mrb[152].mxu1 %v6535_v3  ;;  %3607 = vmatmul.mubr.bf16.gmra.mrb[12].mxu0 %v6536_v6  ;;  %v6565_v3 = vld [vmem:[%s6913_s30 + $0x968] ss:$28 sps:$4 sm:$0xff]   ;;  %v6566_v6 = vld [vmem:[%s6913_s30 + $0x1d0] ss:$28 sps:$4 sm:$0xff]  }
 0x17f   : > { %3092 = vmatprep.mubr.bf16.mxu1 %v6537_v10  ;;  %3614 = vmatprep.mubr.bf16.mxu0 %v6539_v12 }
 0x181   : > { %v7309_v14 = vpop.f32.mrb[48].mxu1 }
 0x182   : > { %v2880_v16 = vpop.f32.mrb[49].mxu1 }
 0x183   : > { %v7313_v19 = vpop.f32.mrb[50].mxu1 }
 0x184   : > { %v2883_v22 = vpop.f32.mrb[51].mxu1 }
 0x185   : > { %v6572_v22 = vld [vmem:[%s6913_s30 + $0x208] ss:$28 sps:$4 sm:$0xff]  }
 0x186   : > { %3093 = vmatmul.mubr.bf16.gmra.mrb[156].mxu1 %v6541_v15  ;;  %3615 = vmatmul.mubr.bf16.gmra.mrb[16].mxu0 %v6542_v18  ;;  %v6569_v15 = vld [vmem:[%s6913_s30 + $0x20c] ss:$28 sps:$4 sm:$0xff]   ;;  %v6571_v18 = vld [vmem:[%s6913_s30 + $0x9a0] ss:$28 sps:$4 sm:$0xff]  }
 0x187   : > { %3100 = vmatprep.mubr.bf16.mxu1 %v6543_v20  ;;  %3622 = vmatprep.mubr.bf16.mxu0 %v6545_v23 }
 0x189   : > { %v7317_v24 = vpop.f32.mrb[52].mxu1 }
 0x18a   : > { %v2888_v27 = vpop.f32.mrb[53].mxu1 }
 0x18b   : > { %v7321_v30 = vpop.f32.mrb[54].mxu1 }
 0x18c   : > { %v2891_v33 = vpop.f32.mrb[55].mxu1 }
 0x18d   : > { %v6577_v33 = vld [vmem:[%s6913_s30 + $0x9d8] ss:$28 sps:$4 sm:$0x1f]  }
 0x18e   : > { %3101 = vmatmul.mubr.bf16.gmra.mrb[160].mxu1 %v6547_v26  ;;  %3623 = vmatmul.mubr.bf16.gmra.mrb[20].mxu0 %v6548_v28  ;;  %v6573_v26 = vld [vmem:[%s6913_s30 + $0x9dc] ss:$28 sps:$4 sm:$0x1f]   ;;  %v6575_v28 = vld [vmem:[%s6913_s30 + $0x244] ss:$28 sps:$4 sm:$0xff]  }
 0x18f   : > { %3108 = vmatprep.mubr.bf16.mxu1 %v6549_v31  ;;  %3630 = vmatprep.mubr.bf16.mxu0 %v6551_v35 }
 0x191   : > { %v7325_v37 = vpop.f32.mrb[56].mxu1 }
 0x192   : > { %v2896_v41 = vpop.f32.mrb[57].mxu1 }
 0x193   : > { %v7329_v43 = vpop.f32.mrb[58].mxu1 }
 0x194   : > { %v2899_v47 = vpop.f32.mrb[59].mxu1 }
 0x195   : > { %v6582_v47 = vld [vmem:[%s6913_s30 + $0x27c] ss:$28 sps:$4 sm:$0xff]  }
 0x196   : > { %3109 = vmatmul.mubr.bf16.gmra.mrb[164].mxu1 %v6553_v38  ;;  %3631 = vmatmul.mubr.bf16.gmra.mrb[24].mxu0 %v6554_v42  ;;  %v6578_v38 = vld [vmem:[%s6913_s30 + $0x240] ss:$28 sps:$4 sm:$0xff]   ;;  %v6581_v42 = vld [vmem:[%s6913_s30 + $0x7b4] ss:$28 sps:$4 sm:$0xff]  }
 0x197   : > { %3116 = vmatprep.mubr.bf16.mxu1 %v6555_v46  ;;  %3638 = vmatprep.mubr.bf16.mxu0 %v6557_v49 }
 0x199   : > { %v7333_v51 = vpop.f32.mrb[60].mxu1 }
 0x19a   : > { %v2904_v54 = vpop.f32.mrb[61].mxu1 }
 0x19b   : > { %v7337_v57 = vpop.f32.mrb[62].mxu1 }
 0x19c   : > { %v2907_v61 = vpop.f32.mrb[63].mxu1 }
 0x19d   : > { %v6585_v61 = vld [vmem:[%s6913_s30 + $0x7ec] ss:$28 sps:$4 sm:$0xff]  }
 0x19e   : > { %3117 = vmatmul.mubr.bf16.gmra.mrb[168].mxu1 %v6559_v53  ;;  %3639 = vmatmul.mubr.bf16.gmra.mrb[28].mxu0 %v6560_v1  ;;  %v6579_v53 = vld [vmem:[%s6913_s30 + $0x7b0] ss:$28 sps:$4 sm:$0xff]   ;;  %v6584_v1 = vld [vmem:[%s6913_s30 + $0x278] ss:$28 sps:$4 sm:$0xff]  }
 0x19f   : > { %3124 = vmatprep.mubr.bf16.mxu1 %v6561_v58  ;;  %3646 = vmatprep.mubr.bf16.mxu0 %v6563_v62 }
 0x1a1   : > { %v7341_v0 = vpop.f32.mrb[64].mxu1 }
 0x1a2   : > { %v2912_v5 = vpop.f32.mrb[65].mxu1 }
 0x1a3   : > { %v7345_v10 = vpop.f32.mrb[66].mxu1  ;;  %v6604_v5 = vld [vmem:[%s8407_s1 + $0x188] sm:$0xff]  }
 0x1a4   : > { %v2915_v12 = vpop.f32.mrb[67].mxu1 }
 0x1a5   : > { %v6589_v12 = vld [vmem:[%s6913_s30 + $0x7e8] ss:$28 sps:$4 sm:$0xff]  }
 0x1a6   : > { %3125 = vmatmul.mubr.bf16.gmra.mrb[172].mxu1 %v6565_v3  ;;  %3647 = vmatmul.mubr.bf16.gmra.mrb[32].mxu0 %v6566_v6  ;;  %v6587_v3 = vld [vmem:[%s6913_s30 + $0x2b4] ss:$28 sps:$4 sm:$0xff]  }
 0x1a7   : > { %3132 = vmatprep.mubr.bf16.mxu1 %v6567_v11  ;;  %3654 = vmatprep.mubr.bf16.mxu0 %v6569_v15  ;;  %v6617_v11 = vld [vmem:[%s8407_s1 + $0x190] sm:$0xff]  }
 0x1a9   : > { %v7349_v16 = vpop.f32.mrb[68].mxu1 }
 0x1aa   : > { %v2920_v20 = vpop.f32.mrb[69].mxu1 }
 0x1ab   : > { %v7353_v23 = vpop.f32.mrb[70].mxu1 }
 0x1ac   : > { %v2923_v27 = vpop.f32.mrb[71].mxu1 }
 0x1ad   : > { %v6594_v27 = vld [vmem:[%s6913_s30 + $0x2ec] ss:$28 sps:$4 sm:$0xff]  }
 0x1ae   : > { %3133 = vmatmul.mubr.bf16.gmra.mrb[176].mxu1 %v6571_v18  ;;  %3655 = vmatmul.mubr.bf16.gmra.mrb[36].mxu0 %v6572_v22  ;;  %v6590_v18 = vld [vmem:[%s6913_s30 + $0x2b0] ss:$28 sps:$4 sm:$0xff]   ;;  %v6592_v22 = vld [vmem:[%s6913_s30 + $0x824] ss:$28 sps:$4 sm:$0xff]  }
 0x1af   : > { %3140 = vmatprep.mubr.bf16.mxu1 %v6573_v26  ;;  %3662 = vmatprep.mubr.bf16.mxu0 %v6575_v28 }
 0x1b1   : > { %v7357_v31 = vpop.f32.mrb[72].mxu1 }
 0x1b2   : > { %v2928_v35 = vpop.f32.mrb[73].mxu1 }
 0x1b3   : > { %v7361_v41 = vpop.f32.mrb[74].mxu1  ;;  %v6596_v35 = vld [vmem:[%s6913_s30 + $0x820] ss:$28 sps:$4 sm:$0xff]  }
 0x1b4   : > { %v2931_v46 = vpop.f32.mrb[75].mxu1 }
 0x1b6   : > { %3141 = vmatmul.mubr.bf16.gmra.mrb[180].mxu1 %v6577_v33  ;;  %3663 = vmatmul.mubr.bf16.gmra.mrb[40].mxu0 %v6578_v38  ;;  %v6637_v33 = vld [vmem:[%s8407_s1 + $0x1a0] sm:$0xff]  }
 0x1b7   : > { %3461 = vmatprep.mubr.bf16.mxu1 %v6581_v42  ;;  %3670 = vmatprep.mubr.bf16.mxu0 %v6582_v47  ;;  %v6597_v42 = vld [vmem:[%s6913_s30 + $0x2e8] ss:$28 sps:$4 sm:$0xff]   ;;  %v6598_v47 = vld [vmem:[%s6913_s30 + $0x85c] ss:$28 sps:$4 sm:$0xff]  }
 0x1b9   : > { %v7365_v49 = vpop.f32.mrb[76].mxu1 }
 0x1ba   : > { %v2936_v54 = vpop.f32.mrb[77].mxu1 }
 0x1bb   : > { %v7369_v58 = vpop.f32.mrb[78].mxu1  ;;  %v6600_v54 = vld [vmem:[%s6913_s30 + $0x324] ss:$28 sps:$4 sm:$0xff]  }
 0x1bc   : > { %v2939_v62 = vpop.f32.mrb[79].mxu1 }
 0x1bd   : > { %v6602_v62 = vld [vmem:[%s6913_s30 + $0x858] ss:$28 sps:$4 sm:$0xff]  }
 0x1be   : > { %3462 = vmatmul.mubr.bf16.vlgmr.msra.gmra.mrb[140].mxu1 %v6579_v53  ;;  %3671 = vmatmul.mubr.bf16.gmra.mrb[44].mxu0 %v6584_v1  ;;  %v6650_v1 = vld [vmem:[%s8407_s1 + $0x1a8] sm:$0xff]  }
 0x1bf   : > { %3469 = vmatprep.mubr.bf16.mxu1 %v6585_v61  ;;  %3678 = vmatprep.mubr.bf16.mxu0 %v6587_v3 }
 0x1c0   : > { %5833 = vmatpush3.bf16.msra.mxu1 %v7250_v8  ;;  %v6624_v8 = vld [vmem:[%s8407_s1 + $0x198] sm:$0xff]  }
 0x1c1   : > { %v7377_v6 = vpop.f32.mrb[80].mxu1  ;;  %5834 = vmatprep.subr.bf16.mxu1 %v6604_v5 }
 0x1c2   : > { %v2944_v15 = vpop.f32.mrb[81].mxu1 }
 0x1c3   : > { %v7384_v20 = vpop.f32.mrb[82].mxu1 }
 0x1c4   : > { %v2947_v26 = vpop.f32.mrb[83].mxu1  ;;  %5835 = vmatpush3.bf16.msra.mxu1 %v6604_v5  ;;  %v6603_v5 = vld [vmem:[%s6913_s30 + $0x320] ss:$28 sps:$4 sm:$0xff]  }
 0x1c5   : > { %5836 = vmatprep.subr.bf16.mxu1 %v6617_v11  ;;  %v6609_v26 = vld [vmem:[%s6913_s30 + $0x890] ss:$28 sps:$4 sm:$0xff]  }
 0x1c6   : > { %3470 = vmatmul.mubr.bf16.gmra.mrb[144].mxu1 %v6589_v12  ;;  %3679 = vmatmul.mubr.bf16.gmra.mrb[48].mxu0 %v6590_v18  ;;  %v6605_v12 = vld [vmem:[%s6913_s30 + $0x894] ss:$28 sps:$4 sm:$0xff]   ;;  %v6607_v18 = vld [vmem:[%s6913_s30 + $0x35c] ss:$28 sps:$4 sm:$0xff]  }
 0x1c7   : > { %3477 = vmatprep.mubr.bf16.mxu1 %v6592_v22  ;;  %3686 = vmatprep.mubr.bf16.mxu0 %v6594_v27 }
 0x1c8   : > { %5837 = vmatpush3.bf16.msra.mxu1 %v6617_v11 }
 0x1c9   : > { %v7391_v28 = vpop.f32.mrb[84].mxu1  ;;  %5838 = vmatprep.subr.bf16.mxu1 %v6624_v8 }
 0x1ca   : > { %v2952_v38 = vpop.f32.mrb[85].mxu1 }
 0x1cb   : > { %v7398_v46 = vpop.f32.mrb[86].mxu1 }
 0x1cc   : > { %v2955_v53 = vpop.f32.mrb[87].mxu1  ;;  %5839 = vmatpush3.bf16.msra.mxu1 %v6624_v8  ;;  %v6610_v8 = vld [vmem:[%s6913_s30 + $0x358] ss:$28 sps:$4 sm:$0xff]  }
 0x1cd   : > { %5840 = vmatprep.subr.bf16.mxu1 %v6637_v33  ;;  %v6615_v53 = vld [vmem:[%s6913_s30 + $0x8c8] ss:$28 sps:$4 sm:$0xff]  }
 0x1ce   : > { %3478 = vmatmul.mubr.bf16.gmra.mrb[148].mxu1 %v6596_v35  ;;  %3687 = vmatmul.mubr.bf16.gmra.mrb[52].mxu0 %v6597_v42  ;;  %v6611_v35 = vld [vmem:[%s6913_s30 + $0x8cc] ss:$28 sps:$4 sm:$0xff]   ;;  %v6613_v42 = vld [vmem:[%s6913_s30 + $0x394] ss:$28 sps:$4 sm:$0xff]  }
 0x1cf   : > { %3485 = vmatprep.mubr.bf16.mxu1 %v6598_v47  ;;  %3694 = vmatprep.mubr.bf16.mxu0 %v6600_v54 }
 0x1d0   : > { %5841 = vmatpush3.bf16.msra.mxu1 %v6637_v33 }
 0x1d1   : > { %v7405_v61 = vpop.f32.mrb[88].mxu1  ;;  %5842 = vmatprep.subr.bf16.mxu1 %v6650_v1 }
 0x1d2   : > { %v2960_v3 = vpop.f32.mrb[89].mxu1 }
 0x1d3   : > { %v7409_v11 = vpop.f32.mrb[90].mxu1  ;;  %v6618_v3 = vld [vmem:[%s6913_s30 + $0x904] ss:$28 sps:$4 sm:$0xff]  }
 0x1d4   : > { %v2963_v15 = vpop.f32.mrb[91].mxu1  ;;  %5843 = vmatpush3.bf16.msra.mxu1 %v6650_v1  ;;  %v6616_v1 = vld [vmem:[%s6913_s30 + $0x390] ss:$28 sps:$4 sm:$0xff]  }
 0x1d6   : > { %3486 = vmatmul.mubr.bf16.gmra.mrb[152].mxu1 %v6602_v62  ;;  %3695 = vmatmul.mubr.bf16.gmra.mrb[56].mxu0 %v6603_v5 }
 0x1d7   : > { %3493 = vmatprep.mubr.bf16.mxu1 %v6605_v12  ;;  %3702 = vmatprep.mubr.bf16.mxu0 %v6607_v18  ;;  %v6620_v12 = vld [vmem:[%s6913_s30 + $0x3cc] ss:$28 sps:$4 sm:$0xff]   ;;  %v6622_v18 = vld [vmem:[%s6913_s30 + $0x900] ss:$28 sps:$4 sm:$0xff]  }
 0x1d9   : > { %v7413_v22 = vpop.f32.mrb[92].mxu1 }
 0x1da   : > { %v2968_v27 = vpop.f32.mrb[93].mxu1 }
 0x1db   : > { %v7417_v33 = vpop.f32.mrb[94].mxu1  ;;  %v6623_v27 = vld [vmem:[%s6913_s30 + $0x3c8] ss:$28 sps:$4 sm:$0xff]  }
 0x1dc   : > { %v2971_v38 = vpop.f32.mrb[95].mxu1 }
 0x1de   : > { %3494 = vmatmul.mubr.bf16.gmra.mrb[156].mxu1 %v6609_v26  ;;  %3703 = vmatmul.mubr.bf16.gmra.mrb[60].mxu0 %v6610_v8 }
 0x1df   : > { %3501 = vmatprep.mubr.bf16.mxu1 %v6611_v35  ;;  %3710 = vmatprep.mubr.bf16.mxu0 %v6613_v42  ;;  %v6625_v35 = vld [vmem:[%s6913_s30 + $0x93c] ss:$28 sps:$4 sm:$0xff]   ;;  %v6627_v42 = vld [vmem:[%s6913_s30 + $0x404] ss:$28 sps:$4 sm:$0xff]  }
 0x1e1   : > { %v7421_v47 = vpop.f32.mrb[96].mxu1 }
 0x1e2   : > { %v2976_v54 = vpop.f32.mrb[97].mxu1 }
 0x1e3   : > { %v7425_v62 = vpop.f32.mrb[98].mxu1  ;;  %v6629_v54 = vld [vmem:[%s6913_s30 + $0x938] ss:$28 sps:$4 sm:$0xff]  }
 0x1e4   : > { %v2979_v5 = vpop.f32.mrb[99].mxu1 }
 0x1e6   : > { %3502 = vmatmul.mubr.bf16.gmra.mrb[160].mxu1 %v6615_v53  ;;  %3711 = vmatmul.mubr.bf16.gmra.mrb[64].mxu0 %v6616_v1 }
 0x1e7   : > { %3509 = vmatprep.mubr.bf16.mxu1 %v6618_v3  ;;  %3718 = vmatprep.mubr.bf16.mxu0 %v6620_v12  ;;  %v6630_v3 = vld [vmem:[%s6913_s30 + $0x400] ss:$28 sps:$4 sm:$0xff]   ;;  %v6631_v12 = vld [vmem:[%s6913_s30 + $0x974] ss:$28 sps:$4 sm:$0xff]  }
 0x1e9   : > { %v7429_v15 = vpop.f32.mrb[100].mxu1 }
 0x1ea   : > { %v2984_v26 = vpop.f32.mrb[101].mxu1 }
 0x1eb   : > { %v7433_v8 = vpop.f32.mrb[102].mxu1 }
 0x1ec   : > { %8411 = vst [vmem:[#allocation2_spill] sm:$0xff] %v7433_v8  ;;  %v2987_v38 = vpop.f32.mrb[103].mxu1  ;;  %v6633_v8 = vld [vmem:[%s6913_s30 + $0x43c] ss:$28 sps:$4 sm:$0xff]  }
 0x1ed   : > { %v6636_v38 = vld [vmem:[%s6913_s30 + $0x438] ss:$28 sps:$4 sm:$0xff]  }
 0x1ee   : > { %3510 = vmatmul.mubr.bf16.gmra.mrb[164].mxu1 %v6622_v18  ;;  %3719 = vmatmul.mubr.bf16.gmra.mrb[68].mxu0 %v6623_v27  ;;  %v6635_v27 = vld [vmem:[%s6913_s30 + $0x970] ss:$28 sps:$4 sm:$0xff]  }
 0x1ef   : > { %3517 = vmatprep.mubr.bf16.mxu1 %v6625_v35  ;;  %3726 = vmatprep.mubr.bf16.mxu0 %v6627_v42 }
 0x1f1   : > { %v7437_v53 = vpop.f32.mrb[104].mxu1 }
 0x1f2   : > { %8412 = vst [vmem:[#allocation3_spill] sm:$0xff] %v7437_v53  ;;  %v2992_v1 = vpop.f32.mrb[105].mxu1  ;;  %v6640_v53 = vld [vmem:[%s6913_s30 + $0x474] ss:$28 sps:$4 sm:$0xff]  }
 0x1f3   : > { %v7441_v5 = vpop.f32.mrb[106].mxu1  ;;  %v6638_v1 = vld [vmem:[%s6913_s30 + $0x9ac] ss:$28 sps:$4 sm:$0xff]  }
 0x1f4   : > { %8413 = vst [vmem:[#allocation4_spill] sm:$0xff] %v7441_v5  ;;  %v2995_v26 = vpop.f32.mrb[107].mxu1 }
 0x1f6   : > { %3518 = vmatmul.mubr.bf16.gmra.mrb[168].mxu1 %v6629_v54  ;;  %3727 = vmatmul.mubr.bf16.gmra.mrb[72].mxu0 %v6630_v3  ;;  %v6642_v54 = vld [vmem:[%s6913_s30 + $0x9a8] ss:$28 sps:$4 sm:$0xff]  }
 0x1f7   : > { %3525 = vmatprep.mubr.bf16.mxu1 %v6631_v12  ;;  %3734 = vmatprep.mubr.bf16.mxu0 %v6633_v8  ;;  %v6643_v12 = vld [vmem:[%s6913_s30 + $0x470] ss:$28 sps:$4 sm:$0xff]  }
 0x1f9   : > { %v7445_v18 = vpop.f32.mrb[108].mxu1 }
 0x1fa   : > { %8414 = vst [vmem:[#allocation5_spill] sm:$0xff] %v7445_v18  ;;  %v3000_v35 = vpop.f32.mrb[109].mxu1  ;;  %v6646_v18 = vld [vmem:[%s6913_s30 + $0x4ac] ss:$28 sps:$4 sm:$0xff]  }
 0x1fb   : > { %v7449_v42 = vpop.f32.mrb[110].mxu1  ;;  %v6644_v35 = vld [vmem:[%s6913_s30 + $0x9e4] ss:$28 sps:$4 sm:$0x1f]  }
 0x1fc   : > { %8415 = vst [vmem:[#allocation6_spill] sm:$0xff] %v7449_v42  ;;  %v3003_v5 = vpop.f32.mrb[111].mxu1 }
 0x1fe   : > { %3526 = vmatmul.mubr.bf16.gmra.mrb[172].mxu1 %v6635_v27  ;;  %3735 = vmatmul.mubr.bf16.gmra.mrb[76].mxu0 %v6636_v38  ;;  %v6649_v38 = vld [vmem:[%s6913_s30 + $0x4a8] ss:$28 sps:$4 sm:$0xff]  }
 0x1ff   : > { %3533 = vmatprep.mubr.bf16.mxu1 %v6638_v1  ;;  %3742 = vmatprep.mubr.bf16.mxu0 %v6640_v53  ;;  %v6648_v53 = vld [vmem:[%s6913_s30 + $0x9e0] ss:$28 sps:$4 sm:$0x1f]  }
 0x201   : > { %v7453_v8 = vpop.f32.mrb[112].mxu1 }
 0x202   : > { %8416 = vst [vmem:[#allocation7_spill] sm:$0xff] %v7453_v8  ;;  %v3008_v3 = vpop.f32.mrb[113].mxu1  ;;  %v6651_v8 = vld [vmem:[%s6913_s30 + $0x4e4] ss:$28 sps:$4 sm:$0xff]  }
 0x203   : > { %v7457_v26 = vpop.f32.mrb[114].mxu1  ;;  %v6653_v3 = vld [vmem:[%s6913_s30 + $0x18] ss:$28 sps:$4 sm:$0xff]  }
 0x204   : > { %8417 = vst [vmem:[#allocation8_spill] sm:$0xff] %v7457_v26  ;;  %v3011_v42 = vpop.f32.mrb[115].mxu1 }
 0x205   : > { %v6655_v42 = vld [vmem:[%s6913_s30 + $0x50] ss:$28 sps:$4 sm:$0xff]  }
 0x206   : > { %3534 = vmatmul.mubr.bf16.gmra.mrb[176].mxu1 %v6642_v54  ;;  %3743 = vmatmul.mubr.bf16.gmra.mrb[80].mxu0 %v6643_v12  ;;  %v6654_v12 = vld [vmem:[%s6913_s30 + $0x4e0] ss:$28 sps:$4 sm:$0xff]  }
 0x207   : > { %3541 = vmatprep.mubr.bf16.mxu1 %v6644_v35  ;;  %3750 = vmatprep.mubr.bf16.mxu0 %v6646_v18 }
 0x209   : > { %v7461_v5 = vpop.f32.mrb[116].mxu1 }
 0x20a   : > { %8418 = vst [vmem:[#allocation9_spill] sm:$0xff] %v7461_v5  ;;  %v3016_v27 = vpop.f32.mrb[117].mxu1  ;;  %v6688_v5 = vld [vmem:[%s6913_s30 + $0x328] ss:$28 sps:$4 sm:$0xff]  }
 0x20b   : > { %v7465_v1 = vpop.f32.mrb[118].mxu1  ;;  %v6658_v27 = vld [vmem:[%s6913_s30 + $0x88] ss:$28 sps:$4 sm:$0xff]  }
 0x20c   : > { %8419 = vst [vmem:[#allocation10_spill] sm:$0xff] %v7465_v1  ;;  %v3019_v26 = vpop.f32.mrb[119].mxu1  ;;  %v6656_v1 = vld [vmem:[%s6913_s30 + $0x51c] ss:$28 sps:$4 sm:$0xff]  }
 0x20e   : > { %3542 = vmatmul.mubr.bf16.gmra.mrb[180].mxu1 %v6648_v53  ;;  %3751 = vmatmul.mubr.bf16.gmra.mrb[84].mxu0 %v6649_v38  ;;  %v6660_v53 = vld [vmem:[%s6913_s30 + $0xc0] ss:$28 sps:$4 sm:$0xff]  }
 0x20f   : > { %5844 = vmatprep.mubr.msk.bf16.mxu1 %vm2609_vm0, %v6653_v3  ;;  %3758 = vmatprep.mubr.bf16.mxu0 %v6651_v8  ;;  %v6659_v3 = vld [vmem:[%s6913_s30 + $0x518] ss:$28 sps:$4 sm:$0xff]  }
 0x211   : > { %v7470_v18 = vpop.f32.mrb[120].mxu1 }
 0x212   : > { %8420 = vst [vmem:[#allocation11_spill] sm:$0xff] %v7470_v18  ;;  %v3024_v54 = vpop.f32.mrb[121].mxu1  ;;  %v6661_v18 = vld [vmem:[%s6913_s30 + $0x554] ss:$28 sps:$4 sm:$0xff]  }
 0x213   : > { %v7474_v35 = vpop.f32.mrb[122].mxu1 }
 0x214   : > { %8421 = vst [vmem:[#allocation12_spill] sm:$0xff] %v7474_v35  ;;  %v3027_v26 = vpop.f32.mrb[123].mxu1  ;;  %v6663_v35 = vld [vmem:[%s6913_s30 + $0xf8] ss:$28 sps:$4 sm:$0xff]  }
 0x216   : > { %5845 = vmatmul.mubr.msk.bf16.vlgmr.msra.gmra.mrb[184].mxu1 %vm2609_vm0, %v6655_v42  ;;  %3759 = vmatmul.mubr.bf16.gmra.mrb[88].mxu0 %v6654_v12  ;;  %v6665_v42 = vld [vmem:[%s6913_s30 + $0x130] ss:$28 sps:$4 sm:$0xff]  }
 0x217   : > { %5848 = vmatprep.mubr.msk.bf16.mxu1 %vm2609_vm0, %v6658_v27  ;;  %3766 = vmatprep.mubr.bf16.mxu0 %v6656_v1  ;;  %v6664_v27 = vld [vmem:[%s6913_s30 + $0x550] ss:$28 sps:$4 sm:$0xff]  }
 0x219   : > { %v7480_v8 = vpop.f32.mrb[124].mxu1 }
 0x21a   : > { %8422 = vst [vmem:[#allocation13_spill] sm:$0xff] %v7480_v8  ;;  %v3032_v38 = vpop.f32.mrb[125].mxu1  ;;  %v6666_v8 = vld [vmem:[%s6913_s30 + $0x58c] ss:$28 sps:$4 sm:$0xff]  }
 0x21b   : > { %v7484_v54 = vpop.f32.mrb[126].mxu1 }
 0x21c   : > { %8423 = vst [vmem:[#allocation14_spill] sm:$0xff] %v7484_v54  ;;  %v3035_v26 = vpop.f32.mrb[127].mxu1  ;;  %v6668_v54 = vld [vmem:[%s6913_s30 + $0x168] ss:$28 sps:$4 sm:$0xff]  }
 0x21e   : > { %5849 = vmatmul.mubr.msk.bf16.gmra.mrb[188].mxu1 %vm2609_vm0, %v6660_v53  ;;  %3767 = vmatmul.mubr.bf16.gmra.mrb[92].mxu0 %v6659_v3  ;;  %v6669_v3 = vld [vmem:[%s6913_s30 + $0x588] ss:$28 sps:$4 sm:$0xff]  }
 0x21f   : > { %5852 = vmatprep.mubr.msk.bf16.mxu1 %vm2609_vm0, %v6663_v35  ;;  %3774 = vmatprep.mubr.bf16.mxu0 %v6661_v18  ;;  %v6670_v35 = vld [vmem:[%s6913_s30 + $0x1a0] ss:$28 sps:$4 sm:$0xff]  }
 0x221   : > { %v7490_v1 = vpop.f32.mrb[128].mxu1 }
 0x222   : > { %8424 = vst [vmem:[#allocation15_spill] sm:$0xff] %v7490_v1  ;;  %v3040_v12 = vpop.f32.mrb[129].mxu1  ;;  %v6671_v1 = vld [vmem:[%s6913_s30 + $0x5c4] ss:$28 sps:$4 sm:$0xff]  }
 0x223   : > { %v7494_v38 = vpop.f32.mrb[130].mxu1 }
 0x224   : > { %8425 = vst [vmem:[#allocation16_spill] sm:$0xff] %v7494_v38  ;;  %v3043_v26 = vpop.f32.mrb[131].mxu1  ;;  %v6673_v38 = vld [vmem:[%s6913_s30 + $0x1d8] ss:$28 sps:$4 sm:$0xff]  }
 0x226   : > { %5853 = vmatmul.mubr.msk.bf16.gmra.mrb[192].mxu1 %vm2609_vm0, %v6665_v42  ;;  %3775 = vmatmul.mubr.bf16.gmra.mrb[96].mxu0 %v6664_v27  ;;  %v6674_v27 = vld [vmem:[%s6913_s30 + $0x5c0] ss:$28 sps:$4 sm:$0xff]  }
 0x227   : > { %5856 = vmatprep.mubr.msk.bf16.mxu1 %vm2609_vm0, %v6668_v54  ;;  %3782 = vmatprep.mubr.bf16.mxu0 %v6666_v8  ;;  %v6675_v54 = vld [vmem:[%s6913_s30 + $0x210] ss:$28 sps:$4 sm:$0xff]  }
 0x229   : > { %v7500_v18 = vpop.f32.mrb[132].mxu1 }
 0x22a   : > { %8426 = vst [vmem:[#allocation17_spill] sm:$0xff] %v7500_v18  ;;  %v3048_v53 = vpop.f32.mrb[133].mxu1  ;;  %v6676_v18 = vld [vmem:[%s6913_s30 + $0x5fc] ss:$28 sps:$4 sm:$0xff]  }
 0x22b   : > { %v7504_v12 = vpop.f32.mrb[134].mxu1 }
 0x22c   : > { %8427 = vst [vmem:[#allocation18_spill] sm:$0xff] %v7504_v12  ;;  %v3051_v26 = vpop.f32.mrb[135].mxu1  ;;  %v6678_v12 = vld [vmem:[%s6913_s30 + $0x248] ss:$28 sps:$4 sm:$0xff]  }
 0x22e   : > { %5857 = vmatmul.mubr.msk.bf16.gmra.mrb[196].mxu1 %vm2609_vm0, %v6670_v35  ;;  %3783 = vmatmul.mubr.bf16.gmra.mrb[100].mxu0 %v6669_v3 }
 0x22f   : > { %5860 = vmatprep.mubr.msk.bf16.mxu1 %vm2609_vm0, %v6673_v38  ;;  %3790 = vmatprep.mubr.bf16.mxu0 %v6671_v1  ;;  %v6680_v38 = vld [vmem:[%s6913_s30 + $0x280] ss:$28 sps:$4 sm:$0xff]  }
 0x231   : > { %v7510_v8 = vpop.f32.mrb[136].mxu1 }
 0x232   : > { %8428 = vst [vmem:[#allocation19_spill] sm:$0xff] %v7510_v8  ;;  %v3056_v42 = vpop.f32.mrb[137].mxu1  ;;  %v6681_v8 = vld [vmem:[%s6913_s30 + $0x634] ss:$28 sps:$4 sm:$0xff]  }
 0x233   : > { %v7514_v53 = vpop.f32.mrb[138].mxu1  ;;  %v6679_v42 = vld [vmem:[%s6913_s30 + $0x5f8] ss:$28 sps:$4 sm:$0xff]  }
 0x234   : > { %8429 = vst [vmem:[#allocation20_spill] sm:$0xff] %v7514_v53  ;;  %v3059_v26 = vpop.f32.mrb[139].mxu1  ;;  %v6683_v53 = vld [vmem:[%s6913_s30 + $0x2b8] ss:$28 sps:$4 sm:$0xff]  }
 0x236   : > { %5861 = vmatmul.mubr.msk.bf16.gmra.mrb[200].mxu1 %vm2609_vm0, %v6675_v54  ;;  %3791 = vmatmul.mubr.bf16.gmra.mrb[104].mxu0 %v6674_v27 }
 0x237   : > { %5864 = vmatprep.mubr.msk.bf16.mxu1 %vm2609_vm0, %v6678_v12  ;;  %3798 = vmatprep.mubr.bf16.mxu0 %v6676_v18  ;;  %v6685_v18 = vld [vmem:[%s6913_s30 + $0x2f0] ss:$28 sps:$4 sm:$0xff]  }
 0x239   : > { %v3584_v1 = vpop.f32.mrb[0].mxu0 }
 0x23a   : > { %v7522_v35 = vadd.f32 %v3584_v1, %v7207_v32  ;;  %v3586_v3 = vpop.f32.mrb[1].mxu0 }
 0x23b   : > { %v3587_v26 = vpop.f32.mrb[2].mxu0  ;;  %v6684_v3 = vld [vmem:[%s6913_s30 + $0x630] ss:$28 sps:$4 sm:$0xff]  }
 0x23c   : > { %v7528_v54 = vadd.f32 %v3587_v26, %v7211_v36  ;;  %v3589_v27 = vpop.f32.mrb[3].mxu0  ;;  %v6686_v26 = vld [vmem:[%s6913_s30 + $0x66c] ss:$28 sps:$4 sm:$0xff]  }
 0x23e   : > { %5865 = vmatmul.mubr.msk.bf16.gmra.mrb[204].mxu1 %vm2609_vm0, %v6680_v38  ;;  %3799 = vmatmul.mubr.bf16.gmra.mrb[108].mxu0 %v6679_v42 }
 0x23f   : > { %5868 = vmatprep.mubr.msk.bf16.mxu1 %vm2609_vm0, %v6683_v53  ;;  %3806 = vmatprep.mubr.bf16.mxu0 %v6681_v8  ;;  %v6690_v8 = vld [vmem:[%s6913_s30 + $0x360] ss:$28 sps:$4 sm:$0xff]  }
 0x241   : > { %v3592_v32 = vpop.f32.mrb[4].mxu0 }
 0x242   : > { %v7534_v12 = vadd.f32 %v3592_v32, %v7215_v40  ;;  %v3594_v1 = vpop.f32.mrb[5].mxu0  ;;  %v6689_v32 = vld [vmem:[%s6913_s30 + $0x668] ss:$28 sps:$4 sm:$0xff]  }
 0x243   : > { %v3595_v36 = vpop.f32.mrb[6].mxu0  ;;  %v6693_v1 = vld [vmem:[%s6913_s30 + $0x398] ss:$28 sps:$4 sm:$0xff]  }
 0x244   : > { %v7540_v38 = vadd.f32 %v3595_v36, %v7219_v44  ;;  %v3597_v42 = vpop.f32.mrb[7].mxu0  ;;  %v6691_v36 = vld [vmem:[%s6913_s30 + $0x6a4] ss:$28 sps:$4 sm:$0xff]  }
 0x246   : > { %5869 = vmatmul.mubr.msk.bf16.gmra.mrb[208].mxu1 %vm2609_vm0, %v6685_v18  ;;  %3807 = vmatmul.mubr.bf16.gmra.mrb[112].mxu0 %v6684_v3 }
 0x247   : > { %5872 = vmatprep.mubr.msk.bf16.mxu1 %vm2609_vm0, %v6688_v5  ;;  %3814 = vmatprep.mubr.bf16.mxu0 %v6686_v26  ;;  %v6695_v5 = vld [vmem:[%s6913_s30 + $0x3d0] ss:$28 sps:$4 sm:$0xff]  }
 0x249   : > { %v3600_v40 = vpop.f32.mrb[8].mxu0 }
 0x24a   : > { %v7546_v53 = vadd.f32 %v3600_v40, %v7223_v48  ;;  %v3602_v27 = vpop.f32.mrb[9].mxu0  ;;  %v6694_v40 = vld [vmem:[%s6913_s30 + $0x6a0] ss:$28 sps:$4 sm:$0xff]  }
 0x24b   : > { %v3603_v44 = vpop.f32.mrb[10].mxu0  ;;  %v6698_v27 = vld [vmem:[%s6913_s30 + $0x408] ss:$28 sps:$4 sm:$0xff]  }
 0x24c   : > { %v7552_v18 = vadd.f32 %v3603_v44, %v7227_v52  ;;  %v3605_v3 = vpop.f32.mrb[11].mxu0  ;;  %v6696_v44 = vld [vmem:[%s6913_s30 + $0x6dc] ss:$28 sps:$4 sm:$0xff]  }
 0x24e   : > { %5873 = vmatmul.mubr.msk.bf16.gmra.mrb[212].mxu1 %vm2609_vm0, %v6690_v8  ;;  %3815 = vmatmul.mubr.bf16.gmra.mrb[116].mxu0 %v6689_v32 }
 0x24f   : > { %5876 = vmatprep.mubr.msk.bf16.mxu1 %vm2609_vm0, %v6693_v1  ;;  %3822 = vmatprep.mubr.bf16.mxu0 %v6691_v36  ;;  %v6700_v1 = vld [vmem:[%s6913_s30 + $0x440] ss:$28 sps:$4 sm:$0xff]  }
 0x251   : > { %v3608_v48 = vpop.f32.mrb[12].mxu0 }
 0x252   : > { %v7558_v26 = vadd.f32 %v3608_v48, %v7231_v56  ;;  %v3610_v42 = vpop.f32.mrb[13].mxu0  ;;  %v6699_v48 = vld [vmem:[%s6913_s30 + $0x6d8] ss:$28 sps:$4 sm:$0xff]  }
 0x253   : > { %v3611_v52 = vpop.f32.mrb[14].mxu0  ;;  %v6703_v42 = vld [vmem:[%s6913_s30 + $0x478] ss:$28 sps:$4 sm:$0xff]  }
 0x254   : > { %v7564_v8 = vadd.f32 %v3611_v52, %v7235_v59  ;;  %v3613_v32 = vpop.f32.mrb[15].mxu0  ;;  %v6701_v52 = vld [vmem:[%s6913_s30 + $0x714] ss:$28 sps:$4 sm:$0xff]  }
 0x256   : > { %5877 = vmatmul.mubr.msk.bf16.gmra.mrb[216].mxu1 %vm2609_vm0, %v6695_v5  ;;  %3823 = vmatmul.mubr.bf16.gmra.mrb[120].mxu0 %v6694_v40 }
 0x257   : > { %5880 = vmatprep.mubr.msk.bf16.mxu1 %vm2609_vm0, %v6698_v27  ;;  %3830 = vmatprep.mubr.bf16.mxu0 %v6696_v44  ;;  %v6705_v27 = vld [vmem:[%s6913_s30 + $0x4b0] ss:$28 sps:$4 sm:$0xff]  }
 0x259   : > { %v3616_v56 = vpop.f32.mrb[16].mxu0 }
 0x25a   : > { %v7570_v36 = vadd.f32 %v3616_v56, %v7239_v63  ;;  %v3618_v3 = vpop.f32.mrb[17].mxu0  ;;  %v6704_v56 = vld [vmem:[%s6913_s30 + $0x710] ss:$28 sps:$4 sm:$0xff]  }
 0x25b   : > { %v3619_v59 = vpop.f32.mrb[18].mxu0  ;;  %v6708_v3 = vld [vmem:[%s6913_s30 + $0x4e8] ss:$28 sps:$4 sm:$0xff]  }
 0x25c   : > { %v7576_v5 = vadd.f32 %v3619_v59, %v7243_v4  ;;  %v3621_v40 = vpop.f32.mrb[19].mxu0  ;;  %v6706_v59 = vld [vmem:[%s6913_s30 + $0x74c] ss:$28 sps:$4 sm:$0xff]  }
 0x25e   : > { %5881 = vmatmul.mubr.msk.bf16.gmra.mrb[220].mxu1 %vm2609_vm0, %v6700_v1  ;;  %3831 = vmatmul.mubr.bf16.gmra.mrb[124].mxu0 %v6699_v48 }
 0x25f   : > { %5884 = vmatprep.mubr.msk.bf16.mxu1 %vm2609_vm0, %v6703_v42  ;;  %3838 = vmatprep.mubr.bf16.mxu0 %v6701_v52  ;;  %v6710_v42 = vld [vmem:[%s6913_s30 + $0x520] ss:$28 sps:$4 sm:$0xff]  }
 0x261   : > { %v3624_v63 = vpop.f32.mrb[20].mxu0 }
 0x262   : > { %v7582_v44 = vadd.f32 %v3624_v63, %v7252_v9  ;;  %v3626_v32 = vpop.f32.mrb[21].mxu0  ;;  %v6709_v63 = vld [vmem:[%s6913_s30 + $0x748] ss:$28 sps:$4 sm:$0xff]  }
 0x263   : > { %v3627_v4 = vpop.f32.mrb[22].mxu0  ;;  %v6713_v32 = vld [vmem:[%s6913_s30 + $0x558] ss:$28 sps:$4 sm:$0xff]  }
 0x264   : > { %v7588_v1 = vadd.f32 %v3627_v4, %v7257_v13  ;;  %v3629_v48 = vpop.f32.mrb[23].mxu0  ;;  %v6711_v4 = vld [vmem:[%s6913_s30 + $0x784] ss:$28 sps:$4 sm:$0xff]  }
 0x266   : > { %5885 = vmatmul.mubr.msk.bf16.gmra.mrb[224].mxu1 %vm2609_vm0, %v6705_v27  ;;  %3839 = vmatmul.mubr.bf16.gmra.mrb[128].mxu0 %v6704_v56 }
 0x267   : > { %5888 = vmatprep.mubr.msk.bf16.mxu1 %vm2609_vm0, %v6708_v3  ;;  %3846 = vmatprep.mubr.bf16.mxu0 %v6706_v59  ;;  %v6715_v3 = vld [vmem:[%s6913_s30 + $0x590] ss:$28 sps:$4 sm:$0xff]  }
 0x269   : > { %v3632_v9 = vpop.f32.mrb[24].mxu0 }
 0x26a   : > { %v7594_v52 = vadd.f32 %v3632_v9, %v7261_v17  ;;  %v3634_v40 = vpop.f32.mrb[25].mxu0  ;;  %v6714_v9 = vld [vmem:[%s6913_s30 + $0x780] ss:$28 sps:$4 sm:$0xff]  }
 0x26b   : > { %v3635_v13 = vpop.f32.mrb[26].mxu0  ;;  %v6718_v40 = vld [vmem:[%s6913_s30 + $0x5c8] ss:$28 sps:$4 sm:$0xff]  }
 0x26c   : > { %v7600_v27 = vadd.f32 %v3635_v13, %v7265_v21  ;;  %v3637_v56 = vpop.f32.mrb[27].mxu0  ;;  %v6716_v13 = vld [vmem:[%s6913_s30 + $0x7bc] ss:$28 sps:$4 sm:$0xff]  }
 0x26e   : > { %5889 = vmatmul.mubr.msk.bf16.gmra.mrb[228].mxu1 %vm2609_vm0, %v6710_v42  ;;  %3847 = vmatmul.mubr.bf16.gmra.mrb[132].mxu0 %v6709_v63 }
 0x26f   : > { %5892 = vmatprep.mubr.msk.bf16.mxu1 %vm2609_vm0, %v6713_v32  ;;  %3854 = vmatprep.mubr.bf16.mxu0 %v6711_v4  ;;  %v6720_v32 = vld [vmem:[%s6913_s30 + $0x600] ss:$28 sps:$4 sm:$0xff]  }
 0x271   : > { %v3640_v17 = vpop.f32.mrb[28].mxu0 }
 0x272   : > { %v7606_v59 = vadd.f32 %v3640_v17, %v7269_v25  ;;  %v3642_v48 = vpop.f32.mrb[29].mxu0  ;;  %v6719_v17 = vld [vmem:[%s6913_s30 + $0x7b8] ss:$28 sps:$4 sm:$0xff]  }
 0x273   : > { %v3643_v21 = vpop.f32.mrb[30].mxu0  ;;  %v6723_v48 = vld [vmem:[%s6913_s30 + $0x638] ss:$28 sps:$4 sm:$0xff]  }
 0x274   : > { %v7612_v42 = vadd.f32 %v3643_v21, %v7273_v29  ;;  %v3645_v63 = vpop.f32.mrb[31].mxu0  ;;  %v6721_v21 = vld [vmem:[%s6913_s30 + $0x7f4] ss:$28 sps:$4 sm:$0xff]  }
 0x276   : > { %5893 = vmatmul.mubr.msk.bf16.gmra.mrb[232].mxu1 %vm2609_vm0, %v6715_v3  ;;  %3855 = vmatmul.mubr.bf16.gmra.mrb[136].mxu0 %v6714_v9 }
 0x277   : > { %5896 = vmatprep.mubr.msk.bf16.mxu1 %vm2609_vm0, %v6718_v40  ;;  %3862 = vmatprep.mubr.bf16.mxu0 %v6716_v13  ;;  %v6725_v40 = vld [vmem:[%s6913_s30 + $0x670] ss:$28 sps:$4 sm:$0xff]  }
 0x279   : > { %v3648_v25 = vpop.f32.mrb[32].mxu0 }
 0x27a   : > { %v7618_v4 = vadd.f32 %v3648_v25, %v7277_v34  ;;  %v3650_v56 = vpop.f32.mrb[33].mxu0  ;;  %v6724_v25 = vld [vmem:[%s6913_s30 + $0x7f0] ss:$28 sps:$4 sm:$0xff]  }
 0x27b   : > { %v3651_v29 = vpop.f32.mrb[34].mxu0  ;;  %v6728_v56 = vld [vmem:[%s6913_s30 + $0x6a8] ss:$28 sps:$4 sm:$0xff]  }
 0x27c   : > { %v7624_v3 = vadd.f32 %v3651_v29, %v7281_v39  ;;  %v3653_v9 = vpop.f32.mrb[35].mxu0  ;;  %v6726_v29 = vld [vmem:[%s6913_s30 + $0x82c] ss:$28 sps:$4 sm:$0xff]  }
 0x27e   : > { %8430 = vst [vmem:[#allocation21_spill] sm:$0xff] %v7624_v3  ;;  %5897 = vmatmul.mubr.msk.bf16.gmra.mrb[236].mxu1 %vm2609_vm0, %v6720_v32  ;;  %3863 = vmatmul.mubr.bf16.gmra.mrb[140].mxu0 %v6719_v17 }
 0x27f   : > { %5900 = vmatprep.mubr.msk.bf16.mxu1 %vm2609_vm0, %v6723_v48  ;;  %3870 = vmatprep.mubr.bf16.mxu0 %v6721_v21  ;;  %v6730_v48 = vld [vmem:[%s6913_s30 + $0x6e0] ss:$28 sps:$4 sm:$0xff]  }
 0x281   : > { %v3656_v34 = vpop.f32.mrb[36].mxu0 }
 0x282   : > { %v7630_v13 = vadd.f32 %v3656_v34, %v7285_v45  ;;  %v3658_v63 = vpop.f32.mrb[37].mxu0  ;;  %v6729_v34 = vld [vmem:[%s6913_s30 + $0x828] ss:$28 sps:$4 sm:$0xff]  }
 0x283   : > { %v3659_v39 = vpop.f32.mrb[38].mxu0  ;;  %v6733_v63 = vld [vmem:[%s6913_s30 + $0x718] ss:$28 sps:$4 sm:$0xff]  }
 0x284   : > { %v7636_v32 = vadd.f32 %v3659_v39, %v7289_v50  ;;  %v3661_v17 = vpop.f32.mrb[39].mxu0  ;;  %v6731_v50 = vld [vmem:[%s6913_s30 + $0x864] ss:$28 sps:$4 sm:$0xff]  }
 0x286   : > { %5901 = vmatmul.mubr.msk.bf16.gmra.mrb[240].mxu1 %vm2609_vm0, %v6725_v40  ;;  %3871 = vmatmul.mubr.bf16.gmra.mrb[144].mxu0 %v6724_v25 }
 0x287   : > { %5904 = vmatprep.mubr.msk.bf16.mxu1 %vm2609_vm0, %v6728_v56  ;;  %3878 = vmatprep.mubr.bf16.mxu0 %v6726_v29  ;;  %v6735_v29 = vld [vmem:[%s6913_s30 + $0x750] ss:$28 sps:$4 sm:$0xff]  }
 0x289   : > { %v3664_v45 = vpop.f32.mrb[40].mxu0 }
 0x28a   : > { %v7642_v21 = vadd.f32 %v3664_v45, %v7293_v55  ;;  %v3666_v9 = vpop.f32.mrb[41].mxu0 }
 0x28b   : > { %v3667_v3 = vpop.f32.mrb[42].mxu0  ;;  %v6738_v9 = vld [vmem:[%s6913_s30 + $0x788] ss:$28 sps:$4 sm:$0xff]  }
 0x28c   : > { %v7648_v39 = vadd.f32 %v3667_v3, %v7297_v60  ;;  %v3669_v40 = vpop.f32.mrb[43].mxu0  ;;  %v6734_v3 = vld [vmem:[%s6913_s30 + $0x860] ss:$28 sps:$4 sm:$0xff]  }
 0x28e   : > { %5905 = vmatmul.mubr.msk.bf16.gmra.mrb[244].mxu1 %vm2609_vm0, %v6730_v48  ;;  %3879 = vmatmul.mubr.bf16.gmra.mrb[148].mxu0 %v6729_v34  ;;  %v6736_v34 = vld [vmem:[%s6913_s30 + $0x89c] ss:$28 sps:$4 sm:$0xff]  }
 0x28f   : > { %5908 = vmatprep.mubr.msk.bf16.mxu1 %vm2609_vm0, %v6733_v63  ;;  %3886 = vmatprep.mubr.bf16.mxu0 %v6731_v50 }
 0x291   : > { %v7652_v55 = vpop.f32.mrb[140].mxu1  ;;  %v3672_v25 = vpop.f32.mrb[44].mxu0 }
 0x292   : > { %8431 = vst [vmem:[#allocation22_spill] sm:$0xff] %v7652_v55  ;;  %v3465_v56 = vpop.f32.mrb[141].mxu1  ;;  %v7656_v17 = vadd.f32 %v3672_v25, %v7301_v2  ;;  %v3674_v45 = vpop.f32.mrb[45].mxu0 }
 0x293   : > { %v7658_v60 = vpop.f32.mrb[142].mxu1  ;;  %v3675_v40 = vpop.f32.mrb[46].mxu0  ;;  %v6740_v45 = vld [vmem:[%s6913_s30 + $0x7c0] ss:$28 sps:$4 sm:$0xff]  }
 0x294   : > { %8432 = vst [vmem:[#allocation23_spill] sm:$0xff] %v7658_v60  ;;  %v3468_v48 = vpop.f32.mrb[143].mxu1  ;;  %v7664_v63 = vadd.f32 %v3675_v40, %v7305_v7  ;;  %v3677_v50 = vpop.f32.mrb[47].mxu0  ;;  %v6739_v40 = vld [vmem:[%s6913_s30 + $0x898] ss:$28 sps:$4 sm:$0xff]  }
 0x295   : > { %v6743_v50 = vld [vmem:[%s6913_s30 + $0x7f8] ss:$28 sps:$4 sm:$0xff]  }
 0x296   : > { %5909 = vmatmul.mubr.msk.bf16.gmra.mrb[248].mxu1 %vm2609_vm0, %v6735_v29  ;;  %3887 = vmatmul.mubr.bf16.gmra.mrb[152].mxu0 %v6734_v3  ;;  %v6741_v3 = vld [vmem:[%s6913_s30 + $0x8d4] ss:$28 sps:$4 sm:$0xff]  }
 0x297   : > { %5912 = vmatprep.mubr.msk.bf16.mxu1 %vm2609_vm0, %v6738_v9  ;;  %3894 = vmatprep.mubr.bf16.mxu0 %v6736_v34 }
 0x299   : > { %v7668_v2 = vpop.f32.mrb[144].mxu1  ;;  %v3680_v25 = vpop.f32.mrb[48].mxu0 }
 0x29a   : > { %8433 = vst [vmem:[#allocation24_spill] sm:$0xff] %v7668_v2  ;;  %v3473_v56 = vpop.f32.mrb[145].mxu1  ;;  %v7672_v48 = vadd.f32 %v3680_v25, %v7309_v14  ;;  %v3682_v60 = vpop.f32.mrb[49].mxu0 }
 0x29b   : > { %v7674_v7 = vpop.f32.mrb[146].mxu1  ;;  %v3683_v55 = vpop.f32.mrb[50].mxu0  ;;  %v6745_v56 = vld [vmem:[%s6913_s30 + $0x830] ss:$28 sps:$4 sm:$0xff]  }
 0x29c   : > { %8434 = vst [vmem:[#allocation25_spill] sm:$0xff] %v7674_v7  ;;  %v3476_v29 = vpop.f32.mrb[147].mxu1  ;;  %v7680_v9 = vadd.f32 %v3683_v55, %v7313_v19  ;;  %v3685_v34 = vpop.f32.mrb[51].mxu0  ;;  %v6744_v55 = vld [vmem:[%s6913_s30 + $0x8d0] ss:$28 sps:$4 sm:$0xff]  }
 0x29d   : > { %v6748_v34 = vld [vmem:[%s6913_s30 + $0x868] ss:$28 sps:$4 sm:$0xff]  }
 0x29e   : > { %5913 = vmatmul.mubr.msk.bf16.gmra.mrb[252].mxu1 %vm2609_vm0, %v6740_v45  ;;  %3895 = vmatmul.mubr.bf16.gmra.mrb[156].mxu0 %v6739_v40  ;;  %v6746_v40 = vld [vmem:[%s6913_s30 + $0x90c] ss:$28 sps:$4 sm:$0xff]  }
 0x29f   : > { %5916 = vmatprep.mubr.msk.bf16.mxu1 %vm2609_vm0, %v6743_v50  ;;  %3902 = vmatprep.mubr.bf16.mxu0 %v6741_v3 }
 0x2a1   : > { %v7684_v14 = vpop.f32.mrb[148].mxu1  ;;  %v3688_v60 = vpop.f32.mrb[52].mxu0 }
 0x2a2   : > { %8435 = vst [vmem:[#allocation26_spill] sm:$0xff] %v7684_v14  ;;  %v3481_v25 = vpop.f32.mrb[149].mxu1  ;;  %v7688_v29 = vadd.f32 %v3688_v60, %v7317_v24  ;;  %v3690_v7 = vpop.f32.mrb[53].mxu0 }
 0x2a3   : > { %v7690_v19 = vpop.f32.mrb[150].mxu1  ;;  %v3691_v2 = vpop.f32.mrb[54].mxu0  ;;  %v6750_v25 = vld [vmem:[%s6913_s30 + $0x8a0] ss:$28 sps:$4 sm:$0xff]  }
 0x2a4   : > { %8436 = vst [vmem:[#allocation27_spill] sm:$0xff] %v7690_v19  ;;  %v3484_v45 = vpop.f32.mrb[151].mxu1  ;;  %v7696_v50 = vadd.f32 %v3691_v2, %v7321_v30  ;;  %v3693_v3 = vpop.f32.mrb[55].mxu0  ;;  %v6749_v2 = vld [vmem:[%s6913_s30 + $0x908] ss:$28 sps:$4 sm:$0xff]  }
 0x2a5   : > { %v6753_v3 = vld [vmem:[%s6913_s30 + $0x8d8] ss:$28 sps:$4 sm:$0xff]  }
 0x2a6   : > { %5917 = vmatmul.mubr.msk.bf16.gmra.mrb[0].mxu1 %vm2609_vm0, %v6745_v56  ;;  %3903 = vmatmul.mubr.bf16.gmra.mrb[160].mxu0 %v6744_v55  ;;  %v6751_v55 = vld [vmem:[%s6913_s30 + $0x944] ss:$28 sps:$4 sm:$0xff]  }
 0x2a7   : > { %5920 = vmatprep.mubr.msk.bf16.mxu1 %vm2609_vm0, %v6748_v34  ;;  %3910 = vmatprep.mubr.bf16.mxu0 %v6746_v40 }
 0x2a9   : > { %v7700_v24 = vpop.f32.mrb[152].mxu1  ;;  %v3696_v7 = vpop.f32.mrb[56].mxu0 }
 0x2aa   : > { %8437 = vst [vmem:[#allocation28_spill] sm:$0xff] %v7700_v24  ;;  %v3489_v60 = vpop.f32.mrb[153].mxu1  ;;  %v7704_v45 = vadd.f32 %v3696_v7, %v7325_v37  ;;  %v3698_v19 = vpop.f32.mrb[57].mxu0 }
 0x2ab   : > { %v7706_v30 = vpop.f32.mrb[154].mxu1  ;;  %v3699_v14 = vpop.f32.mrb[58].mxu0  ;;  %v6755_v60 = vld [vmem:[%s6913_s30 + $0x910] ss:$28 sps:$4 sm:$0xff]  }
 0x2ac   : > { %8438 = vst [vmem:[#allocation29_spill] sm:$0xff] %v7706_v30  ;;  %v3492_v56 = vpop.f32.mrb[155].mxu1  ;;  %v7712_v34 = vadd.f32 %v3699_v14, %v7329_v43  ;;  %v3701_v40 = vpop.f32.mrb[59].mxu0  ;;  %v6754_v14 = vld [vmem:[%s6913_s30 + $0x940] ss:$28 sps:$4 sm:$0xff]  }
 0x2ad   : > { %v6758_v40 = vld [vmem:[%s6913_s30 + $0x948] ss:$28 sps:$4 sm:$0xff]  }
 0x2ae   : > { %5921 = vmatmul.mubr.msk.bf16.gmra.mrb[4].mxu1 %vm2609_vm0, %v6750_v25  ;;  %3911 = vmatmul.mubr.bf16.gmra.mrb[164].mxu0 %v6749_v2  ;;  %v6756_v2 = vld [vmem:[%s6913_s30 + $0x97c] ss:$28 sps:$4 sm:$0xff]  }
 0x2af   : > { %5924 = vmatprep.mubr.msk.bf16.mxu1 %vm2609_vm0, %v6753_v3  ;;  %3918 = vmatprep.mubr.bf16.mxu0 %v6751_v55 }
 0x2b1   : > { %v7716_v37 = vpop.f32.mrb[156].mxu1  ;;  %v3704_v19 = vpop.f32.mrb[60].mxu0 }
 0x2b2   : > { %8439 = vst [vmem:[#allocation30_spill] sm:$0xff] %v7716_v37  ;;  %v3497_v7 = vpop.f32.mrb[157].mxu1  ;;  %v7720_v56 = vadd.f32 %v3704_v19, %v7333_v51  ;;  %v3706_v30 = vpop.f32.mrb[61].mxu0 }
 0x2b3   : > { %v7722_v43 = vpop.f32.mrb[158].mxu1  ;;  %v3707_v24 = vpop.f32.mrb[62].mxu0  ;;  %v6760_v7 = vld [vmem:[%s6913_s30 + $0x980] ss:$28 sps:$4 sm:$0xff]  }
 0x2b4   : > { %8440 = vst [vmem:[#allocation31_spill] sm:$0xff] %v7722_v43  ;;  %v3500_v25 = vpop.f32.mrb[159].mxu1  ;;  %v7728_v3 = vadd.f32 %v3707_v24, %v7337_v57  ;;  %v3709_v55 = vpop.f32.mrb[63].mxu0  ;;  %v6759_v24 = vld [vmem:[%s6913_s30 + $0x978] ss:$28 sps:$4 sm:$0xff]  }
 0x2b5   : > { %v6764_v55 = vld [vmem:[%s6913_s30 + $0x9b8] ss:$28 sps:$4 sm:$0xff]  }
 0x2b6   : > { %5925 = vmatmul.mubr.msk.bf16.gmra.mrb[8].mxu1 %vm2609_vm0, %v6755_v60  ;;  %3919 = vmatmul.mubr.bf16.gmra.mrb[168].mxu0 %v6754_v14  ;;  %v6761_v14 = vld [vmem:[%s6913_s30 + $0x9b4] ss:$28 sps:$4 sm:$0xff]  }
 0x2b7   : > { %5928 = vmatprep.mubr.msk.bf16.mxu1 %vm2609_vm0, %v6758_v40  ;;  %3926 = vmatprep.mubr.bf16.mxu0 %v6756_v2 }
 0x2b9   : > { %v7732_v51 = vpop.f32.mrb[160].mxu1  ;;  %v3712_v30 = vpop.f32.mrb[64].mxu0 }
 0x2ba   : > { %8441 = vst [vmem:[#allocation32_spill] sm:$0xff] %v7732_v51  ;;  %v3505_v19 = vpop.f32.mrb[161].mxu1  ;;  %v7736_v25 = vadd.f32 %v3712_v30, %v7341_v0  ;;  %v3714_v43 = vpop.f32.mrb[65].mxu0 }
 0x2bb   : > { %v7738_v57 = vpop.f32.mrb[162].mxu1  ;;  %v3715_v37 = vpop.f32.mrb[66].mxu0  ;;  %v6765_v19 = vld [vmem:[%s6913_s30 + $0x9f0] ss:$28 sps:$4 sm:$0x1f]  }
 0x2bc   : > { %8442 = vst [vmem:[#allocation33_spill] sm:$0xff] %v7738_v57  ;;  %v3508_v60 = vpop.f32.mrb[163].mxu1  ;;  %v7744_v40 = vadd.f32 %v3715_v37, %v7345_v10  ;;  %v3717_v2 = vpop.f32.mrb[67].mxu0  ;;  %v6763_v10 = vld [vmem:[%s6913_s30 + $0x9b0] ss:$28 sps:$4 sm:$0xff]  }
 0x2be   : > { %8443 = vst [vmem:[#allocation34_spill] sm:$0xff] %v7744_v40  ;;  %5929 = vmatmul.mubr.msk.bf16.gmra.mrb[12].mxu1 %vm2609_vm0, %v6760_v7  ;;  %3927 = vmatmul.mubr.bf16.gmra.mrb[172].mxu0 %v6759_v24  ;;  %v6766_v7 = vld [vmem:[%s6913_s30 + $0x9ec] ss:$28 sps:$4 sm:$0x1f]  }
 0x2bf   : > { %5932 = vmatprep.mubr.msk.bf16.mxu1 %vm2609_vm0, %v6764_v55  ;;  %3934 = vmatprep.mubr.bf16.mxu0 %v6761_v14 }
 0x2c1   : > { %v7748_v0 = vpop.f32.mrb[164].mxu1  ;;  %v3720_v43 = vpop.f32.mrb[68].mxu0 }
 0x2c2   : > { %8444 = vst [vmem:[#allocation35_spill] sm:$0xff] %v7748_v0  ;;  %v3513_v30 = vpop.f32.mrb[165].mxu1  ;;  %v7752_v57 = vadd.f32 %v3720_v43, %v7349_v16  ;;  %v3722_v60 = vpop.f32.mrb[69].mxu0 }
 0x2c3   : > { %v7754_v51 = vpop.f32.mrb[166].mxu1  ;;  %v3723_v37 = vpop.f32.mrb[70].mxu0 }
 0x2c4   : > { %8445 = vst [vmem:[#allocation36_spill] sm:$0xff] %v7754_v51  ;;  %v3516_v2 = vpop.f32.mrb[167].mxu1  ;;  %v7759_v24 = vadd.f32 %v3723_v37, %v7353_v23  ;;  %v3725_v55 = vpop.f32.mrb[71].mxu0 }
 0x2c5   : > { %v6768_v2 = vld [vmem:[%s6913_s30 + $0x9e8] ss:$28 sps:$4 sm:$0x1f]  }
 0x2c6   : > { %5933 = vmatmul.mubr.msk.bf16.gmra.mrb[16].mxu1 %vm2609_vm0, %v6765_v19  ;;  %3935 = vmatmul.mubr.bf16.gmra.mrb[176].mxu0 %v6763_v10 }
 0x2c7   : > { %3942 = vmatprep.mubr.bf16.mxu0 %v6766_v7 }
 0x2c9   : > { %v7762_v14 = vpop.f32.mrb[168].mxu1  ;;  %v3728_v16 = vpop.f32.mrb[72].mxu0 }
 0x2ca   : > { %8446 = vst [vmem:[#allocation37_spill] sm:$0xff] %v7762_v14  ;;  %v3521_v43 = vpop.f32.mrb[169].mxu1  ;;  %v7765_v30 = vadd.f32 %v3728_v16, %v7357_v31  ;;  %v3730_v60 = vpop.f32.mrb[73].mxu0 }
 0x2cb   : > { %v7767_v51 = vpop.f32.mrb[170].mxu1  ;;  %v3731_v0 = vpop.f32.mrb[74].mxu0 }
 0x2cc   : > { %8447 = vst [vmem:[#allocation38_spill] sm:$0xff] %v7767_v51  ;;  %v3524_v40 = vpop.f32.mrb[171].mxu1  ;;  %v7771_v23 = vadd.f32 %v3731_v0, %v7361_v41  ;;  %v3733_v37 = vpop.f32.mrb[75].mxu0 }
 0x2ce   : > { %3943 = vmatmul.mubr.bf16.gmra.mrb[180].mxu0 %v6768_v2 }
 0x2d1   : > { %v7773_v19 = vpop.f32.mrb[172].mxu1  ;;  %v3736_v10 = vpop.f32.mrb[76].mxu0 }
 0x2d2   : > { %8448 = vst [vmem:[#allocation39_spill] sm:$0xff] %v7773_v19  ;;  %v3529_v7 = vpop.f32.mrb[173].mxu1  ;;  %v7776_v55 = vadd.f32 %v3736_v10, %v7365_v49  ;;  %v3738_v31 = vpop.f32.mrb[77].mxu0 }
 0x2d3   : > { %v7778_v16 = vpop.f32.mrb[174].mxu1  ;;  %v3739_v43 = vpop.f32.mrb[78].mxu0 }
 0x2d4   : > { %8449 = vst [vmem:[#allocation40_spill] sm:$0xff] %v7778_v16  ;;  %v3532_v60 = vpop.f32.mrb[175].mxu1  ;;  %v7781_v51 = vadd.f32 %v3739_v43, %v7369_v58  ;;  %v3741_v40 = vpop.f32.mrb[79].mxu0 }
 0x2d9   : > { %v7783_v41 = vpop.f32.mrb[176].mxu1  ;;  %v3744_v0 = vpop.f32.mrb[80].mxu0 }
 0x2da   : > { %8450 = vst [vmem:[#allocation41_spill] sm:$0xff] %v7783_v41  ;;  %v3537_v2 = vpop.f32.mrb[177].mxu1  ;;  %v7786_v37 = vadd.f32 %v3744_v0, %v7377_v6  ;;  %v3746_v7 = vpop.f32.mrb[81].mxu0 }
 0x2db   : > { %v7788_v19 = vpop.f32.mrb[178].mxu1  ;;  %v3747_v49 = vpop.f32.mrb[82].mxu0 }
 0x2dc   : > { %8451 = vst [vmem:[#allocation42_spill] sm:$0xff] %v7788_v19  ;;  %v3540_v10 = vpop.f32.mrb[179].mxu1  ;;  %v7791_v31 = vadd.f32 %v3747_v49, %v7384_v20  ;;  %v3749_v60 = vpop.f32.mrb[83].mxu0  ;;  %v7806_v49 = vld [vmem:[%s8408_s2] ss:$0 sm:$0xff] }
 0x2e1   : > { %v7793_v16 = vpop.f32.mrb[180].mxu1  ;;  %v3752_v58 = vpop.f32.mrb[84].mxu0 }
 0x2e2   : > { %8452 = vst [vmem:[#allocation43_spill] sm:$0xff] %v7793_v16  ;;  %v3545_v43 = vpop.f32.mrb[181].mxu1  ;;  %v7796_v40 = vadd.f32 %v3752_v58, %v7391_v28  ;;  %v3754_v2 = vpop.f32.mrb[85].mxu0 }
 0x2e3   : > { %v7798_v41 = vpop.f32.mrb[182].mxu1  ;;  %v3755_v6 = vpop.f32.mrb[86].mxu0 }
 0x2e4   : > { %8453 = vst [vmem:[#allocation44_spill] sm:$0xff] %v7798_v41  ;;  %v3548_v0 = vpop.f32.mrb[183].mxu1  ;;  %v7801_v7 = vadd.f32 %v3755_v6, %v7398_v46  ;;  %v3757_v10 = vpop.f32.mrb[87].mxu0  ;;  %v7815_v46 = vld [vmem:[%s8409_s3] ss:$0 sm:$0xff] }
 0x2e9   : > { %v5846_v20 = vpop.f32.mrb[184].mxu1  ;;  %v3760_v60 = vpop.f32.mrb[88].mxu0 }
 0x2ea   : > { %v3994_v28 = vadd.f32 %v7534_v12, %v5846_v20  ;;  %v3985_v58 = vpop.f32.mrb[185].mxu1  ;;  %v7810_v43 = vadd.f32 %v3760_v60, %v7405_v61  ;;  %v3762_v2 = vpop.f32.mrb[89].mxu0 }
 0x2eb   : > { %v3986_v6 = vadd.f32 %v7522_v35, %v3985_v58  ;;  %v5847_v0 = vpop.f32.mrb[186].mxu1  ;;  %v3763_v41 = vpop.f32.mrb[90].mxu0 }
 0x2ec   : > { %v4361_v10 = vmul.f32 %v7806_v49, %v3994_v28  ;;  %v3997_v16 = vadd.f32 %v7540_v38, %v5847_v0  ;;  %v3988_v19 = vpop.f32.mrb[187].mxu1  ;;  %v7823_v61 = vadd.f32 %v3763_v41, %v7409_v11  ;;  %v3765_v20 = vpop.f32.mrb[91].mxu0 }
 0x2ed   : > { %v4359_v12 = vmul.f32 %v7806_v49, %v3986_v6  ;;  %v3989_v60 = vadd.f32 %v7528_v54, %v3988_v19 }
 0x2ee   : > { %v4460_v2 = vadd.f32 %v7815_v46, %v4361_v10  ;;  %v4362_v35 = vmul.f32 %v7806_v49, %v3997_v16 }
 0x2ef   : > { %v4458_v58 = vadd.f32 %v7815_v46, %v4359_v12  ;;  %v4360_v28 = vmul.f32 %v7806_v49, %v3989_v60 }
 0x2f0   : > { %v4552_v14 = vmax.f32 %v4460_v2, 0.0  ;;  %v4461_v38 = vadd.f32 %v7815_v46, %v4362_v35 }
 0x2f1   : > { %v4550_v11 = vmax.f32 %v4458_v58, 0.0  ;;  %v4459_v54 = vadd.f32 %v7815_v46, %v4360_v28  ;;  %v5850_v19 = vpop.f32.mrb[188].mxu1  ;;  %v3768_v6 = vpop.f32.mrb[92].mxu0 }
 0x2f2   : > { %v5690_v41 = vpack.c.bf16 %v4552_v14, %v4552_v14  ;;  %v4553_v16 = vmax.f32 %v4461_v38, 0.0  ;;  %v4010_v0 = vadd.f32 %v7558_v26, %v5850_v19  ;;  %v4001_v10 = vpop.f32.mrb[189].mxu1  ;;  %v7839_v60 = vadd.f32 %v3768_v6, %v7413_v22  ;;  %v3770_v2 = vpop.f32.mrb[93].mxu0 }
 0x2f3   : > { %v5688_v12 = vpack.c.bf16 %v4550_v11, %v4550_v11  ;;  %v4551_v20 = vmax.f32 %v4459_v54, 0.0  ;;  %v4002_v35 = vadd.f32 %v7546_v53, %v4001_v10  ;;  %v5851_v58 = vpop.f32.mrb[190].mxu1  ;;  %v3771_v38 = vpop.f32.mrb[94].mxu0 }
 0x2f4   : > { %5013 = vst.msk [vmem:[%s7834_s17 + $0x8] sm:$0xf] %vm5010_vm1, %v5690_v41  ;;  %v5691_v14 = vpack.c.bf16 %v4553_v16, %v4553_v16  ;;  %v4365_v28 = vmul.f32 %v7806_v49, %v4010_v0  ;;  %v4013_v26 = vadd.f32 %v7564_v8, %v5851_v58  ;;  %v4004_v19 = vpop.f32.mrb[191].mxu1  ;;  %v7850_v54 = vadd.f32 %v3771_v38, %v7417_v33  ;;  %v3773_v53 = vpop.f32.mrb[95].mxu0 }
 0x2f5   : > { %5011 = vst.msk [vmem:[%s7834_s17] sm:$0xf] %vm5010_vm1, %v5688_v12  ;;  %v5689_v11 = vpack.c.bf16 %v4551_v20, %v4551_v20  ;;  %v4363_v22 = vmul.f32 %v7806_v49, %v4002_v35  ;;  %v4005_v6 = vadd.f32 %v7552_v18, %v4004_v19 }
 0x2f6   : > { %5014 = vst.msk [vmem:[%s7834_s17 + $0xc] sm:$0xf] %vm5010_vm1, %v5691_v14  ;;  %v4464_v41 = vadd.f32 %v7815_v46, %v4365_v28  ;;  %v4366_v16 = vmul.f32 %v7806_v49, %v4013_v26 }
 0x2f7   : > { %5012 = vst.msk [vmem:[%s7834_s17 + $0x4] sm:$0xf] %vm5010_vm1, %v5689_v11  ;;  %v4462_v8 = vadd.f32 %v7815_v46, %v4363_v22  ;;  %v4364_v0 = vmul.f32 %v7806_v49, %v4005_v6 }
 0x2f8   : > { %v4556_v10 = vmax.f32 %v4464_v41, 0.0  ;;  %v4465_v33 = vadd.f32 %v7815_v46, %v4366_v16 }
 0x2f9   : > { %v4554_v12 = vmax.f32 %v4462_v8, 0.0  ;;  %v4463_v20 = vadd.f32 %v7815_v46, %v4364_v0  ;;  %v5854_v18 = vpop.f32.mrb[192].mxu1  ;;  %v3776_v58 = vpop.f32.mrb[96].mxu0 }
 0x2fa   : > { %v5694_v2 = vpack.c.bf16 %v4556_v10, %v4556_v10  ;;  %v4557_v35 = vmax.f32 %v4465_v33, 0.0  ;;  %v4026_v14 = vadd.f32 %v7582_v44, %v5854_v18  ;;  %v4017_v28 = vpop.f32.mrb[193].mxu1  ;;  %v7865_v19 = vadd.f32 %v3776_v58, %v7421_v47  ;;  %v3778_v11 = vpop.f32.mrb[97].mxu0 }
 0x2fb   : > { %v5692_v38 = vpack.c.bf16 %v4554_v12, %v4554_v12  ;;  %v4555_v26 = vmax.f32 %v4463_v20, 0.0  ;;  %v4018_v22 = vadd.f32 %v7570_v36, %v4017_v28  ;;  %v5855_v53 = vpop.f32.mrb[194].mxu1  ;;  %v3779_v16 = vpop.f32.mrb[98].mxu0 }
 0x2fc   : > { %5017 = vst.msk [vmem:[%s7834_s17 + $0x18] sm:$0xf] %vm5010_vm1, %v5694_v2  ;;  %v5695_v6 = vpack.c.bf16 %v4557_v35, %v4557_v35  ;;  %v4369_v41 = vmul.f32 %v7806_v49, %v4026_v14  ;;  %v4029_v44 = vadd.f32 %v7588_v1, %v5855_v53  ;;  %v4020_v8 = vpop.f32.mrb[195].mxu1  ;;  %v7876_v10 = vadd.f32 %v3779_v16, %v7425_v62  ;;  %v3781_v36 = vpop.f32.mrb[99].mxu0 }
 0x2fd   : > { %5015 = vst.msk [vmem:[%s7834_s17 + $0x10] sm:$0xf] %vm5010_vm1, %v5692_v38  ;;  %v5693_v0 = vpack.c.bf16 %v4555_v26, %v4555_v26  ;;  %v4367_v47 = vmul.f32 %v7806_v49, %v4018_v22  ;;  %v4021_v33 = vadd.f32 %v7576_v5, %v4020_v8 }
 0x2fe   : > { %5018 = vst.msk [vmem:[%s7834_s17 + $0x1c] sm:$0xf] %vm5010_vm1, %v5695_v6  ;;  %v4468_v12 = vadd.f32 %v7815_v46, %v4369_v41  ;;  %v4370_v20 = vmul.f32 %v7806_v49, %v4029_v44 }
 0x2ff   : > { %5016 = vst.msk [vmem:[%s7834_s17 + $0x14] sm:$0xf] %vm5010_vm1, %v5693_v0  ;;  %v4466_v1 = vadd.f32 %v7815_v46, %v4367_v47  ;;  %v4368_v18 = vmul.f32 %v7806_v49, %v4021_v33 }
 0x300   : > { %v4560_v2 = vmax.f32 %v4468_v12, 0.0  ;;  %v4469_v62 = vadd.f32 %v7815_v46, %v4370_v20  ;;  %v8454_v12 = vld [vmem:[#allocation2_spill] sm:$0xff] }
 0x301   : > { %v4558_v35 = vmax.f32 %v4466_v1, 0.0  ;;  %v4467_v58 = vadd.f32 %v7815_v46, %v4368_v18  ;;  %v5858_v5 = vpop.f32.mrb[196].mxu1  ;;  %v3784_v38 = vpop.f32.mrb[100].mxu0 }
 0x302   : > { %v5698_v14 = vpack.c.bf16 %v4560_v2, %v4560_v2  ;;  %v4561_v28 = vmax.f32 %v4469_v62, 0.0  ;;  %v4042_v26 = vadd.f32 %v7606_v59, %v5858_v5  ;;  %v4033_v11 = vpop.f32.mrb[197].mxu1  ;;  %v7891_v6 = vadd.f32 %v3784_v38, %v7429_v15  ;;  %v3786_v41 = vpop.f32.mrb[101].mxu0 }
 0x303   : > { %v5696_v22 = vpack.c.bf16 %v4558_v35, %v4558_v35  ;;  %v4559_v53 = vmax.f32 %v4467_v58, 0.0  ;;  %v4034_v16 = vadd.f32 %v7594_v52, %v4033_v11  ;;  %v5859_v44 = vpop.f32.mrb[198].mxu1  ;;  %v3787_v47 = vpop.f32.mrb[102].mxu0 }
 0x304   : > { %5021 = vst.msk [vmem:[%s7834_s17 + $0x28] sm:$0xf] %vm5010_vm1, %v5698_v14  ;;  %v5699_v8 = vpack.c.bf16 %v4561_v28, %v4561_v28  ;;  %v4373_v0 = vmul.f32 %v7806_v49, %v4042_v26  ;;  %v4045_v59 = vadd.f32 %v7612_v42, %v5859_v44  ;;  %v4036_v36 = vpop.f32.mrb[199].mxu1  ;;  %v7902_v20 = vadd.f32 %v3787_v47, %v8454_v12  ;;  %v3789_v52 = vpop.f32.mrb[103].mxu0 }
 0x305   : > { %5019 = vst.msk [vmem:[%s7834_s17 + $0x20] sm:$0xf] %vm5010_vm1, %v5696_v22  ;;  %v5697_v33 = vpack.c.bf16 %v4559_v53, %v4559_v53  ;;  %v4371_v15 = vmul.f32 %v7806_v49, %v4034_v16  ;;  %v4037_v1 = vadd.f32 %v7600_v27, %v4036_v36  ;;  %v8455_v16 = vld [vmem:[#allocation3_spill] sm:$0xff] }
 0x306   : > { %5022 = vst.msk [vmem:[%s7834_s17 + $0x2c] sm:$0xf] %vm5010_vm1, %v5699_v8  ;;  %v4472_v18 = vadd.f32 %v7815_v46, %v4373_v0  ;;  %v4374_v2 = vmul.f32 %v7806_v49, %v4045_v59 }
 0x307   : > { %5020 = vst.msk [vmem:[%s7834_s17 + $0x24] sm:$0xf] %vm5010_vm1, %v5697_v33  ;;  %v4470_v42 = vadd.f32 %v7815_v46, %v4371_v15  ;;  %v4372_v62 = vmul.f32 %v7806_v49, %v4037_v1  ;;  %v8456_v1 = vld [vmem:[#allocation4_spill] sm:$0xff] }
 0x308   : > { %v4564_v35 = vmax.f32 %v4472_v18, 0.0  ;;  %v4473_v58 = vadd.f32 %v7815_v46, %v4374_v2  ;;  %v8457_v2 = vld [vmem:[#allocation21_spill] sm:$0xff] }
 0x309   : > { %v4562_v5 = vmax.f32 %v4470_v42, 0.0  ;;  %v4471_v14 = vadd.f32 %v7815_v46, %v4372_v62  ;;  %v5862_v27 = vpop.f32.mrb[200].mxu1  ;;  %v3792_v26 = vpop.f32.mrb[104].mxu0 }
 0x30a   : > { %v5702_v28 = vpack.c.bf16 %v4564_v35, %v4564_v35  ;;  %v4565_v38 = vmax.f32 %v4473_v58, 0.0  ;;  %v4058_v11 = vadd.f32 %v7630_v13, %v5862_v27  ;;  %v4049_v22 = vpop.f32.mrb[201].mxu1  ;;  %v7917_v44 = vadd.f32 %v3792_v26, %v8455_v16  ;;  %v3794_v8 = vpop.f32.mrb[105].mxu0 }
 0x30b   : > { %v5700_v53 = vpack.c.bf16 %v4562_v5, %v4562_v5  ;;  %v4563_v41 = vmax.f32 %v4471_v14, 0.0  ;;  %v4050_v0 = vadd.f32 %v7618_v4, %v4049_v22  ;;  %v5863_v47 = vpop.f32.mrb[202].mxu1  ;;  %v3795_v33 = vpop.f32.mrb[106].mxu0 }
 0x30c   : > { %5025 = vst.msk [vmem:[%s7834_s17 + $0x38] sm:$0xf] %vm5010_vm1, %v5702_v28  ;;  %v5703_v59 = vpack.c.bf16 %v4565_v38, %v4565_v38  ;;  %v4377_v36 = vmul.f32 %v7806_v49, %v4058_v11  ;;  %v4061_v13 = vadd.f32 %v7636_v32, %v5863_v47  ;;  %v4052_v15 = vpop.f32.mrb[203].mxu1  ;;  %v7928_v18 = vadd.f32 %v3795_v33, %v8456_v1  ;;  %v3797_v4 = vpop.f32.mrb[107].mxu0 }
 0x30d   : > { %5023 = vst.msk [vmem:[%s7834_s17 + $0x30] sm:$0xf] %vm5010_vm1, %v5700_v53  ;;  %v5701_v12 = vpack.c.bf16 %v4563_v41, %v4563_v41  ;;  %v4375_v52 = vmul.f32 %v7806_v49, %v4050_v0  ;;  %v4053_v42 = vadd.f32 %v8457_v2, %v4052_v15  ;;  %v8458_v0 = vld [vmem:[#allocation5_spill] sm:$0xff]  ;;  %v8459_v2 = vld [vmem:[#allocation6_spill] sm:$0xff] }
 0x30e   : > { %5026 = vst.msk [vmem:[%s7834_s17 + $0x3c] sm:$0xf] %vm5010_vm1, %v5703_v59  ;;  %v4476_v62 = vadd.f32 %v7815_v46, %v4377_v36  ;;  %v4378_v35 = vmul.f32 %v7806_v49, %v4061_v13 }
 0x30f   : > { %5024 = vst.msk [vmem:[%s7834_s17 + $0x34] sm:$0xf] %vm5010_vm1, %v5701_v12  ;;  %v4474_v32 = vadd.f32 %v7815_v46, %v4375_v52  ;;  %v4376_v58 = vmul.f32 %v7806_v49, %v4053_v42 }
 0x310   : > { %v4568_v5 = vmax.f32 %v4476_v62, 0.0  ;;  %v4477_v14 = vadd.f32 %v7815_v46, %v4378_v35 }
 0x311   : > { %v4566_v27 = vmax.f32 %v4474_v32, 0.0  ;;  %v4475_v28 = vadd.f32 %v7815_v46, %v4376_v58  ;;  %v5866_v38 = vpop.f32.mrb[204].mxu1  ;;  %v3800_v22 = vpop.f32.mrb[108].mxu0 }
 0x312   : > { %v5706_v26 = vpack.c.bf16 %v4568_v5, %v4568_v5  ;;  %v4569_v11 = vmax.f32 %v4477_v14, 0.0  ;;  %v4074_v53 = vadd.f32 %v7656_v17, %v5866_v38  ;;  %v4065_v41 = vpop.f32.mrb[205].mxu1  ;;  %v7943_v47 = vadd.f32 %v3800_v22, %v8458_v0  ;;  %v3802_v59 = vpop.f32.mrb[109].mxu0 }
 0x313   : > { %v5704_v16 = vpack.c.bf16 %v4566_v27, %v4566_v27  ;;  %v4567_v8 = vmax.f32 %v4475_v28, 0.0  ;;  %v4066_v36 = vadd.f32 %v7642_v21, %v4065_v41  ;;  %v5867_v33 = vpop.f32.mrb[206].mxu1  ;;  %v3803_v12 = vpop.f32.mrb[110].mxu0 }
 0x314   : > { %5029 = vst.msk [vmem:[%s7834_s17 + $0x48] sm:$0xf] %vm5010_vm1, %v5706_v26  ;;  %v5707_v13 = vpack.c.bf16 %v4569_v11, %v4569_v11  ;;  %v4381_v15 = vmul.f32 %v7806_v49, %v4074_v53  ;;  %v4077_v17 = vadd.f32 %v7664_v63, %v5867_v33  ;;  %v4068_v52 = vpop.f32.mrb[207].mxu1  ;;  %v7954_v42 = vadd.f32 %v3803_v12, %v8459_v2  ;;  %v3805_v21 = vpop.f32.mrb[111].mxu0 }
 0x315   : > { %5027 = vst.msk [vmem:[%s7834_s17 + $0x40] sm:$0xf] %vm5010_vm1, %v5704_v16  ;;  %v5705_v1 = vpack.c.bf16 %v4567_v8, %v4567_v8  ;;  %v4379_v4 = vmul.f32 %v7806_v49, %v4066_v36  ;;  %v4069_v62 = vadd.f32 %v7648_v39, %v4068_v52  ;;  %v8460_v8 = vld [vmem:[#allocation7_spill] sm:$0xff] }
 0x316   : > { %5030 = vst.msk [vmem:[%s7834_s17 + $0x4c] sm:$0xf] %vm5010_vm1, %v5707_v13  ;;  %v4480_v35 = vadd.f32 %v7815_v46, %v4381_v15  ;;  %v4382_v32 = vmul.f32 %v7806_v49, %v4077_v17 }
 0x317   : > { %5028 = vst.msk [vmem:[%s7834_s17 + $0x44] sm:$0xf] %vm5010_vm1, %v5705_v1  ;;  %v4478_v63 = vadd.f32 %v7815_v46, %v4379_v4  ;;  %v4380_v58 = vmul.f32 %v7806_v49, %v4069_v62  ;;  %v8461_v4 = vld [vmem:[#allocation8_spill] sm:$0xff] }
 0x318   : > { %v4572_v5 = vmax.f32 %v4480_v35, 0.0  ;;  %v4481_v14 = vadd.f32 %v7815_v46, %v4382_v32 }
 0x319   : > { %v4570_v27 = vmax.f32 %v4478_v63, 0.0  ;;  %v4479_v28 = vadd.f32 %v7815_v46, %v4380_v58  ;;  %v5870_v39 = vpop.f32.mrb[208].mxu1  ;;  %v3808_v11 = vpop.f32.mrb[112].mxu0 }
 0x31a   : > { %v5710_v38 = vpack.c.bf16 %v4572_v5, %v4572_v5  ;;  %v4573_v26 = vmax.f32 %v4481_v14, 0.0  ;;  %v4090_v22 = vadd.f32 %v7688_v29, %v5870_v39  ;;  %v4081_v53 = vpop.f32.mrb[209].mxu1  ;;  %v7969_v0 = vadd.f32 %v3808_v11, %v8460_v8  ;;  %v3810_v59 = vpop.f32.mrb[113].mxu0 }
 0x31b   : > { %v5708_v41 = vpack.c.bf16 %v4570_v27, %v4570_v27  ;;  %v4571_v16 = vmax.f32 %v4479_v28, 0.0  ;;  %v4082_v36 = vadd.f32 %v7672_v48, %v4081_v53  ;;  %v5871_v33 = vpop.f32.mrb[210].mxu1  ;;  %v3811_v12 = vpop.f32.mrb[114].mxu0  ;;  %v8462_v53 = vld [vmem:[#allocation9_spill] sm:$0xff] }
 0x31c   : > { %5033 = vst.msk [vmem:[%s7834_s17 + $0x58] sm:$0xf] %vm5010_vm1, %v5710_v38  ;;  %v5711_v13 = vpack.c.bf16 %v4573_v26, %v4573_v26  ;;  %v4385_v15 = vmul.f32 %v7806_v49, %v4090_v22  ;;  %v4093_v29 = vadd.f32 %v7696_v50, %v5871_v33  ;;  %v4084_v17 = vpop.f32.mrb[211].mxu1  ;;  %v7980_v2 = vadd.f32 %v3811_v12, %v8461_v4  ;;  %v3813_v48 = vpop.f32.mrb[115].mxu0 }
 0x31d   : > { %5031 = vst.msk [vmem:[%s7834_s17 + $0x50] sm:$0xf] %vm5010_vm1, %v5708_v41  ;;  %v5709_v52 = vpack.c.bf16 %v4571_v16, %v4571_v16  ;;  %v4383_v1 = vmul.f32 %v7806_v49, %v4082_v36  ;;  %v4085_v21 = vadd.f32 %v7680_v9, %v4084_v17  ;;  %v8463_v17 = vld [vmem:[#allocation10_spill] sm:$0xff] }
 0x31e   : > { %5034 = vst.msk [vmem:[%s7834_s17 + $0x5c] sm:$0xf] %vm5010_vm1, %v5711_v13  ;;  %v4484_v62 = vadd.f32 %v7815_v46, %v4385_v15  ;;  %v4386_v35 = vmul.f32 %v7806_v49, %v4093_v29 }
 0x31f   : > { %5032 = vst.msk [vmem:[%s7834_s17 + $0x54] sm:$0xf] %vm5010_vm1, %v5709_v52  ;;  %v4482_v50 = vadd.f32 %v7815_v46, %v4383_v1  ;;  %v4384_v32 = vmul.f32 %v7806_v49, %v4085_v21 }
 0x320   : > { %v4576_v63 = vmax.f32 %v4484_v62, 0.0  ;;  %v4485_v58 = vadd.f32 %v7815_v46, %v4386_v35 }
 0x321   : > { %v4574_v5 = vmax.f32 %v4482_v50, 0.0  ;;  %v4483_v14 = vadd.f32 %v7815_v46, %v4384_v32  ;;  %v5874_v9 = vpop.f32.mrb[212].mxu1  ;;  %v3816_v39 = vpop.f32.mrb[116].mxu0 }
 0x322   : > { %v5714_v27 = vpack.c.bf16 %v4576_v63, %v4576_v63  ;;  %v4577_v28 = vmax.f32 %v4485_v58, 0.0  ;;  %v4106_v38 = vadd.f32 %v7720_v56, %v5874_v9  ;;  %v4097_v26 = vpop.f32.mrb[213].mxu1  ;;  %v7995_v41 = vadd.f32 %v3816_v39, %v8462_v53  ;;  %v3818_v16 = vpop.f32.mrb[117].mxu0  ;;  %v8464_v39 = vld [vmem:[#allocation11_spill] sm:$0xff] }
 0x323   : > { %v5712_v11 = vpack.c.bf16 %v4574_v5, %v4574_v5  ;;  %v4575_v22 = vmax.f32 %v4483_v14, 0.0  ;;  %v4098_v8 = vadd.f32 %v7704_v45, %v4097_v26  ;;  %v5875_v59 = vpop.f32.mrb[214].mxu1  ;;  %v3819_v13 = vpop.f32.mrb[118].mxu0 }
 0x324   : > { %5037 = vst.msk [vmem:[%s7834_s17 + $0x68] sm:$0xf] %vm5010_vm1, %v5714_v27  ;;  %v5715_v36 = vpack.c.bf16 %v4577_v28, %v4577_v28  ;;  %v4389_v33 = vmul.f32 %v7806_v49, %v4106_v38  ;;  %v4109_v56 = vadd.f32 %v7728_v3, %v5875_v59  ;;  %v4100_v15 = vpop.f32.mrb[215].mxu1  ;;  %v8006_v52 = vadd.f32 %v3819_v13, %v8463_v17  ;;  %v3821_v45 = vpop.f32.mrb[119].mxu0  ;;  %v8465_v13 = vld [vmem:[#allocation12_spill] sm:$0xff] }
 0x325   : > { %5035 = vst.msk [vmem:[%s7834_s17 + $0x60] sm:$0xf] %vm5010_vm1, %v5712_v11  ;;  %v5713_v12 = vpack.c.bf16 %v4575_v22, %v4575_v22  ;;  %v4387_v29 = vmul.f32 %v7806_v49, %v4098_v8  ;;  %v4101_v1 = vadd.f32 %v7712_v34, %v4100_v15  ;;  %v8466_v15 = vld [vmem:[#allocation34_spill] sm:$0xff] }
 0x326   : > { %5038 = vst.msk [vmem:[%s7834_s17 + $0x6c] sm:$0xf] %vm5010_vm1, %v5715_v36  ;;  %v4488_v4 = vadd.f32 %v7815_v46, %v4389_v33  ;;  %v4390_v48 = vmul.f32 %v7806_v49, %v4109_v56 }
 0x327   : > { %5036 = vst.msk [vmem:[%s7834_s17 + $0x64] sm:$0xf] %vm5010_vm1, %v5713_v12  ;;  %v4486_v3 = vadd.f32 %v7815_v46, %v4387_v29  ;;  %v4388_v21 = vmul.f32 %v7806_v49, %v4101_v1 }
 0x328   : > { %v4580_v62 = vmax.f32 %v4488_v4, 0.0  ;;  %v4489_v35 = vadd.f32 %v7815_v46, %v4390_v48 }
 0x329   : > { %v4578_v50 = vmax.f32 %v4486_v3, 0.0  ;;  %v4487_v32 = vadd.f32 %v7815_v46, %v4388_v21  ;;  %v5878_v34 = vpop.f32.mrb[216].mxu1  ;;  %v3824_v5 = vpop.f32.mrb[120].mxu0 }
 0x32a   : > { %v5718_v63 = vpack.c.bf16 %v4580_v62, %v4580_v62  ;;  %v4581_v58 = vmax.f32 %v4489_v35, 0.0  ;;  %v4122_v14 = vadd.f32 %v7752_v57, %v5878_v34  ;;  %v4113_v9 = vpop.f32.mrb[217].mxu1  ;;  %v8021_v38 = vadd.f32 %v3824_v5, %v8464_v39  ;;  %v3826_v26 = vpop.f32.mrb[121].mxu0  ;;  %v8467_v5 = vld [vmem:[#allocation13_spill] sm:$0xff] }
 0x32b   : > { %v5716_v27 = vpack.c.bf16 %v4578_v50, %v4578_v50  ;;  %v4579_v28 = vmax.f32 %v4487_v32, 0.0  ;;  %v4114_v11 = vadd.f32 %v7736_v25, %v4113_v9  ;;  %v5879_v22 = vpop.f32.mrb[218].mxu1  ;;  %v3827_v8 = vpop.f32.mrb[122].mxu0 }
 0x32c   : > { %5041 = vst.msk [vmem:[%s7834_s17 + $0x78] sm:$0xf] %vm5010_vm1, %v5718_v63  ;;  %v5719_v53 = vpack.c.bf16 %v4581_v58, %v4581_v58  ;;  %v4393_v16 = vmul.f32 %v7806_v49, %v4122_v14  ;;  %v4125_v57 = vadd.f32 %v7759_v24, %v5879_v22  ;;  %v4116_v59 = vpop.f32.mrb[219].mxu1  ;;  %v8032_v56 = vadd.f32 %v3827_v8, %v8465_v13  ;;  %v3829_v25 = vpop.f32.mrb[123].mxu0  ;;  %v8468_v8 = vld [vmem:[#allocation14_spill] sm:$0xff] }
 0x32d   : > { %5039 = vst.msk [vmem:[%s7834_s17 + $0x70] sm:$0xf] %vm5010_vm1, %v5716_v27  ;;  %v5717_v36 = vpack.c.bf16 %v4579_v28, %v4579_v28  ;;  %v4391_v33 = vmul.f32 %v7806_v49, %v4114_v11  ;;  %v4117_v12 = vadd.f32 %v8466_v15, %v4116_v59 }
 0x32e   : > { %5042 = vst.msk [vmem:[%s7834_s17 + $0x7c] sm:$0xf] %vm5010_vm1, %v5719_v53  ;;  %v4492_v29 = vadd.f32 %v7815_v46, %v4393_v16  ;;  %v4394_v17 = vmul.f32 %v7806_v49, %v4125_v57 }
 0x32f   : > { %5040 = vst.msk [vmem:[%s7834_s17 + $0x74] sm:$0xf] %vm5010_vm1, %v5717_v36  ;;  %v4490_v24 = vadd.f32 %v7815_v46, %v4391_v33  ;;  %v4392_v45 = vmul.f32 %v7806_v49, %v4117_v12 }
 0x330   : > { %v4584_v1 = vmax.f32 %v4492_v29, 0.0  ;;  %v4493_v4 = vadd.f32 %v7815_v46, %v4394_v17 }
 0x331   : > { %v4582_v48 = vmax.f32 %v4490_v24, 0.0  ;;  %v4491_v3 = vadd.f32 %v7815_v46, %v4392_v45  ;;  %v5882_v21 = vpop.f32.mrb[220].mxu1  ;;  %v3832_v50 = vpop.f32.mrb[124].mxu0 }
 0x332   : > { %v5722_v62 = vpack.c.bf16 %v4584_v1, %v4584_v1  ;;  %v4585_v35 = vmax.f32 %v4493_v4, 0.0  ;;  %v4138_v32 = vadd.f32 %v7776_v55, %v5882_v21  ;;  %v4129_v34 = vpop.f32.mrb[221].mxu1  ;;  %v8047_v14 = vadd.f32 %v3832_v50, %v8467_v5  ;;  %v3834_v9 = vpop.f32.mrb[125].mxu0  ;;  %v8469_v21 = vld [vmem:[#allocation15_spill] sm:$0xff] }
 0x333   : > { %v5720_v63 = vpack.c.bf16 %v4582_v48, %v4582_v48  ;;  %v4583_v58 = vmax.f32 %v4491_v3, 0.0  ;;  %v4130_v27 = vadd.f32 %v7765_v30, %v4129_v34  ;;  %v5883_v28 = vpop.f32.mrb[222].mxu1  ;;  %v3835_v11 = vpop.f32.mrb[126].mxu0 }
 0x334   : > { %5045 = vst.msk [vmem:[%s7834_s17 + $0x88] sm:$0xf] %vm5010_vm1, %v5722_v62  ;;  %v5723_v39 = vpack.c.bf16 %v4585_v35, %v4585_v35  ;;  %v4397_v26 = vmul.f32 %v7806_v49, %v4138_v32  ;;  %v4141_v55 = vadd.f32 %v7781_v51, %v5883_v28  ;;  %v4132_v22 = vpop.f32.mrb[223].mxu1  ;;  %v8058_v57 = vadd.f32 %v3835_v11, %v8468_v8  ;;  %v3837_v30 = vpop.f32.mrb[127].mxu0  ;;  %v8470_v28 = vld [vmem:[#allocation16_spill] sm:$0xff] }
 0x335   : > { %5043 = vst.msk [vmem:[%s7834_s17 + $0x80] sm:$0xf] %vm5010_vm1, %v5720_v63  ;;  %v5721_v53 = vpack.c.bf16 %v4583_v58, %v4583_v58  ;;  %v4395_v16 = vmul.f32 %v7806_v49, %v4130_v27  ;;  %v4133_v59 = vadd.f32 %v7771_v23, %v4132_v22 }
 0x336   : > { %5046 = vst.msk [vmem:[%s7834_s17 + $0x8c] sm:$0xf] %vm5010_vm1, %v5723_v39  ;;  %v4496_v36 = vadd.f32 %v7815_v46, %v4397_v26  ;;  %v4398_v33 = vmul.f32 %v7806_v49, %v4141_v55 }
 0x337   : > { %5044 = vst.msk [vmem:[%s7834_s17 + $0x84] sm:$0xf] %vm5010_vm1, %v5721_v53  ;;  %v4494_v51 = vadd.f32 %v7815_v46, %v4395_v16  ;;  %v4396_v13 = vmul.f32 %v7806_v49, %v4133_v59 }
 0x338   : > { %v4588_v25 = vmax.f32 %v4496_v36, 0.0  ;;  %v4497_v15 = vadd.f32 %v7815_v46, %v4398_v33 }
 0x339   : > { %v4586_v12 = vmax.f32 %v4494_v51, 0.0  ;;  %v4495_v29 = vadd.f32 %v7815_v46, %v4396_v13  ;;  %v5886_v23 = vpop.f32.mrb[224].mxu1  ;;  %v3840_v45 = vpop.f32.mrb[128].mxu0 }
 0x33a   : > { %v5726_v17 = vpack.c.bf16 %v4588_v25, %v4588_v25  ;;  %v4589_v24 = vmax.f32 %v4497_v15, 0.0  ;;  %v4154_v1 = vadd.f32 %v7796_v40, %v5886_v23  ;;  %v4145_v4 = vpop.f32.mrb[225].mxu1  ;;  %v8073_v62 = vadd.f32 %v3840_v45, %v8469_v21  ;;  %v3842_v35 = vpop.f32.mrb[129].mxu0 }
 0x33b   : > { %v5724_v48 = vpack.c.bf16 %v4586_v12, %v4586_v12  ;;  %v4587_v3 = vmax.f32 %v4495_v29, 0.0  ;;  %v4146_v50 = vadd.f32 %v7786_v37, %v4145_v4  ;;  %v5887_v32 = vpop.f32.mrb[226].mxu1  ;;  %v3843_v58 = vpop.f32.mrb[130].mxu0  ;;  %v8471_v12 = vld [vmem:[#allocation17_spill] sm:$0xff]  ;;  %v8472_v35 = vld [vmem:[#allocation18_spill] sm:$0xff] }
 0x33c   : > { %5049 = vst.msk [vmem:[%s7834_s17 + $0x98] sm:$0xf] %vm5010_vm1, %v5726_v17  ;;  %v5727_v34 = vpack.c.bf16 %v4589_v24, %v4589_v24  ;;  %v4401_v63 = vmul.f32 %v7806_v49, %v4154_v1  ;;  %v4157_v40 = vadd.f32 %v7801_v7, %v5887_v32  ;;  %v4148_v5 = vpop.f32.mrb[227].mxu1  ;;  %v8084_v39 = vadd.f32 %v3843_v58, %v8470_v28  ;;  %v3845_v37 = vpop.f32.mrb[131].mxu0 }
 0x33d   : > { %5047 = vst.msk [vmem:[%s7834_s17 + $0x90] sm:$0xf] %vm5010_vm1, %v5724_v48  ;;  %v5725_v9 = vpack.c.bf16 %v4587_v3, %v4587_v3  ;;  %v4399_v27 = vmul.f32 %v7806_v49, %v4146_v50  ;;  %v4149_v26 = vadd.f32 %v7791_v31, %v4148_v5 }
 0x33e   : > { %5050 = vst.msk [vmem:[%s7834_s17 + $0x9c] sm:$0xf] %vm5010_vm1, %v5727_v34  ;;  %v4500_v11 = vadd.f32 %v7815_v46, %v4401_v63  ;;  %v4402_v55 = vmul.f32 %v7806_v49, %v4157_v40 }
 0x33f   : > { %5048 = vst.msk [vmem:[%s7834_s17 + $0x94] sm:$0xf] %vm5010_vm1, %v5725_v9  ;;  %v4498_v7 = vadd.f32 %v7815_v46, %v4399_v27  ;;  %v4400_v22 = vmul.f32 %v7806_v49, %v4149_v26 }
 0x340   : > { %v4592_v53 = vmax.f32 %v4500_v11, 0.0  ;;  %v4501_v16 = vadd.f32 %v7815_v46, %v4402_v55 }
 0x341   : > { %v4590_v8 = vmax.f32 %v4498_v7, 0.0  ;;  %v4499_v30 = vadd.f32 %v7815_v46, %v4400_v22  ;;  %v5890_v31 = vpop.f32.mrb[228].mxu1  ;;  %v3848_v33 = vpop.f32.mrb[132].mxu0 }
 0x342   : > { %v5730_v59 = vpack.c.bf16 %v4592_v53, %v4592_v53  ;;  %v4593_v36 = vmax.f32 %v4501_v16, 0.0  ;;  %v4170_v51 = vadd.f32 %v7839_v60, %v5890_v31  ;;  %v4161_v13 = vpop.f32.mrb[229].mxu1  ;;  %v8099_v29 = vadd.f32 %v3848_v33, %v8471_v12  ;;  %v3850_v23 = vpop.f32.mrb[133].mxu0  ;;  %v8473_v53 = vld [vmem:[#allocation19_spill] sm:$0xff] }
 0x343   : > { %v5728_v25 = vpack.c.bf16 %v4590_v8, %v4590_v8  ;;  %v4591_v15 = vmax.f32 %v4499_v30, 0.0  ;;  %v4162_v17 = vadd.f32 %v7810_v43, %v4161_v13  ;;  %v5891_v24 = vpop.f32.mrb[230].mxu1  ;;  %v3851_v4 = vpop.f32.mrb[134].mxu0 }
 0x344   : > { %5053 = vst.msk [vmem:[%s7834_s17 + $0xa8] sm:$0xf] %vm5010_vm1, %v5730_v59  ;;  %v5731_v45 = vpack.c.bf16 %v4593_v36, %v4593_v36  ;;  %v4405_v1 = vmul.f32 %v7806_v49, %v4170_v51  ;;  %v4173_v60 = vadd.f32 %v7850_v54, %v5891_v24  ;;  %v4164_v48 = vpop.f32.mrb[231].mxu1  ;;  %v8110_v50 = vadd.f32 %v3851_v4, %v8472_v35  ;;  %v3853_v43 = vpop.f32.mrb[135].mxu0 }
 0x345   : > { %5051 = vst.msk [vmem:[%s7834_s17 + $0xa0] sm:$0xf] %vm5010_vm1, %v5728_v25  ;;  %v5729_v3 = vpack.c.bf16 %v4591_v15, %v4591_v15  ;;  %v4403_v21 = vmul.f32 %v7806_v49, %v4162_v17  ;;  %v4165_v32 = vadd.f32 %v7823_v61, %v4164_v48  ;;  %v8474_v15 = vld [vmem:[#allocation20_spill] sm:$0xff] }
 0x346   : > { %5054 = vst.msk [vmem:[%s7834_s17 + $0xac] sm:$0xf] %vm5010_vm1, %v5731_v45  ;;  %v4504_v34 = vadd.f32 %v7815_v46, %v4405_v1  ;;  %v4406_v63 = vmul.f32 %v7806_v49, %v4173_v60 }
 0x347   : > { %5052 = vst.msk [vmem:[%s7834_s17 + $0xa4] sm:$0xf] %vm5010_vm1, %v5729_v3  ;;  %v4502_v54 = vadd.f32 %v7815_v46, %v4403_v21  ;;  %v4404_v58 = vmul.f32 %v7806_v49, %v4165_v32 }
 0x348   : > { %v4596_v40 = vmax.f32 %v4504_v34, 0.0  ;;  %v4505_v5 = vadd.f32 %v7815_v46, %v4406_v63 }
 0x349   : > { %v4594_v9 = vmax.f32 %v4502_v54, 0.0  ;;  %v4503_v27 = vadd.f32 %v7815_v46, %v4404_v58  ;;  %v5894_v61 = vpop.f32.mrb[232].mxu1  ;;  %v3856_v26 = vpop.f32.mrb[136].mxu0  ;;  %v8475_v54 = vld [vmem:[#allocation22_spill] sm:$0xff] }
 0x34a   : > { %v5734_v28 = vpack.c.bf16 %v4596_v40, %v4596_v40  ;;  %v4597_v37 = vmax.f32 %v4505_v5, 0.0  ;;  %v4186_v11 = vadd.f32 %v7891_v6, %v5894_v61  ;;  %v4177_v55 = vpop.f32.mrb[233].mxu1  ;;  %v8125_v16 = vadd.f32 %v3856_v26, %v8473_v53  ;;  %v3858_v8 = vpop.f32.mrb[137].mxu0 }
 0x34b   : > { %v5732_v7 = vpack.c.bf16 %v4594_v9, %v4594_v9  ;;  %v4595_v22 = vmax.f32 %v4503_v27, 0.0  ;;  %v4178_v30 = vadd.f32 %v7865_v19, %v4177_v55  ;;  %v5895_v31 = vpop.f32.mrb[234].mxu1  ;;  %v3859_v33 = vpop.f32.mrb[138].mxu0  ;;  %v8476_v55 = vld [vmem:[#allocation23_spill] sm:$0xff] }
 0x34c   : > { %5057 = vst.msk [vmem:[%s7834_s17 + $0xb8] sm:$0xf] %vm5010_vm1, %v5734_v28  ;;  %v5735_v59 = vpack.c.bf16 %v4597_v37, %v4597_v37  ;;  %v4409_v36 = vmul.f32 %v7806_v49, %v4186_v11  ;;  %v4189_v6 = vadd.f32 %v7902_v20, %v5895_v31  ;;  %v4180_v51 = vpop.f32.mrb[235].mxu1  ;;  %v8136_v12 = vadd.f32 %v3859_v33, %v8474_v15  ;;  %v3861_v19 = vpop.f32.mrb[139].mxu0 }
 0x34d   : > { %5055 = vst.msk [vmem:[%s7834_s17 + $0xb0] sm:$0xf] %vm5010_vm1, %v5732_v7  ;;  %v5733_v13 = vpack.c.bf16 %v4595_v22, %v4595_v22  ;;  %v4407_v25 = vmul.f32 %v7806_v49, %v4178_v30  ;;  %v4181_v23 = vadd.f32 %v7876_v10, %v4180_v51 }
 0x34e   : > { %5058 = vst.msk [vmem:[%s7834_s17 + $0xbc] sm:$0xf] %vm5010_vm1, %v5735_v59  ;;  %v4508_v17 = vadd.f32 %v7815_v46, %v4409_v36  ;;  %v4410_v24 = vmul.f32 %v7806_v49, %v4189_v6 }
 0x34f   : > { %5056 = vst.msk [vmem:[%s7834_s17 + $0xb4] sm:$0xf] %vm5010_vm1, %v5733_v13  ;;  %v4506_v20 = vadd.f32 %v7815_v46, %v4407_v25  ;;  %v4408_v45 = vmul.f32 %v7806_v49, %v4181_v23 }
 0x350   : > { %v4600_v1 = vmax.f32 %v4508_v17, 0.0  ;;  %v4509_v4 = vadd.f32 %v7815_v46, %v4410_v24  ;;  %v8477_v17 = vld [vmem:[#allocation24_spill] sm:$0xff] }
 0x351   : > { %v4598_v60 = vmax.f32 %v4506_v20, 0.0  ;;  %v4507_v48 = vadd.f32 %v7815_v46, %v4408_v45  ;;  %v5898_v10 = vpop.f32.mrb[236].mxu1  ;;  %v3864_v35 = vpop.f32.mrb[140].mxu0 }
 0x352   : > { %v5738_v3 = vpack.c.bf16 %v4600_v1, %v4600_v1  ;;  %v4601_v21 = vmax.f32 %v4509_v4, 0.0  ;;  %v4202_v43 = vadd.f32 %v7943_v47, %v5898_v10  ;;  %v4193_v32 = vpop.f32.mrb[237].mxu1  ;;  %v8151_v58 = vadd.f32 %v3864_v35, %v8475_v54  ;;  %v3866_v40 = vpop.f32.mrb[141].mxu0  ;;  %v8478_v35 = vld [vmem:[#allocation25_spill] sm:$0xff] }
 0x353   : > { %v5736_v34 = vpack.c.bf16 %v4598_v60, %v4598_v60  ;;  %v4599_v63 = vmax.f32 %v4507_v48, 0.0  ;;  %v4194_v5 = vadd.f32 %v7917_v44, %v4193_v32  ;;  %v5899_v9 = vpop.f32.mrb[238].mxu1  ;;  %v3867_v28 = vpop.f32.mrb[142].mxu0 }
 0x354   : > { %5061 = vst.msk [vmem:[%s7834_s17 + $0xc8] sm:$0xf] %vm5010_vm1, %v5738_v3  ;;  %v5739_v27 = vpack.c.bf16 %v4601_v21, %v4601_v21  ;;  %v4413_v61 = vmul.f32 %v7806_v49, %v4202_v43  ;;  %v4205_v47 = vadd.f32 %v7954_v42, %v5899_v9  ;;  %v4196_v37 = vpop.f32.mrb[239].mxu1  ;;  %v8162_v7 = vadd.f32 %v3867_v28, %v8476_v55  ;;  %v3869_v44 = vpop.f32.mrb[143].mxu0 }
 0x355   : > { %5059 = vst.msk [vmem:[%s7834_s17 + $0xc0] sm:$0xf] %vm5010_vm1, %v5736_v34  ;;  %v5737_v26 = vpack.c.bf16 %v4599_v63, %v4599_v63  ;;  %v4411_v11 = vmul.f32 %v7806_v49, %v4194_v5  ;;  %v4197_v22 = vadd.f32 %v7928_v18, %v4196_v37  ;;  %v8479_v44 = vld [vmem:[#allocation26_spill] sm:$0xff] }
 0x356   : > { %5062 = vst.msk [vmem:[%s7834_s17 + $0xcc] sm:$0xf] %vm5010_vm1, %v5739_v27  ;;  %v4512_v53 = vadd.f32 %v7815_v46, %v4413_v61  ;;  %v4414_v8 = vmul.f32 %v7806_v49, %v4205_v47 }
 0x357   : > { %5060 = vst.msk [vmem:[%s7834_s17 + $0xc4] sm:$0xf] %vm5010_vm1, %v5737_v26  ;;  %v4510_v42 = vadd.f32 %v7815_v46, %v4411_v11  ;;  %v4412_v30 = vmul.f32 %v7806_v49, %v4197_v22 }
 0x358   : > { %v4604_v31 = vmax.f32 %v4512_v53, 0.0  ;;  %v4513_v59 = vadd.f32 %v7815_v46, %v4414_v8 }
 0x359   : > { %v4602_v36 = vmax.f32 %v4510_v42, 0.0  ;;  %v4511_v33 = vadd.f32 %v7815_v46, %v4412_v30  ;;  %v5902_v18 = vpop.f32.mrb[240].mxu1  ;;  %v3872_v13 = vpop.f32.mrb[144].mxu0  ;;  %v8211_v42 = vld [vmem:[%s8408_s2] ss:$0 sm:$0xff] }
 0x35a   : > { %v5742_v6 = vpack.c.bf16 %v4604_v31, %v4604_v31  ;;  %v4605_v51 = vmax.f32 %v4513_v59, 0.0  ;;  %v4218_v25 = vadd.f32 %v7995_v41, %v5902_v18  ;;  %v4209_v15 = vpop.f32.mrb[241].mxu1  ;;  %v8177_v24 = vadd.f32 %v3872_v13, %v8477_v17  ;;  %v3874_v20 = vpop.f32.mrb[145].mxu0  ;;  %v8227_v13 = vld [vmem:[%s8409_s3] ss:$0 sm:$0xff] }
 0x35b   : > { %v5740_v19 = vpack.c.bf16 %v4602_v36, %v4602_v36  ;;  %v4603_v23 = vmax.f32 %v4511_v33, 0.0  ;;  %v4210_v45 = vadd.f32 %v7969_v0, %v4209_v15  ;;  %v5903_v1 = vpop.f32.mrb[242].mxu1  ;;  %v3875_v48 = vpop.f32.mrb[146].mxu0  ;;  %v8480_v33 = vld [vmem:[#allocation27_spill] sm:$0xff] }
 0x35c   : > { %5065 = vst.msk [vmem:[%s7834_s17 + $0xd8] sm:$0xf] %vm5010_vm1, %v5742_v6  ;;  %v5743_v4 = vpack.c.bf16 %v4605_v51, %v4605_v51  ;;  %v4417_v60 = vmul.f32 %v7806_v49, %v4218_v25  ;;  %v4221_v41 = vadd.f32 %v8006_v52, %v5903_v1  ;;  %v4212_v10 = vpop.f32.mrb[243].mxu1  ;;  %v8188_v43 = vadd.f32 %v3875_v48, %v8478_v35  ;;  %v3877_v0 = vpop.f32.mrb[147].mxu0 }
 0x35d   : > { %5063 = vst.msk [vmem:[%s7834_s17 + $0xd0] sm:$0xf] %vm5010_vm1, %v5740_v19  ;;  %v5741_v3 = vpack.c.bf16 %v4603_v23, %v4603_v23  ;;  %v4415_v21 = vmul.f32 %v7806_v49, %v4210_v45  ;;  %v4213_v32 = vadd.f32 %v7980_v2, %v4212_v10 }
 0x35e   : > { %5066 = vst.msk [vmem:[%s7834_s17 + $0xdc] sm:$0xf] %vm5010_vm1, %v5743_v4  ;;  %v4516_v34 = vadd.f32 %v7815_v46, %v4417_v60  ;;  %v4418_v63 = vmul.f32 %v7806_v49, %v4221_v41 }
 0x35f   : > { %5064 = vst.msk [vmem:[%s7834_s17 + $0xd4] sm:$0xf] %vm5010_vm1, %v5741_v3  ;;  %v4514_v52 = vadd.f32 %v7815_v46, %v4415_v21  ;;  %v4416_v54 = vmul.f32 %v7806_v49, %v4213_v32  ;;  %v8481_v21 = vld [vmem:[#allocation28_spill] sm:$0xff] }
 0x360   : > { %v4608_v40 = vmax.f32 %v4516_v34, 0.0  ;;  %v4517_v5 = vadd.f32 %v7815_v46, %v4418_v63 }
 0x361   : > { %v4606_v9 = vmax.f32 %v4514_v52, 0.0  ;;  %v4515_v27 = vadd.f32 %v7815_v46, %v4416_v54  ;;  %v5906_v2 = vpop.f32.mrb[244].mxu1  ;;  %v3880_v47 = vpop.f32.mrb[148].mxu0 }
 0x362   : > { %v5746_v61 = vpack.c.bf16 %v4608_v40, %v4608_v40  ;;  %v4609_v28 = vmax.f32 %v4517_v5, 0.0  ;;  %v4234_v37 = vadd.f32 %v8047_v14, %v5906_v2  ;;  %v4225_v26 = vpop.f32.mrb[245].mxu1  ;;  %v8203_v22 = vadd.f32 %v3880_v47, %v8479_v44  ;;  %v3882_v49 = vpop.f32.mrb[149].mxu0 }
 0x363   : > { %v5744_v11 = vpack.c.bf16 %v4606_v9, %v4606_v9  ;;  %v4607_v55 = vmax.f32 %v4515_v27, 0.0  ;;  %v4226_v53 = vadd.f32 %v8021_v38, %v4225_v26  ;;  %v5907_v8 = vpop.f32.mrb[246].mxu1  ;;  %v3883_v30 = vpop.f32.mrb[150].mxu0  ;;  %v8482_v27 = vld [vmem:[#allocation29_spill] sm:$0xff] }
 0x364   : > { %5069 = vst.msk [vmem:[%s7834_s17 + $0xe8] sm:$0xf] %vm5010_vm1, %v5746_v61  ;;  %v5747_v46 = vpack.c.bf16 %v4609_v28, %v4609_v28  ;;  %v4421_v14 = vmul.f32 %v8211_v42, %v4234_v37  ;;  %v4237_v31 = vadd.f32 %v8058_v57, %v5907_v8  ;;  %v4228_v59 = vpop.f32.mrb[247].mxu1  ;;  %v8219_v18 = vadd.f32 %v3883_v30, %v8480_v33  ;;  %v3885_v6 = vpop.f32.mrb[151].mxu0 }
 0x365   : > { %5067 = vst.msk [vmem:[%s7834_s17 + $0xe0] sm:$0xf] %vm5010_vm1, %v5744_v11  ;;  %v5745_v36 = vpack.c.bf16 %v4607_v55, %v4607_v55  ;;  %v4419_v38 = vmul.f32 %v8211_v42, %v4226_v53  ;;  %v4229_v51 = vadd.f32 %v8032_v56, %v4228_v59  ;;  %v8483_v59 = vld [vmem:[#allocation30_spill] sm:$0xff] }
 0x366   : > { %5070 = vst.msk [vmem:[%s7834_s17 + $0xec] sm:$0xf] %vm5010_vm1, %v5747_v46  ;;  %v4520_v57 = vadd.f32 %v8227_v13, %v4421_v14  ;;  %v4422_v25 = vmul.f32 %v8211_v42, %v4237_v31 }
 0x367   : > { %5068 = vst.msk [vmem:[%s7834_s17 + $0xe4] sm:$0xf] %vm5010_vm1, %v5745_v36  ;;  %v4518_v15 = vadd.f32 %v8227_v13, %v4419_v38  ;;  %v4420_v19 = vmul.f32 %v8211_v42, %v4229_v51 }
 0x368   : > { %v4612_v23 = vmax.f32 %v4520_v57, 0.0  ;;  %v4521_v56 = vadd.f32 %v8227_v13, %v4422_v25 }
 0x369   : > { %v4610_v17 = vmax.f32 %v4518_v15, 0.0  ;;  %v4519_v20 = vadd.f32 %v8227_v13, %v4420_v19  ;;  %v5910_v45 = vpop.f32.mrb[248].mxu1  ;;  %v3888_v60 = vpop.f32.mrb[152].mxu0 }
 0x36a   : > { %v5750_v1 = vpack.c.bf16 %v4612_v23, %v4612_v23  ;;  %v4613_v4 = vmax.f32 %v4521_v56, 0.0  ;;  %v4250_v48 = vadd.f32 %v8099_v29, %v5910_v45  ;;  %v4241_v41 = vpop.f32.mrb[249].mxu1  ;;  %v8239_v35 = vadd.f32 %v3888_v60, %v8481_v21  ;;  %v3890_v0 = vpop.f32.mrb[153].mxu0  ;;  %v8484_v56 = vld [vmem:[#allocation31_spill] sm:$0xff] }
 0x36b   : > { %v5748_v10 = vpack.c.bf16 %v4610_v17, %v4610_v17  ;;  %v4611_v3 = vmax.f32 %v4519_v20, 0.0  ;;  %v4242_v32 = vadd.f32 %v8073_v62, %v4241_v41  ;;  %v5911_v34 = vpop.f32.mrb[250].mxu1  ;;  %v3891_v54 = vpop.f32.mrb[154].mxu0 }
 0x36c   : > { %5073 = vst.msk [vmem:[%s7834_s17 + $0xf8] sm:$0xf] %vm5010_vm1, %v5750_v1  ;;  %v5751_v63 = vpack.c.bf16 %v4613_v4, %v4613_v4  ;;  %v4425_v52 = vmul.f32 %v8211_v42, %v4250_v48  ;;  %v4253_v29 = vadd.f32 %v8110_v50, %v5911_v34  ;;  %v4244_v40 = vpop.f32.mrb[251].mxu1  ;;  %v8250_v2 = vadd.f32 %v3891_v54, %v8482_v27  ;;  %v3893_v62 = vpop.f32.mrb[155].mxu0  ;;  %v8485_v54 = vld [vmem:[#allocation32_spill] sm:$0xff] }
 0x36d   : > { %5071 = vst.msk [vmem:[%s7834_s17 + $0xf0] sm:$0xf] %vm5010_vm1, %v5748_v10  ;;  %v5749_v5 = vpack.c.bf16 %v4611_v3, %v4611_v3  ;;  %v4423_v9 = vmul.f32 %v8211_v42, %v4242_v32  ;;  %v4245_v61 = vadd.f32 %v8084_v39, %v4244_v40 }
 0x36e   : > { %5074 = vst.msk [vmem:[%s7834_s17 + $0xfc] sm:$0xf] %vm5010_vm1, %v5751_v63  ;;  %v4524_v28 = vadd.f32 %v8227_v13, %v4425_v52  ;;  %v4426_v47 = vmul.f32 %v8211_v42, %v4253_v29 }
 0x36f   : > { %5072 = vst.msk [vmem:[%s7834_s17 + $0xf4] sm:$0xf] %vm5010_vm1, %v5749_v5  ;;  %v4522_v50 = vadd.f32 %v8227_v13, %v4423_v9  ;;  %v4424_v37 = vmul.f32 %v8211_v42, %v4245_v61 }
 0x370   : > { %v4616_v26 = vmax.f32 %v4524_v28, 0.0  ;;  %v4525_v11 = vadd.f32 %v8227_v13, %v4426_v47 }
 0x371   : > { %v4614_v55 = vmax.f32 %v4522_v50, 0.0  ;;  %v4523_v44 = vadd.f32 %v8227_v13, %v4424_v37  ;;  %v5914_v39 = vpop.f32.mrb[252].mxu1  ;;  %v3896_v8 = vpop.f32.mrb[156].mxu0  ;;  %v8486_v37 = vld [vmem:[#allocation33_spill] sm:$0xff] }
 0x372   : > { %v5754_v49 = vpack.c.bf16 %v4616_v26, %v4616_v26  ;;  %v4617_v53 = vmax.f32 %v4525_v11, 0.0  ;;  %v4266_v46 = vadd.f32 %v8151_v58, %v5914_v39  ;;  %v4257_v14 = vpop.f32.mrb[253].mxu1  ;;  %v8265_v36 = vadd.f32 %v3896_v8, %v8483_v59  ;;  %v3898_v38 = vpop.f32.mrb[157].mxu0 }
 0x373   : > { %v5752_v30 = vpack.c.bf16 %v4614_v55, %v4614_v55  ;;  %v4615_v31 = vmax.f32 %v4523_v44, 0.0  ;;  %v4258_v33 = vadd.f32 %v8125_v16, %v4257_v14  ;;  %v5915_v6 = vpop.f32.mrb[254].mxu1  ;;  %v3899_v25 = vpop.f32.mrb[158].mxu0 }
 0x374   : > { %5077 = vst.msk [vmem:[%s7834_s17 + $0x108] sm:$0xf] %vm5010_vm1, %v5754_v49  ;;  %v5755_v51 = vpack.c.bf16 %v4617_v53, %v4617_v53  ;;  %v4429_v57 = vmul.f32 %v8211_v42, %v4266_v46  ;;  %v4269_v58 = vadd.f32 %v8162_v7, %v5915_v6  ;;  %v4260_v15 = vpop.f32.mrb[255].mxu1  ;;  %v8276_v17 = vadd.f32 %v3899_v25, %v8484_v56  ;;  %v3901_v16 = vpop.f32.mrb[159].mxu0 }
 0x375   : > { %5075 = vst.msk [vmem:[%s7834_s17 + $0x100] sm:$0xf] %vm5010_vm1, %v5752_v30  ;;  %v5753_v19 = vpack.c.bf16 %v4615_v31, %v4615_v31  ;;  %v4427_v23 = vmul.f32 %v8211_v42, %v4258_v33  ;;  %v4261_v20 = vadd.f32 %v8136_v12, %v4260_v15 }
 0x376   : > { %5078 = vst.msk [vmem:[%s7834_s17 + $0x10c] sm:$0xf] %vm5010_vm1, %v5755_v51  ;;  %v4528_v45 = vadd.f32 %v8227_v13, %v4429_v57  ;;  %v4430_v1 = vmul.f32 %v8211_v42, %v4269_v58  ;;  %v8487_v51 = vld [vmem:[#allocation35_spill] sm:$0xff] }
 0x377   : > { %5076 = vst.msk [vmem:[%s7834_s17 + $0x104] sm:$0xf] %vm5010_vm1, %v5753_v19  ;;  %v4526_v7 = vadd.f32 %v8227_v13, %v4427_v23  ;;  %v4428_v4 = vmul.f32 %v8211_v42, %v4261_v20 }
 0x378   : > { %v4620_v60 = vmax.f32 %v4528_v45, 0.0  ;;  %v4529_v48 = vadd.f32 %v8227_v13, %v4430_v1  ;;  %v8488_v1 = vld [vmem:[#allocation36_spill] sm:$0xff] }
 0x379   : > { %v4618_v41 = vmax.f32 %v4526_v7, 0.0  ;;  %v4527_v10 = vadd.f32 %v8227_v13, %v4428_v4  ;;  %v5918_v12 = vpop.f32.mrb[0].mxu1  ;;  %v3904_v0 = vpop.f32.mrb[160].mxu0 }
 0x37a   : > { %v5758_v3 = vpack.c.bf16 %v4620_v60, %v4620_v60  ;;  %v4621_v21 = vmax.f32 %v4529_v48, 0.0  ;;  %v4282_v32 = vadd.f32 %v8203_v22, %v5918_v12  ;;  %v4273_v34 = vpop.f32.mrb[1].mxu1  ;;  %v8291_v29 = vadd.f32 %v3904_v0, %v8485_v54  ;;  %v3906_v40 = vpop.f32.mrb[161].mxu0 }
 0x37b   : > { %v5756_v63 = vpack.c.bf16 %v4618_v41, %v4618_v41  ;;  %v4619_v52 = vmax.f32 %v4527_v10, 0.0  ;;  %v4274_v5 = vadd.f32 %v8177_v24, %v4273_v34  ;;  %v5919_v9 = vpop.f32.mrb[2].mxu1  ;;  %v3907_v61 = vpop.f32.mrb[162].mxu0 }
 0x37c   : > { %5081 = vst.msk [vmem:[%s7834_s17 + $0x118] sm:$0xf] %vm5010_vm1, %v5758_v3  ;;  %v5759_v27 = vpack.c.bf16 %v4621_v21, %v4621_v21  ;;  %v4433_v62 = vmul.f32 %v8211_v42, %v4282_v32  ;;  %v4285_v22 = vadd.f32 %v8219_v18, %v5919_v9  ;;  %v4276_v28 = vpop.f32.mrb[3].mxu1  ;;  %v8302_v26 = vadd.f32 %v3907_v61, %v8486_v37  ;;  %v3909_v24 = vpop.f32.mrb[163].mxu0 }
 0x37d   : > { %5079 = vst.msk [vmem:[%s7834_s17 + $0x110] sm:$0xf] %vm5010_vm1, %v5756_v63  ;;  %v5757_v47 = vpack.c.bf16 %v4619_v52, %v4619_v52  ;;  %v4431_v50 = vmul.f32 %v8211_v42, %v4274_v5  ;;  %v4277_v11 = vadd.f32 %v8188_v43, %v4276_v28  ;;  %v8489_v5 = vld [vmem:[#allocation37_spill] sm:$0xff] }
 0x37e   : > { %5082 = vst.msk [vmem:[%s7834_s17 + $0x11c] sm:$0xf] %vm5010_vm1, %v5759_v27  ;;  %v4532_v55 = vadd.f32 %v8227_v13, %v4433_v62  ;;  %v4434_v44 = vmul.f32 %v8211_v42, %v4285_v22 }
 0x37f   : > { %5080 = vst.msk [vmem:[%s7834_s17 + $0x114] sm:$0xf] %vm5010_vm1, %v5757_v47  ;;  %v4530_v18 = vadd.f32 %v8227_v13, %v4431_v50  ;;  %v4432_v39 = vmul.f32 %v8211_v42, %v4277_v11 }
 0x380   : > { %v4624_v49 = vmax.f32 %v4532_v55, 0.0  ;;  %v4533_v53 = vadd.f32 %v8227_v13, %v4434_v44  ;;  %v8490_v55 = vld [vmem:[#allocation38_spill] sm:$0xff] }
 0x381   : > { %v4622_v8 = vmax.f32 %v4530_v18, 0.0  ;;  %v4531_v46 = vadd.f32 %v8227_v13, %v4432_v39  ;;  %v5922_v43 = vpop.f32.mrb[4].mxu1  ;;  %v3912_v31 = vpop.f32.mrb[164].mxu0 }
 0x382   : > { %v5762_v14 = vpack.c.bf16 %v4624_v49, %v4624_v49  ;;  %v4625_v30 = vmax.f32 %v4533_v53, 0.0  ;;  %v4298_v59 = vadd.f32 %v8265_v36, %v5922_v43  ;;  %v4289_v38 = vpop.f32.mrb[5].mxu1  ;;  %v6050_v57 = vadd.f32 %v3912_v31, %v8487_v51  ;;  %v3914_v25 = vpop.f32.mrb[165].mxu0 }
 0x383   : > { %v5760_v33 = vpack.c.bf16 %v4622_v8, %v4622_v8  ;;  %v4623_v6 = vmax.f32 %v4531_v46, 0.0  ;;  %v4290_v58 = vadd.f32 %v8239_v35, %v4289_v38  ;;  %v5923_v15 = vpop.f32.mrb[6].mxu1  ;;  %v3915_v56 = vpop.f32.mrb[166].mxu0 }
 0x384   : > { %5085 = vst.msk [vmem:[%s7834_s17 + $0x128] sm:$0xf] %vm5010_vm1, %v5762_v14  ;;  %v5763_v19 = vpack.c.bf16 %v4625_v30, %v4625_v30  ;;  %v4437_v23 = vmul.f32 %v8211_v42, %v4298_v59  ;;  %v4301_v16 = vadd.f32 %v8276_v17, %v5923_v15  ;;  %v4292_v36 = vpop.f32.mrb[7].mxu1  ;;  %v6051_v7 = vadd.f32 %v3915_v56, %v8488_v1  ;;  %v3917_v4 = vpop.f32.mrb[167].mxu0  ;;  %v8492_v1 = vld [vmem:[#allocation40_spill] sm:$0xff] }
 0x385   : > { %5083 = vst.msk [vmem:[%s7834_s17 + $0x120] sm:$0xf] %vm5010_vm1, %v5760_v33  ;;  %v5761_v20 = vpack.c.bf16 %v4623_v6, %v4623_v6  ;;  %v4435_v45 = vmul.f32 %v8211_v42, %v4290_v58  ;;  %v4293_v35 = vadd.f32 %v8250_v2, %v4292_v36 }
 0x386   : > { %5086 = vst.msk [vmem:[%s7834_s17 + $0x12c] sm:$0xf] %vm5010_vm1, %v5763_v19  ;;  %v4536_v60 = vadd.f32 %v8227_v13, %v4437_v23  ;;  %v4438_v48 = vmul.f32 %v8211_v42, %v4301_v16 }
 0x387   : > { %5084 = vst.msk [vmem:[%s7834_s17 + $0x124] sm:$0xf] %vm5010_vm1, %v5761_v20  ;;  %v4534_v17 = vadd.f32 %v8227_v13, %v4435_v45  ;;  %v4436_v41 = vmul.f32 %v8211_v42, %v4293_v35 }
 0x388   : > { %v4628_v10 = vmax.f32 %v4536_v60, 0.0  ;;  %v4537_v12 = vadd.f32 %v8227_v13, %v4438_v48 }
 0x389   : > { %v4626_v3 = vmax.f32 %v4534_v17, 0.0  ;;  %v4535_v21 = vadd.f32 %v8227_v13, %v4436_v41  ;;  %v5926_v2 = vpop.f32.mrb[8].mxu1  ;;  %v3920_v34 = vpop.f32.mrb[168].mxu0 }
 0x38a   : > { %v5766_v0 = vpack.c.bf16 %v4628_v10, %v4628_v10  ;;  %v4629_v32 = vmax.f32 %v4537_v12, 0.0  ;;  %v4314_v63 = vadd.f32 %v6050_v57, %v5926_v2  ;;  %v4305_v52 = vpop.f32.mrb[9].mxu1  ;;  %v6052_v9 = vadd.f32 %v3920_v34, %v8489_v5  ;;  %v3922_v27 = vpop.f32.mrb[169].mxu0  ;;  %v8491_v57 = vld [vmem:[#allocation39_spill] sm:$0xff] }
 0x38b   : > { %v5764_v54 = vpack.c.bf16 %v4626_v3, %v4626_v3  ;;  %v4627_v40 = vmax.f32 %v4535_v21, 0.0  ;;  %v4306_v62 = vadd.f32 %v8291_v29, %v4305_v52  ;;  %v5927_v61 = vpop.f32.mrb[10].mxu1  ;;  %v3923_v47 = vpop.f32.mrb[170].mxu0 }
 0x38c   : > { %5089 = vst.msk [vmem:[%s7834_s17 + $0x138] sm:$0xf] %vm5010_vm1, %v5766_v0  ;;  %v5767_v22 = vpack.c.bf16 %v4629_v32, %v4629_v32  ;;  %v4441_v28 = vmul.f32 %v8211_v42, %v4314_v63  ;;  %v4317_v50 = vadd.f32 %v6051_v7, %v5927_v61  ;;  %v4308_v37 = vpop.f32.mrb[11].mxu1  ;;  %v6053_v44 = vadd.f32 %v3923_v47, %v8490_v55  ;;  %v3925_v18 = vpop.f32.mrb[171].mxu0  ;;  %v8494_v47 = vld [vmem:[#allocation42_spill] sm:$0xff] }
 0x38d   : > { %5087 = vst.msk [vmem:[%s7834_s17 + $0x130] sm:$0xf] %vm5010_vm1, %v5764_v54  ;;  %v5765_v24 = vpack.c.bf16 %v4627_v40, %v4627_v40  ;;  %v4439_v11 = vmul.f32 %v8211_v42, %v4306_v62  ;;  %v4309_v29 = vadd.f32 %v8302_v26, %v4308_v37  ;;  %v8493_v54 = vld [vmem:[#allocation41_spill] sm:$0xff] }
 0x38e   : > { %5090 = vst.msk [vmem:[%s7834_s17 + $0x13c] sm:$0xf] %vm5010_vm1, %v5767_v22  ;;  %v4540_v39 = vadd.f32 %v8227_v13, %v4441_v28  ;;  %v4442_v49 = vmul.f32 %v8211_v42, %v4317_v50 }
 0x38f   : > { %5088 = vst.msk [vmem:[%s7834_s17 + $0x134] sm:$0xf] %vm5010_vm1, %v5765_v24  ;;  %v4538_v53 = vadd.f32 %v8227_v13, %v4439_v11  ;;  %v4440_v8 = vmul.f32 %v8211_v42, %v4309_v29 }
 0x390   : > { %v4632_v46 = vmax.f32 %v4540_v39, 0.0  ;;  %v4541_v43 = vadd.f32 %v8227_v13, %v4442_v49 }
 0x391   : > { %v4630_v14 = vmax.f32 %v4538_v53, 0.0  ;;  %v4539_v30 = vadd.f32 %v8227_v13, %v4440_v8  ;;  %v5930_v26 = vpop.f32.mrb[12].mxu1  ;;  %v3928_v38 = vpop.f32.mrb[172].mxu0 }
 0x392   : > { %v5770_v31 = vpack.c.bf16 %v4632_v46, %v4632_v46  ;;  %v4633_v59 = vmax.f32 %v4541_v43, 0.0  ;;  %v4321_v33 = vpop.f32.mrb[13].mxu1  ;;  %v6054_v25 = vadd.f32 %v3928_v38, %v8491_v57  ;;  %v3930_v58 = vpop.f32.mrb[173].mxu0  ;;  %v8495_v46 = vld [vmem:[#allocation43_spill] sm:$0xff]  ;;  %v8496_v38 = vld [vmem:[#allocation44_spill] sm:$0xff] }
 0x393   : > { %v5768_v6 = vpack.c.bf16 %v4630_v14, %v4630_v14  ;;  %v4631_v51 = vmax.f32 %v4539_v30, 0.0  ;;  %v4322_v15 = vadd.f32 %v6052_v9, %v4321_v33  ;;  %v5931_v19 = vpop.f32.mrb[14].mxu1  ;;  %v3931_v56 = vpop.f32.mrb[174].mxu0 }
 0x394   : > { %5093 = vst.msk [vmem:[%s7834_s17 + $0x148] sm:$0xf] %vm5010_vm1, %v5770_v31  ;;  %v5771_v23 = vpack.c.bf16 %v4633_v59, %v4633_v59  ;;  %v4324_v16 = vpop.f32.mrb[15].mxu1  ;;  %v4330_v20 = vadd.f32 %v6054_v25, %v5930_v26  ;;  %v6055_v7 = vadd.f32 %v3931_v56, %v8492_v1  ;;  %v3933_v4 = vpop.f32.mrb[175].mxu0 }
 0x395   : > { %5091 = vst.msk [vmem:[%s7834_s17 + $0x140] sm:$0xf] %vm5010_vm1, %v5768_v6  ;;  %v5769_v36 = vpack.c.bf16 %v4631_v51, %v4631_v51  ;;  %v4443_v45 = vmul.f32 %v8211_v42, %v4322_v15  ;;  %v4325_v35 = vadd.f32 %v6053_v44, %v4324_v16 }
 0x396   : > { %5094 = vst.msk [vmem:[%s7834_s17 + $0x14c] sm:$0xf] %vm5010_vm1, %v5771_v23  ;;  %v4445_v60 = vmul.f32 %v8211_v42, %v4330_v20  ;;  %v4333_v17 = vadd.f32 %v6055_v7, %v5931_v19 }
 0x397   : > { %5092 = vst.msk [vmem:[%s7834_s17 + $0x144] sm:$0xf] %vm5010_vm1, %v5769_v36  ;;  %v4542_v48 = vadd.f32 %v8227_v13, %v4443_v45  ;;  %v4444_v41 = vmul.f32 %v8211_v42, %v4325_v35  ;;  %v5105_v36 = vld [vmem:[%s7834_s17 + $0x16c] sm:$0x1] }
 0x398   : > { %v4544_v10 = vadd.f32 %v8227_v13, %v4445_v60  ;;  %v4446_v3 = vmul.f32 %v8211_v42, %v4333_v17 }
 0x399   : > { %v4634_v12 = vmax.f32 %v4542_v48, 0.0  ;;  %v5934_v21 = vpop.f32.mrb[16].mxu1  ;;  %v4543_v2 = vadd.f32 %v8227_v13, %v4444_v41  ;;  %v3936_v0 = vpop.f32.mrb[176].mxu0 }
 0x39a   : > { %v4337_v32 = vpop.f32.mrb[17].mxu1  ;;  %v4636_v34 = vmax.f32 %v4544_v10, 0.0  ;;  %v4545_v52 = vadd.f32 %v8227_v13, %v4446_v3  ;;  %v6056_v40 = vadd.f32 %v3936_v0, %v8493_v54  ;;  %v3938_v5 = vpop.f32.mrb[177].mxu0 }
 0x39b   : > { %v5772_v63 = vpack.c.bf16 %v4634_v12, %v4634_v12  ;;  %v5935_v9 = vpop.f32.mrb[18].mxu1  ;;  %v4635_v27 = vmax.f32 %v4543_v2, 0.0  ;;  %v3939_v62 = vpop.f32.mrb[178].mxu0 }
 0x39c   : > { %v4340_v61 = vpop.f32.mrb[19].mxu1  ;;  %v5774_v22 = vpack.c.bf16 %v4636_v34, %v4636_v34  ;;  %v4637_v28 = vmax.f32 %v4545_v52, 0.0  ;;  %v6057_v50 = vadd.f32 %v3939_v62, %v8494_v47  ;;  %v4338_v37 = vadd.f32 %v6056_v40, %v4337_v32  ;;  %v3941_v24 = vpop.f32.mrb[179].mxu0 }
 0x39d   : > { %5095 = vst.msk [vmem:[%s7834_s17 + $0x150] sm:$0xf] %vm5010_vm1, %v5772_v63  ;;  %v5773_v11 = vpack.c.bf16 %v4635_v27, %v4635_v27 }
 0x39e   : > { %5097 = vst.msk [vmem:[%s7834_s17 + $0x158] sm:$0xf] %vm5010_vm1, %v5774_v22  ;;  %v5775_v55 = vpack.c.bf16 %v4637_v28, %v4637_v28  ;;  %v4447_v44 = vmul.f32 %v8211_v42, %v4338_v37  ;;  %v4341_v18 = vadd.f32 %v6057_v50, %v4340_v61 }
 0x39f   : > { %5096 = vst.msk [vmem:[%s7834_s17 + $0x154] sm:$0xf] %vm5010_vm1, %v5773_v11 }
 0x3a0   : > { %5098 = vst.msk [vmem:[%s7834_s17 + $0x15c] sm:$0xf] %vm5010_vm1, %v5775_v55  ;;  %v4546_v29 = vadd.f32 %v8227_v13, %v4447_v44  ;;  %v4448_v39 = vmul.f32 %v8211_v42, %v4341_v18 }
 0x3a1   : > { %v3944_v49 = vpop.f32.mrb[180].mxu0 }
 0x3a2   : > { %v4638_v53 = vmax.f32 %v4546_v29, 0.0  ;;  %v4547_v8 = vadd.f32 %v8227_v13, %v4448_v39  ;;  %v6058_v43 = vadd.f32 %v3944_v49, %v8495_v46  ;;  %v3946_v14 = vpop.f32.mrb[181].mxu0 }
 0x3a3   : > { %v3947_v30 = vpop.f32.mrb[182].mxu0 }
 0x3a4   : > { %v5776_v26 = vpack.c.bf16 %v4638_v53, %v4638_v53  ;;  %v4639_v31 = vmax.f32 %v4547_v8, 0.0  ;;  %v4346_v59 = vadd.f32 %v6058_v43, %v5934_v21  ;;  %v6059_v33 = vadd.f32 %v3947_v30, %v8496_v38  ;;  %v3949_v6 = vpop.f32.mrb[183].mxu0 }
 0x3a6   : > { %5099 = vst.msk [vmem:[%s7834_s17 + $0x160] sm:$0xf] %vm5010_vm1, %v5776_v26  ;;  %v5777_v51 = vpack.c.bf16 %v4639_v31, %v4639_v31  ;;  %v4449_v57 = vmul.f32 %v8211_v42, %v4346_v59  ;;  %v4349_v25 = vadd.f32 %v6059_v33, %v5935_v9 }
 0x3a8   : > { %5100 = vst.msk [vmem:[%s7834_s17 + $0x164] sm:$0xf] %vm5010_vm1, %v5777_v51  ;;  %v4548_v58 = vadd.f32 %v8227_v13, %v4449_v57  ;;  %v4450_v15 = vmul.f32 %v8211_v42, %v4349_v25 }
 0x3aa   : > { %v4640_v19 = vmax.f32 %v4548_v58, 0.0  ;;  %v4549_v23 = vadd.f32 %v8227_v13, %v4450_v15 }
 0x3ac   : > { %v5778_v56 = vpack.c.bf16 %v4640_v19, %v4640_v19  ;;  %v4641_v16 = vmax.f32 %v4549_v23, 0.0 }
 0x3ae   : > { %5101 = vst.msk [vmem:[%s7834_s17 + $0x168] sm:$0xf] %vm5010_vm1, %v5778_v56  ;;  %v5779_v20 = vpack.c.bf16 %v4641_v16, %v4641_v16 }
 0x3b0   : > { %v5106_v45 = vsel %vm5104_vm4, %v5779_v20, %v5105_v36 }
 0x3b1   : > { %5107 = vst [vmem:[%s7834_s17 + $0x16c] sm:$0x1] %v5106_v45 }
 0x3b2 PF: > { %s14_s15 = sadd.s32 1, %s6777_s15  }
 0x3b3   : > { %p11_p4 = scmp.ge.s32.totalorder %s14_s15, 4  }
 0x3b5   :  { %13 = sbr.rel (!%p11_p4) target bundleno = 1 (0x1), region = 66 }

// kernel: _lambda_.6
= control target key start
LH: loop header
LB: loop body
LE: loop exit
PB: predicated region body
PF: predicated region fallthrough
CT: control target
= control target key end

     0   :  { %s3627_s15 = smov 0   ;;  %s4305_s0 = inlined_call_operand.vmem [shape: bf16[2,125,1728], index: 0, kind: input, shape index: {}]   ;;  %s4306_s1 = inlined_call_operand.vmem [shape: bf16[1728,64], index: 1, kind: input, shape index: {}]   ;;  %s4307_s2 = inlined_call_operand.vmem [shape: f32[1,64], index: 2, kind: input, shape index: {}]   ;;  %s4308_s3 = inlined_call_operand.vmem [shape: f32[1,64], index: 3, kind: input, shape index: {}]   ;;  %s4309_s4 = inlined_call_operand.vmem [shape: bf16[2,125,64], index: 4, kind: output, shape index: {}]  }
   0x1 LB: > { %s2634_s16 = sadd.s32 4294967295, %s3599_s15   ;;  %p2638_p0 = scmp.ge.s32.totalorder %s3599_s15, 1  ;;  %s3599_s15 = sphi %s3627_s15, %s14_s15  }
   0x2   : > { %p162_p1 = scmp.lt.s32.totalorder %s3599_s15, 3 }
   0x4   : > { %p163_p2 = pnand %p2638_p0, %p162_p1 }
   0x5   : > { %v3317_v0 = vld [vmem:[%s4306_s1 + $0x40] sm:$0xff] (!%p163_p2)   ;;  %v3319_v2 = vld [vmem:[%s4306_s1 + $0x48] sm:$0xff] (!%p163_p2)   ;;  %p188_p3 = scmp.lt.s32.totalorder (!%p163_p2), %s2634_s16, 1  ;;  %v3321_v4 = vld [vmem:[%s4306_s1 + $0x50] sm:$0xff] (!%p163_p2)   ;;  %vm1727_vm0 = vcmask (!%p163_p2), 523264   ;;  %vm2557_vm1 = vcmask (!%p163_p2), 519168  }
   0x6   : > { %166 = sbr.rel (%p163_p2) target bundleno = 485 (0x1e5), region = 36  ;;  %v3318_v1 = vld [vmem:[%s4306_s1] sm:$0xff] (!%p163_p2)   ;;  %3291 = vmatprep.subr.bf16.mxu1 (!%p163_p2), %v3317_v0  ;;  %2907 = vmatprep.subr.bf16.mxu0 (!%p163_p2), %v3317_v0  ;;  %v3320_v3 = vld [vmem:[%s4306_s1 + $0x8] sm:$0xff] (!%p163_p2)   ;;  %v3322_v5 = vld [vmem:[%s4306_s1 + $0x10] sm:$0xff] (!%p163_p2)   ;;  %vm2573_vm2 = vcmask (!%p163_p2), 518144  }
   0x7   : > { %3299 = vmatpush3.bf16.msra.mxu1 (!%p163_p2), %v3318_v1  ;;  %2908 = vmatpush3.bf16.msra.mxu0 (!%p163_p2), %v3318_v1  ;;  %v3323_v6 = vld [vmem:[%s4306_s1 + $0x58] sm:$0xff] (!%p163_p2)   ;;  %v3325_v8 = vld [vmem:[%s4306_s1 + $0x60] sm:$0xff] (!%p163_p2)   ;;  %v3327_v10 = vld [vmem:[%s4306_s1 + $0x68] sm:$0xff] (!%p163_p2)   ;;  %vm2574_vm3 = vsmask.f32 (!%p163_p2), 2304 }
   0x8   : > { %3292 = vmatprep.subr.bf16.mxu1 (!%p163_p2), %v3319_v2  ;;  %2909 = vmatprep.subr.bf16.mxu0 (!%p163_p2), %v3319_v2  ;;  %v3324_v7 = vld [vmem:[%s4306_s1 + $0x18] sm:$0xff] (!%p163_p2)   ;;  %v3326_v9 = vld [vmem:[%s4306_s1 + $0x20] sm:$0xff] (!%p163_p2)   ;;  %v3328_v12 = vld [vmem:[%s4306_s1 + $0x28] sm:$0xff] (!%p163_p2)  }
   0x9   : > { %v3329_v14 = vld [vmem:[%s4306_s1 + $0x70] sm:$0xff] (!%p163_p2)   ;;  %v3331_v16 = vld [vmem:[%s4306_s1 + $0x78] sm:$0xff] (!%p163_p2)   ;;  %v3336_v18 = vld [vmem:[%s4306_s1 + $0xc0] sm:$0xff] (!%p163_p2)  }
   0xa   : > { %v3330_v15 = vld [vmem:[%s4306_s1 + $0x30] sm:$0xff] (!%p163_p2)   ;;  %v3332_v17 = vld [vmem:[%s4306_s1 + $0x38] sm:$0xff] (!%p163_p2)   ;;  %v3341_v21 = vld [vmem:[%s4306_s1 + $0x140] sm:$0xff] (!%p163_p2)  }
   0xb   : > { %3300 = vmatpush3.bf16.msra.mxu1 (!%p163_p2), %v3320_v3  ;;  %2910 = vmatpush3.bf16.msra.mxu0 (!%p163_p2), %v3320_v3  ;;  %v3340_v22 = vld [vmem:[%s4306_s1 + $0x80] sm:$0xff] (!%p163_p2)   ;;  %v3343_v24 = vld [vmem:[%s4306_s1 + $0xc8] sm:$0xff] (!%p163_p2)   ;;  %v3350_v30 = vld [vmem:[%s4306_s1 + $0xd0] sm:$0xff] (!%p163_p2)  }
   0xc   : > { %3293 = vmatprep.subr.bf16.mxu1 (!%p163_p2), %v3321_v4  ;;  %2911 = vmatprep.subr.bf16.mxu0 (!%p163_p2), %v3321_v4  ;;  %v3342_v23 = vld [vmem:[%s4306_s1 + $0x100] sm:$0xff] (!%p163_p2)   ;;  %v3345_v25 = vld [vmem:[%s4306_s1 + $0x148] sm:$0xff] (!%p163_p2)   ;;  %v3355_v32 = vld [vmem:[%s4306_s1 + $0x150] sm:$0xff] (!%p163_p2)  }
   0xd   : > { %s4311_s16 = smov (!%p188_p3, %s2634_s16), 1  ;;  %v3344_v27 = vld [vmem:[%s4306_s1 + $0x88] sm:$0xff]   ;;  %v3353_v33 = vld [vmem:[%s4306_s1 + $0x90] sm:$0xff]   ;;  %v3357_v36 = vld [vmem:[%s4306_s1 + $0xd8] sm:$0xff]  }
   0xe   : > { %s3307_s5 = smul.u32 896, %s4311_s16  ;;  %v3348_v29 = vld [vmem:[%s4306_s1 + $0x108] sm:$0xff]   ;;  %v3356_v35 = vld [vmem:[%s4306_s1 + $0x110] sm:$0xff]   ;;  %v3359_v37 = vld [vmem:[%s4306_s1 + $0x158] sm:$0xff]   ;;  %s2890_s6 = sshll.u32 %s4311_s16, 6 }
   0xf   : > { %3301 = vmatpush3.bf16.msra.mxu1 %v3322_v5  ;;  %2912 = vmatpush3.bf16.msra.mxu0 %v3322_v5  ;;  %v3358_v38 = vld [vmem:[%s4306_s1 + $0x98] sm:$0xff]   ;;  %v3364_v42 = vld [vmem:[%s4306_s1 + $0xe0] sm:$0xff]   ;;  %v3371_v48 = vld [vmem:[%s4306_s1 + $0xe8] sm:$0xff]   ;;  %s4227_s9 = scalar_lea.vmem %s4309_s4, %s2890_s6 }
  0x10   : > { %3294 = vmatprep.subr.bf16.mxu1 %v3323_v6  ;;  %2913 = vmatprep.subr.bf16.mxu0 %v3323_v6  ;;  %s3668_s12 = scalar_lea.vmem %s4305_s0, %s3307_s5  ;;  %v3362_v41 = vld [vmem:[%s4306_s1 + $0x118] sm:$0xff]   ;;  %v3369_v44 = vld [vmem:[%s4306_s1 + $0x160] sm:$0xff]   ;;  %v3373_v49 = vld [vmem:[%s4306_s1 + $0x168] sm:$0xff]  }
  0x11   : > { %v3335_v11 = vld [vmem:[%s3668_s12 + $0x1c4] ss:$56 sps:$4 sm:$0xff]   ;;  %v3333_v19 = vld [vmem:[%s3668_s12 + $0x1c0] ss:$56 sps:$4 sm:$0xff]   ;;  %v3346_v26 = vld [vmem:[%s3668_s12 + $0x234] ss:$56 sps:$4 sm:$0xff]  }
  0x12   : > { %v3339_v13 = vld [vmem:[%s3668_s12 + $0x4] ss:$56 sps:$4 sm:$0xff]   ;;  %1816 = vmatprep.mubr.bf16.mxu1 %v3335_v11  ;;  %v3337_v20 = vld [vmem:[%s3668_s12] ss:$56 sps:$4 sm:$0xff]   ;;  %v3351_v28 = vld [vmem:[%s3668_s12 + $0x74] ss:$56 sps:$4 sm:$0xff]  }
  0x13   : > { %3302 = vmatpush3.bf16.msra.mxu1 %v3324_v7  ;;  %2914 = vmatpush3.bf16.msra.mxu0 %v3324_v7  ;;  %v3349_v31 = vld [vmem:[%s3668_s12 + $0x230] ss:$56 sps:$4 sm:$0xff]   ;;  %v3360_v39 = vld [vmem:[%s3668_s12 + $0x2a4] ss:$56 sps:$4 sm:$0xff]   ;;  %v3363_v43 = vld [vmem:[%s3668_s12 + $0x2a0] ss:$56 sps:$4 sm:$0xff]  }
  0x14   : > { %3295 = vmatprep.subr.bf16.mxu1 %v3325_v8  ;;  %2915 = vmatprep.subr.bf16.mxu0 %v3325_v8  ;;  %v3354_v34 = vld [vmem:[%s3668_s12 + $0x70] ss:$56 sps:$4 sm:$0xff]   ;;  %v3365_v40 = vld [vmem:[%s3668_s12 + $0xe4] ss:$56 sps:$4 sm:$0xff]   ;;  %v3368_v46 = vld [vmem:[%s3668_s12 + $0xe0] ss:$56 sps:$4 sm:$0xff]  }
  0x15   : > { %1784 = vmatprep.mubr.bf16.mxu0 %v3339_v13  ;;  %v3367_v45 = vld [vmem:[%s4306_s1 + $0xa0] sm:$0xff]   ;;  %v3372_v50 = vld [vmem:[%s4306_s1 + $0xa8] sm:$0xff]   ;;  %v3378_v55 = vld [vmem:[%s4306_s1 + $0xf0] sm:$0xff]  }
  0x16   : > { %v3370_v47 = vld [vmem:[%s4306_s1 + $0x120] sm:$0xff]   ;;  %v3374_v51 = vld [vmem:[%s3668_s12 + $0x314] ss:$56 sps:$4 sm:$0x7f]   ;;  %v3382_v58 = vld [vmem:[%s3668_s12 + $0x150] ss:$56 sps:$4 sm:$0xff]  }
  0x17   : > { %3303 = vmatpush3.bf16.msra.mxu1 %v3326_v9  ;;  %2916 = vmatpush3.bf16.msra.mxu0 %v3326_v9  ;;  %v3376_v52 = vld [vmem:[%s4306_s1 + $0x128] sm:$0xff]   ;;  %v3381_v56 = vld [vmem:[%s4306_s1 + $0xb0] sm:$0xff]   ;;  %v3385_v60 = vld [vmem:[%s4306_s1 + $0xf8] sm:$0xff]  }
  0x18   : > { %3296 = vmatprep.subr.bf16.mxu1 %v3327_v10  ;;  %2917 = vmatprep.subr.bf16.mxu0 %v3327_v10  ;;  %v3379_v53 = vld [vmem:[%s3668_s12 + $0x154] ss:$56 sps:$4 sm:$0xff]   ;;  %v3377_v54 = vld [vmem:[%s3668_s12 + $0x310] ss:$56 sps:$4 sm:$0x7f]   ;;  %v3387_v61 = vld [vmem:[%s4306_s1 + $0x178] sm:$0xff]  }
  0x19   : > { %v3383_v57 = vld [vmem:[%s4306_s1 + $0x170] sm:$0xff]   ;;  %v3386_v62 = vld [vmem:[%s4306_s1 + $0xb8] sm:$0xff]   ;;  %v3390_v63 = vld [vmem:[%s3668_s12 + $0xc] ss:$56 sps:$4 sm:$0xff]  }
  0x1a   : > { %v3384_v59 = vld [vmem:[%s4306_s1 + $0x130] sm:$0xff]   ;;  %v3391_v0 = vld [vmem:[%s4306_s1 + $0x138] sm:$0xff]   ;;  %v3388_v1 = vld [vmem:[%s3668_s12 + $0x8] ss:$56 sps:$4 sm:$0xff]  }
  0x1b   : > { %3304 = vmatpush3.bf16.msra.mxu1 %v3328_v12  ;;  %2918 = vmatpush3.bf16.msra.mxu0 %v3328_v12  ;;  %v3392_v2 = vld [vmem:[%s4306_s1 + $0x1c0] sm:$0xff]   ;;  %v3393_v3 = vld [vmem:[%s3668_s12 + $0x10] ss:$56 sps:$4 sm:$0xff]   ;;  %v3395_v4 = vld [vmem:[%s3668_s12 + $0x14] ss:$56 sps:$4 sm:$0xff]  }
  0x1c   : > { %3297 = vmatprep.subr.bf16.mxu1 %v3329_v14  ;;  %2919 = vmatprep.subr.bf16.mxu0 %v3329_v14  ;;  %v3396_v5 = vld [vmem:[%s4306_s1 + $0x180] sm:$0xff]   ;;  %v3399_v8 = vld [vmem:[%s3668_s12 + $0x7c] ss:$56 sps:$4 sm:$0xff]   ;;  %v3402_v9 = vld [vmem:[%s4306_s1 + $0x1c8] sm:$0xff]  }
  0x1d   : > { %v3397_v6 = vld [vmem:[%s4306_s1 + $0x240] sm:$0xff]   ;;  %v3401_v10 = vld [vmem:[%s3668_s12 + $0x78] ss:$56 sps:$4 sm:$0xff]   ;;  %v3405_v12 = vld [vmem:[%s4306_s1 + $0x188] sm:$0xff]  }
  0x1e   : > { %v3398_v7 = vld [vmem:[%s4306_s1 + $0x200] sm:$0xff]   ;;  %v3407_v14 = vld [vmem:[%s4306_s1 + $0x248] sm:$0xff]   ;;  %vm2575_vm4 = vmand %vm2573_vm2, %vm2574_vm3 }
  0x1f   : > { %3305 = vmatpush3.bf16.msra.mxu1 %v3330_v15  ;;  %2920 = vmatpush3.bf16.msra.mxu0 %v3330_v15  ;;  %v3403_v11 = vld [vmem:[%s3668_s12 + $0x84] ss:$56 sps:$4 sm:$0xff]   ;;  %v3406_v13 = vld [vmem:[%s3668_s12 + $0x80] ss:$56 sps:$4 sm:$0xff]   ;;  %v3408_v15 = vld [vmem:[%s4306_s1 + $0x208] sm:$0xff]  }
  0x20   : > { %3298 = vmatprep.subr.bf16.mxu1 %v3331_v16  ;;  %2921 = vmatprep.subr.bf16.mxu0 %v3331_v16  ;;  %v3409_v16 = vld [vmem:[%s3668_s12 + $0xec] ss:$56 sps:$4 sm:$0xff]  }
  0x23   : > { %3306 = vmatpush3.bf16.msra.mxu1 %v3332_v17  ;;  %2922 = vmatpush3.bf16.msra.mxu0 %v3332_v17  ;;  %v3412_v17 = vld [vmem:[%s4306_s1 + $0x1d0] sm:$0xff]  }
  0x24   : > { %2971 = vmatprep.subr.bf16.mxu1 %v3336_v18  ;;  %3035 = vmatprep.subr.bf16.mxu0 %v3341_v21  ;;  %v3413_v18 = vld [vmem:[%s3668_s12 + $0xf4] ss:$56 sps:$4 sm:$0xff]   ;;  %v3416_v21 = vld [vmem:[%s3668_s12 + $0xf0] ss:$56 sps:$4 sm:$0xff]  }
  0x26   : > { %1817 = vmatmul.mubr.bf16.vlgmr.msra.gmra.mrb[0].mxu1 %v3333_v19  ;;  %1785 = vmatmul.mubr.bf16.vlgmr.msra.gmra.mrb[0].mxu0 %v3337_v20  ;;  %v3411_v19 = vld [vmem:[%s3668_s12 + $0xe8] ss:$56 sps:$4 sm:$0xff]   ;;  %v3415_v20 = vld [vmem:[%s4306_s1 + $0x190] sm:$0xff]  }
  0x27   : > { %2972 = vmatpush3.bf16.msra.mxu1 %v3340_v22  ;;  %3036 = vmatpush3.bf16.msra.mxu0 %v3342_v23  ;;  %v3417_v22 = vld [vmem:[%s4306_s1 + $0x250] sm:$0xff]  }
  0x28   : > { %2973 = vmatprep.subr.bf16.mxu1 %v3343_v24  ;;  %3037 = vmatprep.subr.bf16.mxu0 %v3345_v25  ;;  %v3418_v23 = vld [vmem:[%s4306_s1 + $0x210] sm:$0xff]   ;;  %v3422_v25 = vld [vmem:[%s4306_s1 + $0x1d8] sm:$0xff]  }
  0x29   : > { %1824 = vmatprep.mubr.bf16.mxu1 %v3346_v26  ;;  %1792 = vmatprep.mubr.bf16.mxu0 %v3351_v28  ;;  %v3419_v24 = vld [vmem:[%s3668_s12 + $0x15c] ss:$56 sps:$4 sm:$0xff]   ;;  %v3421_v28 = vld [vmem:[%s3668_s12 + $0x158] ss:$56 sps:$4 sm:$0xff]  }
  0x2a   : > { %v3423_v26 = vld [vmem:[%s3668_s12 + $0x164] ss:$56 sps:$4 sm:$0xff]  }
  0x2b   : > { %2974 = vmatpush3.bf16.msra.mxu1 %v3344_v27  ;;  %3038 = vmatpush3.bf16.msra.mxu0 %v3348_v29  ;;  %v3425_v27 = vld [vmem:[%s4306_s1 + $0x198] sm:$0xff]  }
  0x2c   : > { %2975 = vmatprep.subr.bf16.mxu1 %v3350_v30  ;;  %3039 = vmatprep.subr.bf16.mxu0 %v3355_v32  ;;  %v3427_v29 = vld [vmem:[%s4306_s1 + $0x258] sm:$0xff]   ;;  %v3429_v32 = vld [vmem:[%s3668_s12 + $0x1cc] ss:$56 sps:$4 sm:$0xff]  }
  0x2d   : > { %v3428_v30 = vld [vmem:[%s4306_s1 + $0x218] sm:$0xff]  }
  0x2e   : > { %1825 = vmatmul.mubr.bf16.gmra.mrb[4].mxu1 %v3349_v31  ;;  %1793 = vmatmul.mubr.bf16.gmra.mrb[4].mxu0 %v3354_v34  ;;  %v3426_v31 = vld [vmem:[%s3668_s12 + $0x160] ss:$56 sps:$4 sm:$0xff]   ;;  %v3433_v34 = vld [vmem:[%s3668_s12 + $0x1d4] ss:$56 sps:$4 sm:$0xff]  }
  0x2f   : > { %2976 = vmatpush3.bf16.msra.mxu1 %v3353_v33  ;;  %3040 = vmatpush3.bf16.msra.mxu0 %v3356_v35  ;;  %v3432_v33 = vld [vmem:[%s4306_s1 + $0x1e0] sm:$0xff]  }
  0x30   : > { %2977 = vmatprep.subr.bf16.mxu1 %v3357_v36  ;;  %3041 = vmatprep.subr.bf16.mxu0 %v3359_v37  ;;  %v3435_v35 = vld [vmem:[%s4306_s1 + $0x1a0] sm:$0xff]  }
  0x31   : > { %1832 = vmatprep.mubr.bf16.mxu1 %v3360_v39  ;;  %1800 = vmatprep.mubr.bf16.mxu0 %v3365_v40  ;;  %v3437_v36 = vld [vmem:[%s4306_s1 + $0x260] sm:$0xff]   ;;  %v3436_v39 = vld [vmem:[%s3668_s12 + $0x1d0] ss:$56 sps:$4 sm:$0xff]   ;;  %v3439_v40 = vld [vmem:[%s3668_s12 + $0x23c] ss:$56 sps:$4 sm:$0xff]  }
  0x32   : > { %v3438_v37 = vld [vmem:[%s4306_s1 + $0x220] sm:$0xff]  }
  0x33   : > { %2978 = vmatpush3.bf16.msra.mxu1 %v3358_v38  ;;  %3042 = vmatpush3.bf16.msra.mxu0 %v3362_v41  ;;  %v3431_v38 = vld [vmem:[%s3668_s12 + $0x1c8] ss:$56 sps:$4 sm:$0xff]  }
  0x34   : > { %2979 = vmatprep.subr.bf16.mxu1 %v3364_v42  ;;  %3043 = vmatprep.subr.bf16.mxu0 %v3369_v44  ;;  %v3442_v41 = vld [vmem:[%s4306_s1 + $0x1e8] sm:$0xff]   ;;  %v3443_v42 = vld [vmem:[%s3668_s12 + $0x244] ss:$56 sps:$4 sm:$0xff]  }
  0x35   : > { %v3447_v44 = vld [vmem:[%s4306_s1 + $0x268] sm:$0xff]  }
  0x36   : > { %1833 = vmatmul.mubr.bf16.gmra.mrb[8].mxu1 %v3363_v43  ;;  %1801 = vmatmul.mubr.bf16.gmra.mrb[8].mxu0 %v3368_v46  ;;  %v3445_v43 = vld [vmem:[%s4306_s1 + $0x1a8] sm:$0xff]   ;;  %v3441_v46 = vld [vmem:[%s3668_s12 + $0x238] ss:$56 sps:$4 sm:$0xff]  }
  0x37   : > { %2980 = vmatpush3.bf16.msra.mxu1 %v3367_v45  ;;  %3044 = vmatpush3.bf16.msra.mxu0 %v3370_v47  ;;  %v3448_v45 = vld [vmem:[%s4306_s1 + $0x228] sm:$0xff]   ;;  %v3446_v47 = vld [vmem:[%s3668_s12 + $0x240] ss:$56 sps:$4 sm:$0xff]  }
  0x38   : > { %2981 = vmatprep.subr.bf16.mxu1 %v3371_v48  ;;  %3045 = vmatprep.subr.bf16.mxu0 %v3373_v49  ;;  %v3452_v48 = vld [vmem:[%s4306_s1 + $0x1f0] sm:$0xff]   ;;  %v3449_v49 = vld [vmem:[%s3668_s12 + $0x2ac] ss:$56 sps:$4 sm:$0xff]  }
  0x39   : > { %1840 = vmatprep.mubr.bf16.mxu1 %v3374_v51  ;;  %1808 = vmatprep.mubr.bf16.mxu0 %v3379_v53  ;;  %v3453_v51 = vld [vmem:[%s3668_s12 + $0x2b4] ss:$56 sps:$4 sm:$0xff]  }
  0x3a   : > { %v3458_v53 = vld [vmem:[%s4306_s1 + $0x230] sm:$0xff]  }
  0x3b   : > { %2982 = vmatpush3.bf16.msra.mxu1 %v3372_v50  ;;  %3046 = vmatpush3.bf16.msra.mxu0 %v3376_v52  ;;  %v3455_v50 = vld [vmem:[%s4306_s1 + $0x1b0] sm:$0xff]  }
  0x3c   : > { %2983 = vmatprep.subr.bf16.mxu1 %v3378_v55  ;;  %3047 = vmatprep.subr.bf16.mxu0 %v3383_v57  ;;  %v3457_v52 = vld [vmem:[%s4306_s1 + $0x270] sm:$0xff]   ;;  %v3451_v55 = vld [vmem:[%s3668_s12 + $0x2a8] ss:$56 sps:$4 sm:$0xff]  }
  0x3d   : > { %v3459_v57 = vld [vmem:[%s3668_s12 + $0x31c] ss:$56 sps:$4 sm:$0x7f]  }
  0x3e   : > { %1841 = vmatmul.mubr.bf16.gmra.mrb[12].mxu1 %v3377_v54  ;;  %1809 = vmatmul.mubr.bf16.gmra.mrb[12].mxu0 %v3382_v58  ;;  %v3462_v54 = vld [vmem:[%s4306_s1 + $0x1f8] sm:$0xff]  }
  0x3f   : > { %2984 = vmatpush3.bf16.msra.mxu1 %v3381_v56  ;;  %3048 = vmatpush3.bf16.msra.mxu0 %v3384_v59  ;;  %v3456_v56 = vld [vmem:[%s3668_s12 + $0x2b0] ss:$56 sps:$4 sm:$0xff]   ;;  %v3465_v58 = vld [vmem:[%s4306_s1 + $0x1b8] sm:$0xff]  }
  0x40   : > { %2985 = vmatprep.subr.bf16.mxu1 %v3385_v60  ;;  %3049 = vmatprep.subr.bf16.mxu0 %v3387_v61  ;;  %v3463_v59 = vld [vmem:[%s3668_s12 + $0x324] ss:$56 sps:$4 sm:$0x7f]  }
  0x41   : > { %1881 = vmatprep.mubr.bf16.mxu1 %v3390_v63  ;;  %1978 = vmatprep.mubr.bf16.mxu0 %v3395_v4  ;;  %v3467_v60 = vld [vmem:[%s4306_s1 + $0x278] sm:$0xff]  }
  0x42   : > { %v3468_v61 = vld [vmem:[%s4306_s1 + $0x238] sm:$0xff]  }
  0x43   : > { %2986 = vmatpush3.bf16.msra.mxu1 %v3386_v62  ;;  %3050 = vmatpush3.bf16.msra.mxu0 %v3391_v0  ;;  %v3472_v62 = vld [vmem:[%s4306_s1 + $0x2c0] sm:$0xff]   ;;  %v3461_v63 = vld [vmem:[%s3668_s12 + $0x318] ss:$56 sps:$4 sm:$0x7f]  }
  0x44   : > { %3099 = vmatprep.subr.bf16.mxu1 %v3392_v2  ;;  %3163 = vmatprep.subr.bf16.mxu0 %v3397_v6  ;;  %v3466_v0 = vld [vmem:[%s3668_s12 + $0x320] ss:$56 sps:$4 sm:$0x7f]   ;;  %v3471_v2 = vld [vmem:[%s3668_s12 + $0x1c] ss:$56 sps:$4 sm:$0xff]  }
  0x45   : > { %v3469_v4 = vld [vmem:[%s3668_s12 + $0x18] ss:$56 sps:$4 sm:$0xff]   ;;  %v3476_v6 = vld [vmem:[%s4306_s1 + $0x280] sm:$0xff]  }
  0x46   : > { %1882 = vmatmul.mubr.bf16.vlgmr.msra.gmra.mrb[16].mxu1 %v3388_v1  ;;  %1979 = vmatmul.mubr.bf16.vlgmr.msra.gmra.mrb[16].mxu0 %v3393_v3  ;;  %v3601_v1 = vmov 0   ;;  %v3475_v3 = vld [vmem:[%s3668_s12 + $0x24] ss:$56 sps:$4 sm:$0xff]  }
  0x47   : > { %3100 = vmatpush3.bf16.msra.mxu1 %v3396_v5  ;;  %3164 = vmatpush3.bf16.msra.mxu0 %v3398_v7  ;;  %v3473_v5 = vld [vmem:[%s3668_s12 + $0x20] ss:$56 sps:$4 sm:$0xff]  }
  0x48   : > { %1889 = vmatprep.mubr.bf16.mxu1 %v3399_v8  ;;  %3101 = vmatprep.subr.bf16.mxu1 %v3402_v9  ;;  %v3477_v7 = vld [vmem:[%s4306_s1 + $0x300] sm:$0xff]   ;;  %v3481_v9 = vld [vmem:[%s4306_s1 + $0x2c8] sm:$0xff]  }
  0x49   : > { %1986 = vmatprep.mubr.bf16.mxu0 %v3403_v11  ;;  %3165 = vmatprep.subr.bf16.mxu0 %v3407_v14  ;;  %v3478_v8 = vld [vmem:[%s3668_s12 + $0x8c] ss:$56 sps:$4 sm:$0xff]   ;;  %v3490_v14 = vld [vmem:[%s4306_s1 + $0x2d0] sm:$0xff]  }
  0x4a   : > { %v3484_v11 = vld [vmem:[%s4306_s1 + $0x288] sm:$0xff]  }
  0x4b   : > { %3102 = vmatpush3.bf16.msra.mxu1 %v3405_v12  ;;  %3166 = vmatpush3.bf16.msra.mxu0 %v3408_v15  ;;  %v3486_v12 = vld [vmem:[%s4306_s1 + $0x308] sm:$0xff]  }
  0x4c   : > { %3103 = vmatprep.subr.bf16.mxu1 %v3412_v17  ;;  %3167 = vmatprep.subr.bf16.mxu0 %v3417_v22  ;;  %v3485_v15 = vld [vmem:[%s3668_s12 + $0x90] ss:$56 sps:$4 sm:$0xff]   ;;  %v3491_v17 = vld [vmem:[%s3668_s12 + $0x104] ss:$56 sps:$4 sm:$0xff]  }
  0x4d   : > { %v3489_v22 = vld [vmem:[%s3668_s12 + $0xf8] ss:$56 sps:$4 sm:$0xff]  }
  0x4e   : > { %1890 = vmatmul.mubr.bf16.gmra.mrb[20].mxu1 %v3401_v10  ;;  %1987 = vmatmul.mubr.bf16.gmra.mrb[20].mxu0 %v3406_v13  ;;  %v3482_v10 = vld [vmem:[%s3668_s12 + $0x94] ss:$56 sps:$4 sm:$0xff]   ;;  %v3480_v13 = vld [vmem:[%s3668_s12 + $0x88] ss:$56 sps:$4 sm:$0xff]  }
  0x4f   : > { %1897 = vmatprep.mubr.bf16.mxu1 %v3409_v16  ;;  %1994 = vmatprep.mubr.bf16.mxu0 %v3413_v18  ;;  %v3487_v16 = vld [vmem:[%s3668_s12 + $0xfc] ss:$56 sps:$4 sm:$0xff]  }
  0x50   : > { %3104 = vmatpush3.bf16.msra.mxu1 %v3415_v20  ;;  %3168 = vmatpush3.bf16.msra.mxu0 %v3418_v23  ;;  %v3493_v18 = vld [vmem:[%s4306_s1 + $0x290] sm:$0xff]   ;;  %v3500_v20 = vld [vmem:[%s4306_s1 + $0x2d8] sm:$0xff]  }
  0x51   : > { %3105 = vmatprep.subr.bf16.mxu1 %v3422_v25  ;;  %3169 = vmatprep.subr.bf16.mxu0 %v3427_v29  ;;  %v3503_v23 = vld [vmem:[%s4306_s1 + $0x298] sm:$0xff]   ;;  %v3509_v25 = vld [vmem:[%s4306_s1 + $0x2e0] sm:$0xff]  }
  0x52   : > { %v3512_v29 = vld [vmem:[%s4306_s1 + $0x2a0] sm:$0xff]  }
  0x54   : > { %3106 = vmatpush3.bf16.msra.mxu1 %v3425_v27  ;;  %3170 = vmatpush3.bf16.msra.mxu0 %v3428_v30  ;;  %v3501_v27 = vld [vmem:[%s3668_s12 + $0x174] ss:$56 sps:$4 sm:$0xff]  }
  0x55   : > { %3107 = vmatprep.subr.bf16.mxu1 %v3432_v33  ;;  %3171 = vmatprep.subr.bf16.mxu0 %v3437_v36  ;;  %v3519_v30 = vld [vmem:[%s4306_s1 + $0x2e8] sm:$0xff]   ;;  %v3510_v36 = vld [vmem:[%s3668_s12 + $0x1e4] ss:$56 sps:$4 sm:$0xff]  }
  0x56   : > { %1898 = vmatmul.mubr.bf16.gmra.mrb[24].mxu1 %v3411_v19  ;;  %1995 = vmatmul.mubr.bf16.gmra.mrb[24].mxu0 %v3416_v21  ;;  %v3494_v19 = vld [vmem:[%s4306_s1 + $0x310] sm:$0xff]   ;;  %v3496_v21 = vld [vmem:[%s4306_s1 + $0x318] sm:$0xff]  }
  0x57   : > { %1905 = vmatprep.mubr.bf16.mxu1 %v3419_v24  ;;  %2002 = vmatprep.mubr.bf16.mxu0 %v3423_v26  ;;  %v3495_v24 = vld [vmem:[%s3668_s12 + $0x100] ss:$56 sps:$4 sm:$0xff]   ;;  %v3497_v26 = vld [vmem:[%s3668_s12 + $0x16c] ss:$56 sps:$4 sm:$0xff]   ;;  %v3504_v33 = vld [vmem:[%s3668_s12 + $0x170] ss:$56 sps:$4 sm:$0xff]  }
  0x58   : > { %3108 = vmatpush3.bf16.msra.mxu1 %v3435_v35  ;;  %3172 = vmatpush3.bf16.msra.mxu0 %v3438_v37  ;;  %v3506_v35 = vld [vmem:[%s3668_s12 + $0x1dc] ss:$56 sps:$4 sm:$0xff]  }
  0x59   : > { %3109 = vmatprep.subr.bf16.mxu1 %v3442_v41  ;;  %3173 = vmatprep.subr.bf16.mxu0 %v3447_v44  ;;  %v3528_v37 = vld [vmem:[%s4306_s1 + $0x2f0] sm:$0xff]   ;;  %v3514_v41 = vld [vmem:[%s3668_s12 + $0x1e0] ss:$56 sps:$4 sm:$0xff]   ;;  %v3516_v44 = vld [vmem:[%s3668_s12 + $0x24c] ss:$56 sps:$4 sm:$0xff]  }
  0x5c   : > { %3110 = vmatpush3.bf16.msra.mxu1 %v3445_v43  ;;  %3174 = vmatpush3.bf16.msra.mxu0 %v3448_v45  ;;  %v3538_v43 = vld [vmem:[%s4306_s1 + $0x2f8] sm:$0xff]  }
  0x5d   : > { %3111 = vmatprep.subr.bf16.mxu1 %v3452_v48  ;;  %3175 = vmatprep.subr.bf16.mxu0 %v3457_v52  ;;  %v3541_v45 = vld [vmem:[%s4306_s1 + $0x2b8] sm:$0xff]   ;;  %v3534_v48 = vld [vmem:[%s4306_s1 + $0x348] sm:$0xff]  }
  0x5e   : > { %1906 = vmatmul.mubr.bf16.gmra.mrb[28].mxu1 %v3421_v28  ;;  %2003 = vmatmul.mubr.bf16.gmra.mrb[28].mxu0 %v3426_v31  ;;  %v3505_v28 = vld [vmem:[%s4306_s1 + $0x320] sm:$0xff]   ;;  %v3513_v31 = vld [vmem:[%s4306_s1 + $0x328] sm:$0xff]  }
  0x5f   : > { %1913 = vmatprep.mubr.bf16.mxu1 %v3429_v32  ;;  %2010 = vmatprep.mubr.bf16.mxu0 %v3433_v34  ;;  %v3499_v32 = vld [vmem:[%s3668_s12 + $0x168] ss:$56 sps:$4 sm:$0xff]   ;;  %v3529_v52 = vld [vmem:[%s3668_s12 + $0x2c4] ss:$56 sps:$4 sm:$0xff]  }
  0x60   : > { %3112 = vmatpush3.bf16.msra.mxu1 %v3455_v50  ;;  %3176 = vmatpush3.bf16.msra.mxu0 %v3458_v53  ;;  %v3522_v34 = vld [vmem:[%s4306_s1 + $0x2a8] sm:$0xff]   ;;  %v3543_v53 = vld [vmem:[%s4306_s1 + $0x350] sm:$0xff]  }
  0x61   : > { %3113 = vmatprep.subr.bf16.mxu1 %v3462_v54  ;;  %3177 = vmatprep.subr.bf16.mxu0 %v3467_v60  ;;  %v3523_v50 = vld [vmem:[%s3668_s12 + $0x250] ss:$56 sps:$4 sm:$0xff]   ;;  %v3547_v54 = vld [vmem:[%s4306_s1 + $0x358] sm:$0xff]  }
  0x62   : > { %v3542_v60 = vld [vmem:[%s3668_s12 + $0x330] ss:$56 sps:$4 sm:$0x7f]  }
  0x64   : > { %3114 = vmatpush3.bf16.msra.mxu1 %v3465_v58  ;;  %3178 = vmatpush3.bf16.msra.mxu0 %v3468_v61  ;;  %v3539_v58 = vld [vmem:[%s3668_s12 + $0x334] ss:$56 sps:$4 sm:$0x7f]  }
  0x65   : > { %3227 = vmatprep.subr.bf16.mxu1 %v3472_v62  ;;  %2334 = vmatprep.subr.bf16.mxu0 %v3601_v1  ;;  %v3546_v61 = vld [vmem:[%s3668_s12 + $0x2c] ss:$56 sps:$4 sm:$0xff]  }
  0x66   : > { %1914 = vmatmul.mubr.bf16.gmra.mrb[32].mxu1 %v3431_v38  ;;  %2011 = vmatmul.mubr.bf16.gmra.mrb[32].mxu0 %v3436_v39  ;;  %v3515_v38 = vld [vmem:[%s4306_s1 + $0x330] sm:$0xff]  }
  0x67   : > { %1921 = vmatprep.mubr.bf16.mxu1 %v3439_v40  ;;  %2018 = vmatprep.mubr.bf16.mxu0 %v3443_v42  ;;  %v3531_v39 = vld [vmem:[%s4306_s1 + $0x2b0] sm:$0xff]   ;;  %v3524_v42 = vld [vmem:[%s4306_s1 + $0x338] sm:$0xff]  }
  0x68   : > { %v3508_v40 = vld [vmem:[%s3668_s12 + $0x1d8] ss:$56 sps:$4 sm:$0xff]   ;;  %v3550_v62 = vld [vmem:[%s3668_s12 + $0x34] ss:$56 sps:$4 sm:$0xff]  }
  0x6e   : > { %1922 = vmatmul.mubr.bf16.gmra.mrb[36].mxu1 %v3441_v46  ;;  %2019 = vmatmul.mubr.bf16.gmra.mrb[36].mxu0 %v3446_v47  ;;  %v3520_v46 = vld [vmem:[%s3668_s12 + $0x254] ss:$56 sps:$4 sm:$0xff]   ;;  %v3532_v47 = vld [vmem:[%s4306_s1 + $0x340] sm:$0xff]  }
  0x6f   : > { %1929 = vmatprep.mubr.bf16.mxu1 %v3449_v49  ;;  %2026 = vmatprep.mubr.bf16.mxu0 %v3453_v51  ;;  %v3518_v49 = vld [vmem:[%s3668_s12 + $0x248] ss:$56 sps:$4 sm:$0xff]   ;;  %v3525_v51 = vld [vmem:[%s3668_s12 + $0x2bc] ss:$56 sps:$4 sm:$0xff]  }
  0x76   : > { %1930 = vmatmul.mubr.bf16.gmra.mrb[40].mxu1 %v3451_v55  ;;  %2027 = vmatmul.mubr.bf16.gmra.mrb[40].mxu0 %v3456_v56  ;;  %v3527_v55 = vld [vmem:[%s3668_s12 + $0x2b8] ss:$56 sps:$4 sm:$0xff]  }
  0x77   : > { %1937 = vmatprep.mubr.bf16.mxu1 %v3459_v57  ;;  %2034 = vmatprep.mubr.bf16.mxu0 %v3463_v59  ;;  %v3533_v56 = vld [vmem:[%s3668_s12 + $0x2c0] ss:$56 sps:$4 sm:$0xff]   ;;  %v3535_v57 = vld [vmem:[%s3668_s12 + $0x32c] ss:$56 sps:$4 sm:$0x7f]  }
  0x78   : > { %v3537_v59 = vld [vmem:[%s3668_s12 + $0x328] ss:$56 sps:$4 sm:$0x7f]  }
  0x7e   : > { %1938 = vmatmul.mubr.bf16.gmra.mrb[44].mxu1 %v3461_v63  ;;  %2035 = vmatmul.mubr.bf16.gmra.mrb[44].mxu0 %v3466_v0  ;;  %v3544_v63 = vld [vmem:[%s3668_s12 + $0x28] ss:$56 sps:$4 sm:$0xff]  }
  0x7f   : > { %2075 = vmatprep.mubr.bf16.mxu1 %v3471_v2  ;;  %2172 = vmatprep.mubr.bf16.mxu0 %v3475_v3  ;;  %v3548_v0 = vld [vmem:[%s3668_s12 + $0x30] ss:$56 sps:$4 sm:$0xff]   ;;  %v3554_v2 = vld [vmem:[%s3668_s12 + $0xa4] ss:$56 sps:$4 sm:$0xff]  }
  0x80   : > { %v3553_v3 = vld [vmem:[%s3668_s12 + $0x98] ss:$56 sps:$4 sm:$0xff]  }
  0x86   : > { %2076 = vmatmul.mubr.bf16.vlgmr.msra.gmra.mrb[48].mxu1 %v3469_v4  ;;  %2173 = vmatmul.mubr.bf16.vlgmr.msra.gmra.mrb[48].mxu0 %v3473_v5  ;;  %v3556_v4 = vld [vmem:[%s3668_s12 + $0xa0] ss:$56 sps:$4 sm:$0xff]   ;;  %v3557_v5 = vld [vmem:[%s3668_s12 + $0x10c] ss:$56 sps:$4 sm:$0xff]  }
  0x87   : > { %3228 = vmatpush3.bf16.msra.mxu1 %v3476_v6  ;;  %2335 = vmatpush1.bf16.msra.mxu0 %v3477_v7  ;;  %v3560_v6 = vld [vmem:[%s3668_s12 + $0x114] ss:$56 sps:$4 sm:$0xff]   ;;  %v3559_v7 = vld [vmem:[%s3668_s12 + $0x108] ss:$56 sps:$4 sm:$0xff]  }
  0x88   : > { %2083 = vmatprep.mubr.bf16.mxu1 %v3478_v8  ;;  %3229 = vmatprep.subr.bf16.mxu1 %v3481_v9  ;;  %v3562_v8 = vld [vmem:[%s3668_s12 + $0x110] ss:$56 sps:$4 sm:$0xff]   ;;  %v3563_v9 = vld [vmem:[%s3668_s12 + $0x17c] ss:$56 sps:$4 sm:$0xff]  }
  0x89   : > { %2180 = vmatprep.mubr.bf16.mxu0 %v3482_v10  ;;  %2336 = vmatprep.subr.bf16.mxu0 %v3601_v1  ;;  %v3566_v10 = vld [vmem:[%s3668_s12 + $0x184] ss:$56 sps:$4 sm:$0xff]  }
  0x8b   : > { %3230 = vmatpush3.bf16.msra.mxu1 %v3484_v11  ;;  %2337 = vmatpush1.bf16.msra.mxu0 %v3486_v12  ;;  %v3565_v11 = vld [vmem:[%s3668_s12 + $0x178] ss:$56 sps:$4 sm:$0xff]  }
  0x8c   : > { %3231 = vmatprep.subr.bf16.mxu1 %v3490_v14  ;;  %2338 = vmatprep.subr.bf16.mxu0 %v3601_v1  ;;  %v3568_v12 = vld [vmem:[%s3668_s12 + $0x180] ss:$56 sps:$4 sm:$0xff]   ;;  %v3572_v14 = vld [vmem:[%s3668_s12 + $0x1f4] ss:$56 sps:$4 sm:$0xff]  }
  0x8e   : > { %2084 = vmatmul.mubr.bf16.gmra.mrb[52].mxu1 %v3480_v13  ;;  %2181 = vmatmul.mubr.bf16.gmra.mrb[52].mxu0 %v3485_v15  ;;  %v3569_v13 = vld [vmem:[%s3668_s12 + $0x1ec] ss:$56 sps:$4 sm:$0xff]   ;;  %v3571_v15 = vld [vmem:[%s3668_s12 + $0x1e8] ss:$56 sps:$4 sm:$0xff]  }
  0x8f   : > { %2091 = vmatprep.mubr.bf16.mxu1 %v3487_v16  ;;  %2188 = vmatprep.mubr.bf16.mxu0 %v3491_v17  ;;  %v3574_v16 = vld [vmem:[%s3668_s12 + $0x1f0] ss:$56 sps:$4 sm:$0xff]   ;;  %v3575_v17 = vld [vmem:[%s3668_s12 + $0x25c] ss:$56 sps:$4 sm:$0xff]  }
  0x90   : > { %3232 = vmatpush3.bf16.msra.mxu1 %v3493_v18  ;;  %2339 = vmatpush1.bf16.msra.mxu0 %v3494_v19  ;;  %v3578_v18 = vld [vmem:[%s3668_s12 + $0x264] ss:$56 sps:$4 sm:$0xff]   ;;  %v3577_v19 = vld [vmem:[%s3668_s12 + $0x258] ss:$56 sps:$4 sm:$0xff]  }
  0x91   : > { %2340 = vmatprep.subr.bf16.mxu0 %v3601_v1  ;;  %3233 = vmatprep.subr.bf16.mxu1 %v3500_v20  ;;  %v3580_v20 = vld [vmem:[%s3668_s12 + $0x260] ss:$56 sps:$4 sm:$0xff]  }
  0x94   : > { %2341 = vmatpush1.bf16.msra.mxu0 %v3496_v21  ;;  %3234 = vmatpush3.bf16.msra.mxu1 %v3503_v23  ;;  %v3581_v21 = vld [vmem:[%s3668_s12 + $0x2cc] ss:$56 sps:$4 sm:$0xff]   ;;  %v3583_v23 = vld [vmem:[%s3668_s12 + $0x2c8] ss:$56 sps:$4 sm:$0xff]  }
  0x95   : > { %2342 = vmatprep.subr.bf16.mxu0 %v3601_v1  ;;  %3235 = vmatprep.subr.bf16.mxu1 %v3509_v25  ;;  %v3587_v25 = vld [vmem:[%s3668_s12 + $0x33c] ss:$56 sps:$4 sm:$0x7f]  }
  0x96   : > { %2092 = vmatmul.mubr.bf16.gmra.mrb[56].mxu1 %v3489_v22  ;;  %2189 = vmatmul.mubr.bf16.gmra.mrb[56].mxu0 %v3495_v24  ;;  %v3584_v22 = vld [vmem:[%s3668_s12 + $0x2d4] ss:$56 sps:$4 sm:$0xff]   ;;  %v3586_v24 = vld [vmem:[%s3668_s12 + $0x2d0] ss:$56 sps:$4 sm:$0xff]  }
  0x97   : > { %2099 = vmatprep.mubr.bf16.mxu1 %v3497_v26  ;;  %2196 = vmatprep.mubr.bf16.mxu0 %v3501_v27  ;;  %v3590_v26 = vld [vmem:[%s3668_s12 + $0x344] ss:$56 sps:$4 sm:$0x7f]  }
  0x98   : > { %2343 = vmatpush1.bf16.msra.mxu0 %v3505_v28  ;;  %3236 = vmatpush3.bf16.msra.mxu1 %v3512_v29  ;;  %v3589_v29 = vld [vmem:[%s3668_s12 + $0x338] ss:$56 sps:$4 sm:$0x7f]  }
  0x99   : > { %2344 = vmatprep.subr.bf16.mxu0 %v3601_v1  ;;  %3237 = vmatprep.subr.bf16.mxu1 %v3519_v30 }
  0x9c   : > { %2345 = vmatpush1.bf16.msra.mxu0 %v3513_v31  ;;  %3238 = vmatpush3.bf16.msra.mxu1 %v3522_v34 }
  0x9d   : > { %2346 = vmatprep.subr.bf16.mxu0 %v3601_v1  ;;  %3239 = vmatprep.subr.bf16.mxu1 %v3528_v37 }
  0x9e   : > { %2100 = vmatmul.mubr.bf16.gmra.mrb[60].mxu1 %v3499_v32  ;;  %2197 = vmatmul.mubr.bf16.gmra.mrb[60].mxu0 %v3504_v33  ;;  %v3592_v32 = vld [vmem:[%s3668_s12 + $0x340] ss:$56 sps:$4 sm:$0x7f]  }
  0x9f   : > { %2107 = vmatprep.mubr.bf16.mxu1 %v3506_v35  ;;  %2204 = vmatprep.mubr.bf16.mxu0 %v3510_v36 }
  0xa0   : > { %2347 = vmatpush1.bf16.msra.mxu0 %v3515_v38  ;;  %3240 = vmatpush3.bf16.msra.mxu1 %v3531_v39 }
  0xa1   : > { %2348 = vmatprep.subr.bf16.mxu0 %v3601_v1  ;;  %3241 = vmatprep.subr.bf16.mxu1 %v3538_v43 }
  0xa4   : > { %2349 = vmatpush1.bf16.msra.mxu0 %v3524_v42  ;;  %3242 = vmatpush3.bf16.msra.mxu1 %v3541_v45 }
  0xa5   : > { %2350 = vmatprep.subr.bf16.mxu0 %v3601_v1 }
  0xa6   : > { %2108 = vmatmul.mubr.bf16.gmra.mrb[64].mxu1 %v3508_v40  ;;  %2205 = vmatmul.mubr.bf16.gmra.mrb[64].mxu0 %v3514_v41 }
  0xa7   : > { %2115 = vmatprep.mubr.bf16.mxu1 %v3516_v44  ;;  %2212 = vmatprep.mubr.bf16.mxu0 %v3520_v46 }
  0xa8   : > { %2351 = vmatpush1.bf16.msra.mxu0 %v3532_v47 }
  0xa9   : > { %2352 = vmatprep.subr.bf16.mxu0 %v3601_v1 }
  0xac   : > { %2353 = vmatpush1.bf16.msra.mxu0 %v3534_v48 }
  0xad   : > { %2354 = vmatprep.subr.bf16.mxu0 %v3601_v1 }
  0xae   : > { %2116 = vmatmul.mubr.bf16.gmra.mrb[68].mxu1 %v3518_v49  ;;  %2213 = vmatmul.mubr.bf16.gmra.mrb[68].mxu0 %v3523_v50 }
  0xaf   : > { %2123 = vmatprep.mubr.bf16.mxu1 %v3525_v51  ;;  %2220 = vmatprep.mubr.bf16.mxu0 %v3529_v52 }
  0xb0   : > { %2355 = vmatpush1.bf16.msra.mxu0 %v3543_v53 }
  0xb1   : > { %2356 = vmatprep.subr.bf16.mxu0 %v3601_v1  ;;  %v3551_v1 = vld [vmem:[%s3668_s12 + $0x9c] ss:$56 sps:$4 sm:$0xff]  }
  0xb4   : > { %2357 = vmatpush1.bf16.msra.mxu0 %v3547_v54 }
  0xb6   : > { %2124 = vmatmul.mubr.bf16.gmra.mrb[72].mxu1 %v3527_v55  ;;  %2221 = vmatmul.mubr.bf16.gmra.mrb[72].mxu0 %v3533_v56 }
  0xb7   : > { %2131 = vmatprep.mubr.bf16.mxu1 %v3535_v57  ;;  %2228 = vmatprep.mubr.bf16.mxu0 %v3539_v58 }
  0xbe   : > { %2132 = vmatmul.mubr.bf16.gmra.mrb[76].mxu1 %v3537_v59  ;;  %2229 = vmatmul.mubr.bf16.gmra.mrb[76].mxu0 %v3542_v60 }
  0xbf   : > { %2269 = vmatprep.mubr.bf16.mxu1 %v3546_v61  ;;  %2862 = vmatprep.mubr.msk.bf16.mxu0 %vm1727_vm0, %v3550_v62 }
  0xc6   : > { %2270 = vmatmul.mubr.bf16.vlgmr.msra.gmra.mrb[80].mxu1 %v3544_v63  ;;  %2367 = vmatmul.mubr.bf16.vlgmr.msra.gmra.mrb[80].mxu0 %v3548_v0 }
  0xc7   : > { %2277 = vmatprep.mubr.bf16.mxu1 %v3551_v1  ;;  %2863 = vmatprep.mubr.msk.bf16.mxu0 %vm1727_vm0, %v3554_v2 }
  0xce   : > { %2278 = vmatmul.mubr.bf16.gmra.mrb[84].mxu1 %v3553_v3  ;;  %2375 = vmatmul.mubr.bf16.gmra.mrb[84].mxu0 %v3556_v4 }
  0xcf   : > { %2285 = vmatprep.mubr.bf16.mxu1 %v3557_v5  ;;  %2864 = vmatprep.mubr.msk.bf16.mxu0 %vm1727_vm0, %v3560_v6 }
  0xd6   : > { %2286 = vmatmul.mubr.bf16.gmra.mrb[88].mxu1 %v3559_v7  ;;  %2383 = vmatmul.mubr.bf16.gmra.mrb[88].mxu0 %v3562_v8 }
  0xd7   : > { %2293 = vmatprep.mubr.bf16.mxu1 %v3563_v9  ;;  %2865 = vmatprep.mubr.msk.bf16.mxu0 %vm1727_vm0, %v3566_v10 }
  0xde   : > { %2294 = vmatmul.mubr.bf16.gmra.mrb[92].mxu1 %v3565_v11  ;;  %2391 = vmatmul.mubr.bf16.gmra.mrb[92].mxu0 %v3568_v12 }
  0xdf   : > { %2301 = vmatprep.mubr.bf16.mxu1 %v3569_v13  ;;  %2866 = vmatprep.mubr.msk.bf16.mxu0 %vm1727_vm0, %v3572_v14 }
  0xe6   : > { %2302 = vmatmul.mubr.bf16.gmra.mrb[96].mxu1 %v3571_v15  ;;  %2399 = vmatmul.mubr.bf16.gmra.mrb[96].mxu0 %v3574_v16 }
  0xe7   : > { %2309 = vmatprep.mubr.bf16.mxu1 %v3575_v17  ;;  %2867 = vmatprep.mubr.msk.bf16.mxu0 %vm1727_vm0, %v3578_v18 }
  0xee   : > { %2310 = vmatmul.mubr.bf16.gmra.mrb[100].mxu1 %v3577_v19  ;;  %2407 = vmatmul.mubr.bf16.gmra.mrb[100].mxu0 %v3580_v20 }
  0xef   : > { %2317 = vmatprep.mubr.bf16.mxu1 %v3581_v21  ;;  %2868 = vmatprep.mubr.msk.bf16.mxu0 %vm1727_vm0, %v3584_v22 }
  0xf6   : > { %2318 = vmatmul.mubr.bf16.gmra.mrb[104].mxu1 %v3583_v23  ;;  %2415 = vmatmul.mubr.bf16.gmra.mrb[104].mxu0 %v3586_v24 }
  0xf7   : > { %2325 = vmatprep.mubr.bf16.mxu1 %v3587_v25  ;;  %2869 = vmatprep.mubr.msk.bf16.mxu0 %vm1727_vm0, %v3590_v26 }
  0xf9   : > { %v2947_v27 = vpop.f32.mrb[0].mxu1  ;;  %v2923_v28 = vpop.f32.mrb[0].mxu0 }
  0xfa   : > { %v2948_v30 = vpop.f32.mrb[1].mxu1  ;;  %v2924_v31 = vpop.f32.mrb[1].mxu0 }
  0xfb   : > { %v4099_v33 = vadd.f32 %v2948_v30, %v2947_v27  ;;  %v2950_v34 = vpop.f32.mrb[2].mxu1  ;;  %v2925_v35 = vadd.f32 %v2924_v31, %v2923_v28  ;;  %v2926_v36 = vpop.f32.mrb[2].mxu0 }
  0xfc   : > { %v2951_v37 = vpop.f32.mrb[3].mxu1  ;;  %v2927_v38 = vpop.f32.mrb[3].mxu0 }
  0xfd   : > { %v4101_v39 = vadd.f32 %v2951_v37, %v2950_v34  ;;  %v2928_v40 = vadd.f32 %v2927_v38, %v2926_v36 }
  0xfe   : > { %2326 = vmatmul.mubr.bf16.gmra.mrb[108].mxu1 %v3589_v29  ;;  %2423 = vmatmul.mubr.bf16.gmra.mrb[108].mxu0 %v3592_v32 }
 0x101   : > { %v2953_v41 = vpop.f32.mrb[4].mxu1  ;;  %v2929_v42 = vpop.f32.mrb[4].mxu0 }
 0x102   : > { %v2954_v43 = vpop.f32.mrb[5].mxu1  ;;  %v2930_v44 = vpop.f32.mrb[5].mxu0 }
 0x103   : > { %v4103_v45 = vadd.f32 %v2954_v43, %v2953_v41  ;;  %v2956_v46 = vpop.f32.mrb[6].mxu1  ;;  %v2931_v47 = vadd.f32 %v2930_v44, %v2929_v42  ;;  %v2932_v48 = vpop.f32.mrb[6].mxu0 }
 0x104   : > { %v2957_v49 = vpop.f32.mrb[7].mxu1  ;;  %v2933_v50 = vpop.f32.mrb[7].mxu0 }
 0x105   : > { %v4105_v51 = vadd.f32 %v2957_v49, %v2956_v46  ;;  %v2934_v52 = vadd.f32 %v2933_v50, %v2932_v48 }
 0x109   : > { %v2959_v53 = vpop.f32.mrb[8].mxu1  ;;  %v2935_v54 = vpop.f32.mrb[8].mxu0 }
 0x10a   : > { %v2960_v55 = vpop.f32.mrb[9].mxu1  ;;  %v2936_v56 = vpop.f32.mrb[9].mxu0 }
 0x10b   : > { %v4107_v57 = vadd.f32 %v2960_v55, %v2959_v53  ;;  %v2962_v58 = vpop.f32.mrb[10].mxu1  ;;  %v2937_v59 = vadd.f32 %v2936_v56, %v2935_v54  ;;  %v2938_v60 = vpop.f32.mrb[10].mxu0 }
 0x10c   : > { %v2963_v61 = vpop.f32.mrb[11].mxu1  ;;  %v2939_v62 = vpop.f32.mrb[11].mxu0 }
 0x10d   : > { %v4109_v63 = vadd.f32 %v2963_v61, %v2962_v58  ;;  %v2940_v0 = vadd.f32 %v2939_v62, %v2938_v60 }
 0x111   : > { %v2965_v1 = vpop.f32.mrb[12].mxu1  ;;  %v2941_v2 = vpop.f32.mrb[12].mxu0 }
 0x112   : > { %v2966_v3 = vpop.f32.mrb[13].mxu1  ;;  %v2942_v4 = vpop.f32.mrb[13].mxu0 }
 0x113   : > { %v4111_v5 = vadd.f32 %v2966_v3, %v2965_v1  ;;  %v2968_v6 = vpop.f32.mrb[14].mxu1  ;;  %v4113_v7 = vadd.f32 %v2942_v4, %v2941_v2  ;;  %v2944_v8 = vpop.f32.mrb[14].mxu0 }
 0x114   : > { %v2969_v9 = vpop.f32.mrb[15].mxu1  ;;  %v2945_v10 = vpop.f32.mrb[15].mxu0 }
 0x115   : > { %v4115_v11 = vadd.f32 %v2969_v9, %v2968_v6  ;;  %v2946_v12 = vadd.f32 %v2945_v10, %v2944_v8 }
 0x119   : > { %v2987_v13 = vpop.f32.mrb[16].mxu1  ;;  %v3051_v14 = vpop.f32.mrb[16].mxu0 }
 0x11a   : > { %v2988_v15 = vpop.f32.mrb[17].mxu1  ;;  %v3052_v16 = vpop.f32.mrb[17].mxu0 }
 0x11b   : > { %v2989_v17 = vadd.f32 %v2988_v15, %v2987_v13  ;;  %v2990_v18 = vpop.f32.mrb[18].mxu1  ;;  %v3053_v19 = vadd.f32 %v3052_v16, %v3051_v14  ;;  %v3054_v20 = vpop.f32.mrb[18].mxu0 }
 0x11c   : > { %v2991_v21 = vpop.f32.mrb[19].mxu1  ;;  %v3055_v22 = vpop.f32.mrb[19].mxu0 }
 0x11d   : > { %v1884_v23 = vadd.f32 %v2989_v17, %v2925_v35  ;;  %v2992_v24 = vadd.f32 %v2991_v21, %v2990_v18  ;;  %v3056_v25 = vadd.f32 %v3055_v22, %v3054_v20 }
 0x11f   : > { %v1887_v26 = vadd.f32 %v2992_v24, %v2928_v40  ;;  %v4117_v27 = vadd.f32 %v3053_v19, %v1884_v23 }
 0x121   : > { %v4119_v28 = vadd.f32 %v3056_v25, %v1887_v26  ;;  %v2993_v29 = vpop.f32.mrb[20].mxu1  ;;  %v3057_v30 = vpop.f32.mrb[20].mxu0 }
 0x122   : > { %v2994_v31 = vpop.f32.mrb[21].mxu1  ;;  %v3058_v32 = vpop.f32.mrb[21].mxu0 }
 0x123   : > { %v2995_v34 = vadd.f32 %v2994_v31, %v2993_v29  ;;  %v2996_v36 = vpop.f32.mrb[22].mxu1  ;;  %v3059_v37 = vadd.f32 %v3058_v32, %v3057_v30  ;;  %v3060_v38 = vpop.f32.mrb[22].mxu0 }
 0x124   : > { %v2997_v41 = vpop.f32.mrb[23].mxu1  ;;  %v3061_v42 = vpop.f32.mrb[23].mxu0 }
 0x125   : > { %v1892_v43 = vadd.f32 %v2995_v34, %v2931_v47  ;;  %v2998_v44 = vadd.f32 %v2997_v41, %v2996_v36  ;;  %v3062_v35 = vadd.f32 %v3061_v42, %v3060_v38 }
 0x127   : > { %v1895_v46 = vadd.f32 %v2998_v44, %v2934_v52  ;;  %v4121_v48 = vadd.f32 %v3059_v37, %v1892_v43 }
 0x129   : > { %v4123_v40 = vadd.f32 %v3062_v35, %v1895_v46  ;;  %v2999_v49 = vpop.f32.mrb[24].mxu1  ;;  %v3063_v50 = vpop.f32.mrb[24].mxu0 }
 0x12a   : > { %v3000_v53 = vpop.f32.mrb[25].mxu1  ;;  %v3064_v54 = vpop.f32.mrb[25].mxu0 }
 0x12b   : > { %v3001_v55 = vadd.f32 %v3000_v53, %v2999_v49  ;;  %v3002_v56 = vpop.f32.mrb[26].mxu1  ;;  %v3065_v58 = vadd.f32 %v3064_v54, %v3063_v50  ;;  %v3066_v60 = vpop.f32.mrb[26].mxu0 }
 0x12c   : > { %v3003_v61 = vpop.f32.mrb[27].mxu1  ;;  %v3067_v62 = vpop.f32.mrb[27].mxu0 }
 0x12d   : > { %v1900_v1 = vadd.f32 %v3001_v55, %v2937_v59  ;;  %v3004_v2 = vadd.f32 %v3003_v61, %v3002_v56  ;;  %v3068_v47 = vadd.f32 %v3067_v62, %v3066_v60 }
 0x12f   : > { %v1903_v3 = vadd.f32 %v3004_v2, %v2940_v0  ;;  %v4125_v4 = vadd.f32 %v3065_v58, %v1900_v1 }
 0x131   : > { %v4127_v52 = vadd.f32 %v3068_v47, %v1903_v3  ;;  %v3005_v6 = vpop.f32.mrb[28].mxu1  ;;  %v3069_v8 = vpop.f32.mrb[28].mxu0 }
 0x132   : > { %v3006_v9 = vpop.f32.mrb[29].mxu1  ;;  %v3070_v10 = vpop.f32.mrb[29].mxu0 }
 0x133   : > { %v3007_v13 = vadd.f32 %v3006_v9, %v3005_v6  ;;  %v3008_v14 = vpop.f32.mrb[30].mxu1  ;;  %v3071_v15 = vadd.f32 %v3070_v10, %v3069_v8  ;;  %v3072_v16 = vpop.f32.mrb[30].mxu0 }
 0x134   : > { %v3009_v17 = vpop.f32.mrb[31].mxu1  ;;  %v3073_v18 = vpop.f32.mrb[31].mxu0 }
 0x135   : > { %v1908_v19 = vadd.f32 %v3007_v13, %v4113_v7  ;;  %v3010_v59 = vadd.f32 %v3009_v17, %v3008_v14  ;;  %v3074_v20 = vadd.f32 %v3073_v18, %v3072_v16 }
 0x137   : > { %v1911_v21 = vadd.f32 %v3010_v59, %v2946_v12  ;;  %v4130_v0 = vadd.f32 %v3071_v15, %v1908_v19 }
 0x139   : > { %v4132_v22 = vadd.f32 %v3074_v20, %v1911_v21  ;;  %v3011_v23 = vpop.f32.mrb[32].mxu1  ;;  %v3075_v24 = vpop.f32.mrb[32].mxu0 }
 0x13a   : > { %v3012_v25 = vpop.f32.mrb[33].mxu1  ;;  %v3076_v26 = vpop.f32.mrb[33].mxu0 }
 0x13b   : > { %v3013_v29 = vadd.f32 %v3012_v25, %v3011_v23  ;;  %v3014_v30 = vpop.f32.mrb[34].mxu1  ;;  %v3077_v31 = vadd.f32 %v3076_v26, %v3075_v24  ;;  %v3078_v32 = vpop.f32.mrb[34].mxu0 }
 0x13c   : > { %v3015_v34 = vpop.f32.mrb[35].mxu1  ;;  %v3079_v36 = vpop.f32.mrb[35].mxu0 }
 0x13d   : > { %v1916_v37 = vadd.f32 %v3013_v29, %v4099_v33  ;;  %v3016_v7 = vadd.f32 %v3015_v34, %v3014_v30  ;;  %v3080_v38 = vadd.f32 %v3079_v36, %v3078_v32 }
 0x13f   : > { %v1919_v12 = vadd.f32 %v3016_v7, %v4101_v39  ;;  %v4136_v41 = vadd.f32 %v3077_v31, %v1916_v37 }
 0x141   : > { %v4138_v42 = vadd.f32 %v3080_v38, %v1919_v12  ;;  %v3017_v43 = vpop.f32.mrb[36].mxu1  ;;  %v3081_v44 = vpop.f32.mrb[36].mxu0 }
 0x142   : > { %v3018_v35 = vpop.f32.mrb[37].mxu1  ;;  %v3082_v46 = vpop.f32.mrb[37].mxu0 }
 0x143   : > { %v3019_v49 = vadd.f32 %v3018_v35, %v3017_v43  ;;  %v3020_v50 = vpop.f32.mrb[38].mxu1  ;;  %v3083_v53 = vadd.f32 %v3082_v46, %v3081_v44  ;;  %v3084_v54 = vpop.f32.mrb[38].mxu0 }
 0x144   : > { %v3021_v55 = vpop.f32.mrb[39].mxu1  ;;  %v3085_v56 = vpop.f32.mrb[39].mxu0 }
 0x145   : > { %v1924_v33 = vadd.f32 %v3019_v49, %v4103_v45  ;;  %v3022_v58 = vadd.f32 %v3021_v55, %v3020_v50  ;;  %v3086_v60 = vadd.f32 %v3085_v56, %v3084_v54 }
 0x147   : > { %v1927_v39 = vadd.f32 %v3022_v58, %v4105_v51  ;;  %v4142_v61 = vadd.f32 %v3083_v53, %v1924_v33 }
 0x149   : > { %v4144_v62 = vadd.f32 %v3086_v60, %v1927_v39  ;;  %v3023_v1 = vpop.f32.mrb[40].mxu1  ;;  %v3087_v2 = vpop.f32.mrb[40].mxu0 }
 0x14a   : > { %v3024_v47 = vpop.f32.mrb[41].mxu1  ;;  %v3088_v3 = vpop.f32.mrb[41].mxu0 }
 0x14b   : > { %v3025_v6 = vadd.f32 %v3024_v47, %v3023_v1  ;;  %v3026_v8 = vpop.f32.mrb[42].mxu1  ;;  %v3089_v9 = vadd.f32 %v3088_v3, %v3087_v2  ;;  %v3090_v10 = vpop.f32.mrb[42].mxu0 }
 0x14c   : > { %v3027_v13 = vpop.f32.mrb[43].mxu1  ;;  %v3091_v14 = vpop.f32.mrb[43].mxu0 }
 0x14d   : > { %v1932_v45 = vadd.f32 %v3025_v6, %v4107_v57  ;;  %v3028_v15 = vadd.f32 %v3027_v13, %v3026_v8  ;;  %v3092_v16 = vadd.f32 %v3091_v14, %v3090_v10 }
 0x14f   : > { %v1935_v51 = vadd.f32 %v3028_v15, %v4109_v63  ;;  %v4148_v17 = vadd.f32 %v3089_v9, %v1932_v45 }
 0x151   : > { %v4150_v18 = vadd.f32 %v3092_v16, %v1935_v51  ;;  %v3029_v19 = vpop.f32.mrb[44].mxu1  ;;  %v3093_v59 = vpop.f32.mrb[44].mxu0 }
 0x152   : > { %v3030_v20 = vpop.f32.mrb[45].mxu1  ;;  %v3094_v21 = vpop.f32.mrb[45].mxu0 }
 0x153   : > { %v3031_v23 = vadd.f32 %v3030_v20, %v3029_v19  ;;  %v3032_v24 = vpop.f32.mrb[46].mxu1  ;;  %v3095_v25 = vadd.f32 %v3094_v21, %v3093_v59  ;;  %v3096_v26 = vpop.f32.mrb[46].mxu0 }
 0x154   : > { %v3033_v29 = vpop.f32.mrb[47].mxu1  ;;  %v3097_v30 = vpop.f32.mrb[47].mxu0 }
 0x155   : > { %v1940_v57 = vadd.f32 %v3031_v23, %v4111_v5  ;;  %v3034_v31 = vadd.f32 %v3033_v29, %v3032_v24  ;;  %v3098_v32 = vadd.f32 %v3097_v30, %v3096_v26 }
 0x157   : > { %v1943_v63 = vadd.f32 %v3034_v31, %v4115_v11  ;;  %v4154_v34 = vadd.f32 %v3095_v25, %v1940_v57 }
 0x159   : > { %v4156_v36 = vadd.f32 %v3098_v32, %v1943_v63  ;;  %v3115_v37 = vpop.f32.mrb[48].mxu1  ;;  %v3179_v7 = vpop.f32.mrb[48].mxu0 }
 0x15a   : > { %v3116_v38 = vpop.f32.mrb[49].mxu1  ;;  %v3180_v12 = vpop.f32.mrb[49].mxu0 }
 0x15b   : > { %v3117_v43 = vadd.f32 %v3116_v38, %v3115_v37  ;;  %v3118_v44 = vpop.f32.mrb[50].mxu1  ;;  %v3181_v35 = vadd.f32 %v3180_v12, %v3179_v7  ;;  %v3182_v46 = vpop.f32.mrb[50].mxu0 }
 0x15c   : > { %v3119_v49 = vpop.f32.mrb[51].mxu1  ;;  %v3183_v50 = vpop.f32.mrb[51].mxu0 }
 0x15d   : > { %v2078_v5 = vadd.f32 %v3117_v43, %v4117_v27  ;;  %v3120_v53 = vadd.f32 %v3119_v49, %v3118_v44  ;;  %v3184_v54 = vadd.f32 %v3183_v50, %v3182_v46 }
 0x15f   : > { %v2081_v11 = vadd.f32 %v3120_v53, %v4119_v28  ;;  %v4160_v55 = vadd.f32 %v3181_v35, %v2078_v5 }
 0x161   : > { %v4162_v56 = vadd.f32 %v3184_v54, %v2081_v11  ;;  %v3121_v33 = vpop.f32.mrb[52].mxu1  ;;  %v3185_v58 = vpop.f32.mrb[52].mxu0 }
 0x162   : > { %v3122_v60 = vpop.f32.mrb[53].mxu1  ;;  %v3186_v39 = vpop.f32.mrb[53].mxu0 }
 0x163   : > { %v3123_v1 = vadd.f32 %v3122_v60, %v3121_v33  ;;  %v3124_v2 = vpop.f32.mrb[54].mxu1  ;;  %v3187_v47 = vadd.f32 %v3186_v39, %v3185_v58  ;;  %v3188_v3 = vpop.f32.mrb[54].mxu0 }
 0x164   : > { %v3125_v6 = vpop.f32.mrb[55].mxu1  ;;  %v3189_v8 = vpop.f32.mrb[55].mxu0 }
 0x165   : > { %v2086_v27 = vadd.f32 %v3123_v1, %v4121_v48  ;;  %v3126_v9 = vadd.f32 %v3125_v6, %v3124_v2  ;;  %v3190_v10 = vadd.f32 %v3189_v8, %v3188_v3 }
 0x167   : > { %v2089_v28 = vadd.f32 %v3126_v9, %v4123_v40  ;;  %v4166_v13 = vadd.f32 %v3187_v47, %v2086_v27 }
 0x169   : > { %v4168_v14 = vadd.f32 %v3190_v10, %v2089_v28  ;;  %v3127_v45 = vpop.f32.mrb[56].mxu1  ;;  %v3191_v15 = vpop.f32.mrb[56].mxu0 }
 0x16a   : > { %v3128_v16 = vpop.f32.mrb[57].mxu1  ;;  %v3192_v51 = vpop.f32.mrb[57].mxu0 }
 0x16b   : > { %v3129_v19 = vadd.f32 %v3128_v16, %v3127_v45  ;;  %v3130_v59 = vpop.f32.mrb[58].mxu1  ;;  %v3193_v20 = vadd.f32 %v3192_v51, %v3191_v15  ;;  %v3194_v21 = vpop.f32.mrb[58].mxu0 }
 0x16c   : > { %v3131_v23 = vpop.f32.mrb[59].mxu1  ;;  %v3195_v24 = vpop.f32.mrb[59].mxu0 }
 0x16d   : > { %v2094_v48 = vadd.f32 %v3129_v19, %v4125_v4  ;;  %v3132_v25 = vadd.f32 %v3131_v23, %v3130_v59  ;;  %v3196_v26 = vadd.f32 %v3195_v24, %v3194_v21 }
 0x16f   : > { %v2097_v40 = vadd.f32 %v3132_v25, %v4127_v52  ;;  %v4172_v29 = vadd.f32 %v3193_v20, %v2094_v48 }
 0x171   : > { %v4174_v30 = vadd.f32 %v3196_v26, %v2097_v40  ;;  %v3133_v57 = vpop.f32.mrb[60].mxu1  ;;  %v3197_v31 = vpop.f32.mrb[60].mxu0 }
 0x172   : > { %v3134_v32 = vpop.f32.mrb[61].mxu1  ;;  %v3198_v63 = vpop.f32.mrb[61].mxu0 }
 0x173   : > { %v3135_v37 = vadd.f32 %v3134_v32, %v3133_v57  ;;  %v3136_v7 = vpop.f32.mrb[62].mxu1  ;;  %v3199_v38 = vadd.f32 %v3198_v63, %v3197_v31  ;;  %v3200_v12 = vpop.f32.mrb[62].mxu0 }
 0x174   : > { %v3137_v43 = vpop.f32.mrb[63].mxu1  ;;  %v3201_v44 = vpop.f32.mrb[63].mxu0 }
 0x175   : > { %v2102_v4 = vadd.f32 %v3135_v37, %v4130_v0  ;;  %v3138_v35 = vadd.f32 %v3137_v43, %v3136_v7  ;;  %v3202_v46 = vadd.f32 %v3201_v44, %v3200_v12 }
 0x177   : > { %v2105_v52 = vadd.f32 %v3138_v35, %v4132_v22  ;;  %v4178_v49 = vadd.f32 %v3199_v38, %v2102_v4 }
 0x179   : > { %v4180_v50 = vadd.f32 %v3202_v46, %v2105_v52  ;;  %v3139_v5 = vpop.f32.mrb[64].mxu1  ;;  %v3203_v53 = vpop.f32.mrb[64].mxu0 }
 0x17a   : > { %v3140_v54 = vpop.f32.mrb[65].mxu1  ;;  %v3204_v11 = vpop.f32.mrb[65].mxu0 }
 0x17b   : > { %v3141_v33 = vadd.f32 %v3140_v54, %v3139_v5  ;;  %v3142_v58 = vpop.f32.mrb[66].mxu1  ;;  %v3205_v60 = vadd.f32 %v3204_v11, %v3203_v53  ;;  %v3206_v39 = vpop.f32.mrb[66].mxu0 }
 0x17c   : > { %v3143_v1 = vpop.f32.mrb[67].mxu1  ;;  %v3207_v2 = vpop.f32.mrb[67].mxu0 }
 0x17d   : > { %v2110_v0 = vadd.f32 %v3141_v33, %v4136_v41  ;;  %v3144_v47 = vadd.f32 %v3143_v1, %v3142_v58  ;;  %v3208_v3 = vadd.f32 %v3207_v2, %v3206_v39 }
 0x17f   : > { %v2113_v22 = vadd.f32 %v3144_v47, %v4138_v42  ;;  %v4184_v6 = vadd.f32 %v3205_v60, %v2110_v0 }
 0x181   : > { %v4186_v8 = vadd.f32 %v3208_v3, %v2113_v22  ;;  %v3145_v27 = vpop.f32.mrb[68].mxu1  ;;  %v3209_v9 = vpop.f32.mrb[68].mxu0 }
 0x182   : > { %v3146_v10 = vpop.f32.mrb[69].mxu1  ;;  %v3210_v28 = vpop.f32.mrb[69].mxu0 }
 0x183   : > { %v3147_v45 = vadd.f32 %v3146_v10, %v3145_v27  ;;  %v3148_v15 = vpop.f32.mrb[70].mxu1  ;;  %v3211_v16 = vadd.f32 %v3210_v28, %v3209_v9  ;;  %v3212_v51 = vpop.f32.mrb[70].mxu0 }
 0x184   : > { %v3149_v19 = vpop.f32.mrb[71].mxu1  ;;  %v3213_v59 = vpop.f32.mrb[71].mxu0 }
 0x185   : > { %v2118_v41 = vadd.f32 %v3147_v45, %v4142_v61  ;;  %v3150_v20 = vadd.f32 %v3149_v19, %v3148_v15  ;;  %v3214_v21 = vadd.f32 %v3213_v59, %v3212_v51  ;;  %v4216_v19 = vld [vmem:[%s4308_s3] ss:$0 sm:$0xff] }
 0x187   : > { %v2121_v42 = vadd.f32 %v3150_v20, %v4144_v62  ;;  %v4190_v23 = vadd.f32 %v3211_v16, %v2118_v41 }
 0x189   : > { %v4192_v24 = vadd.f32 %v3214_v21, %v2121_v42  ;;  %v3151_v48 = vpop.f32.mrb[72].mxu1  ;;  %v3215_v25 = vpop.f32.mrb[72].mxu0 }
 0x18a   : > { %v3152_v26 = vpop.f32.mrb[73].mxu1  ;;  %v3216_v40 = vpop.f32.mrb[73].mxu0 }
 0x18b   : > { %v3153_v57 = vadd.f32 %v3152_v26, %v3151_v48  ;;  %v3154_v31 = vpop.f32.mrb[74].mxu1  ;;  %v3217_v32 = vadd.f32 %v3216_v40, %v3215_v25  ;;  %v3218_v63 = vpop.f32.mrb[74].mxu0 }
 0x18c   : > { %v3155_v37 = vpop.f32.mrb[75].mxu1  ;;  %v3219_v7 = vpop.f32.mrb[75].mxu0 }
 0x18d   : > { %v2126_v61 = vadd.f32 %v3153_v57, %v4148_v17  ;;  %v3156_v38 = vadd.f32 %v3155_v37, %v3154_v31  ;;  %v3220_v12 = vadd.f32 %v3219_v7, %v3218_v63 }
 0x18f   : > { %v2129_v62 = vadd.f32 %v3156_v38, %v4150_v18  ;;  %v4196_v43 = vadd.f32 %v3217_v32, %v2126_v61 }
 0x191   : > { %v4198_v44 = vadd.f32 %v3220_v12, %v2129_v62  ;;  %v3157_v4 = vpop.f32.mrb[76].mxu1  ;;  %v3221_v35 = vpop.f32.mrb[76].mxu0 }
 0x192   : > { %v3158_v46 = vpop.f32.mrb[77].mxu1  ;;  %v3222_v52 = vpop.f32.mrb[77].mxu0 }
 0x193   : > { %v3159_v5 = vadd.f32 %v3158_v46, %v3157_v4  ;;  %v3160_v53 = vpop.f32.mrb[78].mxu1  ;;  %v3223_v54 = vadd.f32 %v3222_v52, %v3221_v35  ;;  %v3224_v11 = vpop.f32.mrb[78].mxu0 }
 0x194   : > { %v3161_v33 = vpop.f32.mrb[79].mxu1  ;;  %v3225_v58 = vpop.f32.mrb[79].mxu0 }
 0x195   : > { %v2134_v17 = vadd.f32 %v3159_v5, %v4154_v34  ;;  %v3162_v60 = vadd.f32 %v3161_v33, %v3160_v53  ;;  %v3226_v39 = vadd.f32 %v3225_v58, %v3224_v11 }
 0x197   : > { %v2137_v18 = vadd.f32 %v3162_v60, %v4156_v36  ;;  %v4202_v1 = vadd.f32 %v3223_v54, %v2134_v17  ;;  %v4210_v36 = vld [vmem:[%s4307_s2] ss:$0 sm:$0xff] }
 0x199   : > { %v4204_v2 = vadd.f32 %v3226_v39, %v2137_v18  ;;  %v3243_v0 = vpop.f32.mrb[80].mxu1  ;;  %v2368_v47 = vpop.f32.mrb[80].mxu0 }
 0x19a   : > { %v3244_v3 = vpop.f32.mrb[81].mxu1  ;;  %v2370_v22 = vpop.f32.mrb[81].mxu0 }
 0x19b   : > { %v3245_v27 = vadd.f32 %v3244_v3, %v3243_v0  ;;  %v3246_v9 = vpop.f32.mrb[82].mxu1  ;;  %v2371_v10 = vpop.f32.mrb[82].mxu0 }
 0x19c   : > { %v3247_v28 = vpop.f32.mrb[83].mxu1  ;;  %v2373_v45 = vpop.f32.mrb[83].mxu0 }
 0x19d   : > { %v3248_v15 = vadd.f32 %v3247_v28, %v3246_v9  ;;  %v2272_v34 = vadd.f32 %v3245_v27, %v4160_v55 }
 0x19f   : > { %v2369_v16 = vadd.f32 %v2368_v47, %v2272_v34  ;;  %v2275_v51 = vadd.f32 %v3248_v15, %v4162_v56 }
 0x1a1   : > { %v2438_v59 = vmul.f32 %v4210_v36, %v2369_v16  ;;  %v2372_v41 = vadd.f32 %v2371_v10, %v2275_v51  ;;  %v3249_v20 = vpop.f32.mrb[84].mxu1  ;;  %v2376_v21 = vpop.f32.mrb[84].mxu0 }
 0x1a2   : > { %v3250_v42 = vpop.f32.mrb[85].mxu1  ;;  %v2378_v55 = vpop.f32.mrb[85].mxu0 }
 0x1a3   : > { %v2461_v48 = vadd.f32 %v4216_v19, %v2438_v59  ;;  %v2439_v25 = vmul.f32 %v4210_v36, %v2372_v41  ;;  %v3251_v26 = vadd.f32 %v3250_v42, %v3249_v20  ;;  %v3252_v40 = vpop.f32.mrb[86].mxu1  ;;  %v2379_v56 = vpop.f32.mrb[86].mxu0 }
 0x1a4   : > { %v3253_v57 = vpop.f32.mrb[87].mxu1  ;;  %v2381_v31 = vpop.f32.mrb[87].mxu0 }
 0x1a5   : > { %v2477_v32 = vmax.f32 %v2461_v48, 0.0  ;;  %v2462_v63 = vadd.f32 %v4216_v19, %v2439_v25  ;;  %v3254_v37 = vadd.f32 %v3253_v57, %v3252_v40  ;;  %v2280_v7 = vadd.f32 %v3251_v26, %v4166_v13 }
 0x1a7   : > { %v2891_v61 = vpack.c.bf16 %v2477_v32, %v2477_v32  ;;  %v2478_v38 = vmax.f32 %v2462_v63, 0.0  ;;  %v2377_v12 = vadd.f32 %v2376_v21, %v2280_v7  ;;  %v2283_v62 = vadd.f32 %v3254_v37, %v4168_v14 }
 0x1a9   : > { %2558 = vst.msk [vmem:[%s4227_s9] sm:$0xf] %vm2557_vm1, %v2891_v61  ;;  %v2892_v4 = vpack.c.bf16 %v2478_v38, %v2478_v38  ;;  %v2440_v35 = vmul.f32 %v4210_v36, %v2377_v12  ;;  %v2380_v46 = vadd.f32 %v2379_v56, %v2283_v62  ;;  %v3255_v13 = vpop.f32.mrb[88].mxu1  ;;  %v2384_v52 = vpop.f32.mrb[88].mxu0 }
 0x1aa   : > { %v3256_v5 = vpop.f32.mrb[89].mxu1  ;;  %v2386_v53 = vpop.f32.mrb[89].mxu0 }
 0x1ab   : > { %2559 = vst.msk [vmem:[%s4227_s9 + $0x4] sm:$0xf] %vm2557_vm1, %v2892_v4  ;;  %v2463_v54 = vadd.f32 %v4216_v19, %v2440_v35  ;;  %v2441_v11 = vmul.f32 %v4210_v36, %v2380_v46  ;;  %v3257_v33 = vadd.f32 %v3256_v5, %v3255_v13  ;;  %v3258_v58 = vpop.f32.mrb[90].mxu1  ;;  %v2387_v14 = vpop.f32.mrb[90].mxu0 }
 0x1ac   : > { %v3259_v17 = vpop.f32.mrb[91].mxu1  ;;  %v2389_v60 = vpop.f32.mrb[91].mxu0 }
 0x1ad   : > { %v2479_v39 = vmax.f32 %v2463_v54, 0.0  ;;  %v2464_v18 = vadd.f32 %v4216_v19, %v2441_v11  ;;  %v3260_v0 = vadd.f32 %v3259_v17, %v3258_v58  ;;  %v2288_v47 = vadd.f32 %v3257_v33, %v4172_v29 }
 0x1af   : > { %v2893_v3 = vpack.c.bf16 %v2479_v39, %v2479_v39  ;;  %v2480_v22 = vmax.f32 %v2464_v18, 0.0  ;;  %v2385_v27 = vadd.f32 %v2384_v52, %v2288_v47  ;;  %v2291_v9 = vadd.f32 %v3260_v0, %v4174_v30 }
 0x1b1   : > { %2560 = vst.msk [vmem:[%s4227_s9 + $0x8] sm:$0xf] %vm2557_vm1, %v2893_v3  ;;  %v2894_v10 = vpack.c.bf16 %v2480_v22, %v2480_v22  ;;  %v2442_v28 = vmul.f32 %v4210_v36, %v2385_v27  ;;  %v2388_v45 = vadd.f32 %v2387_v14, %v2291_v9  ;;  %v3261_v15 = vpop.f32.mrb[92].mxu1  ;;  %v2392_v34 = vpop.f32.mrb[92].mxu0 }
 0x1b2   : > { %v3262_v16 = vpop.f32.mrb[93].mxu1  ;;  %v2394_v51 = vpop.f32.mrb[93].mxu0 }
 0x1b3   : > { %2561 = vst.msk [vmem:[%s4227_s9 + $0xc] sm:$0xf] %vm2557_vm1, %v2894_v10  ;;  %v2465_v29 = vadd.f32 %v4216_v19, %v2442_v28  ;;  %v2443_v59 = vmul.f32 %v4210_v36, %v2388_v45  ;;  %v3263_v41 = vadd.f32 %v3262_v16, %v3261_v15  ;;  %v3264_v20 = vpop.f32.mrb[94].mxu1  ;;  %v2395_v30 = vpop.f32.mrb[94].mxu0 }
 0x1b4   : > { %v3265_v21 = vpop.f32.mrb[95].mxu1  ;;  %v2397_v42 = vpop.f32.mrb[95].mxu0 }
 0x1b5   : > { %v2481_v55 = vmax.f32 %v2465_v29, 0.0  ;;  %v2466_v48 = vadd.f32 %v4216_v19, %v2443_v59  ;;  %v3266_v25 = vadd.f32 %v3265_v21, %v3264_v20  ;;  %v2296_v26 = vadd.f32 %v3263_v41, %v4178_v49 }
 0x1b7   : > { %v2895_v40 = vpack.c.bf16 %v2481_v55, %v2481_v55  ;;  %v2482_v56 = vmax.f32 %v2466_v48, 0.0  ;;  %v2393_v57 = vadd.f32 %v2392_v34, %v2296_v26  ;;  %v2299_v31 = vadd.f32 %v3266_v25, %v4180_v50 }
 0x1b9   : > { %2562 = vst.msk [vmem:[%s4227_s9 + $0x10] sm:$0xf] %vm2557_vm1, %v2895_v40  ;;  %v2896_v32 = vpack.c.bf16 %v2482_v56, %v2482_v56  ;;  %v2444_v63 = vmul.f32 %v4210_v36, %v2393_v57  ;;  %v2396_v37 = vadd.f32 %v2395_v30, %v2299_v31  ;;  %v3267_v7 = vpop.f32.mrb[96].mxu1  ;;  %v2400_v61 = vpop.f32.mrb[96].mxu0 }
 0x1ba   : > { %v3268_v38 = vpop.f32.mrb[97].mxu1  ;;  %v2402_v12 = vpop.f32.mrb[97].mxu0 }
 0x1bb   : > { %2563 = vst.msk [vmem:[%s4227_s9 + $0x14] sm:$0xf] %vm2557_vm1, %v2896_v32  ;;  %v2467_v49 = vadd.f32 %v4216_v19, %v2444_v63  ;;  %v2445_v62 = vmul.f32 %v4210_v36, %v2396_v37  ;;  %v3269_v4 = vadd.f32 %v3268_v38, %v3267_v7  ;;  %v3270_v35 = vpop.f32.mrb[98].mxu1  ;;  %v2403_v50 = vpop.f32.mrb[98].mxu0 }
 0x1bc   : > { %v3271_v46 = vpop.f32.mrb[99].mxu1  ;;  %v2405_v13 = vpop.f32.mrb[99].mxu0 }
 0x1bd   : > { %v2483_v52 = vmax.f32 %v2467_v49, 0.0  ;;  %v2468_v5 = vadd.f32 %v4216_v19, %v2445_v62  ;;  %v3272_v53 = vadd.f32 %v3271_v46, %v3270_v35  ;;  %v2304_v54 = vadd.f32 %v3269_v4, %v4184_v6 }
 0x1bf   : > { %v2897_v11 = vpack.c.bf16 %v2483_v52, %v2483_v52  ;;  %v2484_v33 = vmax.f32 %v2468_v5, 0.0  ;;  %v2401_v58 = vadd.f32 %v2400_v61, %v2304_v54  ;;  %v2307_v14 = vadd.f32 %v3272_v53, %v4186_v8 }
 0x1c1   : > { %2564 = vst.msk [vmem:[%s4227_s9 + $0x18] sm:$0xf] %vm2557_vm1, %v2897_v11  ;;  %v2898_v17 = vpack.c.bf16 %v2484_v33, %v2484_v33  ;;  %v2446_v60 = vmul.f32 %v4210_v36, %v2401_v58  ;;  %v2404_v39 = vadd.f32 %v2403_v50, %v2307_v14  ;;  %v3273_v18 = vpop.f32.mrb[100].mxu1  ;;  %v2408_v0 = vpop.f32.mrb[100].mxu0 }
 0x1c2   : > { %v3274_v47 = vpop.f32.mrb[101].mxu1  ;;  %v2410_v3 = vpop.f32.mrb[101].mxu0 }
 0x1c3   : > { %2565 = vst.msk [vmem:[%s4227_s9 + $0x1c] sm:$0xf] %vm2557_vm1, %v2898_v17  ;;  %v2469_v6 = vadd.f32 %v4216_v19, %v2446_v60  ;;  %v2447_v22 = vmul.f32 %v4210_v36, %v2404_v39  ;;  %v3275_v27 = vadd.f32 %v3274_v47, %v3273_v18  ;;  %v3276_v9 = vpop.f32.mrb[102].mxu1  ;;  %v2411_v8 = vpop.f32.mrb[102].mxu0 }
 0x1c4   : > { %v3277_v10 = vpop.f32.mrb[103].mxu1  ;;  %v2413_v28 = vpop.f32.mrb[103].mxu0 }
 0x1c5   : > { %v2485_v45 = vmax.f32 %v2469_v6, 0.0  ;;  %v2470_v15 = vadd.f32 %v4216_v19, %v2447_v22  ;;  %v3278_v34 = vadd.f32 %v3277_v10, %v3276_v9  ;;  %v2312_v16 = vadd.f32 %v3275_v27, %v4190_v23  ;;  %v2576_v28 = vld [vmem:[%s4227_s9 + $0x3c] sm:$0x7] }
 0x1c7   : > { %v2899_v51 = vpack.c.bf16 %v2485_v45, %v2485_v45  ;;  %v2486_v29 = vmax.f32 %v2470_v15, 0.0  ;;  %v2409_v59 = vadd.f32 %v2408_v0, %v2312_v16  ;;  %v2315_v41 = vadd.f32 %v3278_v34, %v4192_v24 }
 0x1c9   : > { %2566 = vst.msk [vmem:[%s4227_s9 + $0x20] sm:$0xf] %vm2557_vm1, %v2899_v51  ;;  %v2900_v20 = vpack.c.bf16 %v2486_v29, %v2486_v29  ;;  %v2448_v30 = vmul.f32 %v4210_v36, %v2409_v59  ;;  %v2412_v21 = vadd.f32 %v2411_v8, %v2315_v41  ;;  %v3279_v42 = vpop.f32.mrb[104].mxu1  ;;  %v2416_v55 = vpop.f32.mrb[104].mxu0 }
 0x1ca   : > { %v3280_v48 = vpop.f32.mrb[105].mxu1  ;;  %v2418_v25 = vpop.f32.mrb[105].mxu0 }
 0x1cb   : > { %2567 = vst.msk [vmem:[%s4227_s9 + $0x24] sm:$0xf] %vm2557_vm1, %v2900_v20  ;;  %v2471_v23 = vadd.f32 %v4216_v19, %v2448_v30  ;;  %v2449_v26 = vmul.f32 %v4210_v36, %v2412_v21  ;;  %v3281_v40 = vadd.f32 %v3280_v48, %v3279_v42  ;;  %v3282_v56 = vpop.f32.mrb[106].mxu1  ;;  %v2419_v24 = vpop.f32.mrb[106].mxu0 }
 0x1cc   : > { %v3283_v57 = vpop.f32.mrb[107].mxu1  ;;  %v2421_v31 = vpop.f32.mrb[107].mxu0 }
 0x1cd   : > { %v2487_v32 = vmax.f32 %v2471_v23, 0.0  ;;  %v2472_v63 = vadd.f32 %v4216_v19, %v2449_v26  ;;  %v3284_v37 = vadd.f32 %v3283_v57, %v3282_v56  ;;  %v2320_v7 = vadd.f32 %v3281_v40, %v4196_v43 }
 0x1cf   : > { %v2901_v61 = vpack.c.bf16 %v2487_v32, %v2487_v32  ;;  %v2488_v38 = vmax.f32 %v2472_v63, 0.0  ;;  %v2417_v12 = vadd.f32 %v2416_v55, %v2320_v7  ;;  %v2323_v49 = vadd.f32 %v3284_v37, %v4198_v44 }
 0x1d1   : > { %2568 = vst.msk [vmem:[%s4227_s9 + $0x28] sm:$0xf] %vm2557_vm1, %v2901_v61  ;;  %v2902_v62 = vpack.c.bf16 %v2488_v38, %v2488_v38  ;;  %v2450_v4 = vmul.f32 %v4210_v36, %v2417_v12  ;;  %v2420_v35 = vadd.f32 %v2419_v24, %v2323_v49  ;;  %v3285_v50 = vpop.f32.mrb[108].mxu1  ;;  %v2424_v46 = vpop.f32.mrb[108].mxu0 }
 0x1d2   : > { %v3286_v13 = vpop.f32.mrb[109].mxu1  ;;  %v2426_v52 = vpop.f32.mrb[109].mxu0 }
 0x1d3   : > { %2569 = vst.msk [vmem:[%s4227_s9 + $0x2c] sm:$0xf] %vm2557_vm1, %v2902_v62  ;;  %v2473_v43 = vadd.f32 %v4216_v19, %v2450_v4  ;;  %v2451_v5 = vmul.f32 %v4210_v36, %v2420_v35  ;;  %v3287_v53 = vadd.f32 %v3286_v13, %v3285_v50  ;;  %v3288_v54 = vpop.f32.mrb[110].mxu1  ;;  %v2427_v44 = vpop.f32.mrb[110].mxu0 }
 0x1d4   : > { %v3289_v11 = vpop.f32.mrb[111].mxu1  ;;  %v2429_v33 = vpop.f32.mrb[111].mxu0 }
 0x1d5   : > { %v2489_v58 = vmax.f32 %v2473_v43, 0.0  ;;  %v2474_v14 = vadd.f32 %v4216_v19, %v2451_v5  ;;  %v3290_v17 = vadd.f32 %v3289_v11, %v3288_v54  ;;  %v2328_v60 = vadd.f32 %v3287_v53, %v4202_v1 }
 0x1d7   : > { %v2903_v39 = vpack.c.bf16 %v2489_v58, %v2489_v58  ;;  %v2490_v18 = vmax.f32 %v2474_v14, 0.0  ;;  %v2425_v0 = vadd.f32 %v2424_v46, %v2328_v60  ;;  %v2331_v47 = vadd.f32 %v3290_v17, %v4204_v2 }
 0x1d9   : > { %2570 = vst.msk [vmem:[%s4227_s9 + $0x30] sm:$0xf] %vm2557_vm1, %v2903_v39  ;;  %v2904_v3 = vpack.c.bf16 %v2490_v18, %v2490_v18  ;;  %v2452_v6 = vmul.f32 %v4210_v36, %v2425_v0  ;;  %v2428_v22 = vadd.f32 %v2427_v44, %v2331_v47 }
 0x1db   : > { %2571 = vst.msk [vmem:[%s4227_s9 + $0x34] sm:$0xf] %vm2557_vm1, %v2904_v3  ;;  %v2475_v27 = vadd.f32 %v4216_v19, %v2452_v6  ;;  %v2453_v1 = vmul.f32 %v4210_v36, %v2428_v22 }
 0x1dd   : > { %v2491_v9 = vmax.f32 %v2475_v27, 0.0  ;;  %v2476_v8 = vadd.f32 %v4216_v19, %v2453_v1 }
 0x1df   : > { %v2905_v2 = vpack.c.bf16 %v2491_v9, %v2491_v9  ;;  %v2492_v10 = vmax.f32 %v2476_v8, 0.0 }
 0x1e1   : > { %2572 = vst.msk [vmem:[%s4227_s9 + $0x38] sm:$0xf] %vm2557_vm1, %v2905_v2  ;;  %v2906_v45 = vpack.c.bf16 %v2492_v10, %v2492_v10 }
 0x1e3   : > { %v2577_v15 = vsel %vm2575_vm4, %v2906_v45, %v2576_v28 }
 0x1e4   : > { %2578 = vst [vmem:[%s4227_s9 + $0x3c] sm:$0x7] %v2577_v15 }
 0x1e5 PF: > { %s14_s15 = sadd.s32 1, %s3599_s15  }
 0x1e6   : > { %p11_p4 = scmp.ge.s32.totalorder %s14_s15, 4  }
 0x1e8   :  { %13 = sbr.rel (!%p11_p4) target bundleno = 1 (0x1), region = 66 }

// kernel: _lambda_.7
= control target key start
LH: loop header
LB: loop body
LE: loop exit
PB: predicated region body
PF: predicated region fallthrough
CT: control target
= control target key end

     0   :  { %s5046_s0 = inlined_call_operand.vmem [shape: bf16[2,125,1728], index: 0, kind: input, shape index: {}]   ;;  %s5047_s1 = inlined_call_operand.vmem [shape: bf16[1728,128], index: 1, kind: input, shape index: {}]   ;;  %s5048_s2 = inlined_call_operand.vmem [shape: f32[1,128], index: 2, kind: input, shape index: {}]   ;;  %s5049_s3 = inlined_call_operand.vmem [shape: f32[1,128], index: 3, kind: input, shape index: {}]   ;;  %s5050_s4 = inlined_call_operand.vmem [shape: f32[2,1,32], index: 4, kind: input, shape index: {}]   ;;  %s5051_s5 = inlined_call_operand.vmem [shape: f32[1,32], index: 5, kind: input, shape index: {}]   ;;  %s5052_s6 = inlined_call_operand.<no memory space> [shape: f32[1,1], index: 6, kind: input, shape index: {}]   ;;  %s5053_s7 = inlined_call_operand.vmem [shape: f32[128,64], index: 7, kind: input, shape index: {}]   ;;  %s5054_s8 = inlined_call_operand.vmem [shape: f32[1,64], index: 8, kind: input, shape index: {}]   ;;  %s5055_s9 = inlined_call_operand.vmem [shape: f32[64,2], index: 9, kind: input, shape index: {}]   ;;  %s5056_s10 = inlined_call_operand.vmem [shape: f32[1,2], index: 10, kind: input, shape index: {}]   ;;  %s5057_s11 = inlined_call_operand.hbm [shape: f32[2,1,2], index: 11, kind: output, shape index: {}]  }
   0x1   :  { %5058 = sst [smem:[#allocation6_spill]] %s5046_s0  ;;  %v16_v0 = vstv %s5052_s6 }
   0x2   :  { %17 = vst [vmem:[#allocation2] sm:$0x1] %v16_v0 }
   0x3   :  { %18 = vsyncpa [#allocation4], 0 }
   0x4   :  { %20 = vsyncpa [#allocation4 + $0x1], 0  ;;  %s4218_s19 = smov 0   ;;  %s4220_s20 = smov 0  }
   0x5   :  { %s4222_s21 = smov 0   ;;  %s4224_s22 = smov 0  }
   0x6 LB: > { %s4239_s6 = sadd.s32 4294967295, %s4148_s22   ;;  %s3001_s23 = sadd.s32 4294967294, %s4148_s22   ;;  %s4148_s22 = sphi %s4224_s22, %s5065_s22   ;;  %s4144_s21 = sphi %s4222_s21, %s5064_s21   ;;  %s4140_s20 = sphi %s4220_s20, %s5063_s20   ;;  %s4136_s19 = sphi %s4218_s19, %s5062_s19  }
   0x7   : > { %s4243_s24 = sadd.s32 1, %s4148_s22   ;;  %s274_s25 = sadd.s32 1, %s4144_s21 }
   0x8   : > { %s271_s26 = ssub.s32 %s4148_s22, %s4243_s24  ;;  %p284_p0 = scmp.ne.s32.totalorder %s4144_s21, %s4140_s20 }
   0x9   : > { %p272_p1 = scmp.eq.s32.totalorder %s271_s26, 0  ;;  %p285_p2 = scmp.eq.s32.totalorder %s4239_s6, 1 }
   0xa   : > { %p290_p3 = scmp.ne.s32.totalorder %s4140_s20, %s4136_s19  ;;  %p291_p4 = scmp.eq.s32.totalorder %s3001_s23, 1 }
   0xb   : > { %s4254_s27 = scalar_select %p272_p1, %s4144_s21, %s274_s25  }
   0xc   : > { %p4256_p5 = por %p285_p2, %p284_p0  ;;  %p4260_p6 = por %p291_p4, %p290_p3 }
   0xd   : > { %p3004_p7 = scmp.ge.s32.totalorder %s4148_s22, 1  ;;  %p350_p8 = scmp.lt.s32.totalorder %s4148_s22, 3 }
   0xf   : > { %p351_p9 = pnand %p3004_p7, %p350_p8 }
  0x10   : > { %v3802_v1 = vld [vmem:[%s5047_s1 + $0x40] sm:$0xff] (!%p351_p9)   ;;  %v3804_v3 = vld [vmem:[%s5047_s1 + $0x48] sm:$0xff] (!%p351_p9)   ;;  %p392_p10 = scmp.lt.s32.totalorder (!%p351_p9), %s4239_s6, 1  ;;  %v3806_v5 = vld [vmem:[%s5047_s1 + $0x50] sm:$0xff] (!%p351_p9)   ;;  %v4150_v6 = vmov (!%p351_p9), 0   ;;  %s5061_s0 = sld [smem:[#allocation6_spill]] (!%p351_p9) }
  0x11   : > { %354 = sbr.rel (%p351_p9) target bundleno = 1269 (0x4f5), region = 64  ;;  %v3803_v2 = vld [vmem:[%s5047_s1] sm:$0xff] (!%p351_p9)   ;;  %3741 = vmatprep.subr.bf16.mxu1 (!%p351_p9), %v3802_v1  ;;  %3241 = vmatprep.subr.bf16.mxu0 (!%p351_p9), %v3802_v1  ;;  %v3805_v4 = vld [vmem:[%s5047_s1 + $0x8] sm:$0xff] (!%p351_p9)   ;;  %v3807_v7 = vld [vmem:[%s5047_s1 + $0x10] sm:$0xff] (!%p351_p9)   ;;  %vm2723_vm0 = vcmask (!%p351_p9), 253952   ;;  %vm1929_vm1 = vcmask (!%p351_p9), 523264  }
  0x12   : > { %3749 = vmatpush3.bf16.msra.mxu1 (!%p351_p9), %v3803_v2  ;;  %3242 = vmatpush3.bf16.msra.mxu0 (!%p351_p9), %v3803_v2  ;;  %v3808_v8 = vld [vmem:[%s5047_s1 + $0x58] sm:$0xff] (!%p351_p9)   ;;  %v3810_v10 = vld [vmem:[%s5047_s1 + $0x60] sm:$0xff] (!%p351_p9)   ;;  %v3812_v12 = vld [vmem:[%s5047_s1 + $0x68] sm:$0xff] (!%p351_p9)   ;;  %vm4152_vm2 = vmmov (!%p351_p9), 0   ;;  %vm2709_vm3 = vcmask (!%p351_p9), 1044480   ;;  %vm2911_vm4 = vcmask (!%p351_p9), 8192  }
  0x13   : > { %3742 = vmatprep.subr.bf16.mxu1 (!%p351_p9), %v3804_v3  ;;  %3243 = vmatprep.subr.bf16.mxu0 (!%p351_p9), %v3804_v3  ;;  %v3809_v9 = vld [vmem:[%s5047_s1 + $0x18] sm:$0xff] (!%p351_p9)   ;;  %v3811_v11 = vld [vmem:[%s5047_s1 + $0x20] sm:$0xff] (!%p351_p9)   ;;  %v3813_v14 = vld [vmem:[%s5047_s1 + $0x28] sm:$0xff] (!%p351_p9)   ;;  %s3238_s14 = sshll.u32 (!%p351_p9), %s4239_s6, 4 }
  0x14   : > { %3801 = vset.pattern.permute.xlu0 (!%p351_p9), %v4150_v6  ;;  %v3814_v16 = vld [vmem:[%s5047_s1 + $0x70] sm:$0xff] (!%p351_p9)   ;;  %v3816_v18 = vld [vmem:[%s5047_s1 + $0x78] sm:$0xff] (!%p351_p9)   ;;  %v3821_v20 = vld [vmem:[%s5047_s1 + $0xc0] sm:$0xff] (!%p351_p9)   ;;  %s5003_s18 = scalar_lea.hbm (!%p351_p9), %s5057_s11, %s3238_s14 }
  0x15   : > { %v3815_v17 = vld [vmem:[%s5047_s1 + $0x30] sm:$0xff] (!%p351_p9)   ;;  %v3817_v19 = vld [vmem:[%s5047_s1 + $0x38] sm:$0xff] (!%p351_p9)   ;;  %v3826_v23 = vld [vmem:[%s5047_s1 + $0x140] sm:$0xff] (!%p351_p9)  }
  0x16   : > { %3750 = vmatpush3.bf16.msra.mxu1 (!%p351_p9), %v3805_v4  ;;  %3244 = vmatpush3.bf16.msra.mxu0 (!%p351_p9), %v3805_v4  ;;  %v3825_v24 = vld [vmem:[%s5047_s1 + $0x80] sm:$0xff] (!%p351_p9)   ;;  %v3828_v26 = vld [vmem:[%s5047_s1 + $0xc8] sm:$0xff] (!%p351_p9)   ;;  %v3835_v32 = vld [vmem:[%s5047_s1 + $0xd0] sm:$0xff] (!%p351_p9)  }
  0x17   : > { %3743 = vmatprep.subr.bf16.mxu1 (!%p351_p9), %v3806_v5  ;;  %3245 = vmatprep.subr.bf16.mxu0 (!%p351_p9), %v3806_v5  ;;  %v3827_v25 = vld [vmem:[%s5047_s1 + $0x100] sm:$0xff] (!%p351_p9)   ;;  %v3830_v27 = vld [vmem:[%s5047_s1 + $0x148] sm:$0xff] (!%p351_p9)   ;;  %v3840_v34 = vld [vmem:[%s5047_s1 + $0x150] sm:$0xff] (!%p351_p9)  }
  0x18   : > { %s4284_s26 = scalar_select %p392_p10, %s4239_s6, 1  ;;  %v3829_v29 = vld [vmem:[%s5047_s1 + $0x88] sm:$0xff]   ;;  %v3838_v35 = vld [vmem:[%s5047_s1 + $0x90] sm:$0xff]   ;;  %v3842_v38 = vld [vmem:[%s5047_s1 + $0xd8] sm:$0xff]  }
  0x19   : > { %v3833_v31 = vld [vmem:[%s5047_s1 + $0x108] sm:$0xff]   ;;  %v3841_v37 = vld [vmem:[%s5047_s1 + $0x110] sm:$0xff]   ;;  %v3844_v39 = vld [vmem:[%s5047_s1 + $0x158] sm:$0xff]   ;;  %s4154_s6 = smov [#allocation3]  }
  0x1a   : > { %s3757_s15 = smul.u32 896, %s4284_s26  ;;  %3751 = vmatpush3.bf16.msra.mxu1 %v3807_v7  ;;  %3246 = vmatpush3.bf16.msra.mxu0 %v3807_v7  ;;  %v3843_v40 = vld [vmem:[%s5047_s1 + $0x98] sm:$0xff]   ;;  %v3849_v44 = vld [vmem:[%s5047_s1 + $0xe0] sm:$0xff]   ;;  %v3856_v50 = vld [vmem:[%s5047_s1 + $0xe8] sm:$0xff]   ;;  %s4090_s25 = sshll.u32 %s4154_s6, 4  ;;  %s4091_s25 = int_to_ptr.vmem [resolvable:$false] %s4090_s25 }
  0x1b   : > { %3744 = vmatprep.subr.bf16.mxu1 %v3808_v8  ;;  %3247 = vmatprep.subr.bf16.mxu0 %v3808_v8  ;;  %v3847_v43 = vld [vmem:[%s5047_s1 + $0x118] sm:$0xff]   ;;  %v3854_v46 = vld [vmem:[%s5047_s1 + $0x160] sm:$0xff]   ;;  %v3858_v51 = vld [vmem:[%s5047_s1 + $0x168] sm:$0xff]   ;;  %s4092_s30 = scalar_lea.vmem %s4091_s25, 32 }
  0x1c   : > { %s4302_s12 = scalar_lea.vmem %s5061_s0, %s3757_s15  ;;  %v3852_v47 = vld [vmem:[%s5047_s1 + $0xa0] sm:$0xff]   ;;  %v3857_v52 = vld [vmem:[%s5047_s1 + $0xa8] sm:$0xff]   ;;  %v3863_v57 = vld [vmem:[%s5047_s1 + $0xf0] sm:$0xff]   ;;  %s399_s15 = scalar_lea.vmem %s5050_s4, %s4284_s26 }
  0x1d   : > { %v3820_v13 = vld [vmem:[%s4302_s12 + $0x1c4] ss:$56 sps:$4 sm:$0xff]   ;;  %v3818_v21 = vld [vmem:[%s4302_s12 + $0x1c0] ss:$56 sps:$4 sm:$0xff]   ;;  %v3831_v28 = vld [vmem:[%s4302_s12 + $0x234] ss:$56 sps:$4 sm:$0xff]  }
  0x1e   : > { %3752 = vmatpush3.bf16.msra.mxu1 %v3809_v9  ;;  %3248 = vmatpush3.bf16.msra.mxu0 %v3809_v9  ;;  %v3824_v15 = vld [vmem:[%s4302_s12 + $0x4] ss:$56 sps:$4 sm:$0xff]   ;;  %v3822_v22 = vld [vmem:[%s4302_s12] ss:$56 sps:$4 sm:$0xff]   ;;  %v3836_v30 = vld [vmem:[%s4302_s12 + $0x74] ss:$56 sps:$4 sm:$0xff]  }
  0x1f   : > { %3745 = vmatprep.subr.bf16.mxu1 %v3810_v10  ;;  %3249 = vmatprep.subr.bf16.mxu0 %v3810_v10  ;;  %v3834_v33 = vld [vmem:[%s4302_s12 + $0x230] ss:$56 sps:$4 sm:$0xff]   ;;  %v3845_v41 = vld [vmem:[%s4302_s12 + $0x2a4] ss:$56 sps:$4 sm:$0xff]   ;;  %v3848_v45 = vld [vmem:[%s4302_s12 + $0x2a0] ss:$56 sps:$4 sm:$0xff]  }
  0x20   : > { %2018 = vmatprep.mubr.bf16.mxu1 %v3820_v13  ;;  %1986 = vmatprep.mubr.bf16.mxu0 %v3824_v15  ;;  %v3839_v36 = vld [vmem:[%s4302_s12 + $0x70] ss:$56 sps:$4 sm:$0xff]   ;;  %v3850_v42 = vld [vmem:[%s4302_s12 + $0xe4] ss:$56 sps:$4 sm:$0xff]   ;;  %v3853_v48 = vld [vmem:[%s4302_s12 + $0xe0] ss:$56 sps:$4 sm:$0xff]  }
  0x21   : > { %v3855_v49 = vld [vmem:[%s5047_s1 + $0x120] sm:$0xff]   ;;  %v3859_v53 = vld [vmem:[%s4302_s12 + $0x314] ss:$56 sps:$4 sm:$0x7f]   ;;  %v3867_v60 = vld [vmem:[%s4302_s12 + $0x150] ss:$56 sps:$4 sm:$0xff]  }
  0x22   : > { %3753 = vmatpush3.bf16.msra.mxu1 %v3811_v11  ;;  %3250 = vmatpush3.bf16.msra.mxu0 %v3811_v11  ;;  %v3861_v54 = vld [vmem:[%s5047_s1 + $0x128] sm:$0xff]   ;;  %v3866_v58 = vld [vmem:[%s5047_s1 + $0xb0] sm:$0xff]   ;;  %v3870_v62 = vld [vmem:[%s5047_s1 + $0xf8] sm:$0xff]   ;;  %s390_s26 = sand.u32 1, %s4140_s20  }
  0x23   : > { %3746 = vmatprep.subr.bf16.mxu1 %v3812_v12  ;;  %3251 = vmatprep.subr.bf16.mxu0 %v3812_v12  ;;  %v3864_v55 = vld [vmem:[%s4302_s12 + $0x154] ss:$56 sps:$4 sm:$0xff]   ;;  %v3862_v56 = vld [vmem:[%s4302_s12 + $0x310] ss:$56 sps:$4 sm:$0x7f]   ;;  %v3872_v63 = vld [vmem:[%s5047_s1 + $0x178] sm:$0xff]  }
  0x24   : > { %v3868_v59 = vld [vmem:[%s5047_s1 + $0x170] sm:$0xff]   ;;  %v3871_v0 = vld [vmem:[%s5047_s1 + $0xb8] sm:$0xff]   ;;  %v3875_v1 = vld [vmem:[%s4302_s12 + $0xc] ss:$56 sps:$4 sm:$0xff]   ;;  %s391_s16 = scalar_lea.vmem [#allocation3], %s390_s26 }
  0x25   : > { %v3869_v61 = vld [vmem:[%s5047_s1 + $0x130] sm:$0xff]   ;;  %v3876_v2 = vld [vmem:[%s5047_s1 + $0x138] sm:$0xff]   ;;  %v3873_v3 = vld [vmem:[%s4302_s12 + $0x8] ss:$56 sps:$4 sm:$0xff]   ;;  %s2937_s0 = sshll.u32 %s391_s16, 4  ;;  %s5005_s0 = int_to_ptr.vmem [resolvable:$true] %s2937_s0 }
  0x26   : > { %3754 = vmatpush3.bf16.msra.mxu1 %v3813_v14  ;;  %3252 = vmatpush3.bf16.msra.mxu0 %v3813_v14  ;;  %v3877_v4 = vld [vmem:[%s5047_s1 + $0x1c0] sm:$0xff]   ;;  %v3878_v5 = vld [vmem:[%s4302_s12 + $0x10] ss:$56 sps:$4 sm:$0xff]   ;;  %v3880_v7 = vld [vmem:[%s4302_s12 + $0x14] ss:$56 sps:$4 sm:$0xff]   ;;  %s4086_s23 = scalar_lea.vmem %s5005_s0, 16  ;;  %p4093_p0 = scmp.lt.s32.totalorder %s5005_s0, %s4091_s25 }
  0x27   : > { %3747 = vmatprep.subr.bf16.mxu1 %v3814_v16  ;;  %3253 = vmatprep.subr.bf16.mxu0 %v3814_v16  ;;  %v3881_v8 = vld [vmem:[%s5047_s1 + $0x180] sm:$0xff]   ;;  %v3884_v11 = vld [vmem:[%s4302_s12 + $0x7c] ss:$56 sps:$4 sm:$0xff]   ;;  %v3887_v12 = vld [vmem:[%s5047_s1 + $0x1c8] sm:$0xff]   ;;  %p4087_p11 = scmp.ne.s32.totalorder %s5005_s0, %s4086_s23  ;;  %p4094_p1 = scmp.lt.s32.totalorder %s4092_s30, %s4086_s23 }
  0x28   : > { %v3882_v9 = vld [vmem:[%s5047_s1 + $0x240] sm:$0xff]   ;;  %v3886_v13 = vld [vmem:[%s4302_s12 + $0x78] ss:$56 sps:$4 sm:$0xff]   ;;  %v3890_v15 = vld [vmem:[%s5047_s1 + $0x188] sm:$0xff]  }
  0x29   : > { %v3883_v10 = vld [vmem:[%s5047_s1 + $0x200] sm:$0xff]   ;;  %p4088_p12 = pnand %p4087_p11, %p4256_p5  ;;  %p4095_p2 = por %p4094_p1, %p4093_p0 }
  0x2a   : > { %3755 = vmatpush3.bf16.msra.mxu1 %v3815_v17  ;;  %3254 = vmatpush3.bf16.msra.mxu0 %v3815_v17  ;;  %v3888_v14 = vld [vmem:[%s4302_s12 + $0x84] ss:$56 sps:$4 sm:$0xff]   ;;  %v3891_v16 = vld [vmem:[%s4302_s12 + $0x80] ss:$56 sps:$4 sm:$0xff]   ;;  %v3892_v17 = vld [vmem:[%s5047_s1 + $0x248] sm:$0xff]  }
  0x2b   : > { %3748 = vmatprep.subr.bf16.mxu1 %v3816_v18  ;;  %3255 = vmatprep.subr.bf16.mxu0 %v3816_v18  ;;  %v3893_v18 = vld [vmem:[%s5047_s1 + $0x208] sm:$0xff]   ;;  %p4089_p13 = pneg %p4088_p12 }
  0x2d   : > { %p4096_p3 = pnand %p4095_p2, %p4089_p13 }
  0x2e   : > { %3756 = vmatpush3.bf16.msra.mxu1 %v3817_v19  ;;  %3256 = vmatpush3.bf16.msra.mxu0 %v3817_v19  ;;  %v3894_v19 = vld [vmem:[%s4302_s12 + $0xec] ss:$56 sps:$4 sm:$0xff]  }
  0x2f   : > { %3305 = vmatprep.subr.bf16.mxu1 %v3821_v20  ;;  %3369 = vmatprep.subr.bf16.mxu0 %v3826_v23  ;;  %v3897_v20 = vld [vmem:[%s5047_s1 + $0x1d0] sm:$0xff]  }
  0x30   : > { %v3900_v23 = vld [vmem:[%s5047_s1 + $0x190] sm:$0xff]  }
  0x31   : > { %2019 = vmatmul.mubr.bf16.vlgmr.msra.gmra.mrb[0].mxu1 %v3818_v21  ;;  %1987 = vmatmul.mubr.bf16.vlgmr.msra.gmra.mrb[0].mxu0 %v3822_v22  ;;  %v3898_v21 = vld [vmem:[%s4302_s12 + $0xf4] ss:$56 sps:$4 sm:$0xff]   ;;  %v3896_v22 = vld [vmem:[%s4302_s12 + $0xe8] ss:$56 sps:$4 sm:$0xff]  }
  0x32   : > { %3306 = vmatpush3.bf16.msra.mxu1 %v3825_v24  ;;  %3370 = vmatpush3.bf16.msra.mxu0 %v3827_v25  ;;  %v3901_v24 = vld [vmem:[%s4302_s12 + $0xf0] ss:$56 sps:$4 sm:$0xff]  }
  0x33   : > { %3307 = vmatprep.subr.bf16.mxu1 %v3828_v26  ;;  %3371 = vmatprep.subr.bf16.mxu0 %v3830_v27  ;;  %v3902_v25 = vld [vmem:[%s5047_s1 + $0x250] sm:$0xff]  }
  0x34   : > { %2026 = vmatprep.mubr.bf16.mxu1 %v3831_v28  ;;  %1994 = vmatprep.mubr.bf16.mxu0 %v3836_v30  ;;  %v3903_v26 = vld [vmem:[%s5047_s1 + $0x210] sm:$0xff]   ;;  %v3907_v28 = vld [vmem:[%s5047_s1 + $0x1d8] sm:$0xff]  }
  0x35   : > { %v3904_v27 = vld [vmem:[%s4302_s12 + $0x15c] ss:$56 sps:$4 sm:$0xff]  }
  0x36   : > { %3308 = vmatpush3.bf16.msra.mxu1 %v3829_v29  ;;  %3372 = vmatpush3.bf16.msra.mxu0 %v3833_v31  ;;  %v3908_v29 = vld [vmem:[%s4302_s12 + $0x164] ss:$56 sps:$4 sm:$0xff]   ;;  %v3906_v31 = vld [vmem:[%s4302_s12 + $0x158] ss:$56 sps:$4 sm:$0xff]  }
  0x37   : > { %3309 = vmatprep.subr.bf16.mxu1 %v3835_v32  ;;  %3373 = vmatprep.subr.bf16.mxu0 %v3840_v34  ;;  %v3910_v30 = vld [vmem:[%s5047_s1 + $0x198] sm:$0xff]  }
  0x38   : > { %v3912_v32 = vld [vmem:[%s5047_s1 + $0x258] sm:$0xff]  }
  0x39   : > { %2027 = vmatmul.mubr.bf16.gmra.mrb[4].mxu1 %v3834_v33  ;;  %1995 = vmatmul.mubr.bf16.gmra.mrb[4].mxu0 %v3839_v36  ;;  %v3913_v33 = vld [vmem:[%s5047_s1 + $0x218] sm:$0xff]   ;;  %v3917_v36 = vld [vmem:[%s5047_s1 + $0x1e0] sm:$0xff]  }
  0x3a   : > { %3310 = vmatpush3.bf16.msra.mxu1 %v3838_v35  ;;  %3374 = vmatpush3.bf16.msra.mxu0 %v3841_v37  ;;  %v3911_v34 = vld [vmem:[%s4302_s12 + $0x160] ss:$56 sps:$4 sm:$0xff]   ;;  %v3914_v35 = vld [vmem:[%s4302_s12 + $0x1cc] ss:$56 sps:$4 sm:$0xff]  }
  0x3b   : > { %3311 = vmatprep.subr.bf16.mxu1 %v3842_v38  ;;  %3375 = vmatprep.subr.bf16.mxu0 %v3844_v39  ;;  %v3918_v37 = vld [vmem:[%s4302_s12 + $0x1d4] ss:$56 sps:$4 sm:$0xff]   ;;  %v3920_v38 = vld [vmem:[%s5047_s1 + $0x1a0] sm:$0xff]  }
  0x3c   : > { %2034 = vmatprep.mubr.bf16.mxu1 %v3845_v41  ;;  %2002 = vmatprep.mubr.bf16.mxu0 %v3850_v42  ;;  %v3922_v39 = vld [vmem:[%s5047_s1 + $0x260] sm:$0xff]   ;;  %v3921_v42 = vld [vmem:[%s4302_s12 + $0x1d0] ss:$56 sps:$4 sm:$0xff]  }
  0x3d   : > { %v3916_v41 = vld [vmem:[%s4302_s12 + $0x1c8] ss:$56 sps:$4 sm:$0xff]  }
  0x3e   : > { %3312 = vmatpush3.bf16.msra.mxu1 %v3843_v40  ;;  %3376 = vmatpush3.bf16.msra.mxu0 %v3847_v43  ;;  %v3923_v40 = vld [vmem:[%s5047_s1 + $0x220] sm:$0xff]   ;;  %v3924_v43 = vld [vmem:[%s4302_s12 + $0x23c] ss:$56 sps:$4 sm:$0xff]  }
  0x3f   : > { %3313 = vmatprep.subr.bf16.mxu1 %v3849_v44  ;;  %3377 = vmatprep.subr.bf16.mxu0 %v3854_v46  ;;  %v3927_v44 = vld [vmem:[%s5047_s1 + $0x1e8] sm:$0xff]  }
  0x40   : > { %v3930_v46 = vld [vmem:[%s5047_s1 + $0x1a8] sm:$0xff]  }
  0x41   : > { %2035 = vmatmul.mubr.bf16.gmra.mrb[8].mxu1 %v3848_v45  ;;  %2003 = vmatmul.mubr.bf16.gmra.mrb[8].mxu0 %v3853_v48  ;;  %v3928_v45 = vld [vmem:[%s4302_s12 + $0x244] ss:$56 sps:$4 sm:$0xff]   ;;  %v3933_v48 = vld [vmem:[%s5047_s1 + $0x228] sm:$0xff]  }
  0x42   : > { %3314 = vmatpush3.bf16.msra.mxu1 %v3852_v47  ;;  %3378 = vmatpush3.bf16.msra.mxu0 %v3855_v49  ;;  %v3932_v47 = vld [vmem:[%s5047_s1 + $0x268] sm:$0xff]   ;;  %v3926_v49 = vld [vmem:[%s4302_s12 + $0x238] ss:$56 sps:$4 sm:$0xff]  }
  0x43   : > { %3315 = vmatprep.subr.bf16.mxu1 %v3856_v50  ;;  %3379 = vmatprep.subr.bf16.mxu0 %v3858_v51  ;;  %v3931_v50 = vld [vmem:[%s4302_s12 + $0x240] ss:$56 sps:$4 sm:$0xff]   ;;  %v3937_v51 = vld [vmem:[%s5047_s1 + $0x1f0] sm:$0xff]  }
  0x44   : > { %2042 = vmatprep.mubr.bf16.mxu1 %v3859_v53  ;;  %2010 = vmatprep.mubr.bf16.mxu0 %v3864_v55  ;;  %v3940_v53 = vld [vmem:[%s5047_s1 + $0x1b0] sm:$0xff]  }
  0x45   : > { %v3942_v55 = vld [vmem:[%s5047_s1 + $0x270] sm:$0xff]  }
  0x46   : > { %3316 = vmatpush3.bf16.msra.mxu1 %v3857_v52  ;;  %3380 = vmatpush3.bf16.msra.mxu0 %v3861_v54  ;;  %v3934_v52 = vld [vmem:[%s4302_s12 + $0x2ac] ss:$56 sps:$4 sm:$0xff]  }
  0x47   : > { %3317 = vmatprep.subr.bf16.mxu1 %v3863_v57  ;;  %3381 = vmatprep.subr.bf16.mxu0 %v3868_v59  ;;  %v3938_v54 = vld [vmem:[%s4302_s12 + $0x2b4] ss:$56 sps:$4 sm:$0xff]   ;;  %v3947_v57 = vld [vmem:[%s5047_s1 + $0x1f8] sm:$0xff]   ;;  %v3941_v59 = vld [vmem:[%s4302_s12 + $0x2b0] ss:$56 sps:$4 sm:$0xff]  }
  0x49   : > { %2043 = vmatmul.mubr.bf16.gmra.mrb[12].mxu1 %v3862_v56  ;;  %2011 = vmatmul.mubr.bf16.gmra.mrb[12].mxu0 %v3867_v60  ;;  %v3943_v56 = vld [vmem:[%s5047_s1 + $0x230] sm:$0xff]  }
  0x4a   : > { %3318 = vmatpush3.bf16.msra.mxu1 %v3866_v58  ;;  %3382 = vmatpush3.bf16.msra.mxu0 %v3869_v61  ;;  %v3936_v58 = vld [vmem:[%s4302_s12 + $0x2a8] ss:$56 sps:$4 sm:$0xff]   ;;  %v3944_v60 = vld [vmem:[%s4302_s12 + $0x31c] ss:$56 sps:$4 sm:$0x7f]  }
  0x4b   : > { %3319 = vmatprep.subr.bf16.mxu1 %v3870_v62  ;;  %3383 = vmatprep.subr.bf16.mxu0 %v3872_v63  ;;  %v3950_v61 = vld [vmem:[%s5047_s1 + $0x1b8] sm:$0xff]  }
  0x4c   : > { %2083 = vmatprep.mubr.bf16.mxu1 %v3875_v1  ;;  %2180 = vmatprep.mubr.bf16.mxu0 %v3880_v7  ;;  %v3948_v62 = vld [vmem:[%s4302_s12 + $0x324] ss:$56 sps:$4 sm:$0x7f]   ;;  %v3954_v7 = vld [vmem:[%s4302_s12 + $0x18] ss:$56 sps:$4 sm:$0xff]  }
  0x4d   : > { %v3952_v63 = vld [vmem:[%s5047_s1 + $0x278] sm:$0xff]   ;;  %v3957_v1 = vld [vmem:[%s5047_s1 + $0x2c0] sm:$0xff]  }
  0x4e   : > { %3320 = vmatpush3.bf16.msra.mxu1 %v3871_v0  ;;  %3384 = vmatpush3.bf16.msra.mxu0 %v3876_v2  ;;  %v3953_v0 = vld [vmem:[%s5047_s1 + $0x238] sm:$0xff]  }
  0x4f   : > { %3433 = vmatprep.subr.bf16.mxu1 %v3877_v4  ;;  %3497 = vmatprep.subr.bf16.mxu0 %v3882_v9  ;;  %v3946_v2 = vld [vmem:[%s4302_s12 + $0x318] ss:$56 sps:$4 sm:$0x7f]   ;;  %v3956_v4 = vld [vmem:[%s4302_s12 + $0x1c] ss:$56 sps:$4 sm:$0xff]   ;;  %v3961_v9 = vld [vmem:[%s5047_s1 + $0x280] sm:$0xff]  }
  0x51   : > { %2084 = vmatmul.mubr.bf16.vlgmr.msra.gmra.mrb[16].mxu1 %v3873_v3  ;;  %2181 = vmatmul.mubr.bf16.vlgmr.msra.gmra.mrb[16].mxu0 %v3878_v5  ;;  %v3951_v3 = vld [vmem:[%s4302_s12 + $0x320] ss:$56 sps:$4 sm:$0x7f]   ;;  %v3960_v5 = vld [vmem:[%s4302_s12 + $0x24] ss:$56 sps:$4 sm:$0xff]  }
  0x52   : > { %3434 = vmatpush3.bf16.msra.mxu1 %v3881_v8  ;;  %3498 = vmatpush3.bf16.msra.mxu0 %v3883_v10  ;;  %v3958_v8 = vld [vmem:[%s4302_s12 + $0x20] ss:$56 sps:$4 sm:$0xff]  }
  0x53   : > { %2091 = vmatprep.mubr.bf16.mxu1 %v3884_v11  ;;  %3435 = vmatprep.subr.bf16.mxu1 %v3887_v12  ;;  %v3962_v10 = vld [vmem:[%s5047_s1 + $0x300] sm:$0xff]   ;;  %v3966_v12 = vld [vmem:[%s5047_s1 + $0x2c8] sm:$0xff]  }
  0x54   : > { %2188 = vmatprep.mubr.bf16.mxu0 %v3888_v14  ;;  %3499 = vmatprep.subr.bf16.mxu0 %v3892_v17  ;;  %v3963_v11 = vld [vmem:[%s4302_s12 + $0x8c] ss:$56 sps:$4 sm:$0xff]   ;;  %v3975_v17 = vld [vmem:[%s5047_s1 + $0x2d0] sm:$0xff]  }
  0x55   : > { %v3969_v14 = vld [vmem:[%s5047_s1 + $0x288] sm:$0xff]  }
  0x56   : > { %3436 = vmatpush3.bf16.msra.mxu1 %v3890_v15  ;;  %3500 = vmatpush3.bf16.msra.mxu0 %v3893_v18  ;;  %v3971_v15 = vld [vmem:[%s5047_s1 + $0x308] sm:$0xff]  }
  0x57   : > { %3437 = vmatprep.subr.bf16.mxu1 %v3897_v20  ;;  %3501 = vmatprep.subr.bf16.mxu0 %v3902_v25  ;;  %v3970_v18 = vld [vmem:[%s4302_s12 + $0x90] ss:$56 sps:$4 sm:$0xff]   ;;  %v3976_v20 = vld [vmem:[%s4302_s12 + $0x104] ss:$56 sps:$4 sm:$0xff]  }
  0x58   : > { %v3974_v25 = vld [vmem:[%s4302_s12 + $0xf8] ss:$56 sps:$4 sm:$0xff]  }
  0x59   : > { %2092 = vmatmul.mubr.bf16.gmra.mrb[20].mxu1 %v3886_v13  ;;  %2189 = vmatmul.mubr.bf16.gmra.mrb[20].mxu0 %v3891_v16  ;;  %v3967_v13 = vld [vmem:[%s4302_s12 + $0x94] ss:$56 sps:$4 sm:$0xff]   ;;  %v3965_v16 = vld [vmem:[%s4302_s12 + $0x88] ss:$56 sps:$4 sm:$0xff]  }
  0x5a   : > { %2099 = vmatprep.mubr.bf16.mxu1 %v3894_v19  ;;  %2196 = vmatprep.mubr.bf16.mxu0 %v3898_v21  ;;  %v3972_v19 = vld [vmem:[%s4302_s12 + $0xfc] ss:$56 sps:$4 sm:$0xff]  }
  0x5b   : > { %3438 = vmatpush3.bf16.msra.mxu1 %v3900_v23  ;;  %3502 = vmatpush3.bf16.msra.mxu0 %v3903_v26  ;;  %v3978_v21 = vld [vmem:[%s5047_s1 + $0x290] sm:$0xff]   ;;  %v3985_v23 = vld [vmem:[%s5047_s1 + $0x2d8] sm:$0xff]  }
  0x5c   : > { %3439 = vmatprep.subr.bf16.mxu1 %v3907_v28  ;;  %3503 = vmatprep.subr.bf16.mxu0 %v3912_v32  ;;  %v3988_v26 = vld [vmem:[%s5047_s1 + $0x298] sm:$0xff]   ;;  %v3994_v28 = vld [vmem:[%s5047_s1 + $0x2e0] sm:$0xff]  }
  0x5d   : > { %v3997_v32 = vld [vmem:[%s5047_s1 + $0x2a0] sm:$0xff]  }
  0x5f   : > { %3440 = vmatpush3.bf16.msra.mxu1 %v3910_v30  ;;  %3504 = vmatpush3.bf16.msra.mxu0 %v3913_v33  ;;  %v3986_v30 = vld [vmem:[%s4302_s12 + $0x174] ss:$56 sps:$4 sm:$0xff]  }
  0x60   : > { %3441 = vmatprep.subr.bf16.mxu1 %v3917_v36  ;;  %3505 = vmatprep.subr.bf16.mxu0 %v3922_v39  ;;  %v4004_v33 = vld [vmem:[%s5047_s1 + $0x2e8] sm:$0xff]   ;;  %v3995_v39 = vld [vmem:[%s4302_s12 + $0x1e4] ss:$56 sps:$4 sm:$0xff]  }
  0x61   : > { %2100 = vmatmul.mubr.bf16.gmra.mrb[24].mxu1 %v3896_v22  ;;  %2197 = vmatmul.mubr.bf16.gmra.mrb[24].mxu0 %v3901_v24  ;;  %v3979_v22 = vld [vmem:[%s5047_s1 + $0x310] sm:$0xff]   ;;  %v3981_v24 = vld [vmem:[%s5047_s1 + $0x318] sm:$0xff]  }
  0x62   : > { %2107 = vmatprep.mubr.bf16.mxu1 %v3904_v27  ;;  %2204 = vmatprep.mubr.bf16.mxu0 %v3908_v29  ;;  %v3980_v27 = vld [vmem:[%s4302_s12 + $0x100] ss:$56 sps:$4 sm:$0xff]   ;;  %v3982_v29 = vld [vmem:[%s4302_s12 + $0x16c] ss:$56 sps:$4 sm:$0xff]   ;;  %v3989_v36 = vld [vmem:[%s4302_s12 + $0x170] ss:$56 sps:$4 sm:$0xff]  }
  0x63   : > { %3442 = vmatpush3.bf16.msra.mxu1 %v3920_v38  ;;  %3506 = vmatpush3.bf16.msra.mxu0 %v3923_v40  ;;  %v3991_v38 = vld [vmem:[%s4302_s12 + $0x1dc] ss:$56 sps:$4 sm:$0xff]  }
  0x64   : > { %3443 = vmatprep.subr.bf16.mxu1 %v3927_v44  ;;  %3507 = vmatprep.subr.bf16.mxu0 %v3932_v47  ;;  %v4013_v40 = vld [vmem:[%s5047_s1 + $0x2f0] sm:$0xff]   ;;  %v3999_v44 = vld [vmem:[%s4302_s12 + $0x1e0] ss:$56 sps:$4 sm:$0xff]   ;;  %v4001_v47 = vld [vmem:[%s4302_s12 + $0x24c] ss:$56 sps:$4 sm:$0xff]  }
  0x67   : > { %3444 = vmatpush3.bf16.msra.mxu1 %v3930_v46  ;;  %3508 = vmatpush3.bf16.msra.mxu0 %v3933_v48  ;;  %v4023_v46 = vld [vmem:[%s5047_s1 + $0x2f8] sm:$0xff]  }
  0x68   : > { %3445 = vmatprep.subr.bf16.mxu1 %v3937_v51  ;;  %3509 = vmatprep.subr.bf16.mxu0 %v3942_v55  ;;  %v4026_v48 = vld [vmem:[%s5047_s1 + $0x2b8] sm:$0xff]   ;;  %v2719_v51 = vld [vmem:[%s399_s15] sm:$0x1]  ;;  %s2925_s15 = scalar_lea.sflag [#allocation4], %s390_s26 }
  0x69   : > { %2108 = vmatmul.mubr.bf16.gmra.mrb[28].mxu1 %v3906_v31  ;;  %2205 = vmatmul.mubr.bf16.gmra.mrb[28].mxu0 %v3911_v34  ;;  %v3990_v31 = vld [vmem:[%s5047_s1 + $0x320] sm:$0xff]   ;;  %v3998_v34 = vld [vmem:[%s5047_s1 + $0x328] sm:$0xff]  }
  0x6a   : > { %2115 = vmatprep.mubr.bf16.mxu1 %v3914_v35  ;;  %2212 = vmatprep.mubr.bf16.mxu0 %v3918_v37  ;;  %v3984_v35 = vld [vmem:[%s4302_s12 + $0x168] ss:$56 sps:$4 sm:$0xff]  }
  0x6b   : > { %3446 = vmatpush3.bf16.msra.mxu1 %v3940_v53  ;;  %3510 = vmatpush3.bf16.msra.mxu0 %v3943_v56  ;;  %v4007_v37 = vld [vmem:[%s5047_s1 + $0x2a8] sm:$0xff]  }
  0x6c   : > { %3447 = vmatprep.subr.bf16.mxu1 %v3947_v57  ;;  %3511 = vmatprep.subr.bf16.mxu0 %v3952_v63  ;;  %v4019_v53 = vld [vmem:[%s5047_s1 + $0x348] sm:$0xff]   ;;  %v4032_v63 = vld [vmem:[%s5047_s1 + $0x358] sm:$0xff]  }
  0x6d   : > { %v4003_v55 = vld [vmem:[%s4302_s12 + $0x248] ss:$56 sps:$4 sm:$0xff]  }
  0x6e   : > { %v4008_v56 = vld [vmem:[%s4302_s12 + $0x250] ss:$56 sps:$4 sm:$0xff]  }
  0x6f   : > { %3448 = vmatpush3.bf16.msra.mxu1 %v3950_v61  ;;  %3512 = vmatpush3.bf16.msra.mxu0 %v3953_v0  ;;  %v4018_v0 = vld [vmem:[%s4302_s12 + $0x2c0] ss:$56 sps:$4 sm:$0xff]  }
  0x70   : > { %3561 = vmatprep.subr.bf16.mxu1 %v3957_v1  ;;  %2536 = vmatprep.subr.bf16.mxu0 %v4150_v6  ;;  %v4020_v1 = vld [vmem:[%s4302_s12 + $0x32c] ss:$56 sps:$4 sm:$0x7f]  }
  0x71   : > { %2116 = vmatmul.mubr.bf16.gmra.mrb[32].mxu1 %v3916_v41  ;;  %2213 = vmatmul.mubr.bf16.gmra.mrb[32].mxu0 %v3921_v42  ;;  %v4000_v41 = vld [vmem:[%s5047_s1 + $0x330] sm:$0xff]  }
  0x72   : > { %2123 = vmatprep.mubr.bf16.mxu1 %v3924_v43  ;;  %2220 = vmatprep.mubr.bf16.mxu0 %v3928_v45  ;;  %v4016_v42 = vld [vmem:[%s5047_s1 + $0x2b0] sm:$0xff]   ;;  %v4009_v45 = vld [vmem:[%s5047_s1 + $0x338] sm:$0xff]  }
  0x73   : > { %v3993_v43 = vld [vmem:[%s4302_s12 + $0x1d8] ss:$56 sps:$4 sm:$0xff]  }
  0x79   : > { %2124 = vmatmul.mubr.bf16.gmra.mrb[36].mxu1 %v3926_v49  ;;  %2221 = vmatmul.mubr.bf16.gmra.mrb[36].mxu0 %v3931_v50  ;;  %v4005_v49 = vld [vmem:[%s4302_s12 + $0x254] ss:$56 sps:$4 sm:$0xff]   ;;  %v4017_v50 = vld [vmem:[%s5047_s1 + $0x340] sm:$0xff]  }
  0x7a   : > { %2131 = vmatprep.mubr.bf16.mxu1 %v3934_v52  ;;  %2228 = vmatprep.mubr.bf16.mxu0 %v3938_v54  ;;  %v2721_v52 = vld [vmem:[%s5051_s5] sm:$0x1]  ;;  %v2720_v54 = vmul.f32 0.0003644315, %v2719_v51 }
  0x7c   : > { %v2722_v57 = vmul.f32 %v2721_v52, %v2720_v54 }
  0x7e   : > { %v2724_v61 = vsel %vm2723_vm0, %v2722_v57, 0.0 }
  0x7f   : > { %2725 = vadd.xlane.f32.xlu0 %v2724_v61 }
  0x81   : > { %2132 = vmatmul.mubr.bf16.gmra.mrb[40].mxu1 %v3936_v58  ;;  %2229 = vmatmul.mubr.bf16.gmra.mrb[40].mxu0 %v3941_v59  ;;  %v4010_v58 = vld [vmem:[%s4302_s12 + $0x2bc] ss:$56 sps:$4 sm:$0xff]  }
  0x82   : > { %2139 = vmatprep.mubr.bf16.mxu1 %v3944_v60  ;;  %2236 = vmatprep.mubr.bf16.mxu0 %v3948_v62  ;;  %v4014_v59 = vld [vmem:[%s4302_s12 + $0x2c4] ss:$56 sps:$4 sm:$0xff]   ;;  %v4028_v60 = vld [vmem:[%s5047_s1 + $0x350] sm:$0xff]  }
  0x83   : > { %v4012_v62 = vld [vmem:[%s4302_s12 + $0x2b8] ss:$56 sps:$4 sm:$0xff]  }
  0x89   : > { %2140 = vmatmul.mubr.bf16.gmra.mrb[44].mxu1 %v3946_v2  ;;  %2237 = vmatmul.mubr.bf16.gmra.mrb[44].mxu0 %v3951_v3  ;;  %v4024_v2 = vld [vmem:[%s4302_s12 + $0x334] ss:$56 sps:$4 sm:$0x7f]   ;;  %v4022_v3 = vld [vmem:[%s4302_s12 + $0x328] ss:$56 sps:$4 sm:$0x7f]  }
  0x8a   : > { %2277 = vmatprep.mubr.bf16.mxu1 %v3956_v4  ;;  %2374 = vmatprep.mubr.bf16.mxu0 %v3960_v5  ;;  %v4027_v4 = vld [vmem:[%s4302_s12 + $0x330] ss:$56 sps:$4 sm:$0x7f]   ;;  %v4031_v5 = vld [vmem:[%s4302_s12 + $0x2c] ss:$56 sps:$4 sm:$0xff]  }
  0x91   : > { %2278 = vmatmul.mubr.bf16.vlgmr.msra.gmra.mrb[48].mxu1 %v3954_v7  ;;  %2375 = vmatmul.mubr.bf16.vlgmr.msra.gmra.mrb[48].mxu0 %v3958_v8  ;;  %v4035_v7 = vld [vmem:[%s4302_s12 + $0x34] ss:$56 sps:$4 sm:$0xff]   ;;  %v4033_v8 = vld [vmem:[%s4302_s12 + $0x30] ss:$56 sps:$4 sm:$0xff]  }
  0x92   : > { %3562 = vmatpush3.bf16.msra.mxu1 %v3961_v9  ;;  %2537 = vmatpush1.bf16.msra.mxu0 %v3962_v10  ;;  %v4036_v9 = vld [vmem:[%s4302_s12 + $0x9c] ss:$56 sps:$4 sm:$0xff]  }
  0x93   : > { %2285 = vmatprep.mubr.bf16.mxu1 %v3963_v11  ;;  %3563 = vmatprep.subr.bf16.mxu1 %v3966_v12  ;;  %v4039_v10 = vld [vmem:[%s4302_s12 + $0xa4] ss:$56 sps:$4 sm:$0xff]   ;;  %v4038_v11 = vld [vmem:[%s4302_s12 + $0x98] ss:$56 sps:$4 sm:$0xff]  }
  0x94   : > { %2382 = vmatprep.mubr.bf16.mxu0 %v3967_v13  ;;  %2538 = vmatprep.subr.bf16.mxu0 %v4150_v6  ;;  %v4041_v12 = vld [vmem:[%s4302_s12 + $0xa0] ss:$56 sps:$4 sm:$0xff]   ;;  %v4042_v13 = vld [vmem:[%s4302_s12 + $0x10c] ss:$56 sps:$4 sm:$0xff]  }
  0x96   : > { %3564 = vmatpush3.bf16.msra.mxu1 %v3969_v14  ;;  %2539 = vmatpush1.bf16.msra.mxu0 %v3971_v15  ;;  %v4045_v14 = vld [vmem:[%s4302_s12 + $0x114] ss:$56 sps:$4 sm:$0xff]   ;;  %v4044_v15 = vld [vmem:[%s4302_s12 + $0x108] ss:$56 sps:$4 sm:$0xff]  }
  0x97   : > { %3565 = vmatprep.subr.bf16.mxu1 %v3975_v17  ;;  %2540 = vmatprep.subr.bf16.mxu0 %v4150_v6  ;;  %v4048_v17 = vld [vmem:[%s4302_s12 + $0x17c] ss:$56 sps:$4 sm:$0xff]  }
  0x99   : > { %2286 = vmatmul.mubr.bf16.gmra.mrb[52].mxu1 %v3965_v16  ;;  %2383 = vmatmul.mubr.bf16.gmra.mrb[52].mxu0 %v3970_v18  ;;  %v4047_v16 = vld [vmem:[%s4302_s12 + $0x110] ss:$56 sps:$4 sm:$0xff]   ;;  %v4051_v18 = vld [vmem:[%s4302_s12 + $0x184] ss:$56 sps:$4 sm:$0xff]  }
  0x9a   : > { %2293 = vmatprep.mubr.bf16.mxu1 %v3972_v19  ;;  %2390 = vmatprep.mubr.bf16.mxu0 %v3976_v20  ;;  %v4050_v19 = vld [vmem:[%s4302_s12 + $0x178] ss:$56 sps:$4 sm:$0xff]  }
  0x9b   : > { %3566 = vmatpush3.bf16.msra.mxu1 %v3978_v21  ;;  %2541 = vmatpush1.bf16.msra.mxu0 %v3979_v22  ;;  %v4053_v20 = vld [vmem:[%s4302_s12 + $0x180] ss:$56 sps:$4 sm:$0xff]   ;;  %v4054_v21 = vld [vmem:[%s4302_s12 + $0x1ec] ss:$56 sps:$4 sm:$0xff]  }
  0x9c   : > { %2542 = vmatprep.subr.bf16.mxu0 %v4150_v6  ;;  %3567 = vmatprep.subr.bf16.mxu1 %v3985_v23  ;;  %v4057_v22 = vld [vmem:[%s4302_s12 + $0x1f4] ss:$56 sps:$4 sm:$0xff]   ;;  %v4056_v23 = vld [vmem:[%s4302_s12 + $0x1e8] ss:$56 sps:$4 sm:$0xff]  }
  0x9f   : > { %2543 = vmatpush1.bf16.msra.mxu0 %v3981_v24  ;;  %3568 = vmatpush3.bf16.msra.mxu1 %v3988_v26  ;;  %v4059_v24 = vld [vmem:[%s4302_s12 + $0x1f0] ss:$56 sps:$4 sm:$0xff]   ;;  %v4063_v26 = vld [vmem:[%s4302_s12 + $0x264] ss:$56 sps:$4 sm:$0xff]  }
  0xa0   : > { %2544 = vmatprep.subr.bf16.mxu0 %v4150_v6  ;;  %3569 = vmatprep.subr.bf16.mxu1 %v3994_v28  ;;  %v4065_v28 = vld [vmem:[%s4302_s12 + $0x260] ss:$56 sps:$4 sm:$0xff]  }
  0xa1   : > { %2294 = vmatmul.mubr.bf16.gmra.mrb[56].mxu1 %v3974_v25  ;;  %2391 = vmatmul.mubr.bf16.gmra.mrb[56].mxu0 %v3980_v27  ;;  %v4060_v25 = vld [vmem:[%s4302_s12 + $0x25c] ss:$56 sps:$4 sm:$0xff]   ;;  %v4062_v27 = vld [vmem:[%s4302_s12 + $0x258] ss:$56 sps:$4 sm:$0xff]  }
  0xa2   : > { %2301 = vmatprep.mubr.bf16.mxu1 %v3982_v29  ;;  %2398 = vmatprep.mubr.bf16.mxu0 %v3986_v30  ;;  %v4066_v29 = vld [vmem:[%s4302_s12 + $0x2cc] ss:$56 sps:$4 sm:$0xff]  }
  0xa3   : > { %2545 = vmatpush1.bf16.msra.mxu0 %v3990_v31  ;;  %3570 = vmatpush3.bf16.msra.mxu1 %v3997_v32  ;;  %v4069_v30 = vld [vmem:[%s4302_s12 + $0x2d4] ss:$56 sps:$4 sm:$0xff]   ;;  %v4068_v31 = vld [vmem:[%s4302_s12 + $0x2c8] ss:$56 sps:$4 sm:$0xff]  }
  0xa4   : > { %2546 = vmatprep.subr.bf16.mxu0 %v4150_v6  ;;  %3571 = vmatprep.subr.bf16.mxu1 %v4004_v33  ;;  %v4071_v32 = vld [vmem:[%s4302_s12 + $0x2d0] ss:$56 sps:$4 sm:$0xff]   ;;  %v4072_v33 = vld [vmem:[%s4302_s12 + $0x33c] ss:$56 sps:$4 sm:$0x7f]  }
  0xa7   : > { %2547 = vmatpush1.bf16.msra.mxu0 %v3998_v34  ;;  %3572 = vmatpush3.bf16.msra.mxu1 %v4007_v37  ;;  %v4075_v34 = vld [vmem:[%s4302_s12 + $0x344] ss:$56 sps:$4 sm:$0x7f]   ;;  %v4074_v37 = vld [vmem:[%s4302_s12 + $0x338] ss:$56 sps:$4 sm:$0x7f]  }
  0xa8   : > { %2548 = vmatprep.subr.bf16.mxu0 %v4150_v6  ;;  %3573 = vmatprep.subr.bf16.mxu1 %v4013_v40  ;;  %v4077_v40 = vld [vmem:[%s4302_s12 + $0x340] ss:$56 sps:$4 sm:$0x7f]  }
  0xa9   : > { %2302 = vmatmul.mubr.bf16.gmra.mrb[60].mxu1 %v3984_v35  ;;  %2399 = vmatmul.mubr.bf16.gmra.mrb[60].mxu0 %v3989_v36 }
  0xaa   : > { %2309 = vmatprep.mubr.bf16.mxu1 %v3991_v38  ;;  %2406 = vmatprep.mubr.bf16.mxu0 %v3995_v39 }
  0xab   : > { %2549 = vmatpush1.bf16.msra.mxu0 %v4000_v41  ;;  %3574 = vmatpush3.bf16.msra.mxu1 %v4016_v42 }
  0xac   : > { %2550 = vmatprep.subr.bf16.mxu0 %v4150_v6  ;;  %3575 = vmatprep.subr.bf16.mxu1 %v4023_v46 }
  0xaf   : > { %2551 = vmatpush1.bf16.msra.mxu0 %v4009_v45  ;;  %3576 = vmatpush3.bf16.msra.mxu1 %v4026_v48 }
  0xb0   : > { %2552 = vmatprep.subr.bf16.mxu0 %v4150_v6 }
  0xb1   : > { %2310 = vmatmul.mubr.bf16.gmra.mrb[64].mxu1 %v3993_v43  ;;  %2407 = vmatmul.mubr.bf16.gmra.mrb[64].mxu0 %v3999_v44 }
  0xb2   : > { %2317 = vmatprep.mubr.bf16.mxu1 %v4001_v47  ;;  %2414 = vmatprep.mubr.bf16.mxu0 %v4005_v49 }
  0xb3   : > { %2553 = vmatpush1.bf16.msra.mxu0 %v4017_v50 }
  0xb4   : > { %2554 = vmatprep.subr.bf16.mxu0 %v4150_v6 }
  0xb7   : > { %2555 = vmatpush1.bf16.msra.mxu0 %v4019_v53 }
  0xb8   : > { %2556 = vmatprep.subr.bf16.mxu0 %v4150_v6 }
  0xb9   : > { %2318 = vmatmul.mubr.bf16.gmra.mrb[68].mxu1 %v4003_v55  ;;  %2415 = vmatmul.mubr.bf16.gmra.mrb[68].mxu0 %v4008_v56 }
  0xba   : > { %2325 = vmatprep.mubr.bf16.mxu1 %v4010_v58  ;;  %2422 = vmatprep.mubr.bf16.mxu0 %v4014_v59 }
  0xbb   : > { %2557 = vmatpush1.bf16.msra.mxu0 %v4028_v60 }
  0xbc   : > { %2558 = vmatprep.subr.bf16.mxu0 %v4150_v6  ;;  %v4029_v6 = vld [vmem:[%s4302_s12 + $0x28] ss:$56 sps:$4 sm:$0xff]  }
  0xbf   : > { %2559 = vmatpush1.bf16.msra.mxu0 %v4032_v63 }
  0xc1   : > { %2326 = vmatmul.mubr.bf16.gmra.mrb[72].mxu1 %v4012_v62  ;;  %2423 = vmatmul.mubr.bf16.gmra.mrb[72].mxu0 %v4018_v0 }
  0xc2   : > { %2333 = vmatprep.mubr.bf16.mxu1 %v4020_v1  ;;  %2430 = vmatprep.mubr.bf16.mxu0 %v4024_v2 }
  0xc9   : > { %2334 = vmatmul.mubr.bf16.gmra.mrb[76].mxu1 %v4022_v3  ;;  %2431 = vmatmul.mubr.bf16.gmra.mrb[76].mxu0 %v4027_v4 }
  0xca   : > { %2471 = vmatprep.mubr.bf16.mxu1 %v4031_v5  ;;  %3226 = vmatprep.mubr.msk.bf16.mxu0 %vm1929_vm1, %v4035_v7 }
  0xd1   : > { %2472 = vmatmul.mubr.bf16.vlgmr.msra.gmra.mrb[80].mxu1 %v4029_v6  ;;  %2569 = vmatmul.mubr.bf16.vlgmr.msra.gmra.mrb[80].mxu0 %v4033_v8 }
  0xd2   : > { %2479 = vmatprep.mubr.bf16.mxu1 %v4036_v9  ;;  %3227 = vmatprep.mubr.msk.bf16.mxu0 %vm1929_vm1, %v4039_v10 }
  0xd9   : > { %2480 = vmatmul.mubr.bf16.gmra.mrb[84].mxu1 %v4038_v11  ;;  %2577 = vmatmul.mubr.bf16.gmra.mrb[84].mxu0 %v4041_v12 }
  0xda   : > { %2487 = vmatprep.mubr.bf16.mxu1 %v4042_v13  ;;  %3228 = vmatprep.mubr.msk.bf16.mxu0 %vm1929_vm1, %v4045_v14 }
  0xe1   : > { %2488 = vmatmul.mubr.bf16.gmra.mrb[88].mxu1 %v4044_v15  ;;  %2585 = vmatmul.mubr.bf16.gmra.mrb[88].mxu0 %v4047_v16 }
  0xe2   : > { %2495 = vmatprep.mubr.bf16.mxu1 %v4048_v17  ;;  %3229 = vmatprep.mubr.msk.bf16.mxu0 %vm1929_vm1, %v4051_v18 }
  0xe9   : > { %2496 = vmatmul.mubr.bf16.gmra.mrb[92].mxu1 %v4050_v19  ;;  %2593 = vmatmul.mubr.bf16.gmra.mrb[92].mxu0 %v4053_v20 }
  0xea   : > { %2503 = vmatprep.mubr.bf16.mxu1 %v4054_v21  ;;  %3230 = vmatprep.mubr.msk.bf16.mxu0 %vm1929_vm1, %v4057_v22 }
  0xf1   : > { %2504 = vmatmul.mubr.bf16.gmra.mrb[96].mxu1 %v4056_v23  ;;  %2601 = vmatmul.mubr.bf16.gmra.mrb[96].mxu0 %v4059_v24 }
  0xf2   : > { %2511 = vmatprep.mubr.bf16.mxu1 %v4060_v25  ;;  %3231 = vmatprep.mubr.msk.bf16.mxu0 %vm1929_vm1, %v4063_v26 }
  0xf9   : > { %2512 = vmatmul.mubr.bf16.gmra.mrb[100].mxu1 %v4062_v27  ;;  %2609 = vmatmul.mubr.bf16.gmra.mrb[100].mxu0 %v4065_v28 }
  0xfa   : > { %2519 = vmatprep.mubr.bf16.mxu1 %v4066_v29  ;;  %3232 = vmatprep.mubr.msk.bf16.mxu0 %vm1929_vm1, %v4069_v30 }
 0x101   : > { %2520 = vmatmul.mubr.bf16.gmra.mrb[104].mxu1 %v4068_v31  ;;  %2617 = vmatmul.mubr.bf16.gmra.mrb[104].mxu0 %v4071_v32 }
 0x102   : > { %2527 = vmatprep.mubr.bf16.mxu1 %v4072_v33  ;;  %3233 = vmatprep.mubr.msk.bf16.mxu0 %vm1929_vm1, %v4075_v34 }
 0x104   : > { %v3281_v35 = vpop.f32.mrb[0].mxu1  ;;  %v3257_v36 = vpop.f32.mrb[0].mxu0 }
 0x105   : > { %v3282_v38 = vpop.f32.mrb[1].mxu1  ;;  %v3258_v39 = vpop.f32.mrb[1].mxu0 }
 0x106   : > { %v4740_v41 = vadd.f32 %v3282_v38, %v3281_v35  ;;  %v3284_v42 = vpop.f32.mrb[2].mxu1  ;;  %v3259_v43 = vadd.f32 %v3258_v39, %v3257_v36  ;;  %v3260_v44 = vpop.f32.mrb[2].mxu0 }
 0x107   : > { %v3285_v45 = vpop.f32.mrb[3].mxu1  ;;  %v3261_v46 = vpop.f32.mrb[3].mxu0 }
 0x108   : > { %v4742_v47 = vadd.f32 %v3285_v45, %v3284_v42  ;;  %v3262_v48 = vadd.f32 %v3261_v46, %v3260_v44 }
 0x109   : > { %2528 = vmatmul.mubr.bf16.gmra.mrb[108].mxu1 %v4074_v37  ;;  %2625 = vmatmul.mubr.bf16.gmra.mrb[108].mxu0 %v4077_v40 }
 0x10c   : > { %v3287_v49 = vpop.f32.mrb[4].mxu1  ;;  %v3263_v50 = vpop.f32.mrb[4].mxu0 }
 0x10d   : > { %v3288_v51 = vpop.f32.mrb[5].mxu1  ;;  %v3264_v52 = vpop.f32.mrb[5].mxu0 }
 0x10e   : > { %v4744_v53 = vadd.f32 %v3288_v51, %v3287_v49  ;;  %v3290_v54 = vpop.f32.mrb[6].mxu1  ;;  %v3265_v55 = vadd.f32 %v3264_v52, %v3263_v50  ;;  %v3266_v56 = vpop.f32.mrb[6].mxu0 }
 0x10f   : > { %v3291_v57 = vpop.f32.mrb[7].mxu1  ;;  %v3267_v58 = vpop.f32.mrb[7].mxu0 }
 0x110   : > { %v4746_v59 = vadd.f32 %v3291_v57, %v3290_v54  ;;  %v3268_v60 = vadd.f32 %v3267_v58, %v3266_v56 }
 0x114   : > { %v3293_v61 = vpop.f32.mrb[8].mxu1  ;;  %v3269_v62 = vpop.f32.mrb[8].mxu0 }
 0x115   : > { %v3294_v63 = vpop.f32.mrb[9].mxu1  ;;  %v3270_v0 = vpop.f32.mrb[9].mxu0 }
 0x116   : > { %v4748_v1 = vadd.f32 %v3294_v63, %v3293_v61  ;;  %v3296_v2 = vpop.f32.mrb[10].mxu1  ;;  %v3271_v3 = vadd.f32 %v3270_v0, %v3269_v62  ;;  %v3272_v4 = vpop.f32.mrb[10].mxu0 }
 0x117   : > { %v3297_v5 = vpop.f32.mrb[11].mxu1  ;;  %v3273_v7 = vpop.f32.mrb[11].mxu0 }
 0x118   : > { %v4750_v6 = vadd.f32 %v3297_v5, %v3296_v2  ;;  %v3274_v8 = vadd.f32 %v3273_v7, %v3272_v4 }
 0x11c   : > { %v3299_v9 = vpop.f32.mrb[12].mxu1  ;;  %v3275_v10 = vpop.f32.mrb[12].mxu0 }
 0x11d   : > { %v3300_v11 = vpop.f32.mrb[13].mxu1  ;;  %v3276_v12 = vpop.f32.mrb[13].mxu0 }
 0x11e   : > { %v4752_v13 = vadd.f32 %v3300_v11, %v3299_v9  ;;  %v3302_v14 = vpop.f32.mrb[14].mxu1  ;;  %v4754_v15 = vadd.f32 %v3276_v12, %v3275_v10  ;;  %v3278_v16 = vpop.f32.mrb[14].mxu0 }
 0x11f   : > { %v3303_v17 = vpop.f32.mrb[15].mxu1  ;;  %v3279_v18 = vpop.f32.mrb[15].mxu0 }
 0x120   : > { %v4756_v19 = vadd.f32 %v3303_v17, %v3302_v14  ;;  %v3280_v20 = vadd.f32 %v3279_v18, %v3278_v16 }
 0x124   : > { %v3321_v21 = vpop.f32.mrb[16].mxu1  ;;  %v3385_v22 = vpop.f32.mrb[16].mxu0 }
 0x125   : > { %v3322_v23 = vpop.f32.mrb[17].mxu1  ;;  %v3386_v24 = vpop.f32.mrb[17].mxu0 }
 0x126   : > { %v3323_v25 = vadd.f32 %v3322_v23, %v3321_v21  ;;  %v3324_v26 = vpop.f32.mrb[18].mxu1  ;;  %v3387_v27 = vadd.f32 %v3386_v24, %v3385_v22  ;;  %v3388_v28 = vpop.f32.mrb[18].mxu0 }
 0x127   : > { %v3325_v29 = vpop.f32.mrb[19].mxu1  ;;  %v3389_v30 = vpop.f32.mrb[19].mxu0 }
 0x128   : > { %v2086_v31 = vadd.f32 %v3323_v25, %v3259_v43  ;;  %v3326_v32 = vadd.f32 %v3325_v29, %v3324_v26  ;;  %v3390_v33 = vadd.f32 %v3389_v30, %v3388_v28 }
 0x12a   : > { %v2089_v34 = vadd.f32 %v3326_v32, %v3262_v48  ;;  %v4758_v35 = vadd.f32 %v3387_v27, %v2086_v31 }
 0x12c   : > { %v4760_v36 = vadd.f32 %v3390_v33, %v2089_v34  ;;  %v3327_v37 = vpop.f32.mrb[20].mxu1  ;;  %v3391_v38 = vpop.f32.mrb[20].mxu0 }
 0x12d   : > { %v3328_v39 = vpop.f32.mrb[21].mxu1  ;;  %v3392_v40 = vpop.f32.mrb[21].mxu0 }
 0x12e   : > { %v3329_v42 = vadd.f32 %v3328_v39, %v3327_v37  ;;  %v3330_v44 = vpop.f32.mrb[22].mxu1  ;;  %v3393_v45 = vadd.f32 %v3392_v40, %v3391_v38  ;;  %v3394_v46 = vpop.f32.mrb[22].mxu0 }
 0x12f   : > { %v3331_v49 = vpop.f32.mrb[23].mxu1  ;;  %v3395_v50 = vpop.f32.mrb[23].mxu0 }
 0x130   : > { %v2094_v51 = vadd.f32 %v3329_v42, %v3265_v55  ;;  %v3332_v52 = vadd.f32 %v3331_v49, %v3330_v44  ;;  %v3396_v43 = vadd.f32 %v3395_v50, %v3394_v46  ;;  %v2727_v42 = vld [vmem:[#allocation2] sm:$0x1] }
 0x132   : > { %v2097_v54 = vadd.f32 %v3332_v52, %v3268_v60  ;;  %v4762_v56 = vadd.f32 %v3393_v45, %v2094_v51 }
 0x134   : > { %v4764_v48 = vadd.f32 %v3396_v43, %v2097_v54  ;;  %v3333_v57 = vpop.f32.mrb[24].mxu1  ;;  %v3397_v58 = vpop.f32.mrb[24].mxu0  ;;  %v2741_v43 = vld [vmem:[%s5053_s7] sm:$0xff]  ;;  %v2742_v54 = vld [vmem:[%s5053_s7 + $0x8] sm:$0xff] }
 0x135   : > { %v3334_v61 = vpop.f32.mrb[25].mxu1  ;;  %v3398_v62 = vpop.f32.mrb[25].mxu0 }
 0x136   : > { %v3335_v63 = vadd.f32 %v3334_v61, %v3333_v57  ;;  %v3336_v0 = vpop.f32.mrb[26].mxu1  ;;  %v3399_v2 = vadd.f32 %v3398_v62, %v3397_v58  ;;  %v3400_v4 = vpop.f32.mrb[26].mxu0  ;;  %v4151_v58 = vmov 0.0|0.0  }
 0x137   : > { %v3337_v5 = vpop.f32.mrb[27].mxu1  ;;  %v3401_v7 = vpop.f32.mrb[27].mxu0  ;;  %3705 = vmatprep.subr.bf16.mxu0 %v4151_v58  ;;  %3729 = vmatprep.subr.bf16.mxu1 %v4151_v58 }
 0x138   : > { %v2102_v9 = vadd.f32 %v3335_v63, %v3271_v3  ;;  %v3338_v10 = vadd.f32 %v3337_v5, %v3336_v0  ;;  %v3402_v55 = vadd.f32 %v3401_v7, %v3400_v4 }
 0x13a   : > { %v2105_v11 = vadd.f32 %v3338_v10, %v3274_v8  ;;  %v4766_v12 = vadd.f32 %v3399_v2, %v2102_v9 }
 0x13c   : > { %v4768_v60 = vadd.f32 %v3402_v55, %v2105_v11  ;;  %v3339_v14 = vpop.f32.mrb[28].mxu1  ;;  %v3403_v16 = vpop.f32.mrb[28].mxu0 }
 0x13d   : > { %v3340_v17 = vpop.f32.mrb[29].mxu1  ;;  %v3404_v18 = vpop.f32.mrb[29].mxu0 }
 0x13e   : > { %v3341_v21 = vadd.f32 %v3340_v17, %v3339_v14  ;;  %v3342_v22 = vpop.f32.mrb[30].mxu1  ;;  %v3405_v23 = vadd.f32 %v3404_v18, %v3403_v16  ;;  %v3406_v24 = vpop.f32.mrb[30].mxu0  ;;  %v2743_v18 = vld [vmem:[%s5053_s7 + $0x10] sm:$0xff] }
 0x13f   : > { %v3343_v25 = vpop.f32.mrb[31].mxu1  ;;  %v3407_v26 = vpop.f32.mrb[31].mxu0 }
 0x140   : > { %v2110_v27 = vadd.f32 %v3341_v21, %v4754_v15  ;;  %v3344_v3 = vadd.f32 %v3343_v25, %v3342_v22  ;;  %v3408_v28 = vadd.f32 %v3407_v26, %v3406_v24  ;;  %v2744_v21 = vld [vmem:[%s5053_s7 + $0x18] sm:$0xff] }
 0x141   : > { %v3709_v22 = vpack.c.bf16 %v2744_v21, %v2743_v18 }
 0x142   : > { %v2113_v29 = vadd.f32 %v3344_v3, %v3280_v20  ;;  %v4771_v8 = vadd.f32 %v3405_v23, %v2110_v27  ;;  %v2726_v20 = vpop.xlane.xlu0 %2725 }
 0x143   : > { %v2728_v50 = vadd.f32 %v2727_v42, %v2726_v20  ;;  %v2745_v42 = vld [vmem:[%s5053_s7 + $0x20] sm:$0xff] }
 0x144   : > { %v4773_v30 = vadd.f32 %v3408_v28, %v2113_v29  ;;  %v3345_v31 = vpop.f32.mrb[32].mxu1  ;;  %v3409_v32 = vpop.f32.mrb[32].mxu0 }
 0x145   : > { %v3346_v33 = vpop.f32.mrb[33].mxu1  ;;  %v3410_v34 = vpop.f32.mrb[33].mxu0  ;;  %v3236_v57 = vmul.f32 -1.442695, %v2728_v50 }
 0x146   : > { %v3347_v37 = vadd.f32 %v3346_v33, %v3345_v31  ;;  %v3348_v38 = vpop.f32.mrb[34].mxu1  ;;  %v3411_v39 = vadd.f32 %v3410_v34, %v3409_v32  ;;  %v3412_v40 = vpop.f32.mrb[34].mxu0 }
 0x147   : > { %v3349_v44 = vpop.f32.mrb[35].mxu1  ;;  %v3413_v45 = vpop.f32.mrb[35].mxu0  ;;  %4078 = vpow2.f32 %v3236_v57 }
 0x148   : > { %v2118_v15 = vadd.f32 %v3347_v37, %v4740_v41  ;;  %v3350_v46 = vadd.f32 %v3349_v44, %v3348_v38  ;;  %v3414_v49 = vadd.f32 %v3413_v45, %v3412_v40  ;;  %v3706_v41 = vpack.c.bf16 %v2742_v54, %v2741_v43  ;;  %v2746_v44 = vld [vmem:[%s5053_s7 + $0x28] sm:$0xff] }
 0x149   : > { %v3712_v45 = vpack.c.bf16 %v2746_v44, %v2745_v42 }
 0x14a   : > { %v2121_v51 = vadd.f32 %v3350_v46, %v4742_v47  ;;  %v4777_v52 = vadd.f32 %v3411_v39, %v2118_v15  ;;  %3707 = vmatpush3.bf16.msra.mxu0 %v3706_v41 }
 0x14b   : > { %3708 = vmatprep.subr.bf16.mxu0 %v4151_v58 }
 0x14c   : > { %v4787_v61 = vadd.f32 %v3414_v49, %v2121_v51  ;;  %v3351_v47 = vpop.f32.mrb[36].mxu1  ;;  %v3415_v62 = vpop.f32.mrb[36].mxu0 }
 0x14d   : > { %v3352_v63 = vpop.f32.mrb[37].mxu1  ;;  %v3416_v0 = vpop.f32.mrb[37].mxu0 }
 0x14e   : > { %v3353_v2 = vadd.f32 %v3352_v63, %v3351_v47  ;;  %v3354_v4 = vpop.f32.mrb[38].mxu1  ;;  %v3417_v5 = vadd.f32 %v3416_v0, %v3415_v62  ;;  %v3418_v7 = vpop.f32.mrb[38].mxu0  ;;  %3710 = vmatpush3.bf16.msra.mxu0 %v3709_v22 }
 0x14f   : > { %v3355_v9 = vpop.f32.mrb[39].mxu1  ;;  %v3419_v10 = vpop.f32.mrb[39].mxu0  ;;  %3711 = vmatprep.subr.bf16.mxu0 %v4151_v58 }
 0x150   : > { %v2126_v55 = vadd.f32 %v3353_v2, %v4744_v53  ;;  %v3356_v11 = vadd.f32 %v3355_v9, %v3354_v4  ;;  %v3420_v14 = vadd.f32 %v3419_v10, %v3418_v7  ;;  %v2747_v2 = vld [vmem:[%s5053_s7 + $0x30] sm:$0xff]  ;;  %v2748_v4 = vld [vmem:[%s5053_s7 + $0x38] sm:$0xff] }
 0x151   : > { %v4079_v29 = vpop.eup %4078 }
 0x152   : > { %v2129_v16 = vadd.f32 %v3356_v11, %v4746_v59  ;;  %v4792_v17 = vadd.f32 %v3417_v5, %v2126_v55  ;;  %v2732_v38 = vadd.f32 1.0, %v4079_v29  ;;  %3713 = vmatpush3.bf16.msra.mxu0 %v3712_v45  ;;  %v3715_v5 = vpack.c.bf16 %v2748_v4, %v2747_v2  ;;  %v2753_v45 = vld [vmem:[%s5053_s7 + $0x60] sm:$0xff] }
 0x153   : > { %3714 = vmatprep.subr.bf16.mxu0 %v4151_v58 }
 0x154   : > { %v4800_v23 = vadd.f32 %v3420_v14, %v2129_v16  ;;  %v3357_v24 = vpop.f32.mrb[40].mxu1  ;;  %v3421_v25 = vpop.f32.mrb[40].mxu0  ;;  %4080 = vrcp.f32 %v2732_v38 }
 0x155   : > { %v3358_v53 = vpop.f32.mrb[41].mxu1  ;;  %v3422_v26 = vpop.f32.mrb[41].mxu0 }
 0x156   : > { %v3359_v27 = vadd.f32 %v3358_v53, %v3357_v24  ;;  %v3360_v59 = vpop.f32.mrb[42].mxu1  ;;  %v3423_v3 = vadd.f32 %v3422_v26, %v3421_v25  ;;  %v3424_v28 = vpop.f32.mrb[42].mxu0  ;;  %3716 = vmatpush3.bf16.msra.mxu0 %v3715_v5 }
 0x157   : > { %v3361_v31 = vpop.f32.mrb[43].mxu1  ;;  %v3425_v32 = vpop.f32.mrb[43].mxu0  ;;  %3717 = vmatprep.subr.bf16.mxu0 %v4151_v58 }
 0x158   : > { %v2134_v33 = vadd.f32 %v3359_v27, %v4748_v1  ;;  %v3362_v34 = vadd.f32 %v3361_v31, %v3360_v59  ;;  %v3426_v37 = vadd.f32 %v3425_v32, %v3424_v28  ;;  %v2749_v59 = vld [vmem:[%s5053_s7 + $0x40] sm:$0xff] }
 0x15a   : > { %v2137_v39 = vadd.f32 %v3362_v34, %v4750_v6  ;;  %v4805_v40 = vadd.f32 %v3423_v3, %v2134_v33  ;;  %v2750_v3 = vld [vmem:[%s5053_s7 + $0x48] sm:$0xff]  ;;  %v2752_v34 = vld [vmem:[%s5053_s7 + $0x58] sm:$0xff] }
 0x15b   : > { %v3718_v28 = vpack.c.bf16 %v2750_v3, %v2749_v59 }
 0x15c   : > { %v4813_v15 = vadd.f32 %v3426_v37, %v2137_v39  ;;  %v3363_v1 = vpop.f32.mrb[44].mxu1  ;;  %v3427_v46 = vpop.f32.mrb[44].mxu0 }
 0x15d   : > { %v3364_v49 = vpop.f32.mrb[45].mxu1  ;;  %v3428_v20 = vpop.f32.mrb[45].mxu0  ;;  %3719 = vmatpush3.bf16.msra.mxu0 %v3718_v28 }
 0x15e   : > { %v3365_v6 = vadd.f32 %v3364_v49, %v3363_v1  ;;  %v3366_v50 = vpop.f32.mrb[46].mxu1  ;;  %v3429_v51 = vadd.f32 %v3428_v20, %v3427_v46  ;;  %v3430_v43 = vpop.f32.mrb[46].mxu0  ;;  %3720 = vmatprep.subr.bf16.mxu0 %v4151_v58  ;;  %v2754_v1 = vld [vmem:[%s5053_s7 + $0x68] sm:$0xff] }
 0x15f   : > { %v3367_v54 = vpop.f32.mrb[47].mxu1  ;;  %v3431_v57 = vpop.f32.mrb[47].mxu0 }
 0x160   : > { %v2142_v41 = vadd.f32 %v3365_v6, %v4752_v13  ;;  %v3368_v47 = vadd.f32 %v3367_v54, %v3366_v50  ;;  %v3432_v62 = vadd.f32 %v3431_v57, %v3430_v43  ;;  %v4081_v7 = vpop.eup %4080  ;;  %v2755_v57 = vld [vmem:[%s5053_s7 + $0x70] sm:$0xff] }
 0x161   : > { %2737 = vperm.xlu0 %3801, %v4081_v7  }
 0x162   : > { %v2145_v63 = vadd.f32 %v3368_v47, %v4756_v19  ;;  %v4818_v0 = vadd.f32 %v3429_v51, %v2142_v41  ;;  %v3724_v51 = vpack.c.bf16 %v2754_v1, %v2753_v45  ;;  %v2756_v41 = vld [vmem:[%s5053_s7 + $0x78] sm:$0xff]  ;;  %v2833_v1 = vld [vmem:[%s5055_s9 + $0x20] sm:$0xff] }
 0x164   : > { %v4826_v9 = vadd.f32 %v3432_v62, %v2145_v63  ;;  %v3449_v10 = vpop.f32.mrb[48].mxu1  ;;  %v3513_v13 = vpop.f32.mrb[48].mxu0 }
 0x165   : > { %v3450_v55 = vpop.f32.mrb[49].mxu1  ;;  %v3514_v11 = vpop.f32.mrb[49].mxu0 }
 0x166   : > { %v3451_v19 = vadd.f32 %v3450_v55, %v3449_v10  ;;  %v3452_v14 = vpop.f32.mrb[50].mxu1  ;;  %v3515_v16 = vadd.f32 %v3514_v11, %v3513_v13  ;;  %v3516_v18 = vpop.f32.mrb[50].mxu0 }
 0x167   : > { %v3453_v21 = vpop.f32.mrb[51].mxu1  ;;  %v3517_v22 = vpop.f32.mrb[51].mxu0 }
 0x168   : > { %v2280_v24 = vadd.f32 %v3451_v19, %v4758_v35  ;;  %v3454_v25 = vadd.f32 %v3453_v21, %v3452_v14  ;;  %v3518_v53 = vadd.f32 %v3517_v22, %v3516_v18 }
 0x16a   : > { %v2283_v26 = vadd.f32 %v3454_v25, %v4760_v36  ;;  %v4831_v27 = vadd.f32 %v3515_v16, %v2280_v24  ;;  %v2751_v36 = vld [vmem:[%s5053_s7 + $0x50] sm:$0xff] }
 0x16b   : > { %v3721_v44 = vpack.c.bf16 %v2752_v34, %v2751_v36 }
 0x16c   : > { %v4839_v29 = vadd.f32 %v3518_v53, %v2283_v26  ;;  %v3455_v31 = vpop.f32.mrb[52].mxu1  ;;  %v3519_v32 = vpop.f32.mrb[52].mxu0 }
 0x16d   : > { %v3456_v35 = vpop.f32.mrb[53].mxu1  ;;  %v3520_v33 = vpop.f32.mrb[53].mxu0  ;;  %3722 = vmatpush3.bf16.msra.mxu0 %v3721_v44 }
 0x16e   : > { %v3457_v37 = vadd.f32 %v3456_v35, %v3455_v31  ;;  %v3458_v38 = vpop.f32.mrb[54].mxu1  ;;  %v3521_v39 = vadd.f32 %v3520_v33, %v3519_v32  ;;  %v3522_v42 = vpop.f32.mrb[54].mxu0  ;;  %3723 = vmatprep.subr.bf16.mxu0 %v4151_v58  ;;  %v4153_v31 = vmov 0.0   ;;  %v2830_v35 = vld [vmem:[%s5055_s9 + $0x8] sm:$0xff]  ;;  %v2831_v33 = vld [vmem:[%s5055_s9 + $0x10] sm:$0xff] }
 0x16f   : > { %v3459_v46 = vpop.f32.mrb[55].mxu1  ;;  %v3523_v49 = vpop.f32.mrb[55].mxu0  ;;  %3683 = vmatprep.mubr.msk.f32.mxu0 %vm4152_vm2, %v4153_v31  ;;  %3702 = vmatprep.mubr.msk.f32.mxu1 %vm4152_vm2, %v4153_v31 }
 0x170   : > { %v2288_v20 = vadd.f32 %v3457_v37, %v4762_v56  ;;  %v3460_v6 = vadd.f32 %v3459_v46, %v3458_v38  ;;  %v3524_v50 = vadd.f32 %v3523_v49, %v3522_v42 }
 0x171   : > { %3725 = vmatpush3.bf16.msra.mxu0 %v3724_v51 }
 0x172   : > { %v2291_v43 = vadd.f32 %v3460_v6, %v4764_v48  ;;  %v4856_v54 = vadd.f32 %v3521_v39, %v2288_v20  ;;  %v3727_v48 = vpack.c.bf16 %v2756_v41, %v2755_v57  ;;  %3726 = vmatprep.subr.bf16.mxu0 %v4151_v58  ;;  %v2832_v39 = vld [vmem:[%s5055_s9 + $0x18] sm:$0xff] }
 0x173   : > { %v3733_v45 = vpack.c.bf16 %v2832_v39, %v2831_v33 }
 0x174   : > { %v4865_v47 = vadd.f32 %v3524_v50, %v2291_v43  ;;  %v3461_v56 = vpop.f32.mrb[56].mxu1  ;;  %v3525_v62 = vpop.f32.mrb[56].mxu0 }
 0x175   : > { %v3462_v63 = vpop.f32.mrb[57].mxu1  ;;  %v3526_v2 = vpop.f32.mrb[57].mxu0  ;;  %3728 = vmatpush3.bf16.msra.mxu0 %v3727_v48 }
 0x176   : > { %v3463_v4 = vadd.f32 %v3462_v63, %v3461_v56  ;;  %v3464_v5 = vpop.f32.mrb[58].mxu1  ;;  %v3527_v7 = vadd.f32 %v3526_v2, %v3525_v62  ;;  %v3528_v10 = vpop.f32.mrb[58].mxu0  ;;  %v2835_v63 = vld [vmem:[%s5055_s9 + $0x30] sm:$0xff]  ;;  %v2836_v2 = vld [vmem:[%s5055_s9 + $0x38] sm:$0xff] }
 0x177   : > { %v3465_v13 = vpop.f32.mrb[59].mxu1  ;;  %v3529_v55 = vpop.f32.mrb[59].mxu0 }
 0x178   : > { %v2296_v11 = vadd.f32 %v3463_v4, %v4766_v12  ;;  %v3466_v19 = vadd.f32 %v3465_v13, %v3464_v5  ;;  %v3530_v14 = vadd.f32 %v3529_v55, %v3528_v10  ;;  %v3739_v13 = vpack.c.bf16 %v2836_v2, %v2835_v63 }
 0x17a   : > { %v2299_v16 = vadd.f32 %v3466_v19, %v4768_v60  ;;  %v4870_v18 = vadd.f32 %v3527_v7, %v2296_v11  ;;  %v2829_v60 = vld [vmem:[%s5055_s9] sm:$0xff] }
 0x17b   : > { %v3730_v38 = vpack.c.bf16 %v2830_v35, %v2829_v60 }
 0x17c   : > { %v4872_v21 = vadd.f32 %v3530_v14, %v2299_v16  ;;  %v3467_v22 = vpop.f32.mrb[60].mxu1  ;;  %v3531_v24 = vpop.f32.mrb[60].mxu0 }
 0x17d   : > { %v3468_v25 = vpop.f32.mrb[61].mxu1  ;;  %v3532_v53 = vpop.f32.mrb[61].mxu0  ;;  %3731 = vmatpush3.bf16.msra.mxu1 %v3730_v38 }
 0x17e   : > { %v3469_v26 = vadd.f32 %v3468_v25, %v3467_v22  ;;  %v3470_v59 = vpop.f32.mrb[62].mxu1  ;;  %v3533_v3 = vadd.f32 %v3532_v53, %v3531_v24  ;;  %v3534_v28 = vpop.f32.mrb[62].mxu0  ;;  %3732 = vmatprep.subr.bf16.mxu1 %v4151_v58 }
 0x17f   : > { %v3471_v12 = vpop.f32.mrb[63].mxu1  ;;  %v3535_v32 = vpop.f32.mrb[63].mxu0 }
 0x180   : > { %v2304_v36 = vadd.f32 %v3469_v26, %v4771_v8  ;;  %v3472_v34 = vadd.f32 %v3471_v12, %v3470_v59  ;;  %v3536_v37 = vadd.f32 %v3535_v32, %v3534_v28  ;;  %v2834_v8 = vld [vmem:[%s5055_s9 + $0x28] sm:$0xff] }
 0x181   : > { %3734 = vmatpush3.bf16.msra.mxu1 %v3733_v45  ;;  %v3736_v41 = vpack.c.bf16 %v2834_v8, %v2833_v1 }
 0x182   : > { %v2307_v42 = vadd.f32 %v3472_v34, %v4773_v30  ;;  %v4888_v44 = vadd.f32 %v3533_v3, %v2304_v36  ;;  %3735 = vmatprep.subr.bf16.mxu1 %v4151_v58 }
 0x184   : > { %v4897_v46 = vadd.f32 %v3536_v37, %v2307_v42  ;;  %v3473_v49 = vpop.f32.mrb[64].mxu1  ;;  %v3537_v20 = vpop.f32.mrb[64].mxu0 }
 0x185   : > { %v3474_v6 = vpop.f32.mrb[65].mxu1  ;;  %v3538_v30 = vpop.f32.mrb[65].mxu0  ;;  %3737 = vmatpush3.bf16.msra.mxu1 %v3736_v41 }
 0x186   : > { %v3475_v50 = vadd.f32 %v3474_v6, %v3473_v49  ;;  %v3476_v51 = vpop.f32.mrb[66].mxu1  ;;  %v3539_v43 = vadd.f32 %v3538_v30, %v3537_v20  ;;  %v3540_v57 = vpop.f32.mrb[66].mxu0  ;;  %3738 = vmatprep.subr.bf16.mxu1 %v4151_v58 }
 0x187   : > { %v3477_v56 = vpop.f32.mrb[67].mxu1  ;;  %v3541_v62 = vpop.f32.mrb[67].mxu0 }
 0x188   : > { %v2312_v48 = vadd.f32 %v3475_v50, %v4777_v52  ;;  %v3478_v4 = vadd.f32 %v3477_v56, %v3476_v51  ;;  %v3542_v5 = vadd.f32 %v3541_v62, %v3540_v57 }
 0x189   : > { %3740 = vmatpush3.bf16.msra.mxu1 %v3739_v13 }
 0x18a   : > { %v2315_v7 = vadd.f32 %v3478_v4, %v4787_v61  ;;  %v4908_v10 = vadd.f32 %v3539_v43, %v2312_v48 }
 0x18c   : > { %v4911_v55 = vadd.f32 %v3542_v5, %v2315_v7  ;;  %v3479_v11 = vpop.f32.mrb[68].mxu1  ;;  %v3543_v19 = vpop.f32.mrb[68].mxu0 }
 0x18d   : > { %v3480_v14 = vpop.f32.mrb[69].mxu1  ;;  %v3544_v16 = vpop.f32.mrb[69].mxu0 }
 0x18e   : > { %v3481_v22 = vadd.f32 %v3480_v14, %v3479_v11  ;;  %v3482_v24 = vpop.f32.mrb[70].mxu1  ;;  %v3545_v25 = vadd.f32 %v3544_v16, %v3543_v19  ;;  %v3546_v52 = vpop.f32.mrb[70].mxu0 }
 0x18f   : > { %v3483_v53 = vpop.f32.mrb[71].mxu1  ;;  %v3547_v26 = vpop.f32.mrb[71].mxu0 }
 0x190   : > { %v2320_v61 = vadd.f32 %v3481_v22, %v4792_v17  ;;  %v3484_v59 = vadd.f32 %v3483_v53, %v3482_v24  ;;  %v3548_v3 = vadd.f32 %v3547_v26, %v3546_v52  ;;  %v4941_v53 = vld [vmem:[%s5049_s3] ss:$0 sm:$0xff] }
 0x192   : > { %v2323_v28 = vadd.f32 %v3484_v59, %v4800_v23  ;;  %v4915_v58 = vadd.f32 %v3545_v25, %v2320_v61 }
 0x194   : > { %v4917_v31 = vadd.f32 %v3548_v3, %v2323_v28  ;;  %v3485_v12 = vpop.f32.mrb[72].mxu1  ;;  %v3549_v32 = vpop.f32.mrb[72].mxu0 }
 0x195   : > { %v3486_v60 = vpop.f32.mrb[73].mxu1  ;;  %v3550_v35 = vpop.f32.mrb[73].mxu0 }
 0x196   : > { %v3487_v33 = vadd.f32 %v3486_v60, %v3485_v12  ;;  %v3488_v36 = vpop.f32.mrb[74].mxu1  ;;  %v3551_v34 = vadd.f32 %v3550_v35, %v3549_v32  ;;  %v3552_v37 = vpop.f32.mrb[74].mxu0 }
 0x197   : > { %v3489_v38 = vpop.f32.mrb[75].mxu1  ;;  %v3553_v39 = vpop.f32.mrb[75].mxu0 }
 0x198   : > { %v2328_v17 = vadd.f32 %v3487_v33, %v4805_v40  ;;  %v3490_v42 = vadd.f32 %v3489_v38, %v3488_v36  ;;  %v3554_v45 = vadd.f32 %v3553_v39, %v3552_v37 }
 0x19a   : > { %v2331_v23 = vadd.f32 %v3490_v42, %v4813_v15  ;;  %v4921_v1 = vadd.f32 %v3551_v34, %v2328_v17 }
 0x19c   : > { %v4923_v8 = vadd.f32 %v3554_v45, %v2331_v23  ;;  %v3491_v49 = vpop.f32.mrb[76].mxu1  ;;  %v3555_v20 = vpop.f32.mrb[76].mxu0 }
 0x19d   : > { %v3492_v6 = vpop.f32.mrb[77].mxu1  ;;  %v3556_v30 = vpop.f32.mrb[77].mxu0 }
 0x19e   : > { %v3493_v50 = vadd.f32 %v3492_v6, %v3491_v49  ;;  %v3494_v51 = vpop.f32.mrb[78].mxu1  ;;  %v3557_v43 = vadd.f32 %v3556_v30, %v3555_v20  ;;  %v3558_v57 = vpop.f32.mrb[78].mxu0 }
 0x19f   : > { %v3495_v41 = vpop.f32.mrb[79].mxu1  ;;  %v3559_v56 = vpop.f32.mrb[79].mxu0 }
 0x1a0   : > { %v2336_v40 = vadd.f32 %v3493_v50, %v4818_v0  ;;  %v3496_v62 = vadd.f32 %v3495_v41, %v3494_v51  ;;  %v3560_v63 = vadd.f32 %v3559_v56, %v3558_v57 }
 0x1a2   : > { %v2339_v15 = vadd.f32 %v3496_v62, %v4826_v9  ;;  %v4927_v2 = vadd.f32 %v3557_v43, %v2336_v40  ;;  %v4935_v9 = vld [vmem:[%s5048_s2] ss:$0 sm:$0xff] }
 0x1a4   : > { %v4929_v48 = vadd.f32 %v3560_v63, %v2339_v15  ;;  %v3577_v4 = vpop.f32.mrb[80].mxu1  ;;  %v2570_v5 = vpop.f32.mrb[80].mxu0 }
 0x1a5   : > { %v3578_v7 = vpop.f32.mrb[81].mxu1  ;;  %v2572_v13 = vpop.f32.mrb[81].mxu0 }
 0x1a6   : > { %v3579_v11 = vadd.f32 %v3578_v7, %v3577_v4  ;;  %v3580_v19 = vpop.f32.mrb[82].mxu1  ;;  %v2573_v14 = vpop.f32.mrb[82].mxu0 }
 0x1a7   : > { %v3581_v16 = vpop.f32.mrb[83].mxu1  ;;  %v2575_v22 = vpop.f32.mrb[83].mxu0 }
 0x1a8   : > { %v3582_v24 = vadd.f32 %v3581_v16, %v3580_v19  ;;  %v2474_v0 = vadd.f32 %v3579_v11, %v4831_v27 }
 0x1aa   : > { %v2571_v25 = vadd.f32 %v2570_v5, %v2474_v0  ;;  %v2477_v52 = vadd.f32 %v3582_v24, %v4839_v29 }
 0x1ac   : > { %v2640_v26 = vmul.f32 %v4935_v9, %v2571_v25  ;;  %v2574_v61 = vadd.f32 %v2573_v14, %v2477_v52  ;;  %v3583_v59 = vpop.f32.mrb[84].mxu1  ;;  %v2578_v3 = vpop.f32.mrb[84].mxu0 }
 0x1ad   : > { %v3584_v28 = vpop.f32.mrb[85].mxu1  ;;  %v2580_v27 = vpop.f32.mrb[85].mxu0 }
 0x1ae   : > { %v2663_v12 = vadd.f32 %v4941_v53, %v2640_v26  ;;  %v2641_v32 = vmul.f32 %v4935_v9, %v2574_v61  ;;  %v3585_v60 = vadd.f32 %v3584_v28, %v3583_v59  ;;  %v3586_v35 = vpop.f32.mrb[86].mxu1  ;;  %v2581_v33 = vpop.f32.mrb[86].mxu0 }
 0x1af   : > { %v3587_v29 = vpop.f32.mrb[87].mxu1  ;;  %v2583_v36 = vpop.f32.mrb[87].mxu0 }
 0x1b0   : > { %v2664_v34 = vadd.f32 %v4941_v53, %v2641_v32  ;;  %v3588_v37 = vadd.f32 %v3587_v29, %v3586_v35  ;;  %v2482_v38 = vadd.f32 %v3585_v60, %v4856_v54  ;;  %v2679_v39 = vmax.f32 %v2663_v12, 0.0 }
 0x1b2   : > { %v2680_v17 = vmax.f32 %v2664_v34, 0.0  ;;  %v2579_v42 = vadd.f32 %v2578_v3, %v2482_v38  ;;  %v2485_v45 = vadd.f32 %v3588_v37, %v4865_v47 }
 0x1b4   : > { %v2695_v23 = vadd.f32 %v2680_v17, %v2679_v39  ;;  %v2642_v49 = vmul.f32 %v4935_v9, %v2579_v42  ;;  %v2582_v20 = vadd.f32 %v2581_v33, %v2485_v45  ;;  %v3589_v6 = vpop.f32.mrb[88].mxu1  ;;  %v2586_v30 = vpop.f32.mrb[88].mxu0 }
 0x1b5   : > { %v3590_v50 = vpop.f32.mrb[89].mxu1  ;;  %v2588_v51 = vpop.f32.mrb[89].mxu0 }
 0x1b6   : > { %v2665_v43 = vadd.f32 %v4941_v53, %v2642_v49  ;;  %v2643_v57 = vmul.f32 %v4935_v9, %v2582_v20  ;;  %v3591_v41 = vadd.f32 %v3590_v50, %v3589_v6  ;;  %v3592_v56 = vpop.f32.mrb[90].mxu1  ;;  %v2589_v54 = vpop.f32.mrb[90].mxu0 }
 0x1b7   : > { %v3593_v40 = vpop.f32.mrb[91].mxu1  ;;  %v2591_v62 = vpop.f32.mrb[91].mxu0 }
 0x1b8   : > { %v2681_v63 = vmax.f32 %v2665_v43, 0.0  ;;  %v2666_v47 = vadd.f32 %v4941_v53, %v2643_v57  ;;  %v3594_v15 = vadd.f32 %v3593_v40, %v3592_v56  ;;  %v2490_v4 = vadd.f32 %v3591_v41, %v4870_v18 }
 0x1ba   : > { %v2696_v5 = vadd.f32 %v2695_v23, %v2681_v63  ;;  %v2682_v7 = vmax.f32 %v2666_v47, 0.0  ;;  %v2587_v13 = vadd.f32 %v2586_v30, %v2490_v4  ;;  %v2493_v11 = vadd.f32 %v3594_v15, %v4872_v21 }
 0x1bc   : > { %v2697_v19 = vadd.f32 %v2696_v5, %v2682_v7  ;;  %v2644_v14 = vmul.f32 %v4935_v9, %v2587_v13  ;;  %v2590_v16 = vadd.f32 %v2589_v54, %v2493_v11  ;;  %v3595_v22 = vpop.f32.mrb[92].mxu1  ;;  %v2594_v24 = vpop.f32.mrb[92].mxu0 }
 0x1bd   : > { %v3596_v0 = vpop.f32.mrb[93].mxu1  ;;  %v2596_v25 = vpop.f32.mrb[93].mxu0 }
 0x1be   : > { %v2667_v52 = vadd.f32 %v4941_v53, %v2644_v14  ;;  %v2645_v26 = vmul.f32 %v4935_v9, %v2590_v16  ;;  %v3597_v61 = vadd.f32 %v3596_v0, %v3595_v22  ;;  %v3598_v59 = vpop.f32.mrb[94].mxu1  ;;  %v2597_v18 = vpop.f32.mrb[94].mxu0 }
 0x1bf   : > { %v3599_v3 = vpop.f32.mrb[95].mxu1  ;;  %v2599_v28 = vpop.f32.mrb[95].mxu0 }
 0x1c0   : > { %v2683_v27 = vmax.f32 %v2667_v52, 0.0  ;;  %v2668_v21 = vadd.f32 %v4941_v53, %v2645_v26  ;;  %v3600_v12 = vadd.f32 %v3599_v3, %v3598_v59  ;;  %v2498_v32 = vadd.f32 %v3597_v61, %v4888_v44 }
 0x1c2   : > { %v2698_v60 = vadd.f32 %v2697_v19, %v2683_v27  ;;  %v2684_v35 = vmax.f32 %v2668_v21, 0.0  ;;  %v2595_v33 = vadd.f32 %v2594_v24, %v2498_v32  ;;  %v2501_v29 = vadd.f32 %v3600_v12, %v4897_v46 }
 0x1c4   : > { %v2699_v36 = vadd.f32 %v2698_v60, %v2684_v35  ;;  %v2646_v34 = vmul.f32 %v4935_v9, %v2595_v33  ;;  %v2598_v37 = vadd.f32 %v2597_v18, %v2501_v29  ;;  %v3601_v38 = vpop.f32.mrb[96].mxu1  ;;  %v2602_v39 = vpop.f32.mrb[96].mxu0 }
 0x1c5   : > { %v3602_v17 = vpop.f32.mrb[97].mxu1  ;;  %v2604_v42 = vpop.f32.mrb[97].mxu0 }
 0x1c6   : > { %v2669_v45 = vadd.f32 %v4941_v53, %v2646_v34  ;;  %v2647_v23 = vmul.f32 %v4935_v9, %v2598_v37  ;;  %v3603_v49 = vadd.f32 %v3602_v17, %v3601_v38  ;;  %v3604_v20 = vpop.f32.mrb[98].mxu1  ;;  %v2605_v44 = vpop.f32.mrb[98].mxu0 }
 0x1c7   : > { %v3605_v6 = vpop.f32.mrb[99].mxu1  ;;  %v2607_v30 = vpop.f32.mrb[99].mxu0 }
 0x1c8   : > { %v2685_v50 = vmax.f32 %v2669_v45, 0.0  ;;  %v2670_v46 = vadd.f32 %v4941_v53, %v2647_v23  ;;  %v3606_v51 = vadd.f32 %v3605_v6, %v3604_v20  ;;  %v2506_v43 = vadd.f32 %v3603_v49, %v4908_v10 }
 0x1ca   : > { %v2700_v57 = vadd.f32 %v2699_v36, %v2685_v50  ;;  %v2686_v41 = vmax.f32 %v2670_v46, 0.0  ;;  %v2603_v56 = vadd.f32 %v2602_v39, %v2506_v43  ;;  %v2509_v54 = vadd.f32 %v3606_v51, %v4911_v55 }
 0x1cc   : > { %v2701_v40 = vadd.f32 %v2700_v57, %v2686_v41  ;;  %v2648_v62 = vmul.f32 %v4935_v9, %v2603_v56  ;;  %v2606_v63 = vadd.f32 %v2605_v44, %v2509_v54  ;;  %v3607_v47 = vpop.f32.mrb[100].mxu1  ;;  %v2610_v15 = vpop.f32.mrb[100].mxu0 }
 0x1cd   : > { %v3608_v4 = vpop.f32.mrb[101].mxu1  ;;  %v2612_v5 = vpop.f32.mrb[101].mxu0 }
 0x1ce   : > { %v2671_v7 = vadd.f32 %v4941_v53, %v2648_v62  ;;  %v2649_v13 = vmul.f32 %v4935_v9, %v2606_v63  ;;  %v3609_v11 = vadd.f32 %v3608_v4, %v3607_v47  ;;  %v3610_v19 = vpop.f32.mrb[102].mxu1  ;;  %v2613_v10 = vpop.f32.mrb[102].mxu0 }
 0x1cf   : > { %v3611_v14 = vpop.f32.mrb[103].mxu1  ;;  %v2615_v16 = vpop.f32.mrb[103].mxu0 }
 0x1d0   : > { %v2687_v22 = vmax.f32 %v2671_v7, 0.0  ;;  %v2672_v55 = vadd.f32 %v4941_v53, %v2649_v13  ;;  %v3612_v24 = vadd.f32 %v3611_v14, %v3610_v19  ;;  %v2514_v0 = vadd.f32 %v3609_v11, %v4915_v58 }
 0x1d2   : > { %v2702_v25 = vadd.f32 %v2701_v40, %v2687_v22  ;;  %v2688_v52 = vmax.f32 %v2672_v55, 0.0  ;;  %v2611_v26 = vadd.f32 %v2610_v15, %v2514_v0  ;;  %v2517_v61 = vadd.f32 %v3612_v24, %v4917_v31 }
 0x1d4   : > { %v2703_v59 = vadd.f32 %v2702_v25, %v2688_v52  ;;  %v2650_v18 = vmul.f32 %v4935_v9, %v2611_v26  ;;  %v2614_v3 = vadd.f32 %v2613_v10, %v2517_v61  ;;  %v3613_v28 = vpop.f32.mrb[104].mxu1  ;;  %v2618_v27 = vpop.f32.mrb[104].mxu0 }
 0x1d5   : > { %v3614_v21 = vpop.f32.mrb[105].mxu1  ;;  %v2620_v12 = vpop.f32.mrb[105].mxu0 }
 0x1d6   : > { %v2673_v32 = vadd.f32 %v4941_v53, %v2650_v18  ;;  %v2651_v60 = vmul.f32 %v4935_v9, %v2614_v3  ;;  %v3615_v35 = vadd.f32 %v3614_v21, %v3613_v28  ;;  %v3616_v33 = vpop.f32.mrb[106].mxu1  ;;  %v2621_v58 = vpop.f32.mrb[106].mxu0  ;;  %v2837_v21 = vld [vmem:[%s5056_s10] sm:$0x1] }
 0x1d7   : > { %v3617_v29 = vpop.f32.mrb[107].mxu1  ;;  %v2623_v36 = vpop.f32.mrb[107].mxu0 }
 0x1d8   : > { %v2689_v34 = vmax.f32 %v2673_v32, 0.0  ;;  %v2674_v31 = vadd.f32 %v4941_v53, %v2651_v60  ;;  %v3618_v37 = vadd.f32 %v3617_v29, %v3616_v33  ;;  %v2522_v38 = vadd.f32 %v3615_v35, %v4921_v1 }
 0x1da   : > { %v2704_v39 = vadd.f32 %v2703_v59, %v2689_v34  ;;  %v2690_v17 = vmax.f32 %v2674_v31, 0.0  ;;  %v2619_v42 = vadd.f32 %v2618_v27, %v2522_v38  ;;  %v2525_v45 = vadd.f32 %v3618_v37, %v4923_v8 }
 0x1dc   : > { %v2705_v23 = vadd.f32 %v2704_v39, %v2690_v17  ;;  %v2652_v49 = vmul.f32 %v4935_v9, %v2619_v42  ;;  %v2622_v20 = vadd.f32 %v2621_v58, %v2525_v45  ;;  %v3619_v44 = vpop.f32.mrb[108].mxu1  ;;  %v2626_v6 = vpop.f32.mrb[108].mxu0 }
 0x1dd   : > { %v3620_v30 = vpop.f32.mrb[109].mxu1  ;;  %v2628_v50 = vpop.f32.mrb[109].mxu0 }
 0x1de   : > { %v2675_v46 = vadd.f32 %v4941_v53, %v2652_v49  ;;  %v2653_v51 = vmul.f32 %v4935_v9, %v2622_v20  ;;  %v3621_v43 = vadd.f32 %v3620_v30, %v3619_v44  ;;  %v3622_v57 = vpop.f32.mrb[110].mxu1  ;;  %v2629_v1 = vpop.f32.mrb[110].mxu0 }
 0x1df   : > { %v3623_v41 = vpop.f32.mrb[111].mxu1  ;;  %v2631_v56 = vpop.f32.mrb[111].mxu0 }
 0x1e0   : > { %v2691_v54 = vmax.f32 %v2675_v46, 0.0  ;;  %v2676_v8 = vadd.f32 %v4941_v53, %v2653_v51  ;;  %v3624_v40 = vadd.f32 %v3623_v41, %v3622_v57  ;;  %v2530_v62 = vadd.f32 %v3621_v43, %v4927_v2  ;;  %v2738_v61 = vpop.permute.xlu0 %2737 }
 0x1e2   : > { %v2706_v63 = vadd.f32 %v2705_v23, %v2691_v54  ;;  %v2692_v47 = vmax.f32 %v2676_v8, 0.0  ;;  %v2627_v15 = vadd.f32 %v2626_v6, %v2530_v62  ;;  %v2533_v4 = vadd.f32 %v3624_v40, %v4929_v48 }
 0x1e4   : > { %v2707_v5 = vadd.f32 %v2706_v63, %v2692_v47  ;;  %v2654_v7 = vmul.f32 %v4935_v9, %v2627_v15  ;;  %v2630_v13 = vadd.f32 %v2629_v1, %v2533_v4 }
 0x1e6   : > { %v2677_v11 = vadd.f32 %v4941_v53, %v2654_v7  ;;  %v2655_v19 = vmul.f32 %v4935_v9, %v2630_v13  ;;  %v2757_v9 = vld [vmem:[%s5054_s8] sm:$0x1] }
 0x1e8   : > { %v2693_v10 = vmax.f32 %v2677_v11, 0.0  ;;  %v2678_v14 = vadd.f32 %v4941_v53, %v2655_v19 }
 0x1ea   : > { %v2708_v16 = vadd.f32 %v2707_v5, %v2693_v10  ;;  %v2694_v22 = vmax.f32 %v2678_v14, 0.0 }
 0x1ec   : > { %v2710_v2 = vsel %vm2709_vm3, %v2694_v22, 0.0 }
 0x1ed   : > { %v2711_v55 = vadd.f32 %v2710_v2, %v2708_v16 }
 0x1ef   : > { %v2712_v24 = vrot.slane %v2711_v55, 4 }
 0x1f1   : > { %v2713_v0 = vadd.f32 %v2712_v24, %v2711_v55 }
 0x1f3   : > { %v2714_v25 = vrot.slane %v2713_v0, 2 }
 0x1f5   : > { %v2715_v48 = vadd.f32 %v2714_v25, %v2713_v0 }
 0x1f7   : > { %v2716_v52 = vrot.slane %v2715_v48, 1 }
 0x1f9   : > { %v2717_v26 = vadd.f32 %v2716_v52, %v2715_v48 }
 0x1fb   : > { %v2718_v59 = vmul.f32 0.008, %v2717_v26 }
 0x1fd   : > { %v2740_v18 = vmul.f32 %v2738_v61, %v2718_v59 }
 0x1ff   : > { %3684 = vmatmul.mubr.f32.vlgmr.msra.gmra.mrb[112].mxu0 %v2740_v18 }
 0x2d2   : > { %v2824_v53 = vpop.f32.mrb[112].mxu0 }
 0x2d3   : > { %v2825_v3 = vadd.f32 %v2824_v53, %v2757_v9  ;;  %v3685_v28 = vpop.f32.mrb[113].mxu0 }
 0x2d5   : > { %v2828_v27 = vmax.f32 %v2825_v3, 0.0 }
 0x2d7   : > { %3703 = vmatmul.mubr.msk.f32.vlgmr.msra.gmra.mrb[112].mxu1 %vm1929_vm1, %v2828_v27 }
 0x3aa   : > { %v2907_v12 = vpop.f32.mrb[112].mxu1 }
 0x3ab   : > { %v2908_v32 = vadd.f32 %v2907_v12, %v2837_v21  ;;  %v3704_v60 = vpop.f32.mrb[113].mxu1 }
 0x3ad   : > { %v2912_v35 = vsel %vm2911_vm4, %v2908_v32, -inf }
 0x3ae   : > { %2913 = vmax.xlane.f32.xlu1 %v2912_v35 }
 0x43b   : > { %v2914_v33 = vpop.xlane.xlu1 %2913 }
 0x43c   : > { %v2915_v58 = vsub.f32 %v2908_v32, %v2914_v33 }
 0x43e   : > { %v2916_v29 = vmul.f32 1.442695, %v2915_v58 }
 0x440   : > { %4082 = vpow2.f32 %v2916_v29 }
 0x44a   : > { %v4083_v36 = vpop.eup %4082 }
 0x44b   : > { %v2918_v34 = vsel %vm2911_vm4, %v4083_v36, 0.0 }
 0x44c   : > { %2919 = vadd.xlane.f32.xlu1 %v2918_v34 }
 0x4d9   : > { %v2920_v31 = vpop.xlane.xlu1 %2919 }
 0x4da   : > { %4084 = vrcp.f32 %v2920_v31 }
 0x4e4   : > { %v4085_v37 = vpop.eup %4084 }
 0x4e5   : > { %v2922_v38 = vmul.f32 %v4085_v37, %v4083_v36 }
 0x4e7   : > { %2923 = vst.msk [vmem:[%s391_s16] sm:$0x1] %vm2911_vm4, %v2922_v38 }
 0x4e8   : > { %4099 = shalt.err (!%p4096_p3)
}
 0x4e9   : > { %s4100_s13 = scalar_lea.hbm %s5003_s18, 16  ;;  %s4104_s16 = scalar_lea.hbm %s5057_s11, 32 }
 0x4ea   : > { %p4101_p4 = scmp.ne.s32.totalorder %s5003_s18, %s4100_s13  ;;  %p4105_p9 = scmp.lt.u32.totalorder %s5003_s18, %s5057_s11 }
 0x4eb   : > { %p4106_p10 = scmp.lt.u32.totalorder %s4104_s16, %s4100_s13  ;;  %p4108_p12 = scmp.lt.u32.totalorder %s4100_s13, %s5003_s18 }
 0x4ec   : > { %p4102_p7 = pnand %p4101_p4, %p4256_p5 }
 0x4ed   : > { %p4107_p11 = por %p4106_p10, %p4105_p9 }
 0x4ee   : > { %p4103_p8 = pneg %p4102_p7 }
 0x4ef   : > { %p4109_p13 = por %p4108_p12, %p4107_p11 }
 0x4f1   : > { %p4110_p0 = pnand %p4109_p13, %p4103_p8 }
 0x4f3   : > { %4113 = shalt.err (!%p4110_p0)
}
 0x4f4   : > { %3758 = dma.vmem_to_hbm [thread:$0]  (%p4256_p5), %s5005_s0, 16, %s5003_s18, %s2925_s15  }
 0x4f5 PF: > { %p3764_p1 = scmp.ge.s32.totalorder %s4148_s22, 2  ;;  %s2949_s23 = sand.u32 1, %s4136_s19  }
 0x4f6   : > { %s2950_s6 = scalar_lea.sflag [#allocation4], %s2949_s23 }
 0x4f7   : > { %p3761_p2 = pnand %p3764_p1, %p4260_p6 }
 0x4f9   : > { %4131 = dma.done.wait (!%p3761_p2), %s2950_s6, 16  }
 0x4fa   : > { %4133 = vsyncadd (!%p3761_p2), %s2950_s6, 4294967280  ;;  %p23_p3 = scmp.ge.s32.totalorder %s4243_s24, 4   ;;  %s5062_s19 = smov %s4140_s20 }
 0x4fb   : > { %s5063_s20 = smov %s4144_s21  ;;  %s5064_s21 = smov %s4254_s27 }
 0x4fc   : > { %s5065_s22 = smov %s4243_s24  ;;  %25 = sbr.rel (!%p23_p3) target bundleno = 6 (0x6), region = 102 }
 0x503   :  { %2954 = vsyncpa [#allocation4], 1 }
 0x504   :  { %2956 = vsyncpa [#allocation4 + $0x1], 1 }

</bundles_post_ra>
